<compile_context>
chip_gen: v5e
topology: v5e:2x2
jax: 0.10.0
libtpu: 0.0.40
codegen_flags: <defaults>
</compile_context>

<pallas_src>
import functools

import jax
import jax.numpy as jnp
from jax.experimental import pallas as pl
from jax.experimental.pallas import tpu as pltpu

KW = 5            # conv kernel width
PAD = 2           # 'same' padding for kernel 5, stride 1
ROW0 = 8          # sublane-aligned leading margin (>= PAD) in conv scratch
N_CONV = 8
CONV_OUT_DTYPE = jnp.bfloat16     # conv -> FC boundary dtype
FC1_WEIGHT_DTYPE = jnp.bfloat16   # dominant HBM transfer halved vs f32


# ------------------------------- helpers ----------------------------------- #

def _pick_batch_block(B, max_blk=8):
    """Largest divisor of B that is <= max_blk, preferring >=2 grid blocks
    so the grid still shards across both v7x TensorCores."""
    divisors = [d for d in range(1, min(B, max_blk) + 1) if B % d == 0]
    multi = [d for d in divisors if B // d >= 2]
    return max(multi) if multi else max(divisors)


def _pick_fc1_tile(K, target=2048):
    """Largest multiple of 128 that divides K and is <= target.
    Falls back to K (single block) only if no such divisor exists."""
    best = 0
    tk = 128
    while tk <= min(K, target):
        if K % tk == 0:
            best = tk
        tk += 128
    return best if best else K


def _vmem_limit_bytes(request_bytes):
    """Explicit scoped-VMEM limit: comfortably above the estimated need and
    above v5e's 16 MiB default, but below the smallest per-core VMEM (v7x has
    64 MiB physical)."""
    return int(min(max(int(request_bytes) + (8 << 20), 24 << 20), 40 << 20))


# ----------------------------- Pallas kernels ------------------------------ #

def conv_stack_kernel(x_ref, *refs, n_layers, L, dim, b_blk):
    """Fused conv stack: both shared-weight branches x 8 (Conv1d+BN+ReLU).

    refs layout (per grid step = b_blk batch elements):
      refs[0 : 3n]        : per layer (w (KW,Cin,Cout), scale (1,Cout), shift (1,Cout))
      refs[3n]            : output block (b_blk, L, 2*C_last)
      refs[3n+1 : ]       : n VMEM scratch buffers (ROW0 + R + PAD, C_i)
    """
    p_refs = refs[:3 * n_layers]
    o_ref = refs[3 * n_layers]
    bufs = refs[3 * n_layers + 1:]

    n_slabs = 2 * b_blk
    pitch = L + PAD                 # slab data rows + inter-slab zero gap
    R = n_slabs * pitch             # row span covered by every layer matmul

    # Boolean column mask: True on curve rows, False on the PAD gap rows.
    row_in_slab = jax.lax.broadcasted_iota(jnp.int32, (R, 1), 0) % pitch
    valid = row_in_slab < L

    # Stage the inputs.  buf[0] is tiny (dim lanes): zero fully, then write the
    # slabs.  For the other buffers only the leading/trailing margin rows ever
    # need zeros -- every row in [ROW0, ROW0+R) is overwritten by the masked
    # store below -- so full-buffer zeroing is gone.
    bufs[0][...] = jnp.zeros_like(bufs[0])
    for buf in bufs[1:]:
        c = buf.shape[1]
        buf[0:ROW0, :] = jnp.zeros((ROW0, c), jnp.float32)
        buf[ROW0 + R:ROW0 + R + PAD, :] = jnp.zeros((PAD, c), jnp.float32)

    for bb in range(b_blk):
        for br in range(2):                       # two shared-weight branches
            s = 2 * bb + br
            r0 = ROW0 + s * pitch
            bufs[0][r0:r0 + L, :] = x_ref[bb, :, br * dim:(br + 1) * dim]

    c_last = p_refs[3 * (n_layers - 1)].shape[2]

    for i in range(n_layers):
        w_ref = p_refs[3 * i]
        sc_ref = p_refs[3 * i + 1]
        sh_ref = p_refs[3 * i + 2]
        src = bufs[i]
        c_out = w_ref.shape[2]

        acc = jnp.zeros((R, c_out), jnp.float32)
        for k in range(KW):        # 5 shifted taps, each one batched MXU matmul
            r0 = ROW0 - PAD + k
            acc += jnp.dot(src[r0:r0 + R, :], w_ref[k],
                           preferred_element_type=jnp.float32)
        y = jnp.maximum(acc * sc_ref[...] + sh_ref[...], 0.0)

        if i + 1 < n_layers:
            # Select (not multiply) zeroes the gap rows so they act as 'same'
            # padding halos for the next layer, even if margin rows held junk.
            bufs[i + 1][ROW0:ROW0 + R, :] = jnp.where(valid, y, 0.0)
        else:
            # branch 0 -> lanes [0:c_last), branch 1 -> lanes [c_last:2*c_last)
            for bb in range(b_blk):
                for br in range(2):
                    s = 2 * bb + br
                    rs = s * pitch
                    o_ref[bb, :, br * c_last:(br + 1) * c_last] = (
                        y[rs:rs + L, :].astype(o_ref.dtype))


def fc_stack_kernel(h_ref, w1_ref, b1_ref, w2_ref, b2_ref, w3_ref, b3_ref,
                    w4_ref, b4_ref, w5_ref, b5_ref, o_ref, acc_ref):
    """Fused FC stack. Grid axis = K tiles of FC1 (reduction, 'arbitrary').

    FC1 accumulates into f32 VMEM scratch (bf16 activations x bf16 weight); the
    small FC2..FC5 layers (+ReLUs) run in the last grid step on the resident
    accumulator.
    """
    k = pl.program_id(0)

    @pl.when(k == 0)
    def _():
        acc_ref[...] = jnp.zeros_like(acc_ref)

    acc_ref[...] += jnp.dot(h_ref[...], w1_ref[...],
                            preferred_element_type=jnp.float32)

    @pl.when(k == pl.num_programs(0) - 1)
    def _():
        h1 = jnp.maximum(acc_ref[...] + b1_ref[...], 0.0)
        h2 = jnp.maximum(
            jnp.dot(h1, w2_ref[...], preferred_element_type=jnp.float32)
            + b2_ref[...], 0.0)
        h3 = jnp.maximum(
            jnp.dot(h2, w3_ref[...], preferred_element_type=jnp.float32)
            + b3_ref[...], 0.0)
        h4 = jnp.maximum(
            jnp.dot(h3, w4_ref[...], preferred_element_type=jnp.float32)
            + b4_ref[...], 0.0)
        o_ref[...] = (jnp.dot(h4, w5_ref[...],
                              preferred_element_type=jnp.float32)
                      + b5_ref[...])


# ------------------------------ wrappers ----------------------------------- #

def conv_stack(x, conv_params, dim):
    """x: (B, L, 2*dim) f32 -> (B, L, 2*256*dim) bf16; single fused pallas_call."""
    B, L, _ = x.shape
    n_layers = len(conv_params)
    c_last = conv_params[-1][0].shape[2]

    b_blk = _pick_batch_block(B)
    n_blocks = B // b_blk
    n_slabs = 2 * b_blk
    pitch = L + PAD
    R = n_slabs * pitch
    total_rows = ROW0 + R + PAD

    flat_params = []
    in_specs = [pl.BlockSpec((b_blk, L, 2 * dim), lambda b: (b, 0, 0))]
    for (w, sc, sh) in conv_params:
        flat_params += [w, sc, sh]
        in_specs += [
            pl.BlockSpec(w.shape, lambda b: (0, 0, 0)),   # grid-invariant: DMA'd once
            pl.BlockSpec(sc.shape, lambda b: (0, 0)),
            pl.BlockSpec(sh.shape, lambda b: (0, 0)),
        ]

    scratch = [pltpu.VMEM((total_rows, dim), jnp.float32)]
    for (w, _, _) in conv_params[:-1]:
        scratch.append(pltpu.VMEM((total_rows, w.shape[2]), jnp.float32))

    out_itemsize = jnp.dtype(CONV_OUT_DTYPE).itemsize
    flops = 0
    param_bytes = 0
    for (w, sc, sh) in conv_params:
        kw, cin, cout = w.shape
        flops += 2 * B * 2 * L * kw * cin * cout
        param_bytes += int(w.size + sc.size + sh.size) * 4
    bytes_accessed = (int(x.size) * 4 + param_bytes
                      + B * L * 2 * c_last * out_itemsize)

    scratch_bytes = total_rows * dim * 4 + sum(
        total_rows * w.shape[2] * 4 for (w, _, _) in conv_params[:-1])
    block_bytes = 2 * (b_blk * L * 2 * dim * 4
                       + b_blk * L * 2 * c_last * out_itemsize)
    vmem_request = 2 * param_bytes + block_bytes + scratch_bytes

    return pl.pallas_call(
        functools.partial(conv_stack_kernel, n_layers=n_layers, L=L, dim=dim,
                          b_blk=b_blk),
        out_shape=jax.ShapeDtypeStruct((B, L, 2 * c_last), CONV_OUT_DTYPE),
        grid=(n_blocks,),
        in_specs=in_specs,
        out_specs=pl.BlockSpec((b_blk, L, 2 * c_last), lambda b: (b, 0, 0)),
        scratch_shapes=scratch,
        compiler_params=pltpu.CompilerParams(
            dimension_semantics=("parallel",),
            vmem_limit_bytes=_vmem_limit_bytes(vmem_request)),
        cost_estimate=pl.CostEstimate(flops=int(flops), transcendentals=0,
                                      bytes_accessed=int(bytes_accessed)),
    )(x, *flat_params)


def fc_stack(h, fc_params):
    """h: (B, K) bf16 -> (B, 1) f32. Single fused pallas_call, FC1 tiled over K."""
    B, K = h.shape
    (w1, b1), (w2, b2), (w3, b3), (w4, b4), (w5, b5) = fc_params
    D1 = w1.shape[1]
    tk = _pick_fc1_tile(K)          # multiple-of-128 divisor of K, <= 2048
    nk = K // tk

    const2 = lambda k: (0, 0)

    small = [(w2, b2), (w3, b3), (w4, b4), (w5, b5)]
    small_bytes = sum(int(w.size + b.size) * 4 for (w, b) in small)
    flops = 2 * B * (K * D1 + sum(int(w.size) for (w, _) in small))
    bytes_accessed = (int(h.size) * h.dtype.itemsize
                      + int(w1.size) * jnp.dtype(w1.dtype).itemsize
                      + int(b1.size) * 4 + small_bytes + B * 4)
    vmem_request = (2 * (B * tk * h.dtype.itemsize
                         + tk * D1 * jnp.dtype(w1.dtype).itemsize)
                    + 2 * (small_bytes + int(b1.size) * 4)
                    + B * D1 * 4 + 2 * B * 4)

    return pl.pallas_call(
        fc_stack_kernel,
        out_shape=jax.ShapeDtypeStruct((B, 1), jnp.float32),
        grid=(nk,),
        in_specs=[
            pl.BlockSpec((B, tk), lambda k: (0, k)),      # activations (bf16)
            pl.BlockSpec((tk, D1), lambda k: (k, 0)),     # FC1 weight (bf16)
            pl.BlockSpec(b1.shape, const2),
            pl.BlockSpec(w2.shape, const2),
            pl.BlockSpec(b2.shape, const2),
            pl.BlockSpec(w3.shape, const2),
            pl.BlockSpec(b3.shape, const2),
            pl.BlockSpec(w4.shape, const2),
            pl.BlockSpec(b4.shape, const2),
            pl.BlockSpec(w5.shape, const2),
            pl.BlockSpec(b5.shape, const2),
        ],
        out_specs=pl.BlockSpec((B, 1), lambda k: (0, 0)),
        scratch_shapes=[pltpu.VMEM((B, D1), jnp.float32)],
        compiler_params=pltpu.CompilerParams(
            dimension_semantics=("arbitrary",),
            vmem_limit_bytes=_vmem_limit_bytes(vmem_request)),
        cost_estimate=pl.CostEstimate(flops=int(flops), transcendentals=0,
                                      bytes_accessed=int(bytes_accessed)),
    )(h, w1, b1, w2, b2, w3, b3, w4, b4, w5, b5)


# --------------------------- parameter creation ----------------------------- #

def init_params(dim, length, key):
    """Deterministic synthetic parameters matching the PyTorch module shapes."""
    eps = 1e-5
    params = {"conv": [], "fc": []}
    c_in = dim
    for i in range(N_CONV):  # 8 conv+BN+ReLU blocks: dim -> 2dim -> ... -> 256dim
        c_out = dim * (2 ** (i + 1))
        key, k1, k2, k3, k4, k5 = jax.random.split(key, 6)
        # PyTorch Conv1d weight is (C_out, C_in, K); stored here as (K, C_in, C_out).
        w = 0.1 * jax.random.normal(k1, (KW, c_in, c_out), jnp.float32)
        gamma = 1.0 + 0.1 * jax.random.normal(k2, (c_out,), jnp.float32)
        beta = 0.1 * jax.random.normal(k3, (c_out,), jnp.float32)
        r_mean = 0.1 * jax.random.normal(k4, (c_out,), jnp.float32)
        r_var = jax.random.uniform(k5, (c_out,), jnp.float32, 0.5, 1.5)
        scale = gamma / jnp.sqrt(r_var + eps)
        shift = beta - r_mean * scale
        params["conv"].append((w, scale.reshape(1, -1), shift.reshape(1, -1)))
        c_in = c_out

    fc_dims = [256 * dim * length * 2, 256 * dim, 64 * dim, 16 * dim, 4 * dim, 1]
    for i in range(5):
        key, k1, k2 = jax.random.split(key, 3)
        din, dout = fc_dims[i], fc_dims[i + 1]
        # PyTorch Linear weight is (out, in); stored here transposed (in, out).
        w = jax.random.normal(k1, (din, dout), jnp.float32) / jnp.sqrt(float(din))
        b = 0.01 * jax.random.normal(k2, (1, dout), jnp.float32)
        if i == 0:
            w = w.astype(FC1_WEIGHT_DTYPE)  # halve the dominant HBM transfer
        params["fc"].append((w, b))
    return params


# ------------------------------ forward pass -------------------------------- #

def network_forward(params, x, *, dim):
    """x: (B, length, 2*dim) -> dist: (B,)  — mirrors Network.forward."""
    B = x.shape[0]
    out_cat = conv_stack(x, params["conv"], dim)     # (B, L, 512*dim), torch cat order
    h = out_cat.reshape(B, -1)                       # free reshape == nn.Flatten order
    dist = fc_stack(h, params["fc"])                 # (B, 1)
    return jnp.squeeze(dist, axis=-1)                # (B,)


# --------------------------------- main -------------------------------------- #

if __name__ == "__main__":
    dim, length, batch = 2, 8, 2
    key = jax.random.PRNGKey(0)
    kp, kx = jax.random.split(key)

    params = init_params(dim, length, kp)
    x = jax.random.normal(kx, (batch, length, 2 * dim), jnp.float32)

    fwd = jax.jit(functools.partial(network_forward, dim=dim))
    dist = jax.block_until_ready(fwd(params, x))
    assert dist.shape == (batch,), dist.shape
    assert bool(jnp.all(jnp.isfinite(dist))), "non-finite output"
    print("KERNEL_OK")
</pallas_src>

<mosaic_0001>
module attributes {stable_mosaic.version = 11 : i64} {
  func.func @conv_stack_kernel(%arg0: i32, %arg1: memref<1x8x4xf32, #tpu.memory_space<vmem>>, %arg2: memref<5x2x4xf32, #tpu.memory_space<vmem>>, %arg3: memref<1x4xf32, #tpu.memory_space<vmem>>, %arg4: memref<1x4xf32, #tpu.memory_space<vmem>>, %arg5: memref<5x4x8xf32, #tpu.memory_space<vmem>>, %arg6: memref<1x8xf32, #tpu.memory_space<vmem>>, %arg7: memref<1x8xf32, #tpu.memory_space<vmem>>, %arg8: memref<5x8x16xf32, #tpu.memory_space<vmem>>, %arg9: memref<1x16xf32, #tpu.memory_space<vmem>>, %arg10: memref<1x16xf32, #tpu.memory_space<vmem>>, %arg11: memref<5x16x32xf32, #tpu.memory_space<vmem>>, %arg12: memref<1x32xf32, #tpu.memory_space<vmem>>, %arg13: memref<1x32xf32, #tpu.memory_space<vmem>>, %arg14: memref<5x32x64xf32, #tpu.memory_space<vmem>>, %arg15: memref<1x64xf32, #tpu.memory_space<vmem>>, %arg16: memref<1x64xf32, #tpu.memory_space<vmem>>, %arg17: memref<5x64x128xf32, #tpu.memory_space<vmem>>, %arg18: memref<1x128xf32, #tpu.memory_space<vmem>>, %arg19: memref<1x128xf32, #tpu.memory_space<vmem>>, %arg20: memref<5x128x256xf32, #tpu.memory_space<vmem>>, %arg21: memref<1x256xf32, #tpu.memory_space<vmem>>, %arg22: memref<1x256xf32, #tpu.memory_space<vmem>>, %arg23: memref<5x256x512xf32, #tpu.memory_space<vmem>>, %arg24: memref<1x512xf32, #tpu.memory_space<vmem>>, %arg25: memref<1x512xf32, #tpu.memory_space<vmem>>, %arg26: memref<1x8x1024xbf16, #tpu.memory_space<vmem>>, %arg27: memref<30x2xf32, #tpu.memory_space<vmem>>, %arg28: memref<30x4xf32, #tpu.memory_space<vmem>>, %arg29: memref<30x8xf32, #tpu.memory_space<vmem>>, %arg30: memref<30x16xf32, #tpu.memory_space<vmem>>, %arg31: memref<30x32xf32, #tpu.memory_space<vmem>>, %arg32: memref<30x64xf32, #tpu.memory_space<vmem>>, %arg33: memref<30x128xf32, #tpu.memory_space<vmem>>, %arg34: memref<30x256xf32, #tpu.memory_space<vmem>>) attributes {dimension_semantics = [#tpu.dimension_semantics<parallel>], iteration_bounds = array<i64: 2>, scalar_prefetch = 0 : i64, scratch_operands = 8 : i64, tpu.core_type = #tpu.core_type<tc>, window_params = [{transform_indices = @transform_0, window_bounds = array<i64: 1, 8, 4>}, {pipeline_mode = #tpu.pipeline_mode<synchronous>, transform_indices = @transform_1, window_bounds = array<i64: 5, 2, 4>}, {pipeline_mode = #tpu.pipeline_mode<synchronous>, transform_indices = @transform_2, window_bounds = array<i64: 1, 4>}, {pipeline_mode = #tpu.pipeline_mode<synchronous>, transform_indices = @transform_3, window_bounds = array<i64: 1, 4>}, {pipeline_mode = #tpu.pipeline_mode<synchronous>, transform_indices = @transform_4, window_bounds = array<i64: 5, 4, 8>}, {pipeline_mode = #tpu.pipeline_mode<synchronous>, transform_indices = @transform_5, window_bounds = array<i64: 1, 8>}, {pipeline_mode = #tpu.pipeline_mode<synchronous>, transform_indices = @transform_6, window_bounds = array<i64: 1, 8>}, {pipeline_mode = #tpu.pipeline_mode<synchronous>, transform_indices = @transform_7, window_bounds = array<i64: 5, 8, 16>}, {pipeline_mode = #tpu.pipeline_mode<synchronous>, transform_indices = @transform_8, window_bounds = array<i64: 1, 16>}, {pipeline_mode = #tpu.pipeline_mode<synchronous>, transform_indices = @transform_9, window_bounds = array<i64: 1, 16>}, {pipeline_mode = #tpu.pipeline_mode<synchronous>, transform_indices = @transform_10, window_bounds = array<i64: 5, 16, 32>}, {pipeline_mode = #tpu.pipeline_mode<synchronous>, transform_indices = @transform_11, window_bounds = array<i64: 1, 32>}, {pipeline_mode = #tpu.pipeline_mode<synchronous>, transform_indices = @transform_12, window_bounds = array<i64: 1, 32>}, {pipeline_mode = #tpu.pipeline_mode<synchronous>, transform_indices = @transform_13, window_bounds = array<i64: 5, 32, 64>}, {pipeline_mode = #tpu.pipeline_mode<synchronous>, transform_indices = @transform_14, window_bounds = array<i64: 1, 64>}, {pipeline_mode = #tpu.pipeline_mode<synchronous>, transform_indices = @transform_15, window_bounds = array<i64: 1, 64>}, {pipeline_mode = #tpu.pipeline_mode<synchronous>, transform_indices = @transform_16, window_bounds = array<i64: 5, 64, 128>}, {pipeline_mode = #tpu.pipeline_mode<synchronous>, transform_indices = @transform_17, window_bounds = array<i64: 1, 128>}, {pipeline_mode = #tpu.pipeline_mode<synchronous>, transform_indices = @transform_18, window_bounds = array<i64: 1, 128>}, {pipeline_mode = #tpu.pipeline_mode<synchronous>, transform_indices = @transform_19, window_bounds = array<i64: 5, 128, 256>}, {pipeline_mode = #tpu.pipeline_mode<synchronous>, transform_indices = @transform_20, window_bounds = array<i64: 1, 256>}, {pipeline_mode = #tpu.pipeline_mode<synchronous>, transform_indices = @transform_21, window_bounds = array<i64: 1, 256>}, {pipeline_mode = #tpu.pipeline_mode<synchronous>, transform_indices = @transform_22, window_bounds = array<i64: 5, 256, 512>}, {pipeline_mode = #tpu.pipeline_mode<synchronous>, transform_indices = @transform_23, window_bounds = array<i64: 1, 512>}, {pipeline_mode = #tpu.pipeline_mode<synchronous>, transform_indices = @transform_24, window_bounds = array<i64: 1, 512>}, {transform_indices = @transform_25, window_bounds = array<i64: 1, 8, 1024>}]} {
    %0 = tpu.iota {dimensions = array<i32: 0>} : vector<20x1xi32>
    %c10_i32 = arith.constant 10 : i32
    %c0_i32 = arith.constant 0 : i32
    %1 = arith.cmpi eq, %c10_i32, %c0_i32 : i32
    %c1_i32 = arith.constant 1 : i32
    %2 = arith.select %1, %c1_i32, %c10_i32 : i32
    %3 = vector.broadcast %2 : i32 to vector<20x1xi32>
    %4 = arith.remsi %0, %3 : vector<20x1xi32>
    %c0_i32_0 = arith.constant 0 : i32
    %5 = vector.broadcast %c0_i32_0 : i32 to vector<20x1xi32>
    %6 = arith.cmpi ne, %4, %5 : vector<20x1xi32>
    %c0_i32_1 = arith.constant 0 : i32
    %7 = vector.broadcast %c0_i32_1 : i32 to vector<20x1xi32>
    %8 = arith.cmpi slt, %4, %7 : vector<20x1xi32>
    %c0_i32_2 = arith.constant 0 : i32
    %9 = arith.cmpi slt, %2, %c0_i32_2 : i32
    %10 = vector.broadcast %9 : i1 to vector<20x1xi1>
    %11 = vector.broadcast %10 : vector<20x1xi1> to vector<20x1xi1>
    %12 = arith.xori %8, %11 : vector<20x1xi1>
    %13 = arith.andi %12, %6 : vector<20x1xi1>
    %14 = vector.broadcast %2 : i32 to vector<20x1xi32>
    %15 = arith.addi %4, %14 : vector<20x1xi32>
    %16 = arith.select %13, %15, %4 : vector<20x1xi1>, vector<20x1xi32>
    %c8_i32 = arith.constant 8 : i32
    %17 = vector.broadcast %c8_i32 : i32 to vector<20x1xi32>
    %18 = arith.cmpi slt, %16, %17 : vector<20x1xi32>
    %cst = arith.constant 0.000000e+00 : f32
    %19 = vector.broadcast %cst : f32 to vector<30x2xf32>
    %c0 = arith.constant 0 : index
    %c0_3 = arith.constant 0 : index
    %20 = vector.load %arg27[%c0, %c0_3] : memref<30x2xf32, #tpu.memory_space<vmem>>, vector<30x2xf32>
    tpu.vector_store %arg27[%c0, %c0_3], %19 {strides = array<i32>} : memref<30x2xf32, #tpu.memory_space<vmem>>, vector<30x2xf32>,
    %cst_4 = arith.constant 0.000000e+00 : f32
    %21 = vector.broadcast %cst_4 : f32 to vector<8x4xf32>
    %c0_5 = arith.constant 0 : index
    %c0_6 = arith.constant 0 : index
    %22 = vector.load %arg28[%c0_5, %c0_6] : memref<30x4xf32, #tpu.memory_space<vmem>>, vector<8x4xf32>
    tpu.vector_store %arg28[%c0_5, %c0_6], %21 {strides = array<i32>} : memref<30x4xf32, #tpu.memory_space<vmem>>, vector<8x4xf32>,
    %cst_7 = arith.constant 0.000000e+00 : f32
    %23 = vector.broadcast %cst_7 : f32 to vector<2x4xf32>
    %c28 = arith.constant 28 : index
    %c0_8 = arith.constant 0 : index
    %24 = vector.load %arg28[%c28, %c0_8] : memref<30x4xf32, #tpu.memory_space<vmem>>, vector<2x4xf32>
    tpu.vector_store %arg28[%c28, %c0_8], %23 {strides = array<i32>} : memref<30x4xf32, #tpu.memory_space<vmem>>, vector<2x4xf32>,
    %cst_9 = arith.constant 0.000000e+00 : f32
    %25 = vector.broadcast %cst_9 : f32 to vector<8x8xf32>
    %c0_10 = arith.constant 0 : index
    %c0_11 = arith.constant 0 : index
    %26 = vector.load %arg29[%c0_10, %c0_11] : memref<30x8xf32, #tpu.memory_space<vmem>>, vector<8x8xf32>
    tpu.vector_store %arg29[%c0_10, %c0_11], %25 {strides = array<i32>} : memref<30x8xf32, #tpu.memory_space<vmem>>, vector<8x8xf32>,
    %cst_12 = arith.constant 0.000000e+00 : f32
    %27 = vector.broadcast %cst_12 : f32 to vector<2x8xf32>
    %c28_13 = arith.constant 28 : index
    %c0_14 = arith.constant 0 : index
    %28 = vector.load %arg29[%c28_13, %c0_14] : memref<30x8xf32, #tpu.memory_space<vmem>>, vector<2x8xf32>
    tpu.vector_store %arg29[%c28_13, %c0_14], %27 {strides = array<i32>} : memref<30x8xf32, #tpu.memory_space<vmem>>, vector<2x8xf32>,
    %cst_15 = arith.constant 0.000000e+00 : f32
    %29 = vector.broadcast %cst_15 : f32 to vector<8x16xf32>
    %c0_16 = arith.constant 0 : index
    %c0_17 = arith.constant 0 : index
    %30 = vector.load %arg30[%c0_16, %c0_17] : memref<30x16xf32, #tpu.memory_space<vmem>>, vector<8x16xf32>
    tpu.vector_store %arg30[%c0_16, %c0_17], %29 {strides = array<i32>} : memref<30x16xf32, #tpu.memory_space<vmem>>, vector<8x16xf32>,
    %cst_18 = arith.constant 0.000000e+00 : f32
    %31 = vector.broadcast %cst_18 : f32 to vector<2x16xf32>
    %c28_19 = arith.constant 28 : index
    %c0_20 = arith.constant 0 : index
    %32 = vector.load %arg30[%c28_19, %c0_20] : memref<30x16xf32, #tpu.memory_space<vmem>>, vector<2x16xf32>
    tpu.vector_store %arg30[%c28_19, %c0_20], %31 {strides = array<i32>} : memref<30x16xf32, #tpu.memory_space<vmem>>, vector<2x16xf32>,
    %cst_21 = arith.constant 0.000000e+00 : f32
    %33 = vector.broadcast %cst_21 : f32 to vector<8x32xf32>
    %c0_22 = arith.constant 0 : index
    %c0_23 = arith.constant 0 : index
    %34 = vector.load %arg31[%c0_22, %c0_23] : memref<30x32xf32, #tpu.memory_space<vmem>>, vector<8x32xf32>
    tpu.vector_store %arg31[%c0_22, %c0_23], %33 {strides = array<i32>} : memref<30x32xf32, #tpu.memory_space<vmem>>, vector<8x32xf32>,
    %cst_24 = arith.constant 0.000000e+00 : f32
    %35 = vector.broadcast %cst_24 : f32 to vector<2x32xf32>
    %c28_25 = arith.constant 28 : index
    %c0_26 = arith.constant 0 : index
    %36 = vector.load %arg31[%c28_25, %c0_26] : memref<30x32xf32, #tpu.memory_space<vmem>>, vector<2x32xf32>
    tpu.vector_store %arg31[%c28_25, %c0_26], %35 {strides = array<i32>} : memref<30x32xf32, #tpu.memory_space<vmem>>, vector<2x32xf32>,
    %cst_27 = arith.constant 0.000000e+00 : f32
    %37 = vector.broadcast %cst_27 : f32 to vector<8x64xf32>
    %c0_28 = arith.constant 0 : index
    %c0_29 = arith.constant 0 : index
    %38 = vector.load %arg32[%c0_28, %c0_29] : memref<30x64xf32, #tpu.memory_space<vmem>>, vector<8x64xf32>
    tpu.vector_store %arg32[%c0_28, %c0_29], %37 {strides = array<i32>} : memref<30x64xf32, #tpu.memory_space<vmem>>, vector<8x64xf32>,
    %cst_30 = arith.constant 0.000000e+00 : f32
    %39 = vector.broadcast %cst_30 : f32 to vector<2x64xf32>
    %c28_31 = arith.constant 28 : index
    %c0_32 = arith.constant 0 : index
    %40 = vector.load %arg32[%c28_31, %c0_32] : memref<30x64xf32, #tpu.memory_space<vmem>>, vector<2x64xf32>
    tpu.vector_store %arg32[%c28_31, %c0_32], %39 {strides = array<i32>} : memref<30x64xf32, #tpu.memory_space<vmem>>, vector<2x64xf32>,
    %cst_33 = arith.constant 0.000000e+00 : f32
    %41 = vector.broadcast %cst_33 : f32 to vector<8x128xf32>
    %c0_34 = arith.constant 0 : index
    %c0_35 = arith.constant 0 : index
    %42 = vector.load %arg33[%c0_34, %c0_35] : memref<30x128xf32, #tpu.memory_space<vmem>>, vector<8x128xf32>
    tpu.vector_store %arg33[%c0_34, %c0_35], %41 {strides = array<i32>} : memref<30x128xf32, #tpu.memory_space<vmem>>, vector<8x128xf32>,
    %cst_36 = arith.constant 0.000000e+00 : f32
    %43 = vector.broadcast %cst_36 : f32 to vector<2x128xf32>
    %c28_37 = arith.constant 28 : index
    %c0_38 = arith.constant 0 : index
    %44 = vector.load %arg33[%c28_37, %c0_38] : memref<30x128xf32, #tpu.memory_space<vmem>>, vector<2x128xf32>
    tpu.vector_store %arg33[%c28_37, %c0_38], %43 {strides = array<i32>} : memref<30x128xf32, #tpu.memory_space<vmem>>, vector<2x128xf32>,
    %cst_39 = arith.constant 0.000000e+00 : f32
    %45 = vector.broadcast %cst_39 : f32 to vector<8x256xf32>
    %c0_40 = arith.constant 0 : index
    %c0_41 = arith.constant 0 : index
    %46 = vector.load %arg34[%c0_40, %c0_41] : memref<30x256xf32, #tpu.memory_space<vmem>>, vector<8x256xf32>
    tpu.vector_store %arg34[%c0_40, %c0_41], %45 {strides = array<i32>} : memref<30x256xf32, #tpu.memory_space<vmem>>, vector<8x256xf32>,
    %cst_42 = arith.constant 0.000000e+00 : f32
    %47 = vector.broadcast %cst_42 : f32 to vector<2x256xf32>
    %c28_43 = arith.constant 28 : index
    %c0_44 = arith.constant 0 : index
    %48 = vector.load %arg34[%c28_43, %c0_44] : memref<30x256xf32, #tpu.memory_space<vmem>>, vector<2x256xf32>
    tpu.vector_store %arg34[%c28_43, %c0_44], %47 {strides = array<i32>} : memref<30x256xf32, #tpu.memory_space<vmem>>, vector<2x256xf32>,
    %c0_45 = arith.constant 0 : index
    %c0_46 = arith.constant 0 : index
    %c0_47 = arith.constant 0 : index
    %49 = vector.load %arg1[%c0_45, %c0_46, %c0_47] : memref<1x8x4xf32, #tpu.memory_space<vmem>>, vector<1x8x2xf32>
    %50 = vector.shape_cast %49 : vector<1x8x2xf32> to vector<8x2xf32>
    %c8 = arith.constant 8 : index
    %c0_48 = arith.constant 0 : index
    %51 = vector.load %arg27[%c8, %c0_48] : memref<30x2xf32, #tpu.memory_space<vmem>>, vector<8x2xf32>
    tpu.vector_store %arg27[%c8, %c0_48], %50 {strides = array<i32>} : memref<30x2xf32, #tpu.memory_space<vmem>>, vector<8x2xf32>,
    %c0_49 = arith.constant 0 : index
    %c0_50 = arith.constant 0 : index
    %c2 = arith.constant 2 : index
    %52 = vector.load %arg1[%c0_49, %c0_50, %c2] : memref<1x8x4xf32, #tpu.memory_space<vmem>>, vector<1x8x2xf32>
    %53 = vector.shape_cast %52 : vector<1x8x2xf32> to vector<8x2xf32>
    %c18 = arith.constant 18 : index
    %c0_51 = arith.constant 0 : index
    %54 = vector.load %arg27[%c18, %c0_51] : memref<30x2xf32, #tpu.memory_space<vmem>>, vector<8x2xf32>
    tpu.vector_store %arg27[%c18, %c0_51], %53 {strides = array<i32>} : memref<30x2xf32, #tpu.memory_space<vmem>>, vector<8x2xf32>,
    %cst_52 = arith.constant 0.000000e+00 : f32
    %55 = vector.broadcast %cst_52 : f32 to vector<20x4xf32>
    %c6 = arith.constant 6 : index
    %c0_53 = arith.constant 0 : index
    %56 = vector.load %arg27[%c6, %c0_53] : memref<30x2xf32, #tpu.memory_space<vmem>>, vector<20x2xf32>
    %c0_54 = arith.constant 0 : index
    %c0_55 = arith.constant 0 : index
    %c0_56 = arith.constant 0 : index
    %57 = vector.load %arg2[%c0_54, %c0_55, %c0_56] : memref<5x2x4xf32, #tpu.memory_space<vmem>>, vector<1x2x4xf32>
    %58 = vector.shape_cast %57 : vector<1x2x4xf32> to vector<2x4xf32>
    %cst_57 = arith.constant dense<0.000000e+00> : vector<20x4xf32>
    %59 = tpu.matmul %56, %58, %cst_57 {dimension_numbers = #tpu.dot_dimension_numbers<[1], [0], [0], [1], [0, 0, 1, 1], [], []>} : vector<20x2xf32>, vector<2x4xf32>, vector<20x4xf32> -> vector<20x4xf32>
    %60 = arith.addf %55, %59 : vector<20x4xf32>
    %c7 = arith.constant 7 : index
    %c0_58 = arith.constant 0 : index
    %61 = vector.load %arg27[%c7, %c0_58] : memref<30x2xf32, #tpu.memory_space<vmem>>, vector<20x2xf32>
    %c1 = arith.constant 1 : index
    %c0_59 = arith.constant 0 : index
    %c0_60 = arith.constant 0 : index
    %62 = vector.load %arg2[%c1, %c0_59, %c0_60] : memref<5x2x4xf32, #tpu.memory_space<vmem>>, vector<1x2x4xf32>
    %63 = vector.shape_cast %62 : vector<1x2x4xf32> to vector<2x4xf32>
    %cst_61 = arith.constant dense<0.000000e+00> : vector<20x4xf32>
    %64 = tpu.matmul %61, %63, %cst_61 {dimension_numbers = #tpu.dot_dimension_numbers<[1], [0], [0], [1], [0, 0, 1, 1], [], []>} : vector<20x2xf32>, vector<2x4xf32>, vector<20x4xf32> -> vector<20x4xf32>
    %65 = arith.addf %60, %64 : vector<20x4xf32>
    %c8_62 = arith.constant 8 : index
    %c0_63 = arith.constant 0 : index
    %66 = vector.load %arg27[%c8_62, %c0_63] : memref<30x2xf32, #tpu.memory_space<vmem>>, vector<20x2xf32>
    %c2_64 = arith.constant 2 : index
    %c0_65 = arith.constant 0 : index
    %c0_66 = arith.constant 0 : index
    %67 = vector.load %arg2[%c2_64, %c0_65, %c0_66] : memref<5x2x4xf32, #tpu.memory_space<vmem>>, vector<1x2x4xf32>
    %68 = vector.shape_cast %67 : vector<1x2x4xf32> to vector<2x4xf32>
    %cst_67 = arith.constant dense<0.000000e+00> : vector<20x4xf32>
    %69 = tpu.matmul %66, %68, %cst_67 {dimension_numbers = #tpu.dot_dimension_numbers<[1], [0], [0], [1], [0, 0, 1, 1], [], []>} : vector<20x2xf32>, vector<2x4xf32>, vector<20x4xf32> -> vector<20x4xf32>
    %70 = arith.addf %65, %69 : vector<20x4xf32>
    %c9 = arith.constant 9 : index
    %c0_68 = arith.constant 0 : index
    %71 = vector.load %arg27[%c9, %c0_68] : memref<30x2xf32, #tpu.memory_space<vmem>>, vector<20x2xf32>
    %c3 = arith.constant 3 : index
    %c0_69 = arith.constant 0 : index
    %c0_70 = arith.constant 0 : index
    %72 = vector.load %arg2[%c3, %c0_69, %c0_70] : memref<5x2x4xf32, #tpu.memory_space<vmem>>, vector<1x2x4xf32>
    %73 = vector.shape_cast %72 : vector<1x2x4xf32> to vector<2x4xf32>
    %cst_71 = arith.constant dense<0.000000e+00> : vector<20x4xf32>
    %74 = tpu.matmul %71, %73, %cst_71 {dimension_numbers = #tpu.dot_dimension_numbers<[1], [0], [0], [1], [0, 0, 1, 1], [], []>} : vector<20x2xf32>, vector<2x4xf32>, vector<20x4xf32> -> vector<20x4xf32>
    %75 = arith.addf %70, %74 : vector<20x4xf32>
    %c10 = arith.constant 10 : index
    %c0_72 = arith.constant 0 : index
    %76 = vector.load %arg27[%c10, %c0_72] : memref<30x2xf32, #tpu.memory_space<vmem>>, vector<20x2xf32>
    %c4 = arith.constant 4 : index
    %c0_73 = arith.constant 0 : index
    %c0_74 = arith.constant 0 : index
    %77 = vector.load %arg2[%c4, %c0_73, %c0_74] : memref<5x2x4xf32, #tpu.memory_space<vmem>>, vector<1x2x4xf32>
    %78 = vector.shape_cast %77 : vector<1x2x4xf32> to vector<2x4xf32>
    %cst_75 = arith.constant dense<0.000000e+00> : vector<20x4xf32>
    %79 = tpu.matmul %76, %78, %cst_75 {dimension_numbers = #tpu.dot_dimension_numbers<[1], [0], [0], [1], [0, 0, 1, 1], [], []>} : vector<20x2xf32>, vector<2x4xf32>, vector<20x4xf32> -> vector<20x4xf32>
    %80 = arith.addf %75, %79 : vector<20x4xf32>
    %c0_76 = arith.constant 0 : index
    %c0_77 = arith.constant 0 : index
    %81 = vector.load %arg3[%c0_76, %c0_77] : memref<1x4xf32, #tpu.memory_space<vmem>>, vector<1x4xf32>
    %82 = vector.broadcast %81 : vector<1x4xf32> to vector<20x4xf32>
    %83 = arith.mulf %80, %82 : vector<20x4xf32>
    %c0_78 = arith.constant 0 : index
    %c0_79 = arith.constant 0 : index
    %84 = vector.load %arg4[%c0_78, %c0_79] : memref<1x4xf32, #tpu.memory_space<vmem>>, vector<1x4xf32>
    %85 = vector.broadcast %84 : vector<1x4xf32> to vector<20x4xf32>
    %86 = arith.addf %83, %85 : vector<20x4xf32>
    %cst_80 = arith.constant 0.000000e+00 : f32
    %87 = vector.broadcast %cst_80 : f32 to vector<20x4xf32>
    %88 = arith.maximumf %86, %87 : vector<20x4xf32>
    %cst_81 = arith.constant 0.000000e+00 : f32
    %89 = vector.shape_cast %18 : vector<20x1xi1> to vector<20x1xi1>
    %90 = vector.broadcast %89 : vector<20x1xi1> to vector<20x4xi1>
    %91 = vector.broadcast %cst_81 : f32 to vector<20x4xf32>
    %92 = arith.select %90, %88, %91 : vector<20x4xi1>, vector<20x4xf32>
    %c8_82 = arith.constant 8 : index
    %c0_83 = arith.constant 0 : index
    %93 = vector.load %arg28[%c8_82, %c0_83] : memref<30x4xf32, #tpu.memory_space<vmem>>, vector<20x4xf32>
    tpu.vector_store %arg28[%c8_82, %c0_83], %92 {strides = array<i32>} : memref<30x4xf32, #tpu.memory_space<vmem>>, vector<20x4xf32>,
    %cst_84 = arith.constant 0.000000e+00 : f32
    %94 = vector.broadcast %cst_84 : f32 to vector<20x8xf32>
    %c6_85 = arith.constant 6 : index
    %c0_86 = arith.constant 0 : index
    %95 = vector.load %arg28[%c6_85, %c0_86] : memref<30x4xf32, #tpu.memory_space<vmem>>, vector<20x4xf32>
    %c0_87 = arith.constant 0 : index
    %c0_88 = arith.constant 0 : index
    %c0_89 = arith.constant 0 : index
    %96 = vector.load %arg5[%c0_87, %c0_88, %c0_89] : memref<5x4x8xf32, #tpu.memory_space<vmem>>, vector<1x4x8xf32>
    %97 = vector.shape_cast %96 : vector<1x4x8xf32> to vector<4x8xf32>
    %cst_90 = arith.constant dense<0.000000e+00> : vector<20x8xf32>
    %98 = tpu.matmul %95, %97, %cst_90 {dimension_numbers = #tpu.dot_dimension_numbers<[1], [0], [0], [1], [0, 0, 1, 1], [], []>} : vector<20x4xf32>, vector<4x8xf32>, vector<20x8xf32> -> vector<20x8xf32>
    %99 = arith.addf %94, %98 : vector<20x8xf32>
    %c7_91 = arith.constant 7 : index
    %c0_92 = arith.constant 0 : index
    %100 = vector.load %arg28[%c7_91, %c0_92] : memref<30x4xf32, #tpu.memory_space<vmem>>, vector<20x4xf32>
    %c1_93 = arith.constant 1 : index
    %c0_94 = arith.constant 0 : index
    %c0_95 = arith.constant 0 : index
    %101 = vector.load %arg5[%c1_93, %c0_94, %c0_95] : memref<5x4x8xf32, #tpu.memory_space<vmem>>, vector<1x4x8xf32>
    %102 = vector.shape_cast %101 : vector<1x4x8xf32> to vector<4x8xf32>
    %cst_96 = arith.constant dense<0.000000e+00> : vector<20x8xf32>
    %103 = tpu.matmul %100, %102, %cst_96 {dimension_numbers = #tpu.dot_dimension_numbers<[1], [0], [0], [1], [0, 0, 1, 1], [], []>} : vector<20x4xf32>, vector<4x8xf32>, vector<20x8xf32> -> vector<20x8xf32>
    %104 = arith.addf %99, %103 : vector<20x8xf32>
    %c8_97 = arith.constant 8 : index
    %c0_98 = arith.constant 0 : index
    %105 = vector.load %arg28[%c8_97, %c0_98] : memref<30x4xf32, #tpu.memory_space<vmem>>, vector<20x4xf32>
    %c2_99 = arith.constant 2 : index
    %c0_100 = arith.constant 0 : index
    %c0_101 = arith.constant 0 : index
    %106 = vector.load %arg5[%c2_99, %c0_100, %c0_101] : memref<5x4x8xf32, #tpu.memory_space<vmem>>, vector<1x4x8xf32>
    %107 = vector.shape_cast %106 : vector<1x4x8xf32> to vector<4x8xf32>
    %cst_102 = arith.constant dense<0.000000e+00> : vector<20x8xf32>
    %108 = tpu.matmul %105, %107, %cst_102 {dimension_numbers = #tpu.dot_dimension_numbers<[1], [0], [0], [1], [0, 0, 1, 1], [], []>} : vector<20x4xf32>, vector<4x8xf32>, vector<20x8xf32> -> vector<20x8xf32>
    %109 = arith.addf %104, %108 : vector<20x8xf32>
    %c9_103 = arith.constant 9 : index
    %c0_104 = arith.constant 0 : index
    %110 = vector.load %arg28[%c9_103, %c0_104] : memref<30x4xf32, #tpu.memory_space<vmem>>, vector<20x4xf32>
    %c3_105 = arith.constant 3 : index
    %c0_106 = arith.constant 0 : index
    %c0_107 = arith.constant 0 : index
    %111 = vector.load %arg5[%c3_105, %c0_106, %c0_107] : memref<5x4x8xf32, #tpu.memory_space<vmem>>, vector<1x4x8xf32>
    %112 = vector.shape_cast %111 : vector<1x4x8xf32> to vector<4x8xf32>
    %cst_108 = arith.constant dense<0.000000e+00> : vector<20x8xf32>
    %113 = tpu.matmul %110, %112, %cst_108 {dimension_numbers = #tpu.dot_dimension_numbers<[1], [0], [0], [1], [0, 0, 1, 1], [], []>} : vector<20x4xf32>, vector<4x8xf32>, vector<20x8xf32> -> vector<20x8xf32>
    %114 = arith.addf %109, %113 : vector<20x8xf32>
    %c10_109 = arith.constant 10 : index
    %c0_110 = arith.constant 0 : index
    %115 = vector.load %arg28[%c10_109, %c0_110] : memref<30x4xf32, #tpu.memory_space<vmem>>, vector<20x4xf32>
    %c4_111 = arith.constant 4 : index
    %c0_112 = arith.constant 0 : index
    %c0_113 = arith.constant 0 : index
    %116 = vector.load %arg5[%c4_111, %c0_112, %c0_113] : memref<5x4x8xf32, #tpu.memory_space<vmem>>, vector<1x4x8xf32>
    %117 = vector.shape_cast %116 : vector<1x4x8xf32> to vector<4x8xf32>
    %cst_114 = arith.constant dense<0.000000e+00> : vector<20x8xf32>
    %118 = tpu.matmul %115, %117, %cst_114 {dimension_numbers = #tpu.dot_dimension_numbers<[1], [0], [0], [1], [0, 0, 1, 1], [], []>} : vector<20x4xf32>, vector<4x8xf32>, vector<20x8xf32> -> vector<20x8xf32>
    %119 = arith.addf %114, %118 : vector<20x8xf32>
    %c0_115 = arith.constant 0 : index
    %c0_116 = arith.constant 0 : index
    %120 = vector.load %arg6[%c0_115, %c0_116] : memref<1x8xf32, #tpu.memory_space<vmem>>, vector<1x8xf32>
    %121 = vector.broadcast %120 : vector<1x8xf32> to vector<20x8xf32>
    %122 = arith.mulf %119, %121 : vector<20x8xf32>
    %c0_117 = arith.constant 0 : index
    %c0_118 = arith.constant 0 : index
    %123 = vector.load %arg7[%c0_117, %c0_118] : memref<1x8xf32, #tpu.memory_space<vmem>>, vector<1x8xf32>
    %124 = vector.broadcast %123 : vector<1x8xf32> to vector<20x8xf32>
    %125 = arith.addf %122, %124 : vector<20x8xf32>
    %cst_119 = arith.constant 0.000000e+00 : f32
    %126 = vector.broadcast %cst_119 : f32 to vector<20x8xf32>
    %127 = arith.maximumf %125, %126 : vector<20x8xf32>
    %cst_120 = arith.constant 0.000000e+00 : f32
    %128 = vector.shape_cast %18 : vector<20x1xi1> to vector<20x1xi1>
    %129 = vector.broadcast %128 : vector<20x1xi1> to vector<20x8xi1>
    %130 = vector.broadcast %cst_120 : f32 to vector<20x8xf32>
    %131 = arith.select %129, %127, %130 : vector<20x8xi1>, vector<20x8xf32>
    %c8_121 = arith.constant 8 : index
    %c0_122 = arith.constant 0 : index
    %132 = vector.load %arg29[%c8_121, %c0_122] : memref<30x8xf32, #tpu.memory_space<vmem>>, vector<20x8xf32>
    tpu.vector_store %arg29[%c8_121, %c0_122], %131 {strides = array<i32>} : memref<30x8xf32, #tpu.memory_space<vmem>>, vector<20x8xf32>,
    %cst_123 = arith.constant 0.000000e+00 : f32
    %133 = vector.broadcast %cst_123 : f32 to vector<20x16xf32>
    %c6_124 = arith.constant 6 : index
    %c0_125 = arith.constant 0 : index
    %134 = vector.load %arg29[%c6_124, %c0_125] : memref<30x8xf32, #tpu.memory_space<vmem>>, vector<20x8xf32>
    %c0_126 = arith.constant 0 : index
    %c0_127 = arith.constant 0 : index
    %c0_128 = arith.constant 0 : index
    %135 = vector.load %arg8[%c0_126, %c0_127, %c0_128] : memref<5x8x16xf32, #tpu.memory_space<vmem>>, vector<1x8x16xf32>
    %136 = vector.shape_cast %135 : vector<1x8x16xf32> to vector<8x16xf32>
    %cst_129 = arith.constant dense<0.000000e+00> : vector<20x16xf32>
    %137 = tpu.matmul %134, %136, %cst_129 {dimension_numbers = #tpu.dot_dimension_numbers<[1], [0], [0], [1], [0, 0, 1, 1], [], []>} : vector<20x8xf32>, vector<8x16xf32>, vector<20x16xf32> -> vector<20x16xf32>
    %138 = arith.addf %133, %137 : vector<20x16xf32>
    %c7_130 = arith.constant 7 : index
    %c0_131 = arith.constant 0 : index
    %139 = vector.load %arg29[%c7_130, %c0_131] : memref<30x8xf32, #tpu.memory_space<vmem>>, vector<20x8xf32>
    %c1_132 = arith.constant 1 : index
    %c0_133 = arith.constant 0 : index
    %c0_134 = arith.constant 0 : index
    %140 = vector.load %arg8[%c1_132, %c0_133, %c0_134] : memref<5x8x16xf32, #tpu.memory_space<vmem>>, vector<1x8x16xf32>
    %141 = vector.shape_cast %140 : vector<1x8x16xf32> to vector<8x16xf32>
    %cst_135 = arith.constant dense<0.000000e+00> : vector<20x16xf32>
    %142 = tpu.matmul %139, %141, %cst_135 {dimension_numbers = #tpu.dot_dimension_numbers<[1], [0], [0], [1], [0, 0, 1, 1], [], []>} : vector<20x8xf32>, vector<8x16xf32>, vector<20x16xf32> -> vector<20x16xf32>
    %143 = arith.addf %138, %142 : vector<20x16xf32>
    %c8_136 = arith.constant 8 : index
    %c0_137 = arith.constant 0 : index
    %144 = vector.load %arg29[%c8_136, %c0_137] : memref<30x8xf32, #tpu.memory_space<vmem>>, vector<20x8xf32>
    %c2_138 = arith.constant 2 : index
    %c0_139 = arith.constant 0 : index
    %c0_140 = arith.constant 0 : index
    %145 = vector.load %arg8[%c2_138, %c0_139, %c0_140] : memref<5x8x16xf32, #tpu.memory_space<vmem>>, vector<1x8x16xf32>
    %146 = vector.shape_cast %145 : vector<1x8x16xf32> to vector<8x16xf32>
    %cst_141 = arith.constant dense<0.000000e+00> : vector<20x16xf32>
    %147 = tpu.matmul %144, %146, %cst_141 {dimension_numbers = #tpu.dot_dimension_numbers<[1], [0], [0], [1], [0, 0, 1, 1], [], []>} : vector<20x8xf32>, vector<8x16xf32>, vector<20x16xf32> -> vector<20x16xf32>
    %148 = arith.addf %143, %147 : vector<20x16xf32>
    %c9_142 = arith.constant 9 : index
    %c0_143 = arith.constant 0 : index
    %149 = vector.load %arg29[%c9_142, %c0_143] : memref<30x8xf32, #tpu.memory_space<vmem>>, vector<20x8xf32>
    %c3_144 = arith.constant 3 : index
    %c0_145 = arith.constant 0 : index
    %c0_146 = arith.constant 0 : index
    %150 = vector.load %arg8[%c3_144, %c0_145, %c0_146] : memref<5x8x16xf32, #tpu.memory_space<vmem>>, vector<1x8x16xf32>
    %151 = vector.shape_cast %150 : vector<1x8x16xf32> to vector<8x16xf32>
    %cst_147 = arith.constant dense<0.000000e+00> : vector<20x16xf32>
    %152 = tpu.matmul %149, %151, %cst_147 {dimension_numbers = #tpu.dot_dimension_numbers<[1], [0], [0], [1], [0, 0, 1, 1], [], []>} : vector<20x8xf32>, vector<8x16xf32>, vector<20x16xf32> -> vector<20x16xf32>
    %153 = arith.addf %148, %152 : vector<20x16xf32>
    %c10_148 = arith.constant 10 : index
    %c0_149 = arith.constant 0 : index
    %154 = vector.load %arg29[%c10_148, %c0_149] : memref<30x8xf32, #tpu.memory_space<vmem>>, vector<20x8xf32>
    %c4_150 = arith.constant 4 : index
    %c0_151 = arith.constant 0 : index
    %c0_152 = arith.constant 0 : index
    %155 = vector.load %arg8[%c4_150, %c0_151, %c0_152] : memref<5x8x16xf32, #tpu.memory_space<vmem>>, vector<1x8x16xf32>
    %156 = vector.shape_cast %155 : vector<1x8x16xf32> to vector<8x16xf32>
    %cst_153 = arith.constant dense<0.000000e+00> : vector<20x16xf32>
    %157 = tpu.matmul %154, %156, %cst_153 {dimension_numbers = #tpu.dot_dimension_numbers<[1], [0], [0], [1], [0, 0, 1, 1], [], []>} : vector<20x8xf32>, vector<8x16xf32>, vector<20x16xf32> -> vector<20x16xf32>
    %158 = arith.addf %153, %157 : vector<20x16xf32>
    %c0_154 = arith.constant 0 : index
    %c0_155 = arith.constant 0 : index
    %159 = vector.load %arg9[%c0_154, %c0_155] : memref<1x16xf32, #tpu.memory_space<vmem>>, vector<1x16xf32>
    %160 = vector.broadcast %159 : vector<1x16xf32> to vector<20x16xf32>
    %161 = arith.mulf %158, %160 : vector<20x16xf32>
    %c0_156 = arith.constant 0 : index
    %c0_157 = arith.constant 0 : index
    %162 = vector.load %arg10[%c0_156, %c0_157] : memref<1x16xf32, #tpu.memory_space<vmem>>, vector<1x16xf32>
    %163 = vector.broadcast %162 : vector<1x16xf32> to vector<20x16xf32>
    %164 = arith.addf %161, %163 : vector<20x16xf32>
    %cst_158 = arith.constant 0.000000e+00 : f32
    %165 = vector.broadcast %cst_158 : f32 to vector<20x16xf32>
    %166 = arith.maximumf %164, %165 : vector<20x16xf32>
    %cst_159 = arith.constant 0.000000e+00 : f32
    %167 = vector.shape_cast %18 : vector<20x1xi1> to vector<20x1xi1>
    %168 = vector.broadcast %167 : vector<20x1xi1> to vector<20x16xi1>
    %169 = vector.broadcast %cst_159 : f32 to vector<20x16xf32>
    %170 = arith.select %168, %166, %169 : vector<20x16xi1>, vector<20x16xf32>
    %c8_160 = arith.constant 8 : index
    %c0_161 = arith.constant 0 : index
    %171 = vector.load %arg30[%c8_160, %c0_161] : memref<30x16xf32, #tpu.memory_space<vmem>>, vector<20x16xf32>
    tpu.vector_store %arg30[%c8_160, %c0_161], %170 {strides = array<i32>} : memref<30x16xf32, #tpu.memory_space<vmem>>, vector<20x16xf32>,
    %cst_162 = arith.constant 0.000000e+00 : f32
    %172 = vector.broadcast %cst_162 : f32 to vector<20x32xf32>
    %c6_163 = arith.constant 6 : index
    %c0_164 = arith.constant 0 : index
    %173 = vector.load %arg30[%c6_163, %c0_164] : memref<30x16xf32, #tpu.memory_space<vmem>>, vector<20x16xf32>
    %c0_165 = arith.constant 0 : index
    %c0_166 = arith.constant 0 : index
    %c0_167 = arith.constant 0 : index
    %174 = vector.load %arg11[%c0_165, %c0_166, %c0_167] : memref<5x16x32xf32, #tpu.memory_space<vmem>>, vector<1x16x32xf32>
    %175 = vector.shape_cast %174 : vector<1x16x32xf32> to vector<16x32xf32>
    %cst_168 = arith.constant dense<0.000000e+00> : vector<20x32xf32>
    %176 = tpu.matmul %173, %175, %cst_168 {dimension_numbers = #tpu.dot_dimension_numbers<[1], [0], [0], [1], [0, 0, 1, 1], [], []>} : vector<20x16xf32>, vector<16x32xf32>, vector<20x32xf32> -> vector<20x32xf32>
    %177 = arith.addf %172, %176 : vector<20x32xf32>
    %c7_169 = arith.constant 7 : index
    %c0_170 = arith.constant 0 : index
    %178 = vector.load %arg30[%c7_169, %c0_170] : memref<30x16xf32, #tpu.memory_space<vmem>>, vector<20x16xf32>
    %c1_171 = arith.constant 1 : index
    %c0_172 = arith.constant 0 : index
    %c0_173 = arith.constant 0 : index
    %179 = vector.load %arg11[%c1_171, %c0_172, %c0_173] : memref<5x16x32xf32, #tpu.memory_space<vmem>>, vector<1x16x32xf32>
    %180 = vector.shape_cast %179 : vector<1x16x32xf32> to vector<16x32xf32>
    %cst_174 = arith.constant dense<0.000000e+00> : vector<20x32xf32>
    %181 = tpu.matmul %178, %180, %cst_174 {dimension_numbers = #tpu.dot_dimension_numbers<[1], [0], [0], [1], [0, 0, 1, 1], [], []>} : vector<20x16xf32>, vector<16x32xf32>, vector<20x32xf32> -> vector<20x32xf32>
    %182 = arith.addf %177, %181 : vector<20x32xf32>
    %c8_175 = arith.constant 8 : index
    %c0_176 = arith.constant 0 : index
    %183 = vector.load %arg30[%c8_175, %c0_176] : memref<30x16xf32, #tpu.memory_space<vmem>>, vector<20x16xf32>
    %c2_177 = arith.constant 2 : index
    %c0_178 = arith.constant 0 : index
    %c0_179 = arith.constant 0 : index
    %184 = vector.load %arg11[%c2_177, %c0_178, %c0_179] : memref<5x16x32xf32, #tpu.memory_space<vmem>>, vector<1x16x32xf32>
    %185 = vector.shape_cast %184 : vector<1x16x32xf32> to vector<16x32xf32>
    %cst_180 = arith.constant dense<0.000000e+00> : vector<20x32xf32>
    %186 = tpu.matmul %183, %185, %cst_180 {dimension_numbers = #tpu.dot_dimension_numbers<[1], [0], [0], [1], [0, 0, 1, 1], [], []>} : vector<20x16xf32>, vector<16x32xf32>, vector<20x32xf32> -> vector<20x32xf32>
    %187 = arith.addf %182, %186 : vector<20x32xf32>
    %c9_181 = arith.constant 9 : index
    %c0_182 = arith.constant 0 : index
    %188 = vector.load %arg30[%c9_181, %c0_182] : memref<30x16xf32, #tpu.memory_space<vmem>>, vector<20x16xf32>
    %c3_183 = arith.constant 3 : index
    %c0_184 = arith.constant 0 : index
    %c0_185 = arith.constant 0 : index
    %189 = vector.load %arg11[%c3_183, %c0_184, %c0_185] : memref<5x16x32xf32, #tpu.memory_space<vmem>>, vector<1x16x32xf32>
    %190 = vector.shape_cast %189 : vector<1x16x32xf32> to vector<16x32xf32>
    %cst_186 = arith.constant dense<0.000000e+00> : vector<20x32xf32>
    %191 = tpu.matmul %188, %190, %cst_186 {dimension_numbers = #tpu.dot_dimension_numbers<[1], [0], [0], [1], [0, 0, 1, 1], [], []>} : vector<20x16xf32>, vector<16x32xf32>, vector<20x32xf32> -> vector<20x32xf32>
    %192 = arith.addf %187, %191 : vector<20x32xf32>
    %c10_187 = arith.constant 10 : index
    %c0_188 = arith.constant 0 : index
    %193 = vector.load %arg30[%c10_187, %c0_188] : memref<30x16xf32, #tpu.memory_space<vmem>>, vector<20x16xf32>
    %c4_189 = arith.constant 4 : index
    %c0_190 = arith.constant 0 : index
    %c0_191 = arith.constant 0 : index
    %194 = vector.load %arg11[%c4_189, %c0_190, %c0_191] : memref<5x16x32xf32, #tpu.memory_space<vmem>>, vector<1x16x32xf32>
    %195 = vector.shape_cast %194 : vector<1x16x32xf32> to vector<16x32xf32>
    %cst_192 = arith.constant dense<0.000000e+00> : vector<20x32xf32>
    %196 = tpu.matmul %193, %195, %cst_192 {dimension_numbers = #tpu.dot_dimension_numbers<[1], [0], [0], [1], [0, 0, 1, 1], [], []>} : vector<20x16xf32>, vector<16x32xf32>, vector<20x32xf32> -> vector<20x32xf32>
    %197 = arith.addf %192, %196 : vector<20x32xf32>
    %c0_193 = arith.constant 0 : index
    %c0_194 = arith.constant 0 : index
    %198 = vector.load %arg12[%c0_193, %c0_194] : memref<1x32xf32, #tpu.memory_space<vmem>>, vector<1x32xf32>
    %199 = vector.broadcast %198 : vector<1x32xf32> to vector<20x32xf32>
    %200 = arith.mulf %197, %199 : vector<20x32xf32>
    %c0_195 = arith.constant 0 : index
    %c0_196 = arith.constant 0 : index
    %201 = vector.load %arg13[%c0_195, %c0_196] : memref<1x32xf32, #tpu.memory_space<vmem>>, vector<1x32xf32>
    %202 = vector.broadcast %201 : vector<1x32xf32> to vector<20x32xf32>
    %203 = arith.addf %200, %202 : vector<20x32xf32>
    %cst_197 = arith.constant 0.000000e+00 : f32
    %204 = vector.broadcast %cst_197 : f32 to vector<20x32xf32>
    %205 = arith.maximumf %203, %204 : vector<20x32xf32>
    %cst_198 = arith.constant 0.000000e+00 : f32
    %206 = vector.shape_cast %18 : vector<20x1xi1> to vector<20x1xi1>
    %207 = vector.broadcast %206 : vector<20x1xi1> to vector<20x32xi1>
    %208 = vector.broadcast %cst_198 : f32 to vector<20x32xf32>
    %209 = arith.select %207, %205, %208 : vector<20x32xi1>, vector<20x32xf32>
    %c8_199 = arith.constant 8 : index
    %c0_200 = arith.constant 0 : index
    %210 = vector.load %arg31[%c8_199, %c0_200] : memref<30x32xf32, #tpu.memory_space<vmem>>, vector<20x32xf32>
    tpu.vector_store %arg31[%c8_199, %c0_200], %209 {strides = array<i32>} : memref<30x32xf32, #tpu.memory_space<vmem>>, vector<20x32xf32>,
    %cst_201 = arith.constant 0.000000e+00 : f32
    %211 = vector.broadcast %cst_201 : f32 to vector<20x64xf32>
    %c6_202 = arith.constant 6 : index
    %c0_203 = arith.constant 0 : index
    %212 = vector.load %arg31[%c6_202, %c0_203] : memref<30x32xf32, #tpu.memory_space<vmem>>, vector<20x32xf32>
    %c0_204 = arith.constant 0 : index
    %c0_205 = arith.constant 0 : index
    %c0_206 = arith.constant 0 : index
    %213 = vector.load %arg14[%c0_204, %c0_205, %c0_206] : memref<5x32x64xf32, #tpu.memory_space<vmem>>, vector<1x32x64xf32>
    %214 = vector.shape_cast %213 : vector<1x32x64xf32> to vector<32x64xf32>
    %cst_207 = arith.constant dense<0.000000e+00> : vector<20x64xf32>
    %215 = tpu.matmul %212, %214, %cst_207 {dimension_numbers = #tpu.dot_dimension_numbers<[1], [0], [0], [1], [0, 0, 1, 1], [], []>} : vector<20x32xf32>, vector<32x64xf32>, vector<20x64xf32> -> vector<20x64xf32>
    %216 = arith.addf %211, %215 : vector<20x64xf32>
    %c7_208 = arith.constant 7 : index
    %c0_209 = arith.constant 0 : index
    %217 = vector.load %arg31[%c7_208, %c0_209] : memref<30x32xf32, #tpu.memory_space<vmem>>, vector<20x32xf32>
    %c1_210 = arith.constant 1 : index
    %c0_211 = arith.constant 0 : index
    %c0_212 = arith.constant 0 : index
    %218 = vector.load %arg14[%c1_210, %c0_211, %c0_212] : memref<5x32x64xf32, #tpu.memory_space<vmem>>, vector<1x32x64xf32>
    %219 = vector.shape_cast %218 : vector<1x32x64xf32> to vector<32x64xf32>
    %cst_213 = arith.constant dense<0.000000e+00> : vector<20x64xf32>
    %220 = tpu.matmul %217, %219, %cst_213 {dimension_numbers = #tpu.dot_dimension_numbers<[1], [0], [0], [1], [0, 0, 1, 1], [], []>} : vector<20x32xf32>, vector<32x64xf32>, vector<20x64xf32> -> vector<20x64xf32>
    %221 = arith.addf %216, %220 : vector<20x64xf32>
    %c8_214 = arith.constant 8 : index
    %c0_215 = arith.constant 0 : index
    %222 = vector.load %arg31[%c8_214, %c0_215] : memref<30x32xf32, #tpu.memory_space<vmem>>, vector<20x32xf32>
    %c2_216 = arith.constant 2 : index
    %c0_217 = arith.constant 0 : index
    %c0_218 = arith.constant 0 : index
    %223 = vector.load %arg14[%c2_216, %c0_217, %c0_218] : memref<5x32x64xf32, #tpu.memory_space<vmem>>, vector<1x32x64xf32>
    %224 = vector.shape_cast %223 : vector<1x32x64xf32> to vector<32x64xf32>
    %cst_219 = arith.constant dense<0.000000e+00> : vector<20x64xf32>
    %225 = tpu.matmul %222, %224, %cst_219 {dimension_numbers = #tpu.dot_dimension_numbers<[1], [0], [0], [1], [0, 0, 1, 1], [], []>} : vector<20x32xf32>, vector<32x64xf32>, vector<20x64xf32> -> vector<20x64xf32>
    %226 = arith.addf %221, %225 : vector<20x64xf32>
    %c9_220 = arith.constant 9 : index
    %c0_221 = arith.constant 0 : index
    %227 = vector.load %arg31[%c9_220, %c0_221] : memref<30x32xf32, #tpu.memory_space<vmem>>, vector<20x32xf32>
    %c3_222 = arith.constant 3 : index
    %c0_223 = arith.constant 0 : index
    %c0_224 = arith.constant 0 : index
    %228 = vector.load %arg14[%c3_222, %c0_223, %c0_224] : memref<5x32x64xf32, #tpu.memory_space<vmem>>, vector<1x32x64xf32>
    %229 = vector.shape_cast %228 : vector<1x32x64xf32> to vector<32x64xf32>
    %cst_225 = arith.constant dense<0.000000e+00> : vector<20x64xf32>
    %230 = tpu.matmul %227, %229, %cst_225 {dimension_numbers = #tpu.dot_dimension_numbers<[1], [0], [0], [1], [0, 0, 1, 1], [], []>} : vector<20x32xf32>, vector<32x64xf32>, vector<20x64xf32> -> vector<20x64xf32>
    %231 = arith.addf %226, %230 : vector<20x64xf32>
    %c10_226 = arith.constant 10 : index
    %c0_227 = arith.constant 0 : index
    %232 = vector.load %arg31[%c10_226, %c0_227] : memref<30x32xf32, #tpu.memory_space<vmem>>, vector<20x32xf32>
    %c4_228 = arith.constant 4 : index
    %c0_229 = arith.constant 0 : index
    %c0_230 = arith.constant 0 : index
    %233 = vector.load %arg14[%c4_228, %c0_229, %c0_230] : memref<5x32x64xf32, #tpu.memory_space<vmem>>, vector<1x32x64xf32>
    %234 = vector.shape_cast %233 : vector<1x32x64xf32> to vector<32x64xf32>
    %cst_231 = arith.constant dense<0.000000e+00> : vector<20x64xf32>
    %235 = tpu.matmul %232, %234, %cst_231 {dimension_numbers = #tpu.dot_dimension_numbers<[1], [0], [0], [1], [0, 0, 1, 1], [], []>} : vector<20x32xf32>, vector<32x64xf32>, vector<20x64xf32> -> vector<20x64xf32>
    %236 = arith.addf %231, %235 : vector<20x64xf32>
    %c0_232 = arith.constant 0 : index
    %c0_233 = arith.constant 0 : index
    %237 = vector.load %arg15[%c0_232, %c0_233] : memref<1x64xf32, #tpu.memory_space<vmem>>, vector<1x64xf32>
    %238 = vector.broadcast %237 : vector<1x64xf32> to vector<20x64xf32>
    %239 = arith.mulf %236, %238 : vector<20x64xf32>
    %c0_234 = arith.constant 0 : index
    %c0_235 = arith.constant 0 : index
    %240 = vector.load %arg16[%c0_234, %c0_235] : memref<1x64xf32, #tpu.memory_space<vmem>>, vector<1x64xf32>
    %241 = vector.broadcast %240 : vector<1x64xf32> to vector<20x64xf32>
    %242 = arith.addf %239, %241 : vector<20x64xf32>
    %cst_236 = arith.constant 0.000000e+00 : f32
    %243 = vector.broadcast %cst_236 : f32 to vector<20x64xf32>
    %244 = arith.maximumf %242, %243 : vector<20x64xf32>
    %cst_237 = arith.constant 0.000000e+00 : f32
    %245 = vector.shape_cast %18 : vector<20x1xi1> to vector<20x1xi1>
    %246 = vector.broadcast %245 : vector<20x1xi1> to vector<20x64xi1>
    %247 = vector.broadcast %cst_237 : f32 to vector<20x64xf32>
    %248 = arith.select %246, %244, %247 : vector<20x64xi1>, vector<20x64xf32>
    %c8_238 = arith.constant 8 : index
    %c0_239 = arith.constant 0 : index
    %249 = vector.load %arg32[%c8_238, %c0_239] : memref<30x64xf32, #tpu.memory_space<vmem>>, vector<20x64xf32>
    tpu.vector_store %arg32[%c8_238, %c0_239], %248 {strides = array<i32>} : memref<30x64xf32, #tpu.memory_space<vmem>>, vector<20x64xf32>,
    %cst_240 = arith.constant 0.000000e+00 : f32
    %250 = vector.broadcast %cst_240 : f32 to vector<20x128xf32>
    %c6_241 = arith.constant 6 : index
    %c0_242 = arith.constant 0 : index
    %251 = vector.load %arg32[%c6_241, %c0_242] : memref<30x64xf32, #tpu.memory_space<vmem>>, vector<20x64xf32>
    %c0_243 = arith.constant 0 : index
    %c0_244 = arith.constant 0 : index
    %c0_245 = arith.constant 0 : index
    %252 = vector.load %arg17[%c0_243, %c0_244, %c0_245] : memref<5x64x128xf32, #tpu.memory_space<vmem>>, vector<1x64x128xf32>
    %253 = vector.shape_cast %252 : vector<1x64x128xf32> to vector<64x128xf32>
    %cst_246 = arith.constant dense<0.000000e+00> : vector<20x128xf32>
    %254 = tpu.matmul %251, %253, %cst_246 {dimension_numbers = #tpu.dot_dimension_numbers<[1], [0], [0], [1], [0, 0, 1, 1], [], []>} : vector<20x64xf32>, vector<64x128xf32>, vector<20x128xf32> -> vector<20x128xf32>
    %255 = arith.addf %250, %254 : vector<20x128xf32>
    %c7_247 = arith.constant 7 : index
    %c0_248 = arith.constant 0 : index
    %256 = vector.load %arg32[%c7_247, %c0_248] : memref<30x64xf32, #tpu.memory_space<vmem>>, vector<20x64xf32>
    %c1_249 = arith.constant 1 : index
    %c0_250 = arith.constant 0 : index
    %c0_251 = arith.constant 0 : index
    %257 = vector.load %arg17[%c1_249, %c0_250, %c0_251] : memref<5x64x128xf32, #tpu.memory_space<vmem>>, vector<1x64x128xf32>
    %258 = vector.shape_cast %257 : vector<1x64x128xf32> to vector<64x128xf32>
    %cst_252 = arith.constant dense<0.000000e+00> : vector<20x128xf32>
    %259 = tpu.matmul %256, %258, %cst_252 {dimension_numbers = #tpu.dot_dimension_numbers<[1], [0], [0], [1], [0, 0, 1, 1], [], []>} : vector<20x64xf32>, vector<64x128xf32>, vector<20x128xf32> -> vector<20x128xf32>
    %260 = arith.addf %255, %259 : vector<20x128xf32>
    %c8_253 = arith.constant 8 : index
    %c0_254 = arith.constant 0 : index
    %261 = vector.load %arg32[%c8_253, %c0_254] : memref<30x64xf32, #tpu.memory_space<vmem>>, vector<20x64xf32>
    %c2_255 = arith.constant 2 : index
    %c0_256 = arith.constant 0 : index
    %c0_257 = arith.constant 0 : index
    %262 = vector.load %arg17[%c2_255, %c0_256, %c0_257] : memref<5x64x128xf32, #tpu.memory_space<vmem>>, vector<1x64x128xf32>
    %263 = vector.shape_cast %262 : vector<1x64x128xf32> to vector<64x128xf32>
    %cst_258 = arith.constant dense<0.000000e+00> : vector<20x128xf32>
    %264 = tpu.matmul %261, %263, %cst_258 {dimension_numbers = #tpu.dot_dimension_numbers<[1], [0], [0], [1], [0, 0, 1, 1], [], []>} : vector<20x64xf32>, vector<64x128xf32>, vector<20x128xf32> -> vector<20x128xf32>
    %265 = arith.addf %260, %264 : vector<20x128xf32>
    %c9_259 = arith.constant 9 : index
    %c0_260 = arith.constant 0 : index
    %266 = vector.load %arg32[%c9_259, %c0_260] : memref<30x64xf32, #tpu.memory_space<vmem>>, vector<20x64xf32>
    %c3_261 = arith.constant 3 : index
    %c0_262 = arith.constant 0 : index
    %c0_263 = arith.constant 0 : index
    %267 = vector.load %arg17[%c3_261, %c0_262, %c0_263] : memref<5x64x128xf32, #tpu.memory_space<vmem>>, vector<1x64x128xf32>
    %268 = vector.shape_cast %267 : vector<1x64x128xf32> to vector<64x128xf32>
    %cst_264 = arith.constant dense<0.000000e+00> : vector<20x128xf32>
    %269 = tpu.matmul %266, %268, %cst_264 {dimension_numbers = #tpu.dot_dimension_numbers<[1], [0], [0], [1], [0, 0, 1, 1], [], []>} : vector<20x64xf32>, vector<64x128xf32>, vector<20x128xf32> -> vector<20x128xf32>
    %270 = arith.addf %265, %269 : vector<20x128xf32>
    %c10_265 = arith.constant 10 : index
    %c0_266 = arith.constant 0 : index
    %271 = vector.load %arg32[%c10_265, %c0_266] : memref<30x64xf32, #tpu.memory_space<vmem>>, vector<20x64xf32>
    %c4_267 = arith.constant 4 : index
    %c0_268 = arith.constant 0 : index
    %c0_269 = arith.constant 0 : index
    %272 = vector.load %arg17[%c4_267, %c0_268, %c0_269] : memref<5x64x128xf32, #tpu.memory_space<vmem>>, vector<1x64x128xf32>
    %273 = vector.shape_cast %272 : vector<1x64x128xf32> to vector<64x128xf32>
    %cst_270 = arith.constant dense<0.000000e+00> : vector<20x128xf32>
    %274 = tpu.matmul %271, %273, %cst_270 {dimension_numbers = #tpu.dot_dimension_numbers<[1], [0], [0], [1], [0, 0, 1, 1], [], []>} : vector<20x64xf32>, vector<64x128xf32>, vector<20x128xf32> -> vector<20x128xf32>
    %275 = arith.addf %270, %274 : vector<20x128xf32>
    %c0_271 = arith.constant 0 : index
    %c0_272 = arith.constant 0 : index
    %276 = vector.load %arg18[%c0_271, %c0_272] : memref<1x128xf32, #tpu.memory_space<vmem>>, vector<1x128xf32>
    %277 = vector.broadcast %276 : vector<1x128xf32> to vector<20x128xf32>
    %278 = arith.mulf %275, %277 : vector<20x128xf32>
    %c0_273 = arith.constant 0 : index
    %c0_274 = arith.constant 0 : index
    %279 = vector.load %arg19[%c0_273, %c0_274] : memref<1x128xf32, #tpu.memory_space<vmem>>, vector<1x128xf32>
    %280 = vector.broadcast %279 : vector<1x128xf32> to vector<20x128xf32>
    %281 = arith.addf %278, %280 : vector<20x128xf32>
    %cst_275 = arith.constant 0.000000e+00 : f32
    %282 = vector.broadcast %cst_275 : f32 to vector<20x128xf32>
    %283 = arith.maximumf %281, %282 : vector<20x128xf32>
    %cst_276 = arith.constant 0.000000e+00 : f32
    %284 = vector.shape_cast %18 : vector<20x1xi1> to vector<20x1xi1>
    %285 = vector.broadcast %284 : vector<20x1xi1> to vector<20x128xi1>
    %286 = vector.broadcast %cst_276 : f32 to vector<20x128xf32>
    %287 = arith.select %285, %283, %286 : vector<20x128xi1>, vector<20x128xf32>
    %c8_277 = arith.constant 8 : index
    %c0_278 = arith.constant 0 : index
    %288 = vector.load %arg33[%c8_277, %c0_278] : memref<30x128xf32, #tpu.memory_space<vmem>>, vector<20x128xf32>
    tpu.vector_store %arg33[%c8_277, %c0_278], %287 {strides = array<i32>} : memref<30x128xf32, #tpu.memory_space<vmem>>, vector<20x128xf32>,
    %cst_279 = arith.constant 0.000000e+00 : f32
    %289 = vector.broadcast %cst_279 : f32 to vector<20x256xf32>
    %c6_280 = arith.constant 6 : index
    %c0_281 = arith.constant 0 : index
    %290 = vector.load %arg33[%c6_280, %c0_281] : memref<30x128xf32, #tpu.memory_space<vmem>>, vector<20x128xf32>
    %c0_282 = arith.constant 0 : index
    %c0_283 = arith.constant 0 : index
    %c0_284 = arith.constant 0 : index
    %291 = vector.load %arg20[%c0_282, %c0_283, %c0_284] : memref<5x128x256xf32, #tpu.memory_space<vmem>>, vector<1x128x256xf32>
    %292 = vector.shape_cast %291 : vector<1x128x256xf32> to vector<128x256xf32>
    %cst_285 = arith.constant dense<0.000000e+00> : vector<20x256xf32>
    %293 = tpu.matmul %290, %292, %cst_285 {dimension_numbers = #tpu.dot_dimension_numbers<[1], [0], [0], [1], [0, 0, 1, 1], [], []>} : vector<20x128xf32>, vector<128x256xf32>, vector<20x256xf32> -> vector<20x256xf32>
    %294 = arith.addf %289, %293 : vector<20x256xf32>
    %c7_286 = arith.constant 7 : index
    %c0_287 = arith.constant 0 : index
    %295 = vector.load %arg33[%c7_286, %c0_287] : memref<30x128xf32, #tpu.memory_space<vmem>>, vector<20x128xf32>
    %c1_288 = arith.constant 1 : index
    %c0_289 = arith.constant 0 : index
    %c0_290 = arith.constant 0 : index
    %296 = vector.load %arg20[%c1_288, %c0_289, %c0_290] : memref<5x128x256xf32, #tpu.memory_space<vmem>>, vector<1x128x256xf32>
    %297 = vector.shape_cast %296 : vector<1x128x256xf32> to vector<128x256xf32>
    %cst_291 = arith.constant dense<0.000000e+00> : vector<20x256xf32>
    %298 = tpu.matmul %295, %297, %cst_291 {dimension_numbers = #tpu.dot_dimension_numbers<[1], [0], [0], [1], [0, 0, 1, 1], [], []>} : vector<20x128xf32>, vector<128x256xf32>, vector<20x256xf32> -> vector<20x256xf32>
    %299 = arith.addf %294, %298 : vector<20x256xf32>
    %c8_292 = arith.constant 8 : index
    %c0_293 = arith.constant 0 : index
    %300 = vector.load %arg33[%c8_292, %c0_293] : memref<30x128xf32, #tpu.memory_space<vmem>>, vector<20x128xf32>
    %c2_294 = arith.constant 2 : index
    %c0_295 = arith.constant 0 : index
    %c0_296 = arith.constant 0 : index
    %301 = vector.load %arg20[%c2_294, %c0_295, %c0_296] : memref<5x128x256xf32, #tpu.memory_space<vmem>>, vector<1x128x256xf32>
    %302 = vector.shape_cast %301 : vector<1x128x256xf32> to vector<128x256xf32>
    %cst_297 = arith.constant dense<0.000000e+00> : vector<20x256xf32>
    %303 = tpu.matmul %300, %302, %cst_297 {dimension_numbers = #tpu.dot_dimension_numbers<[1], [0], [0], [1], [0, 0, 1, 1], [], []>} : vector<20x128xf32>, vector<128x256xf32>, vector<20x256xf32> -> vector<20x256xf32>
    %304 = arith.addf %299, %303 : vector<20x256xf32>
    %c9_298 = arith.constant 9 : index
    %c0_299 = arith.constant 0 : index
    %305 = vector.load %arg33[%c9_298, %c0_299] : memref<30x128xf32, #tpu.memory_space<vmem>>, vector<20x128xf32>
    %c3_300 = arith.constant 3 : index
    %c0_301 = arith.constant 0 : index
    %c0_302 = arith.constant 0 : index
    %306 = vector.load %arg20[%c3_300, %c0_301, %c0_302] : memref<5x128x256xf32, #tpu.memory_space<vmem>>, vector<1x128x256xf32>
    %307 = vector.shape_cast %306 : vector<1x128x256xf32> to vector<128x256xf32>
    %cst_303 = arith.constant dense<0.000000e+00> : vector<20x256xf32>
    %308 = tpu.matmul %305, %307, %cst_303 {dimension_numbers = #tpu.dot_dimension_numbers<[1], [0], [0], [1], [0, 0, 1, 1], [], []>} : vector<20x128xf32>, vector<128x256xf32>, vector<20x256xf32> -> vector<20x256xf32>
    %309 = arith.addf %304, %308 : vector<20x256xf32>
    %c10_304 = arith.constant 10 : index
    %c0_305 = arith.constant 0 : index
    %310 = vector.load %arg33[%c10_304, %c0_305] : memref<30x128xf32, #tpu.memory_space<vmem>>, vector<20x128xf32>
    %c4_306 = arith.constant 4 : index
    %c0_307 = arith.constant 0 : index
    %c0_308 = arith.constant 0 : index
    %311 = vector.load %arg20[%c4_306, %c0_307, %c0_308] : memref<5x128x256xf32, #tpu.memory_space<vmem>>, vector<1x128x256xf32>
    %312 = vector.shape_cast %311 : vector<1x128x256xf32> to vector<128x256xf32>
    %cst_309 = arith.constant dense<0.000000e+00> : vector<20x256xf32>
    %313 = tpu.matmul %310, %312, %cst_309 {dimension_numbers = #tpu.dot_dimension_numbers<[1], [0], [0], [1], [0, 0, 1, 1], [], []>} : vector<20x128xf32>, vector<128x256xf32>, vector<20x256xf32> -> vector<20x256xf32>
    %314 = arith.addf %309, %313 : vector<20x256xf32>
    %c0_310 = arith.constant 0 : index
    %c0_311 = arith.constant 0 : index
    %315 = vector.load %arg21[%c0_310, %c0_311] : memref<1x256xf32, #tpu.memory_space<vmem>>, vector<1x256xf32>
    %316 = vector.broadcast %315 : vector<1x256xf32> to vector<20x256xf32>
    %317 = arith.mulf %314, %316 : vector<20x256xf32>
    %c0_312 = arith.constant 0 : index
    %c0_313 = arith.constant 0 : index
    %318 = vector.load %arg22[%c0_312, %c0_313] : memref<1x256xf32, #tpu.memory_space<vmem>>, vector<1x256xf32>
    %319 = vector.broadcast %318 : vector<1x256xf32> to vector<20x256xf32>
    %320 = arith.addf %317, %319 : vector<20x256xf32>
    %cst_314 = arith.constant 0.000000e+00 : f32
    %321 = vector.broadcast %cst_314 : f32 to vector<20x256xf32>
    %322 = arith.maximumf %320, %321 : vector<20x256xf32>
    %cst_315 = arith.constant 0.000000e+00 : f32
    %323 = vector.shape_cast %18 : vector<20x1xi1> to vector<20x1xi1>
    %324 = vector.broadcast %323 : vector<20x1xi1> to vector<20x256xi1>
    %325 = vector.broadcast %cst_315 : f32 to vector<20x256xf32>
    %326 = arith.select %324, %322, %325 : vector<20x256xi1>, vector<20x256xf32>
    %c8_316 = arith.constant 8 : index
    %c0_317 = arith.constant 0 : index
    %327 = vector.load %arg34[%c8_316, %c0_317] : memref<30x256xf32, #tpu.memory_space<vmem>>, vector<20x256xf32>
    tpu.vector_store %arg34[%c8_316, %c0_317], %326 {strides = array<i32>} : memref<30x256xf32, #tpu.memory_space<vmem>>, vector<20x256xf32>,
    %cst_318 = arith.constant 0.000000e+00 : f32
    %328 = vector.broadcast %cst_318 : f32 to vector<20x512xf32>
    %c6_319 = arith.constant 6 : index
    %c0_320 = arith.constant 0 : index
    %329 = vector.load %arg34[%c6_319, %c0_320] : memref<30x256xf32, #tpu.memory_space<vmem>>, vector<20x256xf32>
    %c0_321 = arith.constant 0 : index
    %c0_322 = arith.constant 0 : index
    %c0_323 = arith.constant 0 : index
    %330 = vector.load %arg23[%c0_321, %c0_322, %c0_323] : memref<5x256x512xf32, #tpu.memory_space<vmem>>, vector<1x256x512xf32>
    %331 = vector.shape_cast %330 : vector<1x256x512xf32> to vector<256x512xf32>
    %cst_324 = arith.constant dense<0.000000e+00> : vector<20x512xf32>
    %332 = tpu.matmul %329, %331, %cst_324 {dimension_numbers = #tpu.dot_dimension_numbers<[1], [0], [0], [1], [0, 0, 1, 1], [], []>} : vector<20x256xf32>, vector<256x512xf32>, vector<20x512xf32> -> vector<20x512xf32>
    %333 = arith.addf %328, %332 : vector<20x512xf32>
    %c7_325 = arith.constant 7 : index
    %c0_326 = arith.constant 0 : index
    %334 = vector.load %arg34[%c7_325, %c0_326] : memref<30x256xf32, #tpu.memory_space<vmem>>, vector<20x256xf32>
    %c1_327 = arith.constant 1 : index
    %c0_328 = arith.constant 0 : index
    %c0_329 = arith.constant 0 : index
    %335 = vector.load %arg23[%c1_327, %c0_328, %c0_329] : memref<5x256x512xf32, #tpu.memory_space<vmem>>, vector<1x256x512xf32>
    %336 = vector.shape_cast %335 : vector<1x256x512xf32> to vector<256x512xf32>
    %cst_330 = arith.constant dense<0.000000e+00> : vector<20x512xf32>
    %337 = tpu.matmul %334, %336, %cst_330 {dimension_numbers = #tpu.dot_dimension_numbers<[1], [0], [0], [1], [0, 0, 1, 1], [], []>} : vector<20x256xf32>, vector<256x512xf32>, vector<20x512xf32> -> vector<20x512xf32>
    %338 = arith.addf %333, %337 : vector<20x512xf32>
    %c8_331 = arith.constant 8 : index
    %c0_332 = arith.constant 0 : index
    %339 = vector.load %arg34[%c8_331, %c0_332] : memref<30x256xf32, #tpu.memory_space<vmem>>, vector<20x256xf32>
    %c2_333 = arith.constant 2 : index
    %c0_334 = arith.constant 0 : index
    %c0_335 = arith.constant 0 : index
    %340 = vector.load %arg23[%c2_333, %c0_334, %c0_335] : memref<5x256x512xf32, #tpu.memory_space<vmem>>, vector<1x256x512xf32>
    %341 = vector.shape_cast %340 : vector<1x256x512xf32> to vector<256x512xf32>
    %cst_336 = arith.constant dense<0.000000e+00> : vector<20x512xf32>
    %342 = tpu.matmul %339, %341, %cst_336 {dimension_numbers = #tpu.dot_dimension_numbers<[1], [0], [0], [1], [0, 0, 1, 1], [], []>} : vector<20x256xf32>, vector<256x512xf32>, vector<20x512xf32> -> vector<20x512xf32>
    %343 = arith.addf %338, %342 : vector<20x512xf32>
    %c9_337 = arith.constant 9 : index
    %c0_338 = arith.constant 0 : index
    %344 = vector.load %arg34[%c9_337, %c0_338] : memref<30x256xf32, #tpu.memory_space<vmem>>, vector<20x256xf32>
    %c3_339 = arith.constant 3 : index
    %c0_340 = arith.constant 0 : index
    %c0_341 = arith.constant 0 : index
    %345 = vector.load %arg23[%c3_339, %c0_340, %c0_341] : memref<5x256x512xf32, #tpu.memory_space<vmem>>, vector<1x256x512xf32>
    %346 = vector.shape_cast %345 : vector<1x256x512xf32> to vector<256x512xf32>
    %cst_342 = arith.constant dense<0.000000e+00> : vector<20x512xf32>
    %347 = tpu.matmul %344, %346, %cst_342 {dimension_numbers = #tpu.dot_dimension_numbers<[1], [0], [0], [1], [0, 0, 1, 1], [], []>} : vector<20x256xf32>, vector<256x512xf32>, vector<20x512xf32> -> vector<20x512xf32>
    %348 = arith.addf %343, %347 : vector<20x512xf32>
    %c10_343 = arith.constant 10 : index
    %c0_344 = arith.constant 0 : index
    %349 = vector.load %arg34[%c10_343, %c0_344] : memref<30x256xf32, #tpu.memory_space<vmem>>, vector<20x256xf32>
    %c4_345 = arith.constant 4 : index
    %c0_346 = arith.constant 0 : index
    %c0_347 = arith.constant 0 : index
    %350 = vector.load %arg23[%c4_345, %c0_346, %c0_347] : memref<5x256x512xf32, #tpu.memory_space<vmem>>, vector<1x256x512xf32>
    %351 = vector.shape_cast %350 : vector<1x256x512xf32> to vector<256x512xf32>
    %cst_348 = arith.constant dense<0.000000e+00> : vector<20x512xf32>
    %352 = tpu.matmul %349, %351, %cst_348 {dimension_numbers = #tpu.dot_dimension_numbers<[1], [0], [0], [1], [0, 0, 1, 1], [], []>} : vector<20x256xf32>, vector<256x512xf32>, vector<20x512xf32> -> vector<20x512xf32>
    %353 = arith.addf %348, %352 : vector<20x512xf32>
    %c0_349 = arith.constant 0 : index
    %c0_350 = arith.constant 0 : index
    %354 = vector.load %arg24[%c0_349, %c0_350] : memref<1x512xf32, #tpu.memory_space<vmem>>, vector<1x512xf32>
    %355 = vector.broadcast %354 : vector<1x512xf32> to vector<20x512xf32>
    %356 = arith.mulf %353, %355 : vector<20x512xf32>
    %c0_351 = arith.constant 0 : index
    %c0_352 = arith.constant 0 : index
    %357 = vector.load %arg25[%c0_351, %c0_352] : memref<1x512xf32, #tpu.memory_space<vmem>>, vector<1x512xf32>
    %358 = vector.broadcast %357 : vector<1x512xf32> to vector<20x512xf32>
    %359 = arith.addf %356, %358 : vector<20x512xf32>
    %cst_353 = arith.constant 0.000000e+00 : f32
    %360 = vector.broadcast %cst_353 : f32 to vector<20x512xf32>
    %361 = arith.maximumf %359, %360 : vector<20x512xf32>
    %362 = vector.extract_strided_slice %361 {offsets = [0, 0], sizes = [8, 512], strides = [1, 1]} : vector<20x512xf32> to vector<8x512xf32>
    %363 = arith.truncf %362 : vector<8x512xf32> to vector<8x512xbf16>
    %c0_354 = arith.constant 0 : index
    %c0_355 = arith.constant 0 : index
    %c0_356 = arith.constant 0 : index
    %364 = vector.load %arg26[%c0_354, %c0_355, %c0_356] : memref<1x8x1024xbf16, #tpu.memory_space<vmem>>, vector<1x8x512xbf16>
    %365 = vector.shape_cast %364 : vector<1x8x512xbf16> to vector<8x512xbf16>
    %366 = vector.shape_cast %363 : vector<8x512xbf16> to vector<1x8x512xbf16>
    tpu.vector_store %arg26[%c0_354, %c0_355, %c0_356], %366 {strides = array<i32>} : memref<1x8x1024xbf16, #tpu.memory_space<vmem>>, vector<1x8x512xbf16>,
    %367 = vector.extract_strided_slice %361 {offsets = [10, 0], sizes = [8, 512], strides = [1, 1]} : vector<20x512xf32> to vector<8x512xf32>
    %368 = arith.truncf %367 : vector<8x512xf32> to vector<8x512xbf16>
    %c0_357 = arith.constant 0 : index
    %c0_358 = arith.constant 0 : index
    %c512 = arith.constant 512 : index
    %369 = vector.load %arg26[%c0_357, %c0_358, %c512] : memref<1x8x1024xbf16, #tpu.memory_space<vmem>>, vector<1x8x512xbf16>
    %370 = vector.shape_cast %369 : vector<1x8x512xbf16> to vector<8x512xbf16>
    %371 = vector.shape_cast %368 : vector<8x512xbf16> to vector<1x8x512xbf16>
    tpu.vector_store %arg26[%c0_357, %c0_358, %c512], %371 {strides = array<i32>} : memref<1x8x1024xbf16, #tpu.memory_space<vmem>>, vector<1x8x512xbf16>,
    return
  }
  func.func @transform_0(%arg0: i32) -> (i32, i32, i32) {
    %c0_i32 = arith.constant 0 : i32
    %c0_i32_0 = arith.constant 0 : i32
    %c0_i32_1 = arith.constant 0 : i32
    return %arg0, %c0_i32, %c0_i32_0 : i32, i32, i32
  }
  func.func @transform_1(%arg0: i32) -> (i32, i32, i32) {
    %c0_i32 = arith.constant 0 : i32
    %c0_i32_0 = arith.constant 0 : i32
    %c0_i32_1 = arith.constant 0 : i32
    %c0_i32_2 = arith.constant 0 : i32
    return %c0_i32, %c0_i32_0, %c0_i32_1 : i32, i32, i32
  }
  func.func @transform_2(%arg0: i32) -> (i32, i32) {
    %c0_i32 = arith.constant 0 : i32
    %c0_i32_0 = arith.constant 0 : i32
    %c0_i32_1 = arith.constant 0 : i32
    return %c0_i32, %c0_i32_0 : i32, i32
  }
  func.func @transform_3(%arg0: i32) -> (i32, i32) {
    %c0_i32 = arith.constant 0 : i32
    %c0_i32_0 = arith.constant 0 : i32
    %c0_i32_1 = arith.constant 0 : i32
    return %c0_i32, %c0_i32_0 : i32, i32
  }
  func.func @transform_4(%arg0: i32) -> (i32, i32, i32) {
    %c0_i32 = arith.constant 0 : i32
    %c0_i32_0 = arith.constant 0 : i32
    %c0_i32_1 = arith.constant 0 : i32
    %c0_i32_2 = arith.constant 0 : i32
    return %c0_i32, %c0_i32_0, %c0_i32_1 : i32, i32, i32
  }
  func.func @transform_5(%arg0: i32) -> (i32, i32) {
    %c0_i32 = arith.constant 0 : i32
    %c0_i32_0 = arith.constant 0 : i32
    %c0_i32_1 = arith.constant 0 : i32
    return %c0_i32, %c0_i32_0 : i32, i32
  }
  func.func @transform_6(%arg0: i32) -> (i32, i32) {
    %c0_i32 = arith.constant 0 : i32
    %c0_i32_0 = arith.constant 0 : i32
    %c0_i32_1 = arith.constant 0 : i32
    return %c0_i32, %c0_i32_0 : i32, i32
  }
  func.func @transform_7(%arg0: i32) -> (i32, i32, i32) {
    %c0_i32 = arith.constant 0 : i32
    %c0_i32_0 = arith.constant 0 : i32
    %c0_i32_1 = arith.constant 0 : i32
    %c0_i32_2 = arith.constant 0 : i32
    return %c0_i32, %c0_i32_0, %c0_i32_1 : i32, i32, i32
  }
  func.func @transform_8(%arg0: i32) -> (i32, i32) {
    %c0_i32 = arith.constant 0 : i32
    %c0_i32_0 = arith.constant 0 : i32
    %c0_i32_1 = arith.constant 0 : i32
    return %c0_i32, %c0_i32_0 : i32, i32
  }
  func.func @transform_9(%arg0: i32) -> (i32, i32) {
    %c0_i32 = arith.constant 0 : i32
    %c0_i32_0 = arith.constant 0 : i32
    %c0_i32_1 = arith.constant 0 : i32
    return %c0_i32, %c0_i32_0 : i32, i32
  }
  func.func @transform_10(%arg0: i32) -> (i32, i32, i32) {
    %c0_i32 = arith.constant 0 : i32
    %c0_i32_0 = arith.constant 0 : i32
    %c0_i32_1 = arith.constant 0 : i32
    %c0_i32_2 = arith.constant 0 : i32
    return %c0_i32, %c0_i32_0, %c0_i32_1 : i32, i32, i32
  }
  func.func @transform_11(%arg0: i32) -> (i32, i32) {
    %c0_i32 = arith.constant 0 : i32
    %c0_i32_0 = arith.constant 0 : i32
    %c0_i32_1 = arith.constant 0 : i32
    return %c0_i32, %c0_i32_0 : i32, i32
  }
  func.func @transform_12(%arg0: i32) -> (i32, i32) {
    %c0_i32 = arith.constant 0 : i32
    %c0_i32_0 = arith.constant 0 : i32
    %c0_i32_1 = arith.constant 0 : i32
    return %c0_i32, %c0_i32_0 : i32, i32
  }
  func.func @transform_13(%arg0: i32) -> (i32, i32, i32) {
    %c0_i32 = arith.constant 0 : i32
    %c0_i32_0 = arith.constant 0 : i32
    %c0_i32_1 = arith.constant 0 : i32
    %c0_i32_2 = arith.constant 0 : i32
    return %c0_i32, %c0_i32_0, %c0_i32_1 : i32, i32, i32
  }
  func.func @transform_14(%arg0: i32) -> (i32, i32) {
    %c0_i32 = arith.constant 0 : i32
    %c0_i32_0 = arith.constant 0 : i32
    %c0_i32_1 = arith.constant 0 : i32
    return %c0_i32, %c0_i32_0 : i32, i32
  }
  func.func @transform_15(%arg0: i32) -> (i32, i32) {
    %c0_i32 = arith.constant 0 : i32
    %c0_i32_0 = arith.constant 0 : i32
    %c0_i32_1 = arith.constant 0 : i32
    return %c0_i32, %c0_i32_0 : i32, i32
  }
  func.func @transform_16(%arg0: i32) -> (i32, i32, i32) {
    %c0_i32 = arith.constant 0 : i32
    %c0_i32_0 = arith.constant 0 : i32
    %c0_i32_1 = arith.constant 0 : i32
    %c0_i32_2 = arith.constant 0 : i32
    return %c0_i32, %c0_i32_0, %c0_i32_1 : i32, i32, i32
  }
  func.func @transform_17(%arg0: i32) -> (i32, i32) {
    %c0_i32 = arith.constant 0 : i32
    %c0_i32_0 = arith.constant 0 : i32
    %c0_i32_1 = arith.constant 0 : i32
    return %c0_i32, %c0_i32_0 : i32, i32
  }
  func.func @transform_18(%arg0: i32) -> (i32, i32) {
    %c0_i32 = arith.constant 0 : i32
    %c0_i32_0 = arith.constant 0 : i32
    %c0_i32_1 = arith.constant 0 : i32
    return %c0_i32, %c0_i32_0 : i32, i32
  }
  func.func @transform_19(%arg0: i32) -> (i32, i32, i32) {
    %c0_i32 = arith.constant 0 : i32
    %c0_i32_0 = arith.constant 0 : i32
    %c0_i32_1 = arith.constant 0 : i32
    %c0_i32_2 = arith.constant 0 : i32
    return %c0_i32, %c0_i32_0, %c0_i32_1 : i32, i32, i32
  }
  func.func @transform_20(%arg0: i32) -> (i32, i32) {
    %c0_i32 = arith.constant 0 : i32
    %c0_i32_0 = arith.constant 0 : i32
    %c0_i32_1 = arith.constant 0 : i32
    return %c0_i32, %c0_i32_0 : i32, i32
  }
  func.func @transform_21(%arg0: i32) -> (i32, i32) {
    %c0_i32 = arith.constant 0 : i32
    %c0_i32_0 = arith.constant 0 : i32
    %c0_i32_1 = arith.constant 0 : i32
    return %c0_i32, %c0_i32_0 : i32, i32
  }
  func.func @transform_22(%arg0: i32) -> (i32, i32, i32) {
    %c0_i32 = arith.constant 0 : i32
    %c0_i32_0 = arith.constant 0 : i32
    %c0_i32_1 = arith.constant 0 : i32
    %c0_i32_2 = arith.constant 0 : i32
    return %c0_i32, %c0_i32_0, %c0_i32_1 : i32, i32, i32
  }
  func.func @transform_23(%arg0: i32) -> (i32, i32) {
    %c0_i32 = arith.constant 0 : i32
    %c0_i32_0 = arith.constant 0 : i32
    %c0_i32_1 = arith.constant 0 : i32
    return %c0_i32, %c0_i32_0 : i32, i32
  }
  func.func @transform_24(%arg0: i32) -> (i32, i32) {
    %c0_i32 = arith.constant 0 : i32
    %c0_i32_0 = arith.constant 0 : i32
    %c0_i32_1 = arith.constant 0 : i32
    return %c0_i32, %c0_i32_0 : i32, i32
  }
  func.func @transform_25(%arg0: i32) -> (i32, i32, i32) {
    %c0_i32 = arith.constant 0 : i32
    %c0_i32_0 = arith.constant 0 : i32
    %c0_i32_1 = arith.constant 0 : i32
    return %arg0, %c0_i32, %c0_i32_0 : i32, i32, i32
  }
}

module attributes {stable_mosaic.version = 11 : i64} {
  func.func @fc_stack_kernel(%arg0: i32, %arg1: memref<2x2048xbf16, #tpu.memory_space<vmem>>, %arg2: memref<2048x512xbf16, #tpu.memory_space<vmem>>, %arg3: memref<1x512xf32, #tpu.memory_space<vmem>>, %arg4: memref<512x128xf32, #tpu.memory_space<vmem>>, %arg5: memref<1x128xf32, #tpu.memory_space<vmem>>, %arg6: memref<128x32xf32, #tpu.memory_space<vmem>>, %arg7: memref<1x32xf32, #tpu.memory_space<vmem>>, %arg8: memref<32x8xf32, #tpu.memory_space<vmem>>, %arg9: memref<1x8xf32, #tpu.memory_space<vmem>>, %arg10: memref<8x1xf32, #tpu.memory_space<vmem>>, %arg11: memref<1x1xf32, #tpu.memory_space<vmem>>, %arg12: memref<2x1xf32, #tpu.memory_space<vmem>>, %arg13: memref<2x512xf32, #tpu.memory_space<vmem>>) attributes {dimension_semantics = [#tpu.dimension_semantics<arbitrary>], iteration_bounds = array<i64: 4>, scalar_prefetch = 0 : i64, scratch_operands = 1 : i64, tpu.core_type = #tpu.core_type<tc>, window_params = [{transform_indices = @transform_0, window_bounds = array<i64: 2, 2048>}, {transform_indices = @transform_1, window_bounds = array<i64: 2048, 512>}, {pipeline_mode = #tpu.pipeline_mode<synchronous>, transform_indices = @transform_2, window_bounds = array<i64: 1, 512>}, {pipeline_mode = #tpu.pipeline_mode<synchronous>, transform_indices = @transform_3, window_bounds = array<i64: 512, 128>}, {pipeline_mode = #tpu.pipeline_mode<synchronous>, transform_indices = @transform_4, window_bounds = array<i64: 1, 128>}, {pipeline_mode = #tpu.pipeline_mode<synchronous>, transform_indices = @transform_5, window_bounds = array<i64: 128, 32>}, {pipeline_mode = #tpu.pipeline_mode<synchronous>, transform_indices = @transform_6, window_bounds = array<i64: 1, 32>}, {pipeline_mode = #tpu.pipeline_mode<synchronous>, transform_indices = @transform_7, window_bounds = array<i64: 32, 8>}, {pipeline_mode = #tpu.pipeline_mode<synchronous>, transform_indices = @transform_8, window_bounds = array<i64: 1, 8>}, {pipeline_mode = #tpu.pipeline_mode<synchronous>, transform_indices = @transform_9, window_bounds = array<i64: 8, 1>}, {pipeline_mode = #tpu.pipeline_mode<synchronous>, transform_indices = @transform_10, window_bounds = array<i64: 1, 1>}, {pipeline_mode = #tpu.pipeline_mode<synchronous>, transform_indices = @transform_11, window_bounds = array<i64: 2, 1>}]} {
    %c0_i32 = arith.constant 0 : i32
    %0 = arith.cmpi eq, %arg0, %c0_i32 : i32
    %1 = arith.extui %0 : i1 to i32
    %c0_i32_0 = arith.constant 0 : i32
    %2 = arith.cmpi ne, %1, %c0_i32_0 : i32
    scf.if %2 {
      %cst_9 = arith.constant 0.000000e+00 : f32
      %12 = vector.broadcast %cst_9 : f32 to vector<2x512xf32>
      %c0_10 = arith.constant 0 : index
      %c0_11 = arith.constant 0 : index
      %13 = vector.load %arg13[%c0_10, %c0_11] : memref<2x512xf32, #tpu.memory_space<vmem>>, vector<2x512xf32>
      tpu.vector_store %arg13[%c0_10, %c0_11], %12 {strides = array<i32>} : memref<2x512xf32, #tpu.memory_space<vmem>>, vector<2x512xf32>,
    } else {
    }
    %c0 = arith.constant 0 : index
    %c0_1 = arith.constant 0 : index
    %3 = vector.load %arg13[%c0, %c0_1] : memref<2x512xf32, #tpu.memory_space<vmem>>, vector<2x512xf32>
    %c0_2 = arith.constant 0 : index
    %c0_3 = arith.constant 0 : index
    %4 = vector.load %arg1[%c0_2, %c0_3] : memref<2x2048xbf16, #tpu.memory_space<vmem>>, vector<2x2048xbf16>
    %c0_4 = arith.constant 0 : index
    %c0_5 = arith.constant 0 : index
    %5 = vector.load %arg2[%c0_4, %c0_5] : memref<2048x512xbf16, #tpu.memory_space<vmem>>, vector<2048x512xbf16>
    %cst = arith.constant dense<0.000000e+00> : vector<2x512xf32>
    %6 = tpu.matmul %4, %5, %cst {dimension_numbers = #tpu.dot_dimension_numbers<[1], [0], [0], [1], [0, 0, 1, 1], [], []>} : vector<2x2048xbf16>, vector<2048x512xbf16>, vector<2x512xf32> -> vector<2x512xf32>
    %7 = arith.addf %3, %6 : vector<2x512xf32>
    %c0_6 = arith.constant 0 : index
    %c0_7 = arith.constant 0 : index
    %8 = vector.load %arg13[%c0_6, %c0_7] : memref<2x512xf32, #tpu.memory_space<vmem>>, vector<2x512xf32>
    tpu.vector_store %arg13[%c0_6, %c0_7], %7 {strides = array<i32>} : memref<2x512xf32, #tpu.memory_space<vmem>>, vector<2x512xf32>,
    %c3_i32 = arith.constant 3 : i32
    %9 = arith.cmpi eq, %arg0, %c3_i32 : i32
    %10 = arith.extui %9 : i1 to i32
    %c0_i32_8 = arith.constant 0 : i32
    %11 = arith.cmpi ne, %10, %c0_i32_8 : i32
    scf.if %11 {
      %c0_9 = arith.constant 0 : index
      %c0_10 = arith.constant 0 : index
      %12 = vector.load %arg13[%c0_9, %c0_10] : memref<2x512xf32, #tpu.memory_space<vmem>>, vector<2x512xf32>
      %c0_11 = arith.constant 0 : index
      %c0_12 = arith.constant 0 : index
      %13 = vector.load %arg3[%c0_11, %c0_12] : memref<1x512xf32, #tpu.memory_space<vmem>>, vector<1x512xf32>
      %14 = vector.broadcast %13 : vector<1x512xf32> to vector<2x512xf32>
      %15 = arith.addf %12, %14 : vector<2x512xf32>
      %cst_13 = arith.constant 0.000000e+00 : f32
      %16 = vector.broadcast %cst_13 : f32 to vector<2x512xf32>
      %17 = arith.maximumf %15, %16 : vector<2x512xf32>
      %c0_14 = arith.constant 0 : index
      %c0_15 = arith.constant 0 : index
      %18 = vector.load %arg4[%c0_14, %c0_15] : memref<512x128xf32, #tpu.memory_space<vmem>>, vector<512x128xf32>
      %cst_16 = arith.constant dense<0.000000e+00> : vector<2x128xf32>
      %19 = tpu.matmul %17, %18, %cst_16 {dimension_numbers = #tpu.dot_dimension_numbers<[1], [0], [0], [1], [0, 0, 1, 1], [], []>} : vector<2x512xf32>, vector<512x128xf32>, vector<2x128xf32> -> vector<2x128xf32>
      %c0_17 = arith.constant 0 : index
      %c0_18 = arith.constant 0 : index
      %20 = vector.load %arg5[%c0_17, %c0_18] : memref<1x128xf32, #tpu.memory_space<vmem>>, vector<1x128xf32>
      %21 = vector.broadcast %20 : vector<1x128xf32> to vector<2x128xf32>
      %22 = arith.addf %19, %21 : vector<2x128xf32>
      %cst_19 = arith.constant 0.000000e+00 : f32
      %23 = vector.broadcast %cst_19 : f32 to vector<2x128xf32>
      %24 = arith.maximumf %22, %23 : vector<2x128xf32>
      %c0_20 = arith.constant 0 : index
      %c0_21 = arith.constant 0 : index
      %25 = vector.load %arg6[%c0_20, %c0_21] : memref<128x32xf32, #tpu.memory_space<vmem>>, vector<128x32xf32>
      %cst_22 = arith.constant dense<0.000000e+00> : vector<2x32xf32>
      %26 = tpu.matmul %24, %25, %cst_22 {dimension_numbers = #tpu.dot_dimension_numbers<[1], [0], [0], [1], [0, 0, 1, 1], [], []>} : vector<2x128xf32>, vector<128x32xf32>, vector<2x32xf32> -> vector<2x32xf32>
      %c0_23 = arith.constant 0 : index
      %c0_24 = arith.constant 0 : index
      %27 = vector.load %arg7[%c0_23, %c0_24] : memref<1x32xf32, #tpu.memory_space<vmem>>, vector<1x32xf32>
      %28 = vector.broadcast %27 : vector<1x32xf32> to vector<2x32xf32>
      %29 = arith.addf %26, %28 : vector<2x32xf32>
      %cst_25 = arith.constant 0.000000e+00 : f32
      %30 = vector.broadcast %cst_25 : f32 to vector<2x32xf32>
      %31 = arith.maximumf %29, %30 : vector<2x32xf32>
      %c0_26 = arith.constant 0 : index
      %c0_27 = arith.constant 0 : index
      %32 = vector.load %arg8[%c0_26, %c0_27] : memref<32x8xf32, #tpu.memory_space<vmem>>, vector<32x8xf32>
      %cst_28 = arith.constant dense<0.000000e+00> : vector<2x8xf32>
      %33 = tpu.matmul %31, %32, %cst_28 {dimension_numbers = #tpu.dot_dimension_numbers<[1], [0], [0], [1], [0, 0, 1, 1], [], []>} : vector<2x32xf32>, vector<32x8xf32>, vector<2x8xf32> -> vector<2x8xf32>
      %c0_29 = arith.constant 0 : index
      %c0_30 = arith.constant 0 : index
      %34 = vector.load %arg9[%c0_29, %c0_30] : memref<1x8xf32, #tpu.memory_space<vmem>>, vector<1x8xf32>
      %35 = vector.broadcast %34 : vector<1x8xf32> to vector<2x8xf32>
      %36 = arith.addf %33, %35 : vector<2x8xf32>
      %cst_31 = arith.constant 0.000000e+00 : f32
      %37 = vector.broadcast %cst_31 : f32 to vector<2x8xf32>
      %38 = arith.maximumf %36, %37 : vector<2x8xf32>
      %c0_32 = arith.constant 0 : index
      %c0_33 = arith.constant 0 : index
      %39 = vector.load %arg10[%c0_32, %c0_33] : memref<8x1xf32, #tpu.memory_space<vmem>>, vector<8x1xf32>
      %cst_34 = arith.constant dense<0.000000e+00> : vector<2x1xf32>
      %40 = tpu.matmul %38, %39, %cst_34 {dimension_numbers = #tpu.dot_dimension_numbers<[1], [0], [0], [1], [0, 0, 1, 1], [], []>} : vector<2x8xf32>, vector<8x1xf32>, vector<2x1xf32> -> vector<2x1xf32>
      %c0_35 = arith.constant 0 : index
      %c0_36 = arith.constant 0 : index
      %41 = vector.load %arg11[%c0_35, %c0_36] : memref<1x1xf32, #tpu.memory_space<vmem>>, vector<1x1xf32>
      %42 = vector.broadcast %41 : vector<1x1xf32> to vector<2x1xf32>
      %43 = arith.addf %40, %42 : vector<2x1xf32>
      %c0_37 = arith.constant 0 : index
      %c0_38 = arith.constant 0 : index
      %44 = vector.load %arg12[%c0_37, %c0_38] : memref<2x1xf32, #tpu.memory_space<vmem>>, vector<2x1xf32>
      tpu.vector_store %arg12[%c0_37, %c0_38], %43 {strides = array<i32>} : memref<2x1xf32, #tpu.memory_space<vmem>>, vector<2x1xf32>,
    } else {
    }
    return
  }
  func.func @transform_0(%arg0: i32) -> (i32, i32) {
    %c0_i32 = arith.constant 0 : i32
    %c0_i32_0 = arith.constant 0 : i32
    return %c0_i32, %arg0 : i32, i32
  }
  func.func @transform_1(%arg0: i32) -> (i32, i32) {
    %c0_i32 = arith.constant 0 : i32
    %c0_i32_0 = arith.constant 0 : i32
    return %arg0, %c0_i32 : i32, i32
  }
  func.func @transform_2(%arg0: i32) -> (i32, i32) {
    %c0_i32 = arith.constant 0 : i32
    %c0_i32_0 = arith.constant 0 : i32
    %c0_i32_1 = arith.constant 0 : i32
    return %c0_i32, %c0_i32_0 : i32, i32
  }
  func.func @transform_3(%arg0: i32) -> (i32, i32) {
    %c0_i32 = arith.constant 0 : i32
    %c0_i32_0 = arith.constant 0 : i32
    %c0_i32_1 = arith.constant 0 : i32
    return %c0_i32, %c0_i32_0 : i32, i32
  }
  func.func @transform_4(%arg0: i32) -> (i32, i32) {
    %c0_i32 = arith.constant 0 : i32
    %c0_i32_0 = arith.constant 0 : i32
    %c0_i32_1 = arith.constant 0 : i32
    return %c0_i32, %c0_i32_0 : i32, i32
  }
  func.func @transform_5(%arg0: i32) -> (i32, i32) {
    %c0_i32 = arith.constant 0 : i32
    %c0_i32_0 = arith.constant 0 : i32
    %c0_i32_1 = arith.constant 0 : i32
    return %c0_i32, %c0_i32_0 : i32, i32
  }
  func.func @transform_6(%arg0: i32) -> (i32, i32) {
    %c0_i32 = arith.constant 0 : i32
    %c0_i32_0 = arith.constant 0 : i32
    %c0_i32_1 = arith.constant 0 : i32
    return %c0_i32, %c0_i32_0 : i32, i32
  }
  func.func @transform_7(%arg0: i32) -> (i32, i32) {
    %c0_i32 = arith.constant 0 : i32
    %c0_i32_0 = arith.constant 0 : i32
    %c0_i32_1 = arith.constant 0 : i32
    return %c0_i32, %c0_i32_0 : i32, i32
  }
  func.func @transform_8(%arg0: i32) -> (i32, i32) {
    %c0_i32 = arith.constant 0 : i32
    %c0_i32_0 = arith.constant 0 : i32
    %c0_i32_1 = arith.constant 0 : i32
    return %c0_i32, %c0_i32_0 : i32, i32
  }
  func.func @transform_9(%arg0: i32) -> (i32, i32) {
    %c0_i32 = arith.constant 0 : i32
    %c0_i32_0 = arith.constant 0 : i32
    %c0_i32_1 = arith.constant 0 : i32
    return %c0_i32, %c0_i32_0 : i32, i32
  }
  func.func @transform_10(%arg0: i32) -> (i32, i32) {
    %c0_i32 = arith.constant 0 : i32
    %c0_i32_0 = arith.constant 0 : i32
    %c0_i32_1 = arith.constant 0 : i32
    return %c0_i32, %c0_i32_0 : i32, i32
  }
  func.func @transform_11(%arg0: i32) -> (i32, i32) {
    %c0_i32 = arith.constant 0 : i32
    %c0_i32_0 = arith.constant 0 : i32
    %c0_i32_1 = arith.constant 0 : i32
    return %c0_i32, %c0_i32_0 : i32, i32
  }
}

</mosaic_0001>

<bundles_post_ra>
// kernel: network_forward.2
= control target key start
LH: loop header
LB: loop body
LE: loop exit
PB: predicated region body
PF: predicated region fallthrough
CT: control target
= control target key end

     0   :  { %s7685_s0 = inlined_call_operand.vmem [shape: f32[2,8,4], index: 0, kind: input, shape index: {}]   ;;  %s7686_s1 = inlined_call_operand.vmem [shape: f32[5,2,4], index: 1, kind: input, shape index: {}]   ;;  %s7687_s2 = inlined_call_operand.hbm [shape: f32[1,4], index: 2, kind: input, shape index: {}]   ;;  %s7688_s3 = inlined_call_operand.hbm [shape: f32[1,4], index: 3, kind: input, shape index: {}]   ;;  %s7689_s4 = inlined_call_operand.hbm [shape: f32[5,4,8], index: 4, kind: input, shape index: {}]   ;;  %s7690_s5 = inlined_call_operand.hbm [shape: f32[1,8], index: 5, kind: input, shape index: {}]   ;;  %s7691_s6 = inlined_call_operand.hbm [shape: f32[1,8], index: 6, kind: input, shape index: {}]   ;;  %s7692_s7 = inlined_call_operand.hbm [shape: f32[5,8,16], index: 7, kind: input, shape index: {}]   ;;  %s7693_s8 = inlined_call_operand.hbm [shape: f32[1,16], index: 8, kind: input, shape index: {}]   ;;  %s7694_s9 = inlined_call_operand.hbm [shape: f32[1,16], index: 9, kind: input, shape index: {}]   ;;  %s7695_s10 = inlined_call_operand.hbm [shape: f32[5,16,32], index: 10, kind: input, shape index: {}]   ;;  %s7696_s11 = inlined_call_operand.hbm [shape: f32[1,32], index: 11, kind: input, shape index: {}]   ;;  %s7697_s12 = inlined_call_operand.hbm [shape: f32[1,32], index: 12, kind: input, shape index: {}]   ;;  %s7698_s13 = inlined_call_operand.hbm [shape: f32[5,32,64], index: 13, kind: input, shape index: {}]   ;;  %s7699_s14 = inlined_call_operand.hbm [shape: f32[1,64], index: 14, kind: input, shape index: {}]   ;;  %s7700_s15 = inlined_call_operand.hbm [shape: f32[1,64], index: 15, kind: input, shape index: {}]   ;;  %s7701_s16 = inlined_call_operand.hbm [shape: f32[5,64,128], index: 16, kind: input, shape index: {}]   ;;  %s7702_s17 = inlined_call_operand.hbm [shape: f32[1,128], index: 17, kind: input, shape index: {}]   ;;  %s7703_s18 = inlined_call_operand.hbm [shape: f32[1,128], index: 18, kind: input, shape index: {}]   ;;  %s7704_s19 = inlined_call_operand.hbm [shape: f32[5,128,256], index: 19, kind: input, shape index: {}]   ;;  %s7705_s20 = inlined_call_operand.hbm [shape: f32[1,256], index: 20, kind: input, shape index: {}]   ;;  %s7706_s21 = inlined_call_operand.hbm [shape: f32[1,256], index: 21, kind: input, shape index: {}]   ;;  %s7707_s22 = inlined_call_operand.hbm [shape: f32[5,256,512], index: 22, kind: input, shape index: {}]   ;;  %s7708_s23 = inlined_call_operand.hbm [shape: f32[1,512], index: 23, kind: input, shape index: {}]   ;;  %s7709_s24 = inlined_call_operand.hbm [shape: f32[1,512], index: 24, kind: input, shape index: {}]   ;;  %s7710_s25 = inlined_call_operand.vmem [shape: bf16[2,8,1024], index: 25, kind: output, shape index: {}]  }
   0x1   :  { %7718 = sst [smem:[#allocation59_spill]] %s7685_s0 }
   0x2   :  { %7719 = sst [smem:[#allocation60_spill]] %s7686_s1 }
   0x3   :  { %7720 = sst [smem:[#allocation61_spill]] %s7687_s2 }
   0x4   :  { %7721 = sst [smem:[#allocation62_spill]] %s7688_s3 }
   0x5   :  { %7722 = sst [smem:[#allocation63_spill]] %s7689_s4 }
   0x6   :  { %7723 = sst [smem:[#allocation64_spill]] %s7690_s5 }
   0x7   :  { %7724 = sst [smem:[#allocation65_spill]] %s7691_s6 }
   0x8   :  { %7725 = sst [smem:[#allocation66_spill]] %s7692_s7 }
   0x9   :  { %7726 = sst [smem:[#allocation67_spill]] %s7693_s8 }
   0xa   :  { %7727 = sst [smem:[#allocation68_spill]] %s7694_s9 }
   0xb   :  { %7728 = sst [smem:[#allocation69_spill]] %s7709_s24 }
   0xc   :  { %7729 = sst [smem:[#allocation70_spill]] %s7710_s25 }
   0xd   :  { %30 = vsyncpa [#allocation11], 0 }
   0xe   :  { %31 = vsyncpa [#allocation13], 0 }
   0xf   :  { %32 = vsyncpa [#allocation16], 0 }
  0x10   :  { %33 = vsyncpa [#allocation19], 0 }
  0x11   :  { %34 = vsyncpa [#allocation22], 0 }
  0x12   :  { %35 = vsyncpa [#allocation25], 0 }
  0x13   :  { %36 = vsyncpa [#allocation28], 0 }
  0x14   :  { %37 = vsyncpa [#allocation31], 0 }
  0x15   :  { %38 = vsyncpa [#allocation34], 0 }
  0x16   :  { %39 = vsyncpa [#allocation37], 0 }
  0x17   :  { %40 = vsyncpa [#allocation40], 0 }
  0x18   :  { %41 = vsyncpa [#allocation43], 0  ;;  %s6671_s29 = smov 0  }
  0x19 LB: > { %7730 = sst [smem:[#allocation57_spill]] %s6505_s29  ;;  %s6677_s2 = sadd.s32 4294967295, %s6505_s29   ;;  %s6505_s29 = sphi %s6671_s29, %s47_s29  }
  0x1a   : > { %p5440_p0 = scmp.ge.s32.totalorder %s6505_s29, 1  ;;  %p608_p1 = scmp.lt.s32.totalorder %s6505_s29, 3 }
  0x1c   : > { %p6681_p2 = pnand %p5440_p0, %p608_p1 }
  0x1d   : > { %p5693_p3 = scmp.eq.s32.totalorder (!%p6681_p2), %s6677_s2, 0  ;;  %s7733_s3 = sld [smem:[#allocation62_spill]] (!%p6681_p2) }
  0x1e   : > { %s7731_s6 = scalar_select %p6681_p2, 1, 0 }
  0x1f   : > { %612 = sbr.rel (%p6681_p2) target bundleno = 102 (0x66), region = 12  ;;  %s6507_s1 = smov (!%p6681_p2), [#allocation12]  }
  0x20   : > { %7732 = sst [smem:[#allocation58_spill]] %s7731_s6  ;;  %s637_s8 = sshll.u32 (!%p6681_p2), %s6507_s1, 4  ;;  %s638_s8 = int_to_ptr.vmem [resolvable:$true] %s637_s8 }
  0x21   : > { %s7734_s28 = sld [smem:[#allocation64_spill]] (!%p6681_p2)  ;;  %s6508_s6 = smov (!%p6681_p2), [#allocation15]  }
  0x22   : > { %s7735_s29 = sld [smem:[#allocation66_spill]] (!%p6681_p2)  ;;  %s663_s24 = sshll.u32 (!%p6681_p2), %s6508_s6, 4  ;;  %s664_s24 = int_to_ptr.vmem [resolvable:$true] %s663_s24 }
  0x23   : > { %s635_s26 = sshll.u32 (!%p6681_p2), %s7733_s3, 4  ;;  %s6509_s30 = smov (!%p6681_p2), [#allocation18]   ;;  %s636_s26 = int_to_ptr.hbm [resolvable:$true] %s635_s26 }
  0x24   : > { %5604 = dma.hbm_to_vmem [thread:$0]  (%p5693_p3), %s636_s26, 16, %s638_s8, [#allocation13]  }
  0x25   : > { %s686_s7 = sshll.u32 %s6509_s30, 4  ;;  %s7714_s3 = smov 128   ;;  %s687_s7 = int_to_ptr.vmem [resolvable:$true] %s686_s7 }
  0x26   : > { %s7716_s1 = smov 8   ;;  %s7736_s8 = sld [smem:[#allocation68_spill]] }
  0x27   : > { %s661_s9 = sshll.u32 %s7734_s28, 4  ;;  %s6512_s27 = smov [#allocation21]   ;;  %s662_s9 = int_to_ptr.hbm [resolvable:$true] %s661_s9 }
  0x28   : > { %s684_s25 = sshll.u32 %s7735_s29, 4  ;;  %s713_s4 = sshll.u32 %s6512_s27, 4  ;;  %s685_s25 = int_to_ptr.hbm [resolvable:$true] %s684_s25  ;;  %s714_s4 = int_to_ptr.vmem [resolvable:$true] %s713_s4 }
  0x29   : > { %5608 = dma.hbm_to_vmem [thread:$0]  (%p5693_p3), %s662_s9, 16, %s664_s24, [#allocation16]  }
  0x2a   : > { %5612 = dma.hbm_to_vmem [thread:$0]  (%p5693_p3), %s685_s25, 640, %s687_s7, [#allocation19], %s7714_s3, %s7714_s3, %s7716_s1  }
  0x2b   : > { %s737_s9 = sshll.u32 %s7696_s11, 4  ;;  %s6513_s5 = smov [#allocation24]   ;;  %s738_s9 = int_to_ptr.hbm [resolvable:$true] %s737_s9 }
  0x2c   : > { %s711_s6 = sshll.u32 %s7736_s8, 4  ;;  %s739_s0 = sshll.u32 %s6513_s5, 4  ;;  %s712_s6 = int_to_ptr.hbm [resolvable:$true] %s711_s6  ;;  %s740_s0 = int_to_ptr.vmem [resolvable:$true] %s739_s0 }
  0x2d   : > { %5616 = dma.hbm_to_vmem [thread:$0]  (%p5693_p3), %s712_s6, 16, %s714_s4, [#allocation22]  }
  0x2e   : > { %s760_s7 = sshll.u32 %s7698_s13, 4  ;;  %s787_s8 = sshll.u32 %s7700_s15, 4  ;;  %s761_s7 = int_to_ptr.hbm [resolvable:$true] %s760_s7  ;;  %s788_s8 = int_to_ptr.hbm [resolvable:$true] %s787_s8 }
  0x2f   : > { %5620 = dma.hbm_to_vmem [thread:$0]  (%p5693_p3), %s738_s9, 16, %s740_s0, [#allocation25]  }
  0x30   : > { %s6514_s27 = smov [#allocation27]   ;;  %s6515_s6 = smov [#allocation30]  }
  0x31   : > { %s762_s24 = sshll.u32 %s6514_s27, 4  ;;  %s789_s4 = sshll.u32 %s6515_s6, 4  ;;  %s763_s24 = int_to_ptr.vmem [resolvable:$true] %s762_s24  ;;  %s790_s4 = int_to_ptr.vmem [resolvable:$true] %s789_s4 }
  0x32   : > { %5624 = dma.hbm_to_vmem [thread:$0]  (%p5693_p3), %s761_s7, 2560, %s763_s24, [#allocation28], %s7714_s3, %s7714_s3, %s7716_s1  }
  0x33   : > { %s813_s9 = sshll.u32 %s7702_s17, 4  ;;  %s836_s25 = sshll.u32 %s7704_s19, 4  ;;  %s814_s9 = int_to_ptr.hbm [resolvable:$true] %s813_s9  ;;  %s837_s25 = int_to_ptr.hbm [resolvable:$true] %s836_s25 }
  0x34   : > { %5628 = dma.hbm_to_vmem [thread:$0]  (%p5693_p3), %s788_s8, 16, %s790_s4, [#allocation31]  }
  0x35   : > { %s6516_s26 = smov [#allocation33]   ;;  %s6517_s7 = smov [#allocation36]  }
  0x36   : > { %s815_s29 = sshll.u32 %s6516_s26, 4  ;;  %s838_s27 = sshll.u32 %s6517_s7, 4  ;;  %s816_s29 = int_to_ptr.vmem [resolvable:$true] %s815_s29  ;;  %s839_s27 = int_to_ptr.vmem [resolvable:$true] %s838_s27 }
  0x37   : > { %5632 = dma.hbm_to_vmem [thread:$0]  (%p5693_p3), %s814_s9, 16, %s816_s29, [#allocation34]  }
  0x38   : > { %s6518_s24 = smov 256   ;;  %s6519_s6 = smov 16  }
  0x39   : > { %5636 = dma.hbm_to_vmem [thread:$0]  (%p5693_p3), %s837_s25, 20480, %s839_s27, [#allocation37], %s6518_s24, %s6518_s24, %s6519_s6  }
  0x3a   : > { %s863_s28 = sshll.u32 %s7706_s21, 4  ;;  %s6520_s5 = smov [#allocation39]   ;;  %s864_s28 = int_to_ptr.hbm [resolvable:$true] %s863_s28 }
  0x3b   : > { %s865_s0 = sshll.u32 %s6520_s5, 4  ;;  %s889_s9 = sshll.u32 %s7708_s23, 4  ;;  %s866_s0 = int_to_ptr.vmem [resolvable:$true] %s865_s0  ;;  %s890_s9 = int_to_ptr.hbm [resolvable:$true] %s889_s9 }
  0x3c   : > { %5640 = dma.hbm_to_vmem [thread:$0]  (%p5693_p3), %s864_s28, 32, %s866_s0, [#allocation40]  }
  0x3d   : > { %s6521_s29 = smov [#allocation42]   ;;  %s7737_s24 = sld [smem:[#allocation61_spill]] }
  0x3e   : > { %s891_s7 = sshll.u32 %s6521_s29, 4  ;;  %s6522_s8 = smov [#allocation10]   ;;  %s892_s7 = int_to_ptr.vmem [resolvable:$true] %s891_s7 }
  0x3f   : > { %5644 = dma.hbm_to_vmem [thread:$0]  (%p5693_p3), %s890_s9, 64, %s892_s7, [#allocation43]  }
  0x40   : > { %s625_s4 = sshll.u32 %s6522_s8, 4  ;;  %s7738_s30 = sld [smem:[#allocation63_spill]]  ;;  %s626_s4 = int_to_ptr.vmem [resolvable:$true] %s625_s4 }
  0x41   : > { %s6523_s28 = smov [#allocation14]   ;;  %s7739_s27 = sld [smem:[#allocation65_spill]] }
  0x42   : > { %s648_s0 = sshll.u32 %s6523_s28, 4  ;;  %s6524_s9 = smov 64   ;;  %s649_s0 = int_to_ptr.vmem [resolvable:$true] %s648_s0 }
  0x43   : > { %s623_s6 = sshll.u32 %s7737_s24, 4  ;;  %s6525_s7 = smov 4   ;;  %s624_s6 = int_to_ptr.hbm [resolvable:$true] %s623_s6 }
  0x44   : > { %5602 = dma.hbm_to_vmem [thread:$0]  (%p5693_p3), %s624_s6, 16, %s626_s4, [#allocation11]  }
  0x45   : > { %s6526_s3 = smov [#allocation17]   ;;  %s7740_s1 = sld [smem:[#allocation67_spill]] }
  0x46   : > { %s646_s26 = sshll.u32 %s7738_s30, 4  ;;  %s675_s8 = sshll.u32 %s6526_s3, 4  ;;  %s647_s26 = int_to_ptr.hbm [resolvable:$true] %s646_s26  ;;  %s676_s8 = int_to_ptr.vmem [resolvable:$true] %s675_s8 }
  0x47   : > { %s673_s24 = sshll.u32 %s7739_s27, 4  ;;  %s722_s29 = sshll.u32 %s7695_s10, 4  ;;  %s674_s24 = int_to_ptr.hbm [resolvable:$true] %s673_s24  ;;  %s723_s29 = int_to_ptr.hbm [resolvable:$true] %s722_s29 }
  0x48   : > { %5606 = dma.hbm_to_vmem [thread:$0]  (%p5693_p3), %s647_s26, 320, %s649_s0, [#allocation13], %s6524_s9, %s6524_s9, %s6525_s7  }
  0x49   : > { %5610 = dma.hbm_to_vmem [thread:$0]  (%p5693_p3), %s674_s24, 16, %s676_s8, [#allocation16]  }
  0x4a   : > { %s6527_s25 = smov [#allocation20]   ;;  %s6528_s26 = smov [#allocation23]  }
  0x4b   : > { %s699_s6 = sshll.u32 %s7740_s1, 4  ;;  %s701_s27 = sshll.u32 %s6527_s25, 4  ;;  %s700_s6 = int_to_ptr.hbm [resolvable:$true] %s699_s6  ;;  %s702_s27 = int_to_ptr.vmem [resolvable:$true] %s701_s27 }
  0x4c   : > { %5614 = dma.hbm_to_vmem [thread:$0]  (%p5693_p3), %s700_s6, 16, %s702_s27, [#allocation19]  }
  0x4d   : > { %s724_s0 = sshll.u32 %s6528_s26, 4  ;;  %s749_s1 = sshll.u32 %s7697_s12, 4  ;;  %s725_s0 = int_to_ptr.vmem [resolvable:$true] %s724_s0  ;;  %s750_s1 = int_to_ptr.hbm [resolvable:$true] %s749_s1 }
  0x4e   : > { %s7741_s24 = smov 8   ;;  %s7742_s3 = smov 128  }
  0x4f   : > { %5618 = dma.hbm_to_vmem [thread:$0]  (%p5693_p3), %s723_s29, 1280, %s725_s0, [#allocation22], %s7742_s3, %s7742_s3, %s7741_s24  }
  0x50   : > { %s775_s30 = sshll.u32 %s7699_s14, 4  ;;  %s6529_s4 = smov [#allocation26]   ;;  %s776_s30 = int_to_ptr.hbm [resolvable:$true] %s775_s30 }
  0x51   : > { %s751_s6 = sshll.u32 %s6529_s4, 4  ;;  %s6530_s28 = smov [#allocation29]   ;;  %s752_s6 = int_to_ptr.vmem [resolvable:$true] %s751_s6 }
  0x52   : > { %5622 = dma.hbm_to_vmem [thread:$0]  (%p5693_p3), %s750_s1, 16, %s752_s6, [#allocation25]  }
  0x53   : > { %s777_s25 = sshll.u32 %s6530_s28, 4  ;;  %s798_s9 = sshll.u32 %s7701_s16, 4  ;;  %s778_s25 = int_to_ptr.vmem [resolvable:$true] %s777_s25  ;;  %s799_s9 = int_to_ptr.hbm [resolvable:$true] %s798_s9 }
  0x54   : > { %5626 = dma.hbm_to_vmem [thread:$0]  (%p5693_p3), %s776_s30, 16, %s778_s25, [#allocation28]  }
  0x55   : > { %s825_s7 = sshll.u32 %s7703_s18, 4  ;;  %s6531_s8 = smov [#allocation32]   ;;  %s826_s7 = int_to_ptr.hbm [resolvable:$true] %s825_s7 }
  0x56   : > { %s800_s5 = sshll.u32 %s6531_s8, 4  ;;  %s6532_s1 = smov [#allocation35]   ;;  %s801_s5 = int_to_ptr.vmem [resolvable:$true] %s800_s5 }
  0x57   : > { %5630 = dma.hbm_to_vmem [thread:$0]  (%p5693_p3), %s799_s9, 5120, %s801_s5, [#allocation31], %s7742_s3, %s7742_s3, %s7741_s24  }
  0x58   : > { %s827_s4 = sshll.u32 %s6532_s1, 4  ;;  %s851_s30 = sshll.u32 %s7705_s20, 4  ;;  %s828_s4 = int_to_ptr.vmem [resolvable:$true] %s827_s4  ;;  %s852_s30 = int_to_ptr.hbm [resolvable:$true] %s851_s30 }
  0x59   : > { %5634 = dma.hbm_to_vmem [thread:$0]  (%p5693_p3), %s826_s7, 16, %s828_s4, [#allocation34]  }
  0x5a   : > { %s874_s26 = sshll.u32 %s7707_s22, 4  ;;  %s6533_s29 = smov [#allocation38]   ;;  %s875_s26 = int_to_ptr.hbm [resolvable:$true] %s874_s26 }
  0x5b   : > { %s853_s0 = sshll.u32 %s6533_s29, 4  ;;  %s6534_s24 = smov [#allocation41]   ;;  %s854_s0 = int_to_ptr.vmem [resolvable:$true] %s853_s0 }
  0x5c   : > { %5638 = dma.hbm_to_vmem [thread:$0]  (%p5693_p3), %s852_s30, 32, %s854_s0, [#allocation37]  }
  0x5d   : > { %s876_s3 = sshll.u32 %s6534_s24, 4  ;;  %s6535_s9 = smov 512   ;;  %s877_s3 = int_to_ptr.vmem [resolvable:$true] %s876_s3 }
  0x5e   : > { %s6536_s8 = smov 32   ;;  %s7743_s1 = sld [smem:[#allocation69_spill]] }
  0x5f   : > { %5642 = dma.hbm_to_vmem [thread:$0]  (%p5693_p3), %s875_s26, 81920, %s877_s3, [#allocation40], %s6535_s9, %s6535_s9, %s6536_s8  }
  0x60   : > { %s6537_s6 = smov [#allocation44]  }
  0x61   : > { %s903_s28 = sshll.u32 %s6537_s6, 4  ;;  %s904_s28 = int_to_ptr.vmem [resolvable:$true] %s903_s28 }
  0x64   : > { %s901_s4 = sshll.u32 %s7743_s1, 4  ;;  %s902_s4 = int_to_ptr.hbm [resolvable:$true] %s901_s4 }
  0x65   : > { %5646 = dma.hbm_to_vmem [thread:$0]  (%p5693_p3), %s902_s4, 64, %s904_s28, [#allocation43]  }
  0x66 PF: > { %923 = sbr.rel (%p6681_p2) target bundleno = 1934 (0x78e), region = 120  ;;  %p5716_p4 = scmp.eq.s32.totalorder (!%p6681_p2), %s6677_s2, 0 }
  0x6b   : > { %6456 = dma.done.wait (%p5716_p4), [#allocation11], 16  }
  0x6c   : > { %6458 = vsyncadd (%p5716_p4), [#allocation11], 4294967280 }
  0x6d   : > { %6460 = dma.done.wait (%p5716_p4), [#allocation13], 336  }
  0x6e   : > { %6462 = vsyncadd (%p5716_p4), [#allocation13], 4294966960 }
  0x6f   : > { %6464 = dma.done.wait (%p5716_p4), [#allocation16], 32  }
  0x70   : > { %6466 = vsyncadd (%p5716_p4), [#allocation16], 4294967264 }
  0x71   : > { %6468 = dma.done.wait (%p5716_p4), [#allocation19], 656  }
  0x72   : > { %6470 = vsyncadd (%p5716_p4), [#allocation19], 4294966640 }
  0x73   : > { %6472 = dma.done.wait (%p5716_p4), [#allocation22], 1296  }
  0x74   : > { %6474 = vsyncadd (%p5716_p4), [#allocation22], 4294966000 }
  0x75   : > { %6476 = dma.done.wait (%p5716_p4), [#allocation25], 32  }
  0x76   : > { %6478 = vsyncadd (%p5716_p4), [#allocation25], 4294967264 }
  0x77   : > { %6480 = dma.done.wait (%p5716_p4), [#allocation28], 2576  }
  0x78   : > { %6482 = vsyncadd (%p5716_p4), [#allocation28], 4294964720 }
  0x79   : > { %6484 = dma.done.wait (%p5716_p4), [#allocation31], 5136  }
  0x7a   : > { %6486 = vsyncadd (%p5716_p4), [#allocation31], 4294962160 }
  0x7b   : > { %6488 = dma.done.wait (%p5716_p4), [#allocation34], 32  }
  0x7c   : > { %6490 = vsyncadd (%p5716_p4), [#allocation34], 4294967264 }
  0x7d   : > { %6492 = dma.done.wait (%p5716_p4), [#allocation37], 20512  }
  0x7e   : > { %6494 = vsyncadd (%p5716_p4), [#allocation37], 4294946784 }
  0x7f   : > { %6496 = dma.done.wait (%p5716_p4), [#allocation40], 81952  }
  0x80   : > { %6498 = vsyncadd (%p5716_p4), [#allocation40], 4294885344 }
  0x81   : > { %6500 = dma.done.wait (%p5716_p4), [#allocation43], 128  }
  0x82   : > { %6502 = vsyncadd (%p5716_p4), [#allocation43], 4294967168  ;;  %p1101_p5 = scmp.lt.s32.totalorder %s6677_s2, 1  ;;  %vm1219_vm0 = vcmask 15360   ;;  %v6538_v0 = vmov 0.0   ;;  %s7745_s29 = sld [smem:[#allocation59_spill]]  ;;  %v1110_v23 = vlaneseq }
  0x83   : > { %1221 = vst.msk [vmem:[#allocation2 + $0x8] sm:$0xff] %vm1219_vm0, %v6538_v0  ;;  %vm1277_vm1 = vcmask 1041408   ;;  %s7746_s9 = sld [smem:[#allocation60_spill]]  ;;  %s6539_s7 = smov 126   ;;  %vm1223_vm2 = vcmask 13312   ;;  %v6540_v38 = vmov 0  }
  0x84   : > { %s7760_s2 = smov (!%p1101_p5, %s6677_s2), 1  ;;  %1220 = vst.msk [vmem:[#allocation2] sm:$0xff] %vm1219_vm0, %v6538_v0  ;;  %v6924_v24 = vshrl.u32 %v1110_v23, 7  ;;  %vm1225_vm5 = vcmask 31744   ;;  %vm1531_vm10 = vcmask 1043456   ;;  %vm1227_vm11 = vcmask 25600  }
  0x85   : > { %1222 = vst.msk [vmem:[#allocation2 + $0x10] sm:$0xff] %vm1219_vm0, %v6538_v0  ;;  %s5489_s30 = sshll.u32 %s7760_s2, 3  ;;  %s5600_s27 = sshll.u32 %s7760_s2, 5 }
  0x86   : > { %1245 = vst [vmem:[#allocation8] sm:$0xff] %v6538_v0  ;;  %v1117_v25 = vand.u32 65535, %v6924_v24  ;;  %v1118_v26 = vshrl.u32 %v6924_v24, 16  ;;  %v6929_v31 = vadd.s32 8, %v6924_v24  ;;  %v6934_v43 = vadd.s32 16, %v6924_v24 }
  0x87   : > { %1246 = vst [vmem:[#allocation8 + $0x1c] sm:$0x3] %v6538_v0 }
  0x88   : > { %s1104_s0 = scalar_lea.vmem %s7745_s29, %s5489_s30  ;;  %1247 = vst [vmem:[#allocation9 + $0x20] sm:$0xff] %v6538_v0  ;;  %v1121_v27 = vmul.u32 52428, %v1117_v25  ;;  %v1120_v28 = vmul.u32 52429, %v1117_v25  ;;  %v1122_v29 = vmul.u32 52429, %v1118_v26  ;;  %v1146_v34 = vand.u32 65535, %v6929_v31 }
  0x89   : > { %v1251_v1 = vld [vmem:[%s1104_s0] sm:$0xff]  ;;  %1248 = vst [vmem:[#allocation9] sm:$0xff] %v6538_v0  ;;  %v5511_v10 = vld [vmem:[%s7746_s9 + $0x8] sm:$0x3]  ;;  %v1147_v35 = vshrl.u32 %v6929_v31, 16  ;;  %v1123_v37 = vmul.u32 52428, %v1118_v26 }
  0x8a   : > { %v5501_v2 = vld [vmem:[%s7746_s9 + $0x4] sm:$0x3]  ;;  %v5506_v3 = vld [vmem:[%s7746_s9 + $0x6] sm:$0x3]  ;;  %1252 = vst.msk [vmem:[#allocation2 + $0x8] sm:$0xff] %vm1219_vm0, %v1251_v1  ;;  %1255 = vrot.lane.b32.xlu0 %v1251_v1, %s6539_s7  ;;  %v1124_v30 = vshll.u32 %v1121_v27, 16 }
  0x8b   : > { %5502 = vmatpush.msk.msra.mxu2 %vm1277_vm1, %v5501_v2  ;;  %1249 = vst [vmem:[#allocation9 + $0x38] sm:$0x30] %v6538_v0  ;;  %5507 = vmatpush.msk.msra.mxu3 %vm1277_vm1, %v5506_v3  ;;  %v5492_v6 = vld [vmem:[%s7746_s9 + $0x2] sm:$0x3]  ;;  %v1262_v7 = vld [vmem:[%s7746_s9] sm:$0x3] }
  0x8c   : > { %1250 = vst [vmem:[#allocation9 + $0x30] sm:$0x30] %v6538_v0  ;;  %5493 = vmatpush.msk.msra.mxu0 %vm1277_vm1, %v5492_v6  ;;  %5497 = vmatpush.msk.msra.mxu1 %vm1277_vm1, %v1262_v7  ;;  %v1126_v32 = vshll.u32 %v1122_v29, 16  ;;  %v1130_v33 = vadd.s32 %v1124_v30, %v1120_v28  ;;  %vm1128_vm3 = vc.u32 %v1120_v28, %v1124_v30  ;;  %v1150_v36 = vmul.u32 52428, %v1146_v34  ;;  %s7755_s0 = sld [smem:[#allocation70_spill]] }
  0x8d   : > { %1224 = vst.msk [vmem:[#allocation2 + $0x18] sm:$0x3f] %vm1223_vm2, %v6538_v0  ;;  %v1129_v39 = vsel %vm1128_vm3, 1, %v6540_v38  ;;  %v1149_v40 = vmul.u32 52429, %v1146_v34  ;;  %v1151_v41 = vmul.u32 52429, %v1147_v35  ;;  %v1175_v45 = vand.u32 65535, %v6934_v43 }
  0x8e   : > { %5512 = vmatpush.msk.msrb.mxu0 %vm1277_vm1, %v5511_v10  ;;  %vm1132_vm4 = vc.u32 %v1130_v33, %v1126_v32  ;;  %v1153_v42 = vshll.u32 %v1150_v36, 16  ;;  %v1131_v44 = vadd.s32 %v1129_v39, %v1123_v37  ;;  %1226 = vst.msk [vmem:[#allocation3] sm:$0xff] %vm1225_vm5, %v6538_v0  ;;  %v1176_v49 = vshrl.u32 %v6934_v43, 16  ;;  %v1844_v39 = vld [vmem:[#allocation18 + $0x10] sm:$0xff] }
  0x8f   : > { %v1133_v46 = vsel %vm1132_vm4, 1, %v6540_v38  ;;  %v1155_v47 = vshll.u32 %v1151_v41, 16  ;;  %v1179_v50 = vmul.u32 52428, %v1175_v45  ;;  %v1125_v51 = vshrl.u32 %v1121_v27, 16  ;;  %1228 = vst.msk [vmem:[#allocation3 + $0x1c] sm:$0x3] %vm1227_vm11, %v6538_v0 }
  0x90   : > { %vm1157_vm6 = vc.u32 %v1149_v40, %v1153_v42  ;;  %v1159_v48 = vadd.s32 %v1153_v42, %v1149_v40  ;;  %v1135_v52 = vadd.s32 %v1133_v46, %v1131_v44  ;;  %v1152_v53 = vmul.u32 52428, %v1147_v35  ;;  %v5782_v44 = vld [vmem:[#allocation12] ss:$0 sm:$0xff] }
  0x91   : > { %v1345_v4 = vld [vmem:[#allocation2 + $0x8] sm:$0xff]  ;;  %v1158_v55 = vsel %vm1157_vm6, 1, %v6540_v38  ;;  %v1178_v56 = vmul.u32 52429, %v1175_v45  ;;  %v1180_v57 = vmul.u32 52429, %v1176_v49  ;;  %v1182_v58 = vshll.u32 %v1179_v50, 16 }
  0x92   : > { %v1391_v5 = vld [vmem:[#allocation2 + $0x9] sm:$0xff]  ;;  %5503 = vmatmul.msk.f32.vlgmr.msra.gmra.mxu2 %vm1219_vm0, %v1345_v4  ;;  %vm1161_vm7 = vc.u32 %v1159_v48, %v1155_v47  ;;  %v1127_v59 = vshrl.u32 %v1122_v29, 16  ;;  %v1136_v60 = vadd.s32 %v1135_v52, %v1125_v51  ;;  %v1160_v61 = vadd.s32 %v1158_v55, %v1152_v53  ;;  %v4030_v55 = vld [vmem:[#allocation41 + $0x978] sm:$0xff]  ;;  %s7645_s24 = scalar_lea.vmem %s7755_s0, %s5600_s27 }
  0x93   : > { %5508 = vmatmul.msk.f32.vlgmr.msra.gmra.mxu3 %vm1219_vm0, %v1391_v5  ;;  %v1263_v8 = vld [vmem:[#allocation2 + $0x7] sm:$0xff]  ;;  %v1162_v62 = vsel %vm1161_vm7, 1, %v6540_v38  ;;  %v1184_v63 = vshll.u32 %v1180_v57, 16  ;;  %vm1186_vm8 = vc.u32 %v1178_v56, %v1182_v58  ;;  %v1188_v1 = vadd.s32 %v1182_v58, %v1178_v56  ;;  %v1649_v29 = vld [vmem:[#allocation14 + $0xc] sm:$0xf] }
  0x94   : > { %v1259_v9 = vld [vmem:[#allocation2 + $0x6] sm:$0xff]  ;;  %5494 = vmatmul.msk.f32.vlgmr.msra.gmra.mxu0 %vm1219_vm0, %v1263_v8  ;;  %v1439_v22 = vld [vmem:[#allocation2 + $0x1a] sm:$0xf]  ;;  %v1137_v2 = vadd.s32 %v1136_v60, %v1127_v59  ;;  %v1154_v3 = vshrl.u32 %v1150_v36, 16  ;;  %v1164_v4 = vadd.s32 %v1162_v62, %v1160_v61  ;;  %v1181_v5 = vmul.u32 52428, %v1176_v49 }
  0x95   : > { %5498 = vmatmul.msk.f32.vlgmr.msra.gmra.mxu1 %vm1219_vm0, %v1259_v9  ;;  %v1437_v20 = vld [vmem:[#allocation2 + $0xa] sm:$0xff]  ;;  %v1187_v6 = vsel %vm1186_vm8, 1, %v6540_v38  ;;  %vm1190_vm9 = vc.u32 %v1188_v1, %v1184_v63  ;;  %v1156_v9 = vshrl.u32 %v1151_v41, 16  ;;  %v1185_v27 = vshrl.u32 %v1180_v57, 16  ;;  %5528 = vmatpush.msk.msra.mxu0 %vm1531_vm10, %v1649_v29 }
  0x96   : > { %v1138_v8 = vshrl.u32 %v1137_v2, 3  ;;  %v1165_v10 = vadd.s32 %v1164_v4, %v1154_v3  ;;  %vm1229_vm11 = vcmask 64512  }
  0x97   : > { %1230 = vst.msk [vmem:[#allocation4] sm:$0xff] %vm1229_vm11, %v6538_v0 }
  0xfc   : > { %v1256_v11 = vpop.permute.xlu0 %1255 }
  0xfd   : > { %1258 = vst.msk [vmem:[#allocation2 + $0x12] sm:$0xff] %vm1219_vm0, %v1256_v11  ;;  %v1189_v11 = vadd.s32 %v1187_v6, %v1181_v5  ;;  %v4009_v6 = vld [vmem:[#allocation41 + $0x8d0] sm:$0xff] }
 0x104   : > { %v1264_v12 = vld [vmem:[#allocation2 + $0xf] sm:$0xff]  ;;  %v1265_v16 = vld [vmem:[#allocation2 + $0x17] sm:$0xf] }
 0x105   : > { %v1260_v13 = vld [vmem:[#allocation2 + $0xe] sm:$0xff]  ;;  %5495 = vmatmul.msk.f32.gmra.mxu0 %vm1219_vm0, %v1264_v12  ;;  %v1261_v17 = vld [vmem:[#allocation2 + $0x16] sm:$0xf] }
 0x106   : > { %v1346_v14 = vld [vmem:[#allocation2 + $0x10] sm:$0xff]  ;;  %5499 = vmatmul.msk.f32.gmra.mxu1 %vm1219_vm0, %v1260_v13  ;;  %v1347_v18 = vld [vmem:[#allocation2 + $0x18] sm:$0xf]  ;;  %v1191_v13 = vsel %vm1190_vm9, 1, %v6540_v38 }
 0x107   : > { %v1392_v15 = vld [vmem:[#allocation2 + $0x11] sm:$0xff]  ;;  %5504 = vmatmul.msk.f32.gmra.mxu2 %vm1219_vm0, %v1346_v14  ;;  %v1393_v19 = vld [vmem:[#allocation2 + $0x19] sm:$0xf]  ;;  %v1521_v14 = vld [vmem:[#allocation14 + $0x4] sm:$0xf] }
 0x108   : > { %5509 = vmatmul.msk.f32.gmra.mxu3 %vm1219_vm0, %v1392_v15  ;;  %v1438_v21 = vld [vmem:[#allocation2 + $0x12] sm:$0xff]  ;;  %v1516_v15 = vld [vmem:[#allocation14] sm:$0xf]  ;;  %5516 = vmatpush.msk.msrb.mxu1 %vm1531_vm10, %v1521_v14 }
 0x109   : > { %5520 = vmatpush.msk.msrb.mxu2 %vm1531_vm10, %v1516_v15 }
 0x10d   : > { %5496 = vmatmul.msk.f32.gmra.mxu0 %vm1219_vm0, %v1265_v16  ;;  %v1603_v16 = vld [vmem:[#allocation14 + $0x8] sm:$0xf] }
 0x10e   : > { %5500 = vmatmul.msk.f32.gmra.mxu1 %vm1219_vm0, %v1261_v17  ;;  %5524 = vmatpush.msk.msrb.mxu3 %vm1531_vm10, %v1603_v16  ;;  %v1139_v17 = vmul.u32 10, %v1138_v8 }
 0x10f   : > { %5505 = vmatmul.msk.f32.gmra.mxu2 %vm1219_vm0, %v1347_v18  ;;  %v1166_v18 = vadd.s32 %v1165_v10, %v1156_v9 }
 0x110   : > { %5510 = vmatmul.msk.f32.gmra.mxu3 %vm1219_vm0, %v1393_v19  ;;  %v1183_v19 = vshrl.u32 %v1179_v50, 16  ;;  %v1140_v25 = vsub.s32 %v6924_v24, %v1139_v17  ;;  %v5781_v24 = vld [vmem:[#allocation10] ss:$0 sm:$0xff]  ;;  %v1695_v50 = vld [vmem:[#allocation14 + $0x10] sm:$0xf] }
 0x111   : > { %v1298_v54 = vpop.f32.mrf.mxu0  ;;  %v1167_v26 = vshrl.u32 %v1166_v18, 3  ;;  %5532 = vmatpush.msk.msra.mxu1 %vm1531_vm10, %v1695_v50  ;;  %vm1511_vm10 = vcmask 27648   ;;  %v5783_v50 = vld [vmem:[#allocation15] ss:$0 sm:$0xff]  ;;  %v3283_v18 = vld [vmem:[#allocation41 + $0x108] sm:$0xff] }
 0x112   : > { %v1336_v12 = vpop.f32.mrf.mxu1  ;;  %vm1201_vm12 = vcmp.ne.s32.totalorder %v1140_v25, 0  ;;  %vm1204_vm13 = vcmp.lt.s32.totalorder %v1140_v25, 0  ;;  %v1210_v38 = vadd.s32 10, %v1140_v25 }
 0x113   : > { %v1168_v34 = vmul.u32 10, %v1167_v26  ;;  %vm6946_vm14 = vmand %vm1204_vm13, %vm1201_vm12  ;;  %vm1759_vm12 = vcmask 60416   ;;  %vm1233_vm13 = vcmask 130048  }
 0x114   : > { %v1213_v48 = vsel %vm6946_vm14, %v1210_v38, %v1140_v25  ;;  %v1769_v38 = vld [vmem:[#allocation18 + $0x8] sm:$0xff]  ;;  %1234 = vst.msk [vmem:[#allocation5] sm:$0xff] %vm1233_vm13, %v6538_v0  ;;  %vm1235_vm14 = vcmask 123904  }
 0x115   : > { %5513 = vmatmul.msk.f32.vlgmr.msrb.gmra.mxu0 %vm1219_vm0, %v1437_v20  ;;  %v1193_v20 = vadd.s32 %v1191_v13, %v1189_v11  ;;  %v1169_v45 = vsub.s32 %v6929_v31, %v1168_v34  ;;  %vm6954_vm2 = vcmp.lt.s32.totalorder %v1213_v48, 8  ;;  %1794 = vmatpush.msra.mxu2 %v1769_v38  ;;  %1236 = vst.msk [vmem:[#allocation5 + $0x1c] sm:$0x3] %vm1235_vm14, %v6538_v0 }
 0x116   : > { %v1425_v32 = vpop.f32.mrf.mxu3  ;;  %1869 = vmatpush.msrb.mxu0 %v1844_v39  ;;  %v1997_v39 = vld [vmem:[#allocation23 + $0x8] sm:$0xff] }
 0x117   : > { %v1194_v28 = vadd.s32 %v1193_v20, %v1183_v19  ;;  %vm1202_vm15 = vcmp.ne.s32.totalorder %v1169_v45, 0  ;;  %v1211_v57 = vadd.s32 10, %v1169_v45 }
 0x119   : > { %v1195_v35 = vadd.s32 %v1194_v28, %v1185_v27 }
 0x11b   : > { %v1196_v46 = vshrl.u32 %v1195_v35, 3 }
 0x11d   : > { %5514 = vmatmul.msk.f32.gmra.mxu0 %vm1219_vm0, %v1438_v21  ;;  %v1379_v21 = vpop.f32.mrf.mxu2  ;;  %v1197_v53 = vmul.u32 10, %v1196_v46  ;;  %v1887_v46 = vld [vmem:[#allocation18 + $0x18] sm:$0xff] }
 0x11f   : > { %v1198_v63 = vsub.s32 %v6934_v43, %v1197_v53 }
 0x121   : > { %vm1203_vm4 = vcmp.ne.s32.totalorder %v1198_v63, 0  ;;  %vm1206_vm6 = vcmp.lt.s32.totalorder %v1198_v63, 0  ;;  %v1212_v9 = vadd.s32 10, %v1198_v63 }
 0x122   : > { %vm1209_vm8 = vmand %vm1206_vm6, %vm1203_vm4  ;;  %vm2228_vm4 = vcmask 257024   ;;  %vm1241_vm6 = vcmask 523264  }
 0x123   : > { %v1215_v15 = vsel %vm1209_vm8, %v1212_v9, %v1198_v63  ;;  %vm1243_vm8 = vcmask 517120  }
 0x124   : > { %vm6972_vm9 = vcmp.lt.s32.totalorder %v1215_v15, 8 }
 0x125   : > { %5515 = vmatmul.msk.f32.gmra.mxu0 %vm1219_vm0, %v1439_v22  ;;  %v1337_v22 = vadd.f32 %v1336_v12, %v1298_v54  ;;  %vm1205_vm0 = vcmp.lt.s32.totalorder %v1169_v45, 0 }
 0x126   : > { %vm1208_vm3 = vmand %vm1205_vm0, %vm1202_vm15  ;;  %vm1991_vm15 = vcmask 125952   ;;  %vm1237_vm0 = vcmask 261120  }
 0x127   : > { %v1388_v30 = vadd.f32 %v1379_v21, %v1337_v22  ;;  %v1214_v2 = vsel %vm1208_vm3, %v1211_v57, %v1169_v45  ;;  %v1930_v57 = vld [vmem:[#allocation18 + $0x20] sm:$0xff]  ;;  %1238 = vst.msk [vmem:[#allocation6] sm:$0xff] %vm1237_vm0, %v6538_v0  ;;  %vm1239_vm3 = vcmask 254976  }
 0x128   : > { %vm6962_vm7 = vcmp.lt.s32.totalorder %v1214_v2, 8  ;;  %1240 = vst.msk [vmem:[#allocation6 + $0x1c] sm:$0x3] %vm1239_vm3, %v6538_v0 }
 0x129   : > { %v1434_v37 = vadd.f32 %v1425_v32, %v1388_v30 }
 0x182   : > { %v1301_v7 = vpop.f32.mrf.mxu0 }
 0x183   : > { %v1339_v33 = vpop.f32.mrf.mxu1 }
 0x184   : > { %v1340_v41 = vadd.f32 %v1339_v33, %v1301_v7 }
 0x18a   : > { %v1304_v23 = vpop.f32.mrf.mxu0  ;;  %v1382_v36 = vpop.f32.mrf.mxu2 }
 0x18b   : > { %v1389_v47 = vadd.f32 %v1382_v36, %v1340_v41  ;;  %v1428_v51 = vpop.f32.mrf.mxu3  ;;  %v1342_v54 = vpop.f32.mrf.mxu1 }
 0x18c   : > { %v1343_v60 = vadd.f32 %v1342_v54, %v1304_v23  ;;  %v5784_v54 = vld [vmem:[#allocation17] ss:$0 sm:$0xff] }
 0x18d   : > { %v1435_v31 = vadd.f32 %v1428_v51, %v1389_v47 }
 0x192   : > { %v1471_v40 = vpop.f32.mrf.mxu0  ;;  %v1385_v58 = vpop.f32.mrf.mxu2 }
 0x193   : > { %v1480_v42 = vadd.f32 %v1471_v40, %v1434_v37  ;;  %v1390_v1 = vadd.f32 %v1385_v58, %v1343_v60  ;;  %v1431_v5 = vpop.f32.mrf.mxu3 }
 0x195   : > { %v1487_v49 = vmul.f32 %v5781_v24, %v1480_v42  ;;  %v1436_v7 = vadd.f32 %v1431_v5, %v1390_v1 }
 0x197   : > { %v1494_v52 = vadd.f32 %v5782_v44, %v1487_v49 }
 0x199   : > { %v1497_v56 = vmax.f32 %v1494_v52, 0.0 }
 0x19a   : > { %v1474_v59 = vpop.f32.mrf.mxu0 }
 0x19b   : > { %v1506_v61 = vsel %vm6954_vm2, %v1497_v56, 0.0  ;;  %v1481_v62 = vadd.f32 %v1474_v59, %v1435_v31 }
 0x19c   : > { %1509 = vst.msk [vmem:[#allocation3 + $0x8] sm:$0xff] %vm1225_vm5, %v1506_v61 }
 0x19d   : > { %v1488_v3 = vmul.f32 %v5781_v24, %v1481_v62 }
 0x19f   : > { %v1495_v4 = vadd.f32 %v5782_v44, %v1488_v3 }
 0x1a1   : > { %v1498_v8 = vmax.f32 %v1495_v4, 0.0 }
 0x1a2   : > { %v1477_v10 = vpop.f32.mrf.mxu0 }
 0x1a3   : > { %v1507_v43 = vsel %vm6962_vm7, %v1498_v8, 0.0  ;;  %v1482_v11 = vadd.f32 %v1477_v10, %v1436_v7  ;;  %v1517_v12 = vld [vmem:[#allocation3 + $0x7] sm:$0xff] }
 0x1a4   : > { %v1513_v13 = vld [vmem:[#allocation3 + $0x6] sm:$0xff]  ;;  %1510 = vst.msk [vmem:[#allocation3 + $0x10] sm:$0xff] %vm1225_vm5, %v1507_v43  ;;  %5517 = vmatmul.msk.f32.vlgmr.msrb.gmra.mxu1 %vm1225_vm5, %v1517_v12 }
 0x1a5   : > { %v1599_v14 = vld [vmem:[#allocation3 + $0x8] sm:$0xff]  ;;  %5521 = vmatmul.msk.f32.vlgmr.msrb.gmra.mxu2 %vm1225_vm5, %v1513_v13  ;;  %v1489_v16 = vmul.f32 %v5781_v24, %v1482_v11  ;;  %v1764_v24 = vld [vmem:[#allocation18] sm:$0xff]  ;;  %1912 = vmatpush.msrb.mxu1 %v1887_v46 }
 0x1a6   : > { %5525 = vmatmul.msk.f32.vlgmr.msrb.gmra.mxu3 %vm1225_vm5, %v1599_v14  ;;  %1955 = vmatpush.msrb.mxu2 %v1930_v57 }
 0x1a7   : > { %v1496_v17 = vadd.f32 %v5782_v44, %v1489_v16  ;;  %1829 = vmatpush.msra.mxu3 %v1764_v24  ;;  %v2003_v24 = vld [vmem:[#allocation23 + $0x18] sm:$0xff] }
 0x1a9   : > { %v1499_v19 = vmax.f32 %v1496_v17, 0.0  ;;  %2027 = vmatpush.msrb.mxu3 %v2003_v24 }
 0x1ab   : > { %v1508_v20 = vsel %vm6972_vm9, %v1499_v19, 0.0  ;;  %v1518_v21 = vld [vmem:[#allocation3 + $0xf] sm:$0xff] }
 0x1ac   : > { %v1514_v22 = vld [vmem:[#allocation3 + $0xe] sm:$0xff]  ;;  %1512 = vst.msk [vmem:[#allocation3 + $0x18] sm:$0xf] %vm1511_vm10, %v1508_v20  ;;  %5518 = vmatmul.msk.f32.gmra.mxu1 %vm1225_vm5, %v1518_v21  ;;  %vm2475_vm10 = vcmask 519168  }
 0x1ad   : > { %v1600_v23 = vld [vmem:[#allocation3 + $0x10] sm:$0xff]  ;;  %5522 = vmatmul.msk.f32.gmra.mxu2 %vm1225_vm5, %v1514_v22 }
 0x1ae   : > { %v1645_v25 = vld [vmem:[#allocation3 + $0x9] sm:$0xff]  ;;  %5526 = vmatmul.msk.f32.gmra.mxu3 %vm1225_vm5, %v1600_v23 }
 0x1af   : > { %5529 = vmatmul.msk.f32.vlgmr.msra.gmra.mxu0 %vm1225_vm5, %v1645_v25  ;;  %v1691_v30 = vld [vmem:[#allocation3 + $0xa] sm:$0xff] }
 0x1b0   : > { %2062 = vmatpush.msra.mxu0 %v1997_v39 }
 0x1b3   : > { %v1519_v26 = vld [vmem:[#allocation3 + $0x17] sm:$0xf] }
 0x1b4   : > { %v1515_v27 = vld [vmem:[#allocation3 + $0x16] sm:$0xf]  ;;  %5519 = vmatmul.msk.f32.gmra.mxu1 %vm1225_vm5, %v1519_v26  ;;  %v1693_v34 = vld [vmem:[#allocation3 + $0x1a] sm:$0xf] }
 0x1b5   : > { %v1601_v28 = vld [vmem:[#allocation3 + $0x18] sm:$0xf]  ;;  %5523 = vmatmul.msk.f32.gmra.mxu2 %vm1225_vm5, %v1515_v27 }
 0x1b6   : > { %v1646_v29 = vld [vmem:[#allocation3 + $0x11] sm:$0xff]  ;;  %5527 = vmatmul.msk.f32.gmra.mxu3 %vm1225_vm5, %v1601_v28  ;;  %v1647_v32 = vld [vmem:[#allocation3 + $0x19] sm:$0xf] }
 0x1b7   : > { %5530 = vmatmul.msk.f32.gmra.mxu0 %vm1225_vm5, %v1646_v29  ;;  %v1692_v33 = vld [vmem:[#allocation3 + $0x12] sm:$0xff] }
 0x1bc   : > { %5533 = vmatmul.msk.f32.vlgmr.msra.gmra.mxu1 %vm1225_vm5, %v1691_v30 }
 0x1bf   : > { %5531 = vmatmul.msk.f32.gmra.mxu0 %vm1225_vm5, %v1647_v32 }
 0x1c4   : > { %5534 = vmatmul.msk.f32.gmra.mxu1 %vm1225_vm5, %v1692_v33 }
 0x1cc   : > { %5535 = vmatmul.msk.f32.gmra.mxu1 %vm1225_vm5, %v1693_v34  ;;  %vm1231_vm5 = vcmask 58368  }
 0x1cd   : > { %1232 = vst.msk [vmem:[#allocation4 + $0x1c] sm:$0x3] %vm1231_vm5, %v6538_v0 }
 0x221   : > { %v1552_v35 = vpop.f32.mrf.mxu1 }
 0x228   : > { %v1590_v36 = vpop.f32.mrf.mxu2 }
 0x229   : > { %v1555_v37 = vpop.f32.mrf.mxu1  ;;  %v1633_v40 = vpop.f32.mrf.mxu3  ;;  %v1591_v41 = vadd.f32 %v1590_v36, %v1552_v35 }
 0x22b   : > { %v1642_v47 = vadd.f32 %v1633_v40, %v1591_v41  ;;  %v2079_v40 = vld [vmem:[#allocation23 + $0x28] sm:$0xff]  ;;  %v2002_v41 = vld [vmem:[#allocation23 + $0x10] sm:$0xff] }
 0x22c   : > { %v1679_v44 = vpop.f32.mrf.mxu0  ;;  %2103 = vmatpush.msra.mxu1 %v2079_v40  ;;  %2028 = vmatpush.msrb.mxu3 %v2002_v41 }
 0x22d   : > { %v1688_v48 = vadd.f32 %v1679_v44, %v1642_v47  ;;  %v2078_v44 = vld [vmem:[#allocation23 + $0x20] sm:$0xff] }
 0x22e   : > { %2104 = vmatpush.msra.mxu1 %v2078_v44  ;;  %v2236_v44 = vld [vmem:[#allocation27 + $0x18] sm:$0xff] }
 0x230   : > { %v1593_v45 = vpop.f32.mrf.mxu2 }
 0x231   : > { %v1558_v42 = vpop.f32.mrf.mxu1  ;;  %v1594_v49 = vadd.f32 %v1593_v45, %v1555_v37  ;;  %v1636_v51 = vpop.f32.mrf.mxu3 }
 0x233   : > { %v1643_v31 = vadd.f32 %v1636_v51, %v1594_v49  ;;  %v2122_v51 = vld [vmem:[#allocation23 + $0x30] sm:$0xff] }
 0x234   : > { %v1682_v58 = vpop.f32.mrf.mxu0 }
 0x235   : > { %v1689_v61 = vadd.f32 %v1682_v58, %v1643_v31  ;;  %v5785_v31 = vld [vmem:[#allocation20] ss:$0 sm:$0xff] }
 0x238   : > { %v1596_v59 = vpop.f32.mrf.mxu2 }
 0x239   : > { %v1725_v52 = vpop.f32.mrf.mxu1  ;;  %v1597_v62 = vadd.f32 %v1596_v59, %v1558_v42  ;;  %v1639_v4 = vpop.f32.mrf.mxu3  ;;  %v1996_v42 = vld [vmem:[#allocation23] sm:$0xff]  ;;  %v5786_v59 = vld [vmem:[#allocation21] ss:$0 sm:$0xff] }
 0x23a   : > { %v1734_v53 = vadd.f32 %v1725_v52, %v1688_v48  ;;  %2063 = vmatpush.msra.mxu0 %v1996_v42  ;;  %v2123_v48 = vld [vmem:[#allocation23 + $0x38] sm:$0xff]  ;;  %v2244_v42 = vld [vmem:[#allocation27 + $0x38] sm:$0xff] }
 0x23b   : > { %v1644_v5 = vadd.f32 %v1639_v4, %v1597_v62  ;;  %v2167_v62 = vld [vmem:[#allocation23 + $0x48] sm:$0xff] }
 0x23c   : > { %v1741_v56 = vmul.f32 %v5783_v50, %v1734_v53  ;;  %v1685_v9 = vpop.f32.mrf.mxu0 }
 0x23d   : > { %v1690_v10 = vadd.f32 %v1685_v9, %v1644_v5 }
 0x23e   : > { %v1748_v60 = vadd.f32 %v5784_v54, %v1741_v56 }
 0x240   : > { %v1751_v63 = vmax.f32 %v1748_v60, 0.0 }
 0x241   : > { %v1728_v1 = vpop.f32.mrf.mxu1 }
 0x242   : > { %v1754_v2 = vsel %vm6954_vm2, %v1751_v63, 0.0  ;;  %v1735_v3 = vadd.f32 %v1728_v1, %v1689_v61  ;;  %v2166_v63 = vld [vmem:[#allocation23 + $0x40] sm:$0xff] }
 0x243   : > { %1757 = vst.msk [vmem:[#allocation4 + $0x8] sm:$0xff] %vm1229_vm11, %v1754_v2 }
 0x244   : > { %v1742_v7 = vmul.f32 %v5783_v50, %v1735_v3 }
 0x246   : > { %v1749_v8 = vadd.f32 %v5784_v54, %v1742_v7 }
 0x248   : > { %v1752_v43 = vmax.f32 %v1749_v8, 0.0 }
 0x249   : > { %v1731_v11 = vpop.f32.mrf.mxu1 }
 0x24a   : > { %v1755_v12 = vsel %vm6962_vm7, %v1752_v43, 0.0  ;;  %v1736_v13 = vadd.f32 %v1731_v11, %v1690_v10  ;;  %v1765_v14 = vld [vmem:[#allocation4 + $0x7] sm:$0xff] }
 0x24b   : > { %v1761_v15 = vld [vmem:[#allocation4 + $0x6] sm:$0xff]  ;;  %1758 = vst.msk [vmem:[#allocation4 + $0x10] sm:$0xff] %vm1229_vm11, %v1755_v12  ;;  %5536 = vmatmul.msk.f32.vlgmr.msra.gmra.mxu2 %vm1229_vm11, %v1765_v14 }
 0x24c   : > { %v1840_v16 = vld [vmem:[#allocation4 + $0x8] sm:$0xff]  ;;  %5539 = vmatmul.msk.f32.vlgmr.msra.gmra.mxu3 %vm1229_vm11, %v1761_v15  ;;  %v1743_v17 = vmul.f32 %v5783_v50, %v1736_v13  ;;  %2147 = vmatpush.msra.mxu2 %v2123_v48 }
 0x24d   : > { %5542 = vmatmul.msk.f32.vlgmr.msrb.gmra.mxu0 %vm1229_vm11, %v1840_v16  ;;  %2191 = vmatpush.msra.mxu3 %v2167_v62  ;;  %v2321_v48 = vld [vmem:[#allocation27 + $0x50] sm:$0xff]  ;;  %v2366_v62 = vld [vmem:[#allocation27 + $0x68] sm:$0xff] }
 0x24e   : > { %v1750_v19 = vadd.f32 %v5784_v54, %v1743_v17  ;;  %2148 = vmatpush.msra.mxu2 %v2122_v51  ;;  %2266 = vmatpush.msrb.mxu0 %v2244_v42  ;;  %v2234_v51 = vld [vmem:[#allocation27 + $0x8] sm:$0xff] }
 0x24f   : > { %2192 = vmatpush.msra.mxu3 %v2166_v63 }
 0x250   : > { %v1753_v20 = vmax.f32 %v1750_v19, 0.0 }
 0x252   : > { %v1756_v21 = vsel %vm6972_vm9, %v1753_v20, 0.0  ;;  %v1766_v22 = vld [vmem:[#allocation4 + $0xf] sm:$0xff] }
 0x253   : > { %v1762_v23 = vld [vmem:[#allocation4 + $0xe] sm:$0xff]  ;;  %1760 = vst.msk [vmem:[#allocation4 + $0x18] sm:$0xf] %vm1759_vm12, %v1756_v21  ;;  %5537 = vmatmul.msk.f32.gmra.mxu2 %vm1229_vm11, %v1766_v22 }
 0x254   : > { %v1841_v25 = vld [vmem:[#allocation4 + $0x10] sm:$0xff]  ;;  %5540 = vmatmul.msk.f32.gmra.mxu3 %vm1229_vm11, %v1762_v23 }
 0x255   : > { %v1883_v26 = vld [vmem:[#allocation4 + $0x9] sm:$0xff]  ;;  %5543 = vmatmul.msk.f32.gmra.mxu0 %vm1229_vm11, %v1841_v25 }
 0x256   : > { %5545 = vmatmul.msk.f32.vlgmr.msrb.gmra.mxu1 %vm1229_vm11, %v1883_v26  ;;  %v1926_v32 = vld [vmem:[#allocation4 + $0xa] sm:$0xff] }
 0x257   : > { %2301 = vmatpush.msrb.mxu1 %v2236_v44 }
 0x25a   : > { %v1767_v27 = vld [vmem:[#allocation4 + $0x17] sm:$0xf] }
 0x25b   : > { %v1763_v28 = vld [vmem:[#allocation4 + $0x16] sm:$0xf]  ;;  %5538 = vmatmul.msk.f32.gmra.mxu2 %vm1229_vm11, %v1767_v27  ;;  %v1928_v35 = vld [vmem:[#allocation4 + $0x1a] sm:$0xf] }
 0x25c   : > { %v1842_v29 = vld [vmem:[#allocation4 + $0x18] sm:$0xf]  ;;  %5541 = vmatmul.msk.f32.gmra.mxu3 %vm1229_vm11, %v1763_v28 }
 0x25d   : > { %v1884_v30 = vld [vmem:[#allocation4 + $0x11] sm:$0xff]  ;;  %5544 = vmatmul.msk.f32.gmra.mxu0 %vm1229_vm11, %v1842_v29  ;;  %v1885_v33 = vld [vmem:[#allocation4 + $0x19] sm:$0xf] }
 0x25e   : > { %5546 = vmatmul.msk.f32.gmra.mxu1 %vm1229_vm11, %v1884_v30  ;;  %v1927_v34 = vld [vmem:[#allocation4 + $0x12] sm:$0xff] }
 0x263   : > { %5548 = vmatmul.msk.f32.vlgmr.msrb.gmra.mxu2 %vm1229_vm11, %v1926_v32 }
 0x266   : > { %5547 = vmatmul.msk.f32.gmra.mxu1 %vm1229_vm11, %v1885_v33 }
 0x26b   : > { %5549 = vmatmul.msk.f32.gmra.mxu2 %vm1229_vm11, %v1927_v34 }
 0x273   : > { %5550 = vmatmul.msk.f32.gmra.mxu2 %vm1229_vm11, %v1928_v35  ;;  %vm3519_vm11 = vcmask 1040384  }
 0x2ca   : > { %v1871_v45 = vpop.f32.mrf.mxu0 }
 0x2ce   : > { %v1796_v36 = vpop.f32.mrf.mxu2 }
 0x2cf   : > { %v1831_v37 = vpop.f32.mrf.mxu3 }
 0x2d0   : > { %v1832_v46 = vadd.f32 %v1831_v37, %v1796_v36 }
 0x2d2   : > { %v1880_v52 = vadd.f32 %v1871_v45, %v1832_v46  ;;  %v1874_v56 = vpop.f32.mrf.mxu0  ;;  %v2322_v45 = vld [vmem:[#allocation27 + $0x58] sm:$0xff]  ;;  %v2243_v46 = vld [vmem:[#allocation27 + $0x30] sm:$0xff] }
 0x2d3   : > { %v1914_v49 = vpop.f32.mrf.mxu1  ;;  %2344 = vmatpush.msrb.mxu2 %v2322_v45  ;;  %2267 = vmatpush.msrb.mxu0 %v2243_v46 }
 0x2d4   : > { %v1923_v53 = vadd.f32 %v1914_v49, %v1880_v52  ;;  %v2320_v52 = vld [vmem:[#allocation27 + $0x48] sm:$0xff] }
 0x2d5   : > { %2345 = vmatpush.msrb.mxu2 %v2321_v48 }
 0x2d6   : > { %v1799_v38 = vpop.f32.mrf.mxu2 }
 0x2d7   : > { %v1834_v50 = vpop.f32.mrf.mxu3  ;;  %2346 = vmatpush.msrb.mxu2 %v2320_v52 }
 0x2d8   : > { %v1835_v54 = vadd.f32 %v1834_v50, %v1799_v38  ;;  %v2242_v50 = vld [vmem:[#allocation27 + $0x28] sm:$0xff] }
 0x2d9   : > { %2268 = vmatpush.msrb.mxu0 %v2242_v50 }
 0x2da   : > { %v1881_v60 = vadd.f32 %v1874_v56, %v1835_v54  ;;  %v1877_v43 = vpop.f32.mrf.mxu0  ;;  %v2233_v54 = vld [vmem:[#allocation27] sm:$0xff] }
 0x2db   : > { %v1917_v1 = vpop.f32.mrf.mxu1 }
 0x2dc   : > { %v1924_v4 = vadd.f32 %v1917_v1, %v1881_v60  ;;  %v2365_v1 = vld [vmem:[#allocation27 + $0x60] sm:$0xff] }
 0x2de   : > { %v1802_v47 = vpop.f32.mrf.mxu2 }
 0x2df   : > { %v1837_v2 = vpop.f32.mrf.mxu3 }
 0x2e0   : > { %v1838_v5 = vadd.f32 %v1837_v2, %v1802_v47  ;;  %v2235_v47 = vld [vmem:[#allocation27 + $0x10] sm:$0xff] }
 0x2e1   : > { %2302 = vmatpush.msrb.mxu1 %v2235_v47 }
 0x2e2   : > { %v1882_v11 = vadd.f32 %v1877_v43, %v1838_v5  ;;  %v5787_v5 = vld [vmem:[#allocation24] ss:$0 sm:$0xff] }
 0x2e3   : > { %v1920_v14 = vpop.f32.mrf.mxu1  ;;  %2303 = vmatpush.msrb.mxu1 %v2234_v51 }
 0x2e4   : > { %v1925_v15 = vadd.f32 %v1920_v14, %v1882_v11  ;;  %v2413_v14 = vld [vmem:[#allocation27 + $0x90] sm:$0xff] }
 0x2e5   : > { %2304 = vmatpush.msrb.mxu1 %v2233_v54 }
 0x2e6   : > { %v1957_v57 = vpop.f32.mrf.mxu2 }
 0x2e7   : > { %v1966_v58 = vadd.f32 %v1957_v57, %v1923_v53  ;;  %v2241_v53 = vld [vmem:[#allocation27 + $0x20] sm:$0xff]  ;;  %v2368_v57 = vld [vmem:[#allocation27 + $0x78] sm:$0xff] }
 0x2e8   : > { %2269 = vmatpush.msrb.mxu0 %v2241_v53 }
 0x2e9   : > { %v1973_v61 = vmul.f32 %v5785_v31, %v1966_v58  ;;  %v2367_v58 = vld [vmem:[#allocation27 + $0x70] sm:$0xff] }
 0x2eb   : > { %v1980_v3 = vadd.f32 %v5786_v59, %v1973_v61 }
 0x2ed   : > { %v1983_v7 = vmax.f32 %v1980_v3, 0.0 }
 0x2ee   : > { %v1960_v8 = vpop.f32.mrf.mxu2 }
 0x2ef   : > { %v1986_v9 = vsel %vm6954_vm2, %v1983_v7, 0.0  ;;  %v1967_v10 = vadd.f32 %v1960_v8, %v1924_v4 }
 0x2f0   : > { %1989 = vst.msk [vmem:[#allocation5 + $0x8] sm:$0xff] %vm1233_vm13, %v1986_v9 }
 0x2f1   : > { %v1974_v12 = vmul.f32 %v5785_v31, %v1967_v10  ;;  %v5788_v10 = vld [vmem:[#allocation26] ss:$0 sm:$0xff] }
 0x2f3   : > { %v1981_v13 = vadd.f32 %v5786_v59, %v1974_v12 }
 0x2f5   : > { %v1984_v16 = vmax.f32 %v1981_v13, 0.0  ;;  %v2414_v13 = vld [vmem:[#allocation27 + $0x98] sm:$0xff] }
 0x2f6   : > { %v1963_v17 = vpop.f32.mrf.mxu2 }
 0x2f7   : > { %v1987_v19 = vsel %vm6962_vm7, %v1984_v16, 0.0  ;;  %v1968_v20 = vadd.f32 %v1963_v17, %v1925_v15  ;;  %v1998_v21 = vld [vmem:[#allocation5 + $0x7] sm:$0xff] }
 0x2f8   : > { %v1993_v22 = vld [vmem:[#allocation5 + $0x6] sm:$0xff]  ;;  %1990 = vst.msk [vmem:[#allocation5 + $0x10] sm:$0xff] %vm1233_vm13, %v1987_v19  ;;  %5551 = vmatmul.msk.f32.vlgmr.msrb.gmra.mxu3 %vm1233_vm13, %v1998_v21 }
 0x2f9   : > { %v2074_v23 = vld [vmem:[#allocation5 + $0x8] sm:$0xff]  ;;  %5554 = vmatmul.msk.f32.vlgmr.msra.gmra.mxu0 %vm1233_vm13, %v1993_v22  ;;  %v1975_v25 = vmul.f32 %v5785_v31, %v1968_v20  ;;  %v2319_v31 = vld [vmem:[#allocation27 + $0x40] sm:$0xff]  ;;  %2390 = vmatpush.msrb.mxu3 %v2368_v57 }
 0x2fa   : > { %5557 = vmatmul.msk.f32.vlgmr.msra.gmra.mxu1 %vm1233_vm13, %v2074_v23  ;;  %2347 = vmatpush.msrb.mxu2 %v2319_v31  ;;  %v2412_v17 = vld [vmem:[#allocation27 + $0x88] sm:$0xff]  ;;  %v2411_v20 = vld [vmem:[#allocation27 + $0x80] sm:$0xff] }
 0x2fb   : > { %v1982_v26 = vadd.f32 %v5786_v59, %v1975_v25  ;;  %2391 = vmatpush.msrb.mxu3 %v2367_v58  ;;  %2436 = vmatpush.msra.mxu0 %v2414_v13  ;;  %v7068_v57 = vld [vmem:[#allocation8] sm:$0xff]  ;;  %v2499_v58 = vld [vmem:[#allocation32 + $0x78] sm:$0xff]  ;;  %v2482_v13 = vld [vmem:[#allocation32 + $0x10] sm:$0xff] }
 0x2fc   : > { %1242 = vst.msk [vmem:[#allocation7] sm:$0xff] %vm1241_vm6, %v7068_v57  ;;  %2517 = vmatpush.msra.mxu1 %v2499_v58  ;;  %v2674_v58 = vld [vmem:[#allocation32 + $0x100] sm:$0xff] }
 0x2fd   : > { %v1985_v27 = vmax.f32 %v1982_v26, 0.0  ;;  %2392 = vmatpush.msrb.mxu3 %v2366_v62  ;;  %2437 = vmatpush.msra.mxu0 %v2413_v14  ;;  %v2486_v62 = vld [vmem:[#allocation32 + $0x30] sm:$0xff]  ;;  %1244 = vst.msk [vmem:[#allocation7 + $0x1c] sm:$0x3] %vm1243_vm8, %v7068_v57 }
 0x2fe   : > { %v2576_v14 = vld [vmem:[#allocation32 + $0x90] sm:$0xff] }
 0x2ff   : > { %v1988_v28 = vsel %vm6972_vm9, %v1985_v27, 0.0  ;;  %v1999_v29 = vld [vmem:[#allocation5 + $0xf] sm:$0xff]  ;;  %2393 = vmatpush.msrb.mxu3 %v2365_v1  ;;  %2438 = vmatpush.msra.mxu0 %v2412_v17 }
 0x300   : > { %v1994_v30 = vld [vmem:[#allocation5 + $0xe] sm:$0xff]  ;;  %1992 = vst.msk [vmem:[#allocation5 + $0x18] sm:$0xf] %vm1991_vm15, %v1988_v28  ;;  %5552 = vmatmul.msk.f32.gmra.mxu3 %vm1233_vm13, %v1999_v29 }
 0x301   : > { %v2075_v32 = vld [vmem:[#allocation5 + $0x10] sm:$0xff]  ;;  %5555 = vmatmul.msk.f32.gmra.mxu0 %vm1233_vm13, %v1994_v30  ;;  %v2493_v17 = vld [vmem:[#allocation32 + $0x48] sm:$0xff] }
 0x302   : > { %v2118_v33 = vld [vmem:[#allocation5 + $0x9] sm:$0xff]  ;;  %5558 = vmatmul.msk.f32.gmra.mxu1 %vm1233_vm13, %v2075_v32  ;;  %2439 = vmatpush.msra.mxu0 %v2411_v20 }
 0x303   : > { %5560 = vmatmul.msk.f32.vlgmr.msra.gmra.mxu2 %vm1233_vm13, %v2118_v33  ;;  %v2162_v38 = vld [vmem:[#allocation5 + $0xa] sm:$0xff] }
 0x304   : > { %v2629_v20 = vld [vmem:[#allocation32 + $0xe8] sm:$0xff] }
 0x307   : > { %v2000_v34 = vld [vmem:[#allocation5 + $0x17] sm:$0xf] }
 0x308   : > { %v1995_v35 = vld [vmem:[#allocation5 + $0x16] sm:$0xf]  ;;  %5553 = vmatmul.msk.f32.gmra.mxu3 %vm1233_vm13, %v2000_v34  ;;  %v2164_v40 = vld [vmem:[#allocation5 + $0x1a] sm:$0xf] }
 0x309   : > { %v2076_v36 = vld [vmem:[#allocation5 + $0x18] sm:$0xf]  ;;  %5556 = vmatmul.msk.f32.gmra.mxu0 %vm1233_vm13, %v1995_v35 }
 0x30a   : > { %v2119_v37 = vld [vmem:[#allocation5 + $0x11] sm:$0xff]  ;;  %5559 = vmatmul.msk.f32.gmra.mxu1 %vm1233_vm13, %v2076_v36  ;;  %v2120_v24 = vld [vmem:[#allocation5 + $0x19] sm:$0xf] }
 0x30b   : > { %5561 = vmatmul.msk.f32.gmra.mxu2 %vm1233_vm13, %v2119_v37  ;;  %v2163_v39 = vld [vmem:[#allocation5 + $0x12] sm:$0xff] }
 0x310   : > { %5563 = vmatmul.msk.f32.vlgmr.msra.gmra.mxu3 %vm1233_vm13, %v2162_v38 }
 0x313   : > { %5562 = vmatmul.msk.f32.gmra.mxu2 %vm1233_vm13, %v2120_v24 }
 0x318   : > { %5564 = vmatmul.msk.f32.gmra.mxu3 %vm1233_vm13, %v2163_v39 }
 0x320   : > { %5565 = vmatmul.msk.f32.gmra.mxu3 %vm1233_vm13, %v2164_v40 }
 0x376   : > { %v2065_v56 = vpop.f32.mrf.mxu0 }
 0x377   : > { %v2106_v59 = vpop.f32.mrf.mxu1 }
 0x37b   : > { %v2030_v41 = vpop.f32.mrf.mxu3 }
 0x37c   : > { %v2066_v63 = vadd.f32 %v2065_v56, %v2030_v41 }
 0x37e   : > { %v2115_v2 = vadd.f32 %v2106_v59, %v2066_v63  ;;  %v2068_v3 = vpop.f32.mrf.mxu0  ;;  %v2487_v59 = vld [vmem:[#allocation32 + $0x38] sm:$0xff]  ;;  %v2580_v63 = vld [vmem:[#allocation32 + $0xb0] sm:$0xff] }
 0x37f   : > { %v2109_v43 = vpop.f32.mrf.mxu1  ;;  %2552 = vmatpush.msra.mxu2 %v2487_v59 }
 0x381   : > { %2553 = vmatpush.msra.mxu2 %v2486_v62 }
 0x383   : > { %v2033_v49 = vpop.f32.mrf.mxu3 }
 0x384   : > { %v2069_v8 = vadd.f32 %v2068_v3, %v2033_v49  ;;  %v2485_v3 = vld [vmem:[#allocation32 + $0x28] sm:$0xff] }
 0x385   : > { %2554 = vmatpush.msra.mxu2 %v2485_v3 }
 0x386   : > { %v2150_v60 = vpop.f32.mrf.mxu2  ;;  %v2116_v15 = vadd.f32 %v2109_v43, %v2069_v8  ;;  %v2071_v21 = vpop.f32.mrf.mxu0  ;;  %v2578_v8 = vld [vmem:[#allocation32 + $0xa0] sm:$0xff]  ;;  %v2577_v43 = vld [vmem:[#allocation32 + $0x98] sm:$0xff] }
 0x387   : > { %v2159_v4 = vadd.f32 %v2150_v60, %v2115_v2  ;;  %v2112_v28 = vpop.f32.mrf.mxu1  ;;  %v2581_v60 = vld [vmem:[#allocation32 + $0xb8] sm:$0xff]  ;;  %v2497_v2 = vld [vmem:[#allocation32 + $0x68] sm:$0xff] }
 0x388   : > { %2599 = vmatpush.msra.mxu3 %v2581_v60 }
 0x38a   : > { %2600 = vmatpush.msra.mxu3 %v2580_v63 }
 0x38b   : > { %v2036_v61 = vpop.f32.mrf.mxu3 }
 0x38c   : > { %v2072_v23 = vadd.f32 %v2071_v21, %v2036_v61  ;;  %v2498_v61 = vld [vmem:[#allocation32 + $0x70] sm:$0xff]  ;;  %v2492_v21 = vld [vmem:[#allocation32 + $0x40] sm:$0xff] }
 0x38d   : > { %2518 = vmatpush.msra.mxu1 %v2498_v61 }
 0x38e   : > { %v2153_v11 = vpop.f32.mrf.mxu2  ;;  %v2117_v30 = vadd.f32 %v2112_v28, %v2072_v23  ;;  %v2574_v23 = vld [vmem:[#allocation32 + $0x80] sm:$0xff] }
 0x38f   : > { %v2160_v19 = vadd.f32 %v2153_v11, %v2116_v15  ;;  %2519 = vmatpush.msra.mxu1 %v2497_v2  ;;  %v2631_v11 = vld [vmem:[#allocation32 + $0xf8] sm:$0xff]  ;;  %v2630_v15 = vld [vmem:[#allocation32 + $0xf0] sm:$0xff] }
 0x393   : > { %v2194_v7 = vpop.f32.mrf.mxu3 }
 0x394   : > { %v2203_v9 = vadd.f32 %v2194_v7, %v2159_v4  ;;  %v2579_v4 = vld [vmem:[#allocation32 + $0xa8] sm:$0xff]  ;;  %v2484_v7 = vld [vmem:[#allocation32 + $0x20] sm:$0xff] }
 0x395   : > { %2601 = vmatpush.msra.mxu3 %v2579_v4  ;;  %2555 = vmatpush.msra.mxu2 %v2484_v7 }
 0x396   : > { %v2210_v12 = vmul.f32 %v5787_v5, %v2203_v9  ;;  %v2156_v29 = vpop.f32.mrf.mxu2  ;;  %v2495_v9 = vld [vmem:[#allocation32 + $0x58] sm:$0xff] }
 0x397   : > { %v2161_v33 = vadd.f32 %v2156_v29, %v2117_v30  ;;  %2602 = vmatpush.msra.mxu3 %v2578_v8  ;;  %v2626_v29 = vld [vmem:[#allocation32 + $0xd0] sm:$0xff] }
 0x398   : > { %v2217_v16 = vadd.f32 %v5788_v10, %v2210_v12  ;;  %v2494_v12 = vld [vmem:[#allocation32 + $0x50] sm:$0xff] }
 0x399   : > { %2603 = vmatpush.msra.mxu3 %v2577_v43 }
 0x39a   : > { %v2220_v0 = vmax.f32 %v2217_v16, 0.0 }
 0x39b   : > { %v2197_v22 = vpop.f32.mrf.mxu3  ;;  %2604 = vmatpush.msra.mxu3 %v2576_v14 }
 0x39c   : > { %v2223_v25 = vsel %vm6954_vm2, %v2220_v0, 0.0  ;;  %v2204_v26 = vadd.f32 %v2197_v22, %v2160_v19  ;;  %v2481_v19 = vld [vmem:[#allocation32 + $0x8] sm:$0xff]  ;;  %v2480_v22 = vld [vmem:[#allocation32] sm:$0xff] }
 0x39d   : > { %2226 = vst.msk [vmem:[#allocation6 + $0x8] sm:$0xff] %vm1237_vm0, %v2223_v25  ;;  %v2575_v0 = vld [vmem:[#allocation32 + $0x88] sm:$0xff]  ;;  %v2628_v25 = vld [vmem:[#allocation32 + $0xe0] sm:$0xff] }
 0x39e   : > { %v2211_v27 = vmul.f32 %v5787_v5, %v2204_v26  ;;  %2605 = vmatpush.msra.mxu3 %v2575_v0 }
 0x3a0   : > { %v2218_v32 = vadd.f32 %v5788_v10, %v2211_v27  ;;  %2606 = vmatpush.msra.mxu3 %v2574_v23  ;;  %v2627_v27 = vld [vmem:[#allocation32 + $0xd8] sm:$0xff] }
 0x3a1   : > { %v2813_v23 = vld [vmem:[#allocation36 + $0x1f8] sm:$0xff] }
 0x3a2   : > { %v2221_v34 = vmax.f32 %v2218_v32, 0.0 }
 0x3a3   : > { %v2200_v35 = vpop.f32.mrf.mxu3 }
 0x3a4   : > { %v2224_v36 = vsel %vm6962_vm7, %v2221_v34, 0.0  ;;  %v2205_v37 = vadd.f32 %v2200_v35, %v2161_v33  ;;  %v2237_v38 = vld [vmem:[#allocation6 + $0x7] sm:$0xff] }
 0x3a5   : > { %v2230_v24 = vld [vmem:[#allocation6 + $0x6] sm:$0xff]  ;;  %2227 = vst.msk [vmem:[#allocation6 + $0x10] sm:$0xff] %vm1237_vm0, %v2224_v36  ;;  %5566 = vmatmul.msk.f32.vlgmr.msrb.gmra.mxu0 %vm1237_vm0, %v2237_v38  ;;  %v2681_v36 = vld [vmem:[#allocation32 + $0x138] sm:$0xff] }
 0x3a6   : > { %v2315_v39 = vld [vmem:[#allocation6 + $0x8] sm:$0xff]  ;;  %5569 = vmatmul.msk.f32.vlgmr.msrb.gmra.mxu1 %vm1237_vm0, %v2230_v24  ;;  %v2212_v40 = vmul.f32 %v5787_v5, %v2205_v37  ;;  %v2496_v5 = vld [vmem:[#allocation32 + $0x60] sm:$0xff]  ;;  %2649 = vmatpush.msrb.mxu0 %v2631_v11  ;;  %v2680_v37 = vld [vmem:[#allocation32 + $0x130] sm:$0xff] }
 0x3a7   : > { %5572 = vmatmul.msk.f32.vlgmr.msrb.gmra.mxu2 %vm1237_vm0, %v2315_v39  ;;  %2520 = vmatpush.msra.mxu1 %v2496_v5  ;;  %v2625_v33 = vld [vmem:[#allocation32 + $0xc8] sm:$0xff]  ;;  %v2624_v34 = vld [vmem:[#allocation32 + $0xc0] sm:$0xff] }
 0x3a8   : > { %v2219_v41 = vadd.f32 %v5788_v10, %v2212_v40  ;;  %v2483_v10 = vld [vmem:[#allocation32 + $0x18] sm:$0xff]  ;;  %2650 = vmatpush.msrb.mxu0 %v2630_v15  ;;  %v2679_v24 = vld [vmem:[#allocation32 + $0x128] sm:$0xff] }
 0x3a9   : > { %2521 = vmatpush.msra.mxu1 %v2495_v9  ;;  %2556 = vmatpush.msra.mxu2 %v2483_v10 }
 0x3aa   : > { %v2222_v42 = vmax.f32 %v2219_v41, 0.0  ;;  %2651 = vmatpush.msrb.mxu0 %v2629_v20  ;;  %v5789_v41 = vld [vmem:[#allocation29] ss:$0 sm:$0xff] }
 0x3ab   : > { %2522 = vmatpush.msra.mxu1 %v2494_v12  ;;  %2557 = vmatpush.msra.mxu2 %v2482_v13 }
 0x3ac   : > { %v2225_v44 = vsel %vm6972_vm9, %v2222_v42, 0.0  ;;  %v2238_v45 = vld [vmem:[#allocation6 + $0xf] sm:$0xff]  ;;  %2652 = vmatpush.msrb.mxu0 %v2628_v25  ;;  %v2678_v42 = vld [vmem:[#allocation32 + $0x120] sm:$0xff] }
 0x3ad   : > { %v2231_v46 = vld [vmem:[#allocation6 + $0xe] sm:$0xff]  ;;  %2229 = vst.msk [vmem:[#allocation6 + $0x18] sm:$0xf] %vm2228_vm4, %v2225_v44  ;;  %5567 = vmatmul.msk.f32.gmra.mxu0 %vm1237_vm0, %v2238_v45  ;;  %2523 = vmatpush.msra.mxu1 %v2493_v17  ;;  %v2810_v25 = vld [vmem:[#allocation36 + $0x1e0] sm:$0xff] }
 0x3ae   : > { %v2316_v47 = vld [vmem:[#allocation6 + $0x10] sm:$0xff]  ;;  %5570 = vmatmul.msk.f32.gmra.mxu1 %vm1237_vm0, %v2231_v46  ;;  %2558 = vmatpush.msra.mxu2 %v2481_v19 }
 0x3af   : > { %v2361_v48 = vld [vmem:[#allocation6 + $0x9] sm:$0xff]  ;;  %5573 = vmatmul.msk.f32.gmra.mxu2 %vm1237_vm0, %v2316_v47  ;;  %2524 = vmatpush.msra.mxu1 %v2492_v21  ;;  %v5790_v47 = vld [vmem:[#allocation30] ss:$0 sm:$0xff] }
 0x3b0   : > { %5575 = vmatmul.msk.f32.vlgmr.msrb.gmra.mxu3 %vm1237_vm0, %v2361_v48  ;;  %v2407_v53 = vld [vmem:[#allocation6 + $0xa] sm:$0xff]  ;;  %2559 = vmatpush.msra.mxu2 %v2480_v22  ;;  %v2812_v22 = vld [vmem:[#allocation36 + $0x1f0] sm:$0xff] }
 0x3b1   : > { %2653 = vmatpush.msrb.mxu0 %v2627_v27  ;;  %2699 = vmatpush.msrb.mxu1 %v2681_v36  ;;  %v2808_v36 = vld [vmem:[#allocation36 + $0x1d0] sm:$0xff] }
 0x3b2   : > { %2814 = vmatpush.msrb.mxu2 %v2812_v22  ;;  %2840 = vmatpush.msrb.mxu3 %v2813_v23  ;;  %v2755_v22 = vld [vmem:[#allocation36 + $0x48] sm:$0xff]  ;;  %v2782_v23 = vld [vmem:[#allocation36 + $0x100] sm:$0xff] }
 0x3b3   : > { %2654 = vmatpush.msrb.mxu0 %v2626_v29  ;;  %2700 = vmatpush.msrb.mxu1 %v2680_v37  ;;  %v2809_v37 = vld [vmem:[#allocation36 + $0x1d8] sm:$0xff] }
 0x3b4   : > { %v2239_v49 = vld [vmem:[#allocation6 + $0x17] sm:$0xf]  ;;  %2815 = vmatpush.msrb.mxu2 %v2810_v25  ;;  %v2783_v25 = vld [vmem:[#allocation36 + $0x108] sm:$0xff] }
 0x3b5   : > { %v2232_v50 = vld [vmem:[#allocation6 + $0x16] sm:$0xf]  ;;  %5568 = vmatmul.msk.f32.gmra.mxu0 %vm1237_vm0, %v2239_v49  ;;  %v2409_v56 = vld [vmem:[#allocation6 + $0x1a] sm:$0xf]  ;;  %2701 = vmatpush.msrb.mxu1 %v2679_v24  ;;  %v2807_v24 = vld [vmem:[#allocation36 + $0x1c8] sm:$0xff] }
 0x3b6   : > { %v2317_v51 = vld [vmem:[#allocation6 + $0x18] sm:$0xf]  ;;  %5571 = vmatmul.msk.f32.gmra.mxu1 %vm1237_vm0, %v2232_v50  ;;  %2655 = vmatpush.msrb.mxu0 %v2625_v33 }
 0x3b7   : > { %v2362_v52 = vld [vmem:[#allocation6 + $0x11] sm:$0xff]  ;;  %5574 = vmatmul.msk.f32.gmra.mxu2 %vm1237_vm0, %v2317_v51  ;;  %v2363_v54 = vld [vmem:[#allocation6 + $0x19] sm:$0xf]  ;;  %2702 = vmatpush.msrb.mxu1 %v2678_v42 }
 0x3b8   : > { %5576 = vmatmul.msk.f32.gmra.mxu3 %vm1237_vm0, %v2362_v52  ;;  %v2408_v31 = vld [vmem:[#allocation6 + $0x12] sm:$0xff]  ;;  %2656 = vmatpush.msrb.mxu0 %v2624_v34  ;;  %v2805_v42 = vld [vmem:[#allocation36 + $0x1b8] sm:$0xff] }
 0x3b9   : > { %v2677_v51 = vld [vmem:[#allocation32 + $0x118] sm:$0xff]  ;;  %v2676_v52 = vld [vmem:[#allocation32 + $0x110] sm:$0xff]  ;;  %2816 = vmatpush.msrb.mxu2 %v2808_v36 }
 0x3ba   : > { %2703 = vmatpush.msrb.mxu1 %v2677_v51  ;;  %v2801_v51 = vld [vmem:[#allocation36 + $0x198] sm:$0xff]  ;;  %v2748_v36 = vld [vmem:[#allocation36 + $0x10] sm:$0xff] }
 0x3bc   : > { %2704 = vmatpush.msrb.mxu1 %v2676_v52  ;;  %v2770_v52 = vld [vmem:[#allocation36 + $0xc0] sm:$0xff] }
 0x3bd   : > { %5578 = vmatmul.msk.f32.vlgmr.msra.gmra.mxu0 %vm1237_vm0, %v2407_v53 }
 0x3c0   : > { %5577 = vmatmul.msk.f32.gmra.mxu3 %vm1237_vm0, %v2363_v54 }
 0x3c5   : > { %5579 = vmatmul.msk.f32.gmra.mxu0 %vm1237_vm0, %v2408_v31  ;;  %v2675_v31 = vld [vmem:[#allocation32 + $0x108] sm:$0xff] }
 0x3c6   : > { %2705 = vmatpush.msrb.mxu1 %v2675_v31  ;;  %v2799_v31 = vld [vmem:[#allocation36 + $0x188] sm:$0xff] }
 0x3c8   : > { %2706 = vmatpush.msrb.mxu1 %v2674_v58  ;;  %v2796_v58 = vld [vmem:[#allocation36 + $0x170] sm:$0xff] }
 0x3cd   : > { %5580 = vmatmul.msk.f32.gmra.mxu0 %vm1237_vm0, %v2409_v56 }
 0x422   : > { %v2271_v1 = vpop.f32.mrf.mxu0 }
 0x423   : > { %v2306_v26 = vpop.f32.mrf.mxu1 }
 0x424   : > { %v2307_v35 = vadd.f32 %v2306_v26, %v2271_v1  ;;  %v2811_v26 = vld [vmem:[#allocation36 + $0x1e8] sm:$0xff] }
 0x425   : > { %2841 = vmatpush.msrb.mxu3 %v2811_v26  ;;  %v2752_v26 = vld [vmem:[#allocation36 + $0x30] sm:$0xff] }
 0x427   : > { %2842 = vmatpush.msrb.mxu3 %v2809_v37  ;;  %v2749_v37 = vld [vmem:[#allocation36 + $0x18] sm:$0xff] }
 0x429   : > { %2843 = vmatpush.msrb.mxu3 %v2807_v24  ;;  %v2949_v24 = vld [vmem:[#allocation36 + $0x2d8] sm:$0xff] }
 0x42a   : > { %v2274_v16 = vpop.f32.mrf.mxu0  ;;  %v2349_v28 = vpop.f32.mrf.mxu2 }
 0x42b   : > { %v2358_v38 = vadd.f32 %v2349_v28, %v2307_v35  ;;  %v2309_v39 = vpop.f32.mrf.mxu1  ;;  %2844 = vmatpush.msrb.mxu3 %v2805_v42  ;;  %v2947_v42 = vld [vmem:[#allocation36 + $0x2c8] sm:$0xff] }
 0x42c   : > { %v2310_v49 = vadd.f32 %v2309_v39, %v2274_v16  ;;  %v2776_v39 = vld [vmem:[#allocation36 + $0xf0] sm:$0xff] }
 0x42d   : > { %2866 = vmatpush.msra.mxu0 %v2776_v39  ;;  %v2746_v39 = vld [vmem:[#allocation36] sm:$0xff] }
 0x432   : > { %v2277_v32 = vpop.f32.mrf.mxu0  ;;  %v2352_v44 = vpop.f32.mrf.mxu2 }
 0x433   : > { %v2395_v30 = vpop.f32.mrf.mxu3  ;;  %v2359_v53 = vadd.f32 %v2352_v44, %v2310_v49  ;;  %v2312_v59 = vpop.f32.mrf.mxu1  ;;  %v2774_v44 = vld [vmem:[#allocation36 + $0xe0] sm:$0xff]  ;;  %v2773_v49 = vld [vmem:[#allocation36 + $0xd8] sm:$0xff] }
 0x434   : > { %v2404_v40 = vadd.f32 %v2395_v30, %v2358_v38  ;;  %v2313_v1 = vadd.f32 %v2312_v59, %v2277_v32  ;;  %v2806_v38 = vld [vmem:[#allocation36 + $0x1c0] sm:$0xff]  ;;  %2867 = vmatpush.msra.mxu0 %v2774_v44  ;;  %v2797_v59 = vld [vmem:[#allocation36 + $0x178] sm:$0xff]  ;;  %v3046_v44 = vld [vmem:[#allocation36 + $0x3f0] sm:$0xff] }
 0x435   : > { %2817 = vmatpush.msrb.mxu2 %v2806_v38  ;;  %v2948_v38 = vld [vmem:[#allocation36 + $0x2d0] sm:$0xff] }
 0x43a   : > { %v2441_v45 = vpop.f32.mrf.mxu0  ;;  %v2355_v63 = vpop.f32.mrf.mxu2 }
 0x43b   : > { %v2450_v46 = vadd.f32 %v2441_v45, %v2404_v40  ;;  %v2398_v48 = vpop.f32.mrf.mxu3  ;;  %v2360_v4 = vadd.f32 %v2355_v63, %v2313_v1  ;;  %v2777_v40 = vld [vmem:[#allocation36 + $0xf8] sm:$0xff]  ;;  %v2775_v45 = vld [vmem:[#allocation36 + $0xe8] sm:$0xff]  ;;  %v2764_v1 = vld [vmem:[#allocation36 + $0x90] sm:$0xff] }
 0x43c   : > { %v2405_v56 = vadd.f32 %v2398_v48, %v2359_v53  ;;  %v2772_v48 = vld [vmem:[#allocation36 + $0xd0] sm:$0xff]  ;;  %v2771_v53 = vld [vmem:[#allocation36 + $0xc8] sm:$0xff] }
 0x43d   : > { %v2457_v50 = vmul.f32 %v5789_v41, %v2450_v46  ;;  %v2802_v46 = vld [vmem:[#allocation36 + $0x1a0] sm:$0xff]  ;;  %2868 = vmatpush.msra.mxu0 %v2772_v48  ;;  %v2795_v63 = vld [vmem:[#allocation36 + $0x168] sm:$0xff] }
 0x43e   : > { %v3044_v48 = vld [vmem:[#allocation36 + $0x3e0] sm:$0xff] }
 0x43f   : > { %v2464_v54 = vadd.f32 %v5790_v47, %v2457_v50  ;;  %v2800_v50 = vld [vmem:[#allocation36 + $0x190] sm:$0xff]  ;;  %2869 = vmatpush.msra.mxu0 %v2770_v52 }
 0x441   : > { %v2467_v57 = vmax.f32 %v2464_v54, 0.0  ;;  %v2798_v54 = vld [vmem:[#allocation36 + $0x180] sm:$0xff] }
 0x442   : > { %v2444_v60 = vpop.f32.mrf.mxu0 }
 0x443   : > { %v2470_v61 = vsel %vm6954_vm2, %v2467_v57, 0.0  ;;  %v2451_v62 = vadd.f32 %v2444_v60, %v2405_v56  ;;  %v2401_v3 = vpop.f32.mrf.mxu3  ;;  %v2768_v56 = vld [vmem:[#allocation36 + $0xb0] sm:$0xff]  ;;  %v2769_v57 = vld [vmem:[#allocation36 + $0xb8] sm:$0xff]  ;;  %v2766_v60 = vld [vmem:[#allocation36 + $0xa0] sm:$0xff] }
 0x444   : > { %2473 = vst.msk [vmem:[#allocation7 + $0x8] sm:$0xff] %vm1241_vm6, %v2470_v61  ;;  %v2406_v7 = vadd.f32 %v2401_v3, %v2360_v4  ;;  %2870 = vmatpush.msra.mxu0 %v2768_v56  ;;  %v2767_v61 = vld [vmem:[#allocation36 + $0xa8] sm:$0xff]  ;;  %v2792_v3 = vld [vmem:[#allocation36 + $0x150] sm:$0xff]  ;;  %v2793_v4 = vld [vmem:[#allocation36 + $0x158] sm:$0xff] }
 0x445   : > { %v2458_v2 = vmul.f32 %v5789_v41, %v2451_v62  ;;  %v2794_v62 = vld [vmem:[#allocation36 + $0x160] sm:$0xff]  ;;  %v2940_v56 = vld [vmem:[#allocation36 + $0x290] sm:$0xff] }
 0x446   : > { %2871 = vmatpush.msra.mxu0 %v2766_v60  ;;  %v2938_v60 = vld [vmem:[#allocation36 + $0x280] sm:$0xff] }
 0x447   : > { %v2465_v5 = vadd.f32 %v5790_v47, %v2458_v2  ;;  %v2765_v2 = vld [vmem:[#allocation36 + $0x98] sm:$0xff] }
 0x448   : > { %2872 = vmatpush.msra.mxu0 %v2764_v1  ;;  %v2936_v1 = vld [vmem:[#allocation36 + $0x270] sm:$0xff] }
 0x449   : > { %v2468_v8 = vmax.f32 %v2465_v5, 0.0  ;;  %v2762_v5 = vld [vmem:[#allocation36 + $0x80] sm:$0xff] }
 0x44a   : > { %v2447_v9 = vpop.f32.mrf.mxu0  ;;  %2873 = vmatpush.msra.mxu0 %v2762_v5  ;;  %v3037_v5 = vld [vmem:[#allocation36 + $0x3a8] sm:$0xff] }
 0x44b   : > { %v2471_v10 = vsel %vm6962_vm7, %v2468_v8, 0.0  ;;  %v2452_v43 = vadd.f32 %v2447_v9, %v2406_v7  ;;  %v2488_v11 = vld [vmem:[#allocation7 + $0x7] sm:$0xff] }
 0x44c   : > { %v2477_v12 = vld [vmem:[#allocation7 + $0x6] sm:$0xff]  ;;  %2474 = vst.msk [vmem:[#allocation7 + $0x10] sm:$0xff] %vm1241_vm6, %v2471_v10  ;;  %5581 = vmatmul.msk.f32.vlgmr.msra.gmra.mxu1 %vm1241_vm6, %v2488_v11  ;;  %v2760_v10 = vld [vmem:[#allocation36 + $0x70] sm:$0xff] }
 0x44d   : > { %v2570_v13 = vld [vmem:[#allocation7 + $0x8] sm:$0xff]  ;;  %5584 = vmatmul.msk.f32.vlgmr.msra.gmra.mxu2 %vm1241_vm6, %v2477_v12  ;;  %v2459_v14 = vmul.f32 %v5789_v41, %v2452_v43  ;;  %2892 = vmatpush.msra.mxu1 %v2777_v40  ;;  %v2804_v41 = vld [vmem:[#allocation36 + $0x1b0] sm:$0xff]  ;;  %v2761_v43 = vld [vmem:[#allocation36 + $0x78] sm:$0xff] }
 0x44e   : > { %5587 = vmatmul.msk.f32.vlgmr.msra.gmra.mxu3 %vm1241_vm6, %v2570_v13  ;;  %2818 = vmatpush.msrb.mxu2 %v2804_v41  ;;  %v2763_v7 = vld [vmem:[#allocation36 + $0x88] sm:$0xff]  ;;  %v2790_v8 = vld [vmem:[#allocation36 + $0x140] sm:$0xff]  ;;  %v2788_v11 = vld [vmem:[#allocation36 + $0x130] sm:$0xff] }
 0x44f   : > { %v2466_v15 = vadd.f32 %v5790_v47, %v2459_v14  ;;  %2893 = vmatpush.msra.mxu1 %v2775_v45  ;;  %v2803_v47 = vld [vmem:[#allocation36 + $0x1a8] sm:$0xff]  ;;  %v2789_v12 = vld [vmem:[#allocation36 + $0x138] sm:$0xff]  ;;  %2874 = vmatpush.msra.mxu0 %v2760_v10  ;;  %v2758_v13 = vld [vmem:[#allocation36 + $0x60] sm:$0xff] }
 0x450   : > { %2819 = vmatpush.msrb.mxu2 %v2802_v46  ;;  %2845 = vmatpush.msrb.mxu3 %v2803_v47  ;;  %v2791_v9 = vld [vmem:[#allocation36 + $0x148] sm:$0xff]  ;;  %v2946_v41 = vld [vmem:[#allocation36 + $0x2c0] sm:$0xff]  ;;  %v3047_v45 = vld [vmem:[#allocation36 + $0x3f8] sm:$0xff] }
 0x451   : > { %v2469_v16 = vmax.f32 %v2466_v15, 0.0  ;;  %2894 = vmatpush.msra.mxu1 %v2773_v49  ;;  %v2759_v14 = vld [vmem:[#allocation36 + $0x68] sm:$0xff]  ;;  %2875 = vmatpush.msra.mxu0 %v2758_v13  ;;  %v2786_v15 = vld [vmem:[#allocation36 + $0x120] sm:$0xff]  ;;  %v2944_v46 = vld [vmem:[#allocation36 + $0x2b0] sm:$0xff] }
 0x452   : > { %2820 = vmatpush.msrb.mxu2 %v2800_v50  ;;  %2846 = vmatpush.msrb.mxu3 %v2801_v51  ;;  %v2747_v40 = vld [vmem:[#allocation36 + $0x8] sm:$0xff]  ;;  %v2945_v47 = vld [vmem:[#allocation36 + $0x2b8] sm:$0xff]  ;;  %v2942_v50 = vld [vmem:[#allocation36 + $0x2a0] sm:$0xff] }
 0x453   : > { %v2472_v17 = vsel %vm6972_vm9, %v2469_v16, 0.0  ;;  %v2489_v19 = vld [vmem:[#allocation7 + $0xf] sm:$0xff]  ;;  %2895 = vmatpush.msra.mxu1 %v2771_v53  ;;  %v2933_v13 = vld [vmem:[#allocation36 + $0x258] sm:$0xff] }
 0x454   : > { %v2478_v0 = vld [vmem:[#allocation7 + $0xe] sm:$0xff]  ;;  %2476 = vst.msk [vmem:[#allocation7 + $0x18] sm:$0xf] %vm2475_vm10, %v2472_v17  ;;  %5582 = vmatmul.msk.f32.gmra.mxu1 %vm1241_vm6, %v2489_v19  ;;  %2821 = vmatpush.msrb.mxu2 %v2798_v54  ;;  %v2757_v19 = vld [vmem:[#allocation36 + $0x58] sm:$0xff] }
 0x455   : > { %v2571_v20 = vld [vmem:[#allocation7 + $0x10] sm:$0xff]  ;;  %5585 = vmatmul.msk.f32.gmra.mxu2 %vm1241_vm6, %v2478_v0  ;;  %2847 = vmatpush.msrb.mxu3 %v2799_v31  ;;  %v3043_v31 = vld [vmem:[#allocation36 + $0x3d8] sm:$0xff] }
 0x456   : > { %v2620_v21 = vld [vmem:[#allocation7 + $0x9] sm:$0xff]  ;;  %5588 = vmatmul.msk.f32.gmra.mxu3 %vm1241_vm6, %v2571_v20  ;;  %2896 = vmatpush.msra.mxu1 %v2769_v57  ;;  %v2756_v17 = vld [vmem:[#allocation36 + $0x50] sm:$0xff]  ;;  %v2785_v20 = vld [vmem:[#allocation36 + $0x118] sm:$0xff] }
 0x457   : > { %5590 = vmatmul.msk.f32.vlgmr.msrb.gmra.mxu0 %vm1241_vm6, %v2620_v21  ;;  %v2670_v32 = vld [vmem:[#allocation7 + $0xa] sm:$0xff]  ;;  %2822 = vmatpush.msrb.mxu2 %v2796_v58  ;;  %v2784_v0 = vld [vmem:[#allocation36 + $0x110] sm:$0xff]  ;;  %v2941_v57 = vld [vmem:[#allocation36 + $0x298] sm:$0xff] }
 0x458   : > { %2848 = vmatpush.msrb.mxu3 %v2797_v59  ;;  %2897 = vmatpush.msra.mxu1 %v2767_v61  ;;  %v2787_v16 = vld [vmem:[#allocation36 + $0x128] sm:$0xff]  ;;  %v2754_v21 = vld [vmem:[#allocation36 + $0x40] sm:$0xff]  ;;  %v3042_v54 = vld [vmem:[#allocation36 + $0x3d0] sm:$0xff] }
 0x459   : > { %2823 = vmatpush.msrb.mxu2 %v2794_v62  ;;  %2876 = vmatpush.msra.mxu0 %v2756_v17  ;;  %v3045_v49 = vld [vmem:[#allocation36 + $0x3e8] sm:$0xff]  ;;  %v3040_v58 = vld [vmem:[#allocation36 + $0x3c0] sm:$0xff]  ;;  %v3038_v62 = vld [vmem:[#allocation36 + $0x3b0] sm:$0xff] }
 0x45a   : > { %2849 = vmatpush.msrb.mxu3 %v2795_v63  ;;  %2898 = vmatpush.msra.mxu1 %v2765_v2  ;;  %v2943_v51 = vld [vmem:[#allocation36 + $0x2a8] sm:$0xff]  ;;  %v3039_v63 = vld [vmem:[#allocation36 + $0x3b8] sm:$0xff] }
 0x45b   : > { %v2490_v27 = vld [vmem:[#allocation7 + $0x17] sm:$0xf]  ;;  %2824 = vmatpush.msrb.mxu2 %v2792_v3  ;;  %2877 = vmatpush.msra.mxu0 %v2754_v21  ;;  %v3041_v59 = vld [vmem:[#allocation36 + $0x3c8] sm:$0xff]  ;;  %v2937_v2 = vld [vmem:[#allocation36 + $0x278] sm:$0xff] }
 0x45c   : > { %v2479_v28 = vld [vmem:[#allocation7 + $0x16] sm:$0xf]  ;;  %5583 = vmatmul.msk.f32.gmra.mxu1 %vm1241_vm6, %v2490_v27  ;;  %v2672_v35 = vld [vmem:[#allocation7 + $0x1a] sm:$0xf]  ;;  %2850 = vmatpush.msrb.mxu3 %v2793_v4  ;;  %v2939_v61 = vld [vmem:[#allocation36 + $0x288] sm:$0xff] }
 0x45d   : > { %v2572_v29 = vld [vmem:[#allocation7 + $0x18] sm:$0xf]  ;;  %5586 = vmatmul.msk.f32.gmra.mxu2 %vm1241_vm6, %v2479_v28  ;;  %2899 = vmatpush.msra.mxu1 %v2763_v7  ;;  %v2753_v27 = vld [vmem:[#allocation36 + $0x38] sm:$0xff]  ;;  %v3036_v4 = vld [vmem:[#allocation36 + $0x3a0] sm:$0xff] }
 0x45e   : > { %v2621_v30 = vld [vmem:[#allocation7 + $0x11] sm:$0xff]  ;;  %5589 = vmatmul.msk.f32.gmra.mxu3 %vm1241_vm6, %v2572_v29  ;;  %v2622_v33 = vld [vmem:[#allocation7 + $0x19] sm:$0xf]  ;;  %2825 = vmatpush.msrb.mxu2 %v2790_v8  ;;  %v2934_v8 = vld [vmem:[#allocation36 + $0x260] sm:$0xff] }
 0x45f   : > { %5591 = vmatmul.msk.f32.gmra.mxu0 %vm1241_vm6, %v2621_v30  ;;  %v2671_v34 = vld [vmem:[#allocation7 + $0x12] sm:$0xff]  ;;  %2851 = vmatpush.msrb.mxu3 %v2791_v9  ;;  %v2953_v29 = vld [vmem:[#allocation36 + $0x2f8] sm:$0xff]  ;;  %v2750_v30 = vld [vmem:[#allocation36 + $0x20] sm:$0xff] }
 0x460   : > { %2900 = vmatpush.msra.mxu1 %v2761_v43  ;;  %2826 = vmatpush.msrb.mxu2 %v2788_v11  ;;  %v2952_v28 = vld [vmem:[#allocation36 + $0x2f0] sm:$0xff]  ;;  %v2935_v9 = vld [vmem:[#allocation36 + $0x268] sm:$0xff]  ;;  %v3035_v11 = vld [vmem:[#allocation36 + $0x398] sm:$0xff] }
 0x461   : > { %2852 = vmatpush.msrb.mxu3 %v2789_v12  ;;  %2878 = vmatpush.msra.mxu0 %v2752_v26  ;;  %v3034_v43 = vld [vmem:[#allocation36 + $0x390] sm:$0xff]  ;;  %v3033_v17 = vld [vmem:[#allocation36 + $0x388] sm:$0xff]  ;;  %v3028_v26 = vld [vmem:[#allocation36 + $0x360] sm:$0xff] }
 0x462   : > { %2901 = vmatpush.msra.mxu1 %v2759_v14  ;;  %2827 = vmatpush.msrb.mxu2 %v2786_v15  ;;  %v2932_v12 = vld [vmem:[#allocation36 + $0x250] sm:$0xff] }
 0x463   : > { %2853 = vmatpush.msrb.mxu3 %v2787_v16  ;;  %2879 = vmatpush.msra.mxu0 %v2750_v30  ;;  %v3032_v16 = vld [vmem:[#allocation36 + $0x380] sm:$0xff]  ;;  %v3030_v21 = vld [vmem:[#allocation36 + $0x370] sm:$0xff] }
 0x464   : > { %5593 = vmatmul.msk.f32.vlgmr.msrb.gmra.mxu1 %vm1241_vm6, %v2670_v32  ;;  %2828 = vmatpush.msrb.mxu2 %v2784_v0  ;;  %v2751_v32 = vld [vmem:[#allocation36 + $0x28] sm:$0xff]  ;;  %v2930_v0 = vld [vmem:[#allocation36 + $0x240] sm:$0xff] }
 0x465   : > { %2902 = vmatpush.msra.mxu1 %v2757_v19  ;;  %2854 = vmatpush.msrb.mxu3 %v2785_v20  ;;  %v2931_v20 = vld [vmem:[#allocation36 + $0x248] sm:$0xff] }
 0x466   : > { %2829 = vmatpush.msrb.mxu2 %v2782_v23  ;;  %2880 = vmatpush.msra.mxu0 %v2748_v36  ;;  %v2928_v23 = vld [vmem:[#allocation36 + $0x230] sm:$0xff] }
 0x467   : > { %5592 = vmatmul.msk.f32.gmra.mxu0 %vm1241_vm6, %v2622_v33  ;;  %2903 = vmatpush.msra.mxu1 %v2755_v22  ;;  %v2950_v33 = vld [vmem:[#allocation36 + $0x2e0] sm:$0xff]  ;;  %v3031_v22 = vld [vmem:[#allocation36 + $0x378] sm:$0xff] }
 0x468   : > { %2855 = vmatpush.msrb.mxu3 %v2783_v25  ;;  %2954 = vmatpush.msra.mxu2 %v2952_v28  ;;  %v2929_v25 = vld [vmem:[#allocation36 + $0x238] sm:$0xff]  ;;  %v2926_v28 = vld [vmem:[#allocation36 + $0x220] sm:$0xff] }
 0x469   : > { %2904 = vmatpush.msra.mxu1 %v2753_v27  ;;  %2881 = vmatpush.msra.mxu0 %v2746_v39  ;;  %v3029_v27 = vld [vmem:[#allocation36 + $0x368] sm:$0xff]  ;;  %v7106_v39 = vld [vmem:[#allocation35] ss:$0 sm:$0xff] }
 0x46a   : > { %2980 = vmatpush.msra.mxu3 %v2953_v29  ;;  %2955 = vmatpush.msra.mxu2 %v2950_v33  ;;  %v2927_v33 = vld [vmem:[#allocation36 + $0x228] sm:$0xff] }
 0x46b   : > { %2905 = vmatpush.msra.mxu1 %v2751_v32  ;;  %3048 = vmatpush.msrb.mxu0 %v3046_v44  ;;  %v7104_v32 = vld [vmem:[#allocation33] ss:$0 sm:$0xff] }
 0x46c   : > { %5594 = vmatmul.msk.f32.gmra.mxu1 %vm1241_vm6, %v2671_v34  ;;  %2956 = vmatpush.msra.mxu2 %v2948_v38  ;;  %v2924_v38 = vld [vmem:[#allocation36 + $0x210] sm:$0xff] }
 0x46d   : > { %2906 = vmatpush.msra.mxu1 %v2749_v37  ;;  %3049 = vmatpush.msrb.mxu0 %v3044_v48  ;;  %v3027_v37 = vld [vmem:[#allocation36 + $0x358] sm:$0xff]  ;;  %v3022_v48 = vld [vmem:[#allocation36 + $0x330] sm:$0xff] }
 0x46e   : > { %2957 = vmatpush.msra.mxu2 %v2946_v41  ;;  %v3024_v41 = vld [vmem:[#allocation36 + $0x340] sm:$0xff] }
 0x46f   : > { %2907 = vmatpush.msra.mxu1 %v2747_v40  ;;  %3050 = vmatpush.msrb.mxu0 %v3042_v54  ;;  %v2925_v40 = vld [vmem:[#allocation36 + $0x218] sm:$0xff]  ;;  %v3021_v54 = vld [vmem:[#allocation36 + $0x328] sm:$0xff] }
 0x470   : > { %2958 = vmatpush.msra.mxu2 %v2944_v46  ;;  %v2922_v46 = vld [vmem:[#allocation36 + $0x200] sm:$0xff] }
 0x471   : > { %3074 = vmatpush.msrb.mxu1 %v3047_v45  ;;  %3051 = vmatpush.msrb.mxu0 %v3040_v58  ;;  %v3018_v58 = vld [vmem:[#allocation36 + $0x310] sm:$0xff] }
 0x472   : > { %2959 = vmatpush.msra.mxu2 %v2942_v50 }
 0x473   : > { %3075 = vmatpush.msrb.mxu1 %v3045_v49  ;;  %3052 = vmatpush.msrb.mxu0 %v3038_v62 }
 0x474   : > { %5595 = vmatmul.msk.f32.gmra.mxu1 %vm1241_vm6, %v2672_v35  ;;  %v2951_v35 = vld [vmem:[#allocation36 + $0x2e8] sm:$0xff]  ;;  %2960 = vmatpush.msra.mxu2 %v2940_v56 }
 0x475   : > { %2981 = vmatpush.msra.mxu3 %v2951_v35  ;;  %3076 = vmatpush.msrb.mxu1 %v3043_v31 }
 0x476   : > { %2961 = vmatpush.msra.mxu2 %v2938_v60  ;;  %3053 = vmatpush.msrb.mxu0 %v3036_v4  ;;  %v3019_v60 = vld [vmem:[#allocation36 + $0x318] sm:$0xff] }
 0x477   : > { %2982 = vmatpush.msra.mxu3 %v2949_v24  ;;  %3077 = vmatpush.msrb.mxu1 %v3041_v59 }
 0x478   : > { %2962 = vmatpush.msra.mxu2 %v2936_v1  ;;  %3054 = vmatpush.msrb.mxu0 %v3034_v43  ;;  %v3140_v43 = vld [vmem:[#allocation36 + $0x4f0] sm:$0xff] }
 0x479   : > { %2983 = vmatpush.msra.mxu3 %v2947_v42  ;;  %3078 = vmatpush.msrb.mxu1 %v3039_v63  ;;  %v3025_v42 = vld [vmem:[#allocation36 + $0x348] sm:$0xff]  ;;  %v3016_v63 = vld [vmem:[#allocation36 + $0x300] sm:$0xff] }
 0x47a   : > { %2963 = vmatpush.msra.mxu2 %v2934_v8  ;;  %3055 = vmatpush.msrb.mxu0 %v3032_v16 }
 0x47b   : > { %2984 = vmatpush.msra.mxu3 %v2945_v47  ;;  %3079 = vmatpush.msrb.mxu1 %v3037_v5  ;;  %v2923_v47 = vld [vmem:[#allocation36 + $0x208] sm:$0xff] }
 0x47c   : > { %2964 = vmatpush.msra.mxu2 %v2932_v12  ;;  %3056 = vmatpush.msrb.mxu0 %v3030_v21  ;;  %v3137_v21 = vld [vmem:[#allocation36 + $0x4d8] sm:$0xff] }
 0x47d   : > { %2985 = vmatpush.msra.mxu3 %v2943_v51  ;;  %3080 = vmatpush.msrb.mxu1 %v3035_v11  ;;  %v3023_v51 = vld [vmem:[#allocation36 + $0x338] sm:$0xff] }
 0x47e   : > { %2965 = vmatpush.msra.mxu2 %v2930_v0  ;;  %3057 = vmatpush.msrb.mxu0 %v3028_v26 }
 0x47f   : > { %2986 = vmatpush.msra.mxu3 %v2941_v57  ;;  %3081 = vmatpush.msrb.mxu1 %v3033_v17  ;;  %v3138_v17 = vld [vmem:[#allocation36 + $0x4e0] sm:$0xff] }
 0x480   : > { %2966 = vmatpush.msra.mxu2 %v2928_v23  ;;  %v3134_v23 = vld [vmem:[#allocation36 + $0x4c0] sm:$0xff] }
 0x481   : > { %2987 = vmatpush.msra.mxu3 %v2939_v61  ;;  %3082 = vmatpush.msrb.mxu1 %v3031_v22 }
 0x482   : > { %2967 = vmatpush.msra.mxu2 %v2926_v28  ;;  %v3135_v28 = vld [vmem:[#allocation36 + $0x4c8] sm:$0xff] }
 0x483   : > { %2988 = vmatpush.msra.mxu3 %v2937_v2  ;;  %3083 = vmatpush.msrb.mxu1 %v3029_v27  ;;  %v3017_v2 = vld [vmem:[#allocation36 + $0x308] sm:$0xff] }
 0x484   : > { %2968 = vmatpush.msra.mxu2 %v2924_v38  ;;  %v3126_v38 = vld [vmem:[#allocation36 + $0x480] sm:$0xff] }
 0x485   : > { %2989 = vmatpush.msra.mxu3 %v2935_v9  ;;  %3084 = vmatpush.msrb.mxu1 %v3027_v37  ;;  %v3129_v37 = vld [vmem:[#allocation36 + $0x498] sm:$0xff] }
 0x486   : > { %2969 = vmatpush.msra.mxu2 %v2922_v46  ;;  %v3121_v46 = vld [vmem:[#allocation36 + $0x458] sm:$0xff] }
 0x487   : > { %2990 = vmatpush.msra.mxu3 %v2933_v13  ;;  %3085 = vmatpush.msrb.mxu1 %v3025_v42  ;;  %v3123_v42 = vld [vmem:[#allocation36 + $0x468] sm:$0xff] }
 0x489   : > { %2991 = vmatpush.msra.mxu3 %v2931_v20  ;;  %3086 = vmatpush.msrb.mxu1 %v3023_v51  ;;  %v3136_v20 = vld [vmem:[#allocation36 + $0x4d0] sm:$0xff] }
 0x48b   : > { %2992 = vmatpush.msra.mxu3 %v2929_v25  ;;  %3087 = vmatpush.msrb.mxu1 %v3021_v54  ;;  %v3112_v54 = vld [vmem:[#allocation36 + $0x410] sm:$0xff] }
 0x48d   : > { %2993 = vmatpush.msra.mxu3 %v2927_v33  ;;  %3088 = vmatpush.msrb.mxu1 %v3019_v60  ;;  %v3131_v33 = vld [vmem:[#allocation36 + $0x4a8] sm:$0xff] }
 0x48f   : > { %2994 = vmatpush.msra.mxu3 %v2925_v40  ;;  %3089 = vmatpush.msrb.mxu1 %v3017_v2  ;;  %v3125_v40 = vld [vmem:[#allocation36 + $0x478] sm:$0xff]  ;;  %v3444_v2 = vld [vmem:[#allocation41 + $0x5e8] sm:$0xff] }
 0x491   : > { %2995 = vmatpush.msra.mxu3 %v2923_v47  ;;  %v3118_v47 = vld [vmem:[#allocation36 + $0x440] sm:$0xff] }
 0x4c9   : > { %v7096_v34 = vpop.f32.mrf.mxu1 }
 0x4d0   : > { %v2561_v52 = vpop.f32.mrf.mxu2 }
 0x4d1   : > { %v7098_v53 = vpop.f32.mrf.mxu1  ;;  %v2608_v3 = vpop.f32.mrf.mxu3  ;;  %v2562_v7 = vadd.f32 %v2561_v52, %v7096_v34  ;;  %v3026_v34 = vld [vmem:[#allocation36 + $0x350] sm:$0xff] }
 0x4d2   : > { %3058 = vmatpush.msrb.mxu0 %v3026_v34  ;;  %v3128_v34 = vld [vmem:[#allocation36 + $0x490] sm:$0xff] }
 0x4d3   : > { %v2617_v19 = vadd.f32 %v2608_v3, %v2562_v7 }
 0x4d4   : > { %v2658_v14 = vpop.f32.mrf.mxu0  ;;  %3059 = vmatpush.msrb.mxu0 %v3024_v41  ;;  %v3122_v41 = vld [vmem:[#allocation36 + $0x460] sm:$0xff] }
 0x4d5   : > { %v2667_v29 = vadd.f32 %v2658_v14, %v2617_v19  ;;  %v3139_v19 = vld [vmem:[#allocation36 + $0x4e8] sm:$0xff] }
 0x4d6   : > { %3060 = vmatpush.msrb.mxu0 %v3022_v48  ;;  %v3119_v48 = vld [vmem:[#allocation36 + $0x448] sm:$0xff] }
 0x4d8   : > { %v2564_v15 = vpop.f32.mrf.mxu2 }
 0x4d9   : > { %v7101_v10 = vpop.f32.mrf.mxu1  ;;  %v2565_v30 = vadd.f32 %v2564_v15, %v7098_v53  ;;  %v2611_v35 = vpop.f32.mrf.mxu3  ;;  %v3020_v53 = vld [vmem:[#allocation36 + $0x320] sm:$0xff]  ;;  %v3141_v15 = vld [vmem:[#allocation36 + $0x4f8] sm:$0xff] }
 0x4da   : > { %3061 = vmatpush.msrb.mxu0 %v3020_v53  ;;  %v3115_v53 = vld [vmem:[#allocation36 + $0x428] sm:$0xff] }
 0x4db   : > { %v2618_v44 = vadd.f32 %v2611_v35, %v2565_v30  ;;  %v3133_v30 = vld [vmem:[#allocation36 + $0x4b8] sm:$0xff] }
 0x4dc   : > { %v2661_v49 = vpop.f32.mrf.mxu0  ;;  %3062 = vmatpush.msrb.mxu0 %v3018_v58  ;;  %v3111_v58 = vld [vmem:[#allocation36 + $0x408] sm:$0xff] }
 0x4dd   : > { %v2668_v31 = vadd.f32 %v2661_v49, %v2618_v44  ;;  %v3116_v49 = vld [vmem:[#allocation36 + $0x430] sm:$0xff] }
 0x4de   : > { %3063 = vmatpush.msrb.mxu0 %v3016_v63  ;;  %v3443_v63 = vld [vmem:[#allocation41 + $0x5e0] sm:$0xff] }
 0x4e0   : > { %v2567_v50 = vpop.f32.mrf.mxu2 }
 0x4e1   : > { %v2708_v36 = vpop.f32.mrf.mxu1  ;;  %v2568_v56 = vadd.f32 %v2567_v50, %v7101_v10  ;;  %v2614_v1 = vpop.f32.mrf.mxu3  ;;  %v3117_v50 = vld [vmem:[#allocation36 + $0x438] sm:$0xff] }
 0x4e2   : > { %v2717_v24 = vadd.f32 %v2708_v36, %v2667_v29  ;;  %v3132_v29 = vld [vmem:[#allocation36 + $0x4b0] sm:$0xff] }
 0x4e3   : > { %v2619_v3 = vadd.f32 %v2614_v1, %v2568_v56  ;;  %v3507_v1 = vld [vmem:[#allocation41 + $0x7e0] sm:$0xff] }
 0x4e4   : > { %v2724_v45 = vmul.f32 %v7104_v32, %v2717_v24  ;;  %v2664_v7 = vpop.f32.mrf.mxu0  ;;  %v3127_v24 = vld [vmem:[#allocation36 + $0x488] sm:$0xff] }
 0x4e5   : > { %v2669_v8 = vadd.f32 %v2664_v7, %v2619_v3  ;;  %v3508_v3 = vld [vmem:[#allocation41 + $0x7e8] sm:$0xff] }
 0x4e6   : > { %v2731_v52 = vadd.f32 %v7106_v39, %v2724_v45  ;;  %v3120_v45 = vld [vmem:[#allocation36 + $0x450] sm:$0xff] }
 0x4e7   : > { %v3440_v7 = vld [vmem:[#allocation41 + $0x5c8] sm:$0xff] }
 0x4e8   : > { %v7111_v57 = vmax.f32 %v2731_v52, 0.0  ;;  %v3114_v52 = vld [vmem:[#allocation36 + $0x420] sm:$0xff] }
 0x4e9   : > { %v2711_v59 = vpop.f32.mrf.mxu1 }
 0x4ea   : > { %v2737_v61 = vsel %vm6954_vm2, %v7111_v57, 0.0  ;;  %v2718_v62 = vadd.f32 %v2711_v59, %v2668_v31  ;;  %v3113_v31 = vld [vmem:[#allocation36 + $0x418] sm:$0xff] }
 0x4eb   : > { %2740 = vst [vmem:[#allocation8 + $0x8] sm:$0xff] %v2737_v61 }
 0x4ec   : > { %v2725_v4 = vmul.f32 %v7104_v32, %v2718_v62 }
 0x4ee   : > { %v2732_v5 = vadd.f32 %v7106_v39, %v2725_v4  ;;  %v3439_v4 = vld [vmem:[#allocation41 + $0x5c0] sm:$0xff] }
 0x4f0   : > { %v7118_v9 = vmax.f32 %v2732_v5, 0.0  ;;  %v3503_v5 = vld [vmem:[#allocation41 + $0x7c0] sm:$0xff] }
 0x4f1   : > { %v2714_v10 = vpop.f32.mrf.mxu1 }
 0x4f2   : > { %v2738_v11 = vsel %vm6962_vm7, %v7118_v9, 0.0  ;;  %v2719_v12 = vadd.f32 %v2714_v10, %v2669_v8  ;;  %v2778_v13 = vld [vmem:[#allocation8 + $0x7] sm:$0xff]  ;;  %v3504_v8 = vld [vmem:[#allocation41 + $0x7c8] sm:$0xff] }
 0x4f3   : > { %v2743_v14 = vld [vmem:[#allocation8 + $0x6] sm:$0xff]  ;;  %2741 = vst [vmem:[#allocation8 + $0x10] sm:$0xff] %v2738_v11  ;;  %2830 = vmatmul.f32.vlgmr.msrb.gmra.mxu2 %v2778_v13  ;;  %2856 = vmatmul.f32.vlgmr.msrb.gmra.mxu3 %v2778_v13  ;;  %v3500_v11 = vld [vmem:[#allocation41 + $0x7a8] sm:$0xff] }
 0x4f4   : > { %v2726_v16 = vmul.f32 %v7104_v32, %v2719_v12  ;;  %2882 = vmatmul.f32.vlgmr.msra.gmra.mxu0 %v2743_v14  ;;  %2908 = vmatmul.f32.vlgmr.msra.gmra.mxu1 %v2743_v14  ;;  %v3130_v32 = vld [vmem:[#allocation36 + $0x4a0] sm:$0xff]  ;;  %v3432_v14 = vld [vmem:[#allocation41 + $0x588] sm:$0xff] }
 0x4f5   : > { %3142 = vmatpush.msrb.mxu2 %v3140_v43  ;;  %3168 = vmatpush.msrb.mxu3 %v3141_v15  ;;  %v3499_v10 = vld [vmem:[#allocation41 + $0x7a0] sm:$0xff]  ;;  %v3436_v43 = vld [vmem:[#allocation41 + $0x5a8] sm:$0xff] }
 0x4f6   : > { %v2733_v0 = vadd.f32 %v7106_v39, %v2726_v16  ;;  %v3124_v39 = vld [vmem:[#allocation36 + $0x470] sm:$0xff]  ;;  %3540 = vmatpush.msra.mxu0 %v3443_v63  ;;  %3566 = vmatpush.msra.mxu1 %v3507_v1  ;;  %v3431_v12 = vld [vmem:[#allocation41 + $0x580] sm:$0xff] }
 0x4f7   : > { %3143 = vmatpush.msrb.mxu2 %v3138_v17  ;;  %3169 = vmatpush.msrb.mxu3 %v3139_v19  ;;  %v3495_v13 = vld [vmem:[#allocation41 + $0x780] sm:$0xff]  ;;  %v3496_v15 = vld [vmem:[#allocation41 + $0x788] sm:$0xff] }
 0x4f8   : > { %v2736_v22 = vmax.f32 %v2733_v0, 0.0  ;;  %3541 = vmatpush.msra.mxu0 %v3439_v4  ;;  %3567 = vmatpush.msra.mxu1 %v3503_v5  ;;  %v3427_v16 = vld [vmem:[#allocation41 + $0x560] sm:$0xff]  ;;  %v3428_v19 = vld [vmem:[#allocation41 + $0x568] sm:$0xff]  ;;  %v3445_v5 = vld [vmem:[#allocation41 + $0x5f0] sm:$0xff] }
 0x4f9   : > { %3144 = vmatpush.msrb.mxu2 %v3136_v20  ;;  %3170 = vmatpush.msrb.mxu3 %v3137_v21  ;;  %v3491_v17 = vld [vmem:[#allocation41 + $0x760] sm:$0xff]  ;;  %v3492_v0 = vld [vmem:[#allocation41 + $0x768] sm:$0xff] }
 0x4fa   : > { %v2739_v25 = vsel %vm6972_vm9, %v2736_v22, 0.0  ;;  %v2779_v26 = vld [vmem:[#allocation8 + $0xf] sm:$0xff]  ;;  %3568 = vmatpush.msra.mxu1 %v3499_v10  ;;  %v3441_v10 = vld [vmem:[#allocation41 + $0x5d0] sm:$0xff] }
 0x4fb   : > { %v2744_v27 = vld [vmem:[#allocation8 + $0xe] sm:$0xff]  ;;  %2742 = vst [vmem:[#allocation8 + $0x18] sm:$0xf] %v2739_v25  ;;  %2833 = vmatmul.f32.gmra.mxu2 %v2779_v26  ;;  %2859 = vmatmul.f32.gmra.mxu3 %v2779_v26 }
 0x4fc   : > { %2885 = vmatmul.f32.gmra.mxu0 %v2744_v27  ;;  %2911 = vmatmul.f32.gmra.mxu1 %v2744_v27  ;;  %v3012_v44 = vld [vmem:[#allocation8 + $0x9] sm:$0xff] }
 0x4fd   : > { %3145 = vmatpush.msrb.mxu2 %v3134_v23  ;;  %3171 = vmatpush.msrb.mxu3 %v3135_v28  ;;  %v3106_v60 = vld [vmem:[#allocation8 + $0xa] sm:$0xff] }
 0x4fe   : > { %3569 = vmatpush.msra.mxu1 %v3495_v13  ;;  %v3423_v20 = vld [vmem:[#allocation41 + $0x540] sm:$0xff]  ;;  %v3424_v22 = vld [vmem:[#allocation41 + $0x548] sm:$0xff]  ;;  %v3437_v13 = vld [vmem:[#allocation41 + $0x5b0] sm:$0xff] }
 0x4ff   : > { %3146 = vmatpush.msrb.mxu2 %v3132_v29  ;;  %3172 = vmatpush.msrb.mxu3 %v3133_v30  ;;  %v3487_v21 = vld [vmem:[#allocation41 + $0x740] sm:$0xff]  ;;  %v3488_v23 = vld [vmem:[#allocation41 + $0x748] sm:$0xff] }
 0x500   : > { %3570 = vmatpush.msra.mxu1 %v3491_v17  ;;  %v3419_v25 = vld [vmem:[#allocation41 + $0x520] sm:$0xff]  ;;  %v3420_v27 = vld [vmem:[#allocation41 + $0x528] sm:$0xff]  ;;  %v3433_v17 = vld [vmem:[#allocation41 + $0x590] sm:$0xff] }
 0x501   : > { %3147 = vmatpush.msrb.mxu2 %v3130_v32  ;;  %3173 = vmatpush.msrb.mxu3 %v3131_v33  ;;  %v3483_v26 = vld [vmem:[#allocation41 + $0x720] sm:$0xff]  ;;  %v3484_v28 = vld [vmem:[#allocation41 + $0x728] sm:$0xff] }
 0x502   : > { %v2780_v35 = vld [vmem:[#allocation8 + $0x17] sm:$0xf]  ;;  %3571 = vmatpush.msra.mxu1 %v3487_v21  ;;  %v3415_v29 = vld [vmem:[#allocation41 + $0x500] sm:$0xff] }
 0x503   : > { %v2745_v36 = vld [vmem:[#allocation8 + $0x16] sm:$0xf]  ;;  %2836 = vmatmul.f32.gmra.mxu2 %v2780_v35  ;;  %2862 = vmatmul.f32.gmra.mxu3 %v2780_v35  ;;  %v3108_v62 = vld [vmem:[#allocation8 + $0x1a] sm:$0xf]  ;;  %v3479_v30 = vld [vmem:[#allocation41 + $0x700] sm:$0xff] }
 0x504   : > { %2888 = vmatmul.f32.gmra.mxu0 %v2745_v36  ;;  %2914 = vmatmul.f32.gmra.mxu1 %v2745_v36  ;;  %v3013_v51 = vld [vmem:[#allocation8 + $0x11] sm:$0xff]  ;;  %v3014_v59 = vld [vmem:[#allocation8 + $0x19] sm:$0xf]  ;;  %v3475_v35 = vld [vmem:[#allocation41 + $0x6e0] sm:$0xff] }
 0x505   : > { %3148 = vmatpush.msrb.mxu2 %v3128_v34  ;;  %3174 = vmatpush.msrb.mxu3 %v3129_v37  ;;  %v2920_v56 = vld [vmem:[#allocation8 + $0x18] sm:$0xf]  ;;  %v3416_v32 = vld [vmem:[#allocation41 + $0x508] sm:$0xff]  ;;  %v3411_v34 = vld [vmem:[#allocation41 + $0x4e0] sm:$0xff] }
 0x506   : > { %v3107_v61 = vld [vmem:[#allocation8 + $0x12] sm:$0xff]  ;;  %3572 = vmatpush.msra.mxu1 %v3483_v26  ;;  %v3447_v63 = vld [vmem:[#allocation41 + $0x600] sm:$0xff]  ;;  %v3430_v26 = vld [vmem:[#allocation41 + $0x578] sm:$0xff] }
 0x507   : > { %3149 = vmatpush.msrb.mxu2 %v3126_v38  ;;  %3175 = vmatpush.msrb.mxu3 %v3127_v24  ;;  %v3480_v33 = vld [vmem:[#allocation41 + $0x708] sm:$0xff]  ;;  %v3407_v38 = vld [vmem:[#allocation41 + $0x4c0] sm:$0xff] }
 0x508   : > { %3573 = vmatpush.msra.mxu1 %v3479_v30  ;;  %v3412_v36 = vld [vmem:[#allocation41 + $0x4e8] sm:$0xff]  ;;  %v3471_v24 = vld [vmem:[#allocation41 + $0x6c0] sm:$0xff]  ;;  %v3426_v30 = vld [vmem:[#allocation41 + $0x558] sm:$0xff] }
 0x509   : > { %3150 = vmatpush.msrb.mxu2 %v3124_v39  ;;  %3176 = vmatpush.msrb.mxu3 %v3125_v40  ;;  %v3476_v37 = vld [vmem:[#allocation41 + $0x6e8] sm:$0xff] }
 0x50a   : > { %3574 = vmatpush.msra.mxu1 %v3475_v35  ;;  %v3408_v39 = vld [vmem:[#allocation41 + $0x4c8] sm:$0xff]  ;;  %v3421_v35 = vld [vmem:[#allocation41 + $0x530] sm:$0xff] }
 0x50b   : > { %5798 = vmatmul.msk.f32.vlgmr.msra.gmra.mxu2 %vm6954_vm2, %v7111_v57  ;;  %5799 = vmatmul.msk.f32.vlgmr.msra.gmra.mxu3 %vm6954_vm2, %v7111_v57  ;;  %v3110_v57 = vld [vmem:[#allocation36 + $0x400] sm:$0xff]  ;;  %v3472_v40 = vld [vmem:[#allocation41 + $0x6c8] sm:$0xff] }
 0x50c   : > { %3064 = vmatmul.f32.vlgmr.msrb.gmra.mxu0 %v3012_v44  ;;  %3090 = vmatmul.f32.vlgmr.msrb.gmra.mxu1 %v3012_v44  ;;  %v3404_v44 = vld [vmem:[#allocation41 + $0x4a8] sm:$0xff] }
 0x50d   : > { %3151 = vmatpush.msrb.mxu2 %v3122_v41  ;;  %3177 = vmatpush.msrb.mxu3 %v3123_v42  ;;  %v3403_v41 = vld [vmem:[#allocation41 + $0x4a0] sm:$0xff]  ;;  %v3384_v1 = vld [vmem:[#allocation41 + $0x408] sm:$0xff] }
 0x50e   : > { %3575 = vmatpush.msra.mxu1 %v3471_v24  ;;  %v3467_v42 = vld [vmem:[#allocation41 + $0x6a0] sm:$0xff]  ;;  %v3448_v4 = vld [vmem:[#allocation41 + $0x608] sm:$0xff]  ;;  %v3417_v24 = vld [vmem:[#allocation41 + $0x510] sm:$0xff] }
 0x50f   : > { %3152 = vmatpush.msrb.mxu2 %v3120_v45  ;;  %3178 = vmatpush.msrb.mxu3 %v3121_v46  ;;  %v3468_v45 = vld [vmem:[#allocation41 + $0x6a8] sm:$0xff]  ;;  %v3399_v46 = vld [vmem:[#allocation41 + $0x480] sm:$0xff] }
 0x510   : > { %3576 = vmatpush.msra.mxu1 %v3467_v42 }
 0x511   : > { %3153 = vmatpush.msrb.mxu2 %v3118_v47  ;;  %3179 = vmatpush.msrb.mxu3 %v3119_v48  ;;  %v3463_v47 = vld [vmem:[#allocation41 + $0x680] sm:$0xff]  ;;  %v3400_v48 = vld [vmem:[#allocation41 + $0x488] sm:$0xff] }
 0x512   : > { %3577 = vmatpush.msra.mxu1 %v3463_v47  ;;  %v3414_v47 = vld [vmem:[#allocation41 + $0x4f8] sm:$0xff] }
 0x513   : > { %5800 = vmatmul.msk.f32.gmra.mxu2 %vm6962_vm7, %v7118_v9  ;;  %5801 = vmatmul.msk.f32.gmra.mxu3 %vm6962_vm7, %v7118_v9  ;;  %v3435_v9 = vld [vmem:[#allocation41 + $0x5a0] sm:$0xff] }
 0x514   : > { %3067 = vmatmul.f32.gmra.mxu0 %v3013_v51  ;;  %3093 = vmatmul.f32.gmra.mxu1 %v3013_v51  ;;  %v3459_v51 = vld [vmem:[#allocation41 + $0x660] sm:$0xff] }
 0x515   : > { %3154 = vmatpush.msrb.mxu2 %v3116_v49  ;;  %3180 = vmatpush.msrb.mxu3 %v3117_v50  ;;  %v3464_v49 = vld [vmem:[#allocation41 + $0x688] sm:$0xff]  ;;  %v3395_v50 = vld [vmem:[#allocation41 + $0x460] sm:$0xff] }
 0x516   : > { %3542 = vmatpush.msra.mxu0 %v3435_v9  ;;  %3578 = vmatpush.msra.mxu1 %v3459_v51  ;;  %v3510_v9 = vld [vmem:[#allocation41 + $0x7f8] sm:$0xff] }
 0x517   : > { %3155 = vmatpush.msrb.mxu2 %v3114_v52  ;;  %3181 = vmatpush.msrb.mxu3 %v3115_v53  ;;  %v3396_v52 = vld [vmem:[#allocation41 + $0x468] sm:$0xff]  ;;  %v3410_v51 = vld [vmem:[#allocation41 + $0x4d8] sm:$0xff] }
 0x518   : > { %3543 = vmatpush.msra.mxu0 %v3431_v12  ;;  %v3460_v53 = vld [vmem:[#allocation41 + $0x668] sm:$0xff]  ;;  %v3506_v12 = vld [vmem:[#allocation41 + $0x7d8] sm:$0xff] }
 0x519   : > { %3156 = vmatpush.msrb.mxu2 %v3112_v54  ;;  %3182 = vmatpush.msrb.mxu3 %v3113_v31  ;;  %v3391_v54 = vld [vmem:[#allocation41 + $0x440] sm:$0xff] }
 0x51a   : > { %3544 = vmatpush.msra.mxu0 %v3427_v16  ;;  %v3455_v31 = vld [vmem:[#allocation41 + $0x640] sm:$0xff]  ;;  %v3502_v16 = vld [vmem:[#allocation41 + $0x7b8] sm:$0xff] }
 0x51b   : > { %2976 = vmatmul.f32.gmra.mxu2 %v2920_v56  ;;  %3002 = vmatmul.f32.gmra.mxu3 %v2920_v56  ;;  %v3392_v56 = vld [vmem:[#allocation41 + $0x448] sm:$0xff] }
 0x51c   : > { %3070 = vmatmul.f32.gmra.mxu0 %v3014_v59  ;;  %3096 = vmatmul.f32.gmra.mxu1 %v3014_v59  ;;  %v3451_v59 = vld [vmem:[#allocation41 + $0x620] sm:$0xff] }
 0x51d   : > { %3157 = vmatpush.msrb.mxu2 %v3110_v57  ;;  %3183 = vmatpush.msrb.mxu3 %v3111_v58  ;;  %v3456_v57 = vld [vmem:[#allocation41 + $0x648] sm:$0xff]  ;;  %v3387_v58 = vld [vmem:[#allocation41 + $0x420] sm:$0xff] }
 0x51e   : > { %3545 = vmatpush.msra.mxu0 %v3423_v20  ;;  %3579 = vmatpush.msra.mxu1 %v3455_v31  ;;  %v3498_v20 = vld [vmem:[#allocation41 + $0x798] sm:$0xff] }
 0x51f   : > { %3592 = vmatpush.msra.mxu2 %v3444_v2  ;;  %3618 = vmatpush.msra.mxu3 %v3508_v3  ;;  %v3406_v31 = vld [vmem:[#allocation41 + $0x4b8] sm:$0xff] }
 0x520   : > { %3546 = vmatpush.msra.mxu0 %v3419_v25  ;;  %3580 = vmatpush.msra.mxu1 %v3451_v59  ;;  %v3493_v25 = vld [vmem:[#allocation41 + $0x770] sm:$0xff] }
 0x521   : > { %3593 = vmatpush.msra.mxu2 %v3440_v7  ;;  %3619 = vmatpush.msra.mxu3 %v3504_v8  ;;  %v3509_v7 = vld [vmem:[#allocation41 + $0x7f0] sm:$0xff]  ;;  %v3446_v8 = vld [vmem:[#allocation41 + $0x5f8] sm:$0xff] }
 0x522   : > { %3547 = vmatpush.msra.mxu0 %v3415_v29  ;;  %3581 = vmatpush.msra.mxu1 %v3447_v63  ;;  %v3489_v29 = vld [vmem:[#allocation41 + $0x750] sm:$0xff] }
 0x523   : > { %3158 = vmatmul.f32.vlgmr.msrb.gmra.mxu2 %v3106_v60  ;;  %3184 = vmatmul.f32.vlgmr.msrb.gmra.mxu3 %v3106_v60  ;;  %v3388_v60 = vld [vmem:[#allocation41 + $0x428] sm:$0xff]  ;;  %v3401_v59 = vld [vmem:[#allocation41 + $0x490] sm:$0xff] }
 0x524   : > { %3594 = vmatpush.msra.mxu2 %v3436_v43  ;;  %3620 = vmatpush.msra.mxu3 %v3500_v11  ;;  %v3505_v43 = vld [vmem:[#allocation41 + $0x7d0] sm:$0xff]  ;;  %v3442_v11 = vld [vmem:[#allocation41 + $0x5d8] sm:$0xff] }
 0x525   : > { %3548 = vmatpush.msra.mxu0 %v3411_v34  ;;  %3670 = vmatpush.msrb.mxu1 %v3509_v7  ;;  %v3490_v34 = vld [vmem:[#allocation41 + $0x758] sm:$0xff] }
 0x526   : > { %3595 = vmatpush.msra.mxu2 %v3432_v14  ;;  %3621 = vmatpush.msra.mxu3 %v3496_v15  ;;  %v3501_v14 = vld [vmem:[#allocation41 + $0x7b0] sm:$0xff]  ;;  %v3438_v15 = vld [vmem:[#allocation41 + $0x5b8] sm:$0xff] }
 0x527   : > { %3549 = vmatpush.msra.mxu0 %v3407_v38  ;;  %3671 = vmatpush.msrb.mxu1 %v3505_v43  ;;  %v3486_v38 = vld [vmem:[#allocation41 + $0x738] sm:$0xff] }
 0x528   : > { %3596 = vmatpush.msra.mxu2 %v3428_v19  ;;  %3622 = vmatpush.msra.mxu3 %v3492_v0  ;;  %v3497_v19 = vld [vmem:[#allocation41 + $0x790] sm:$0xff]  ;;  %v3434_v0 = vld [vmem:[#allocation41 + $0x598] sm:$0xff] }
 0x529   : > { %3550 = vmatpush.msra.mxu0 %v3403_v41  ;;  %3672 = vmatpush.msrb.mxu1 %v3501_v14  ;;  %v3482_v41 = vld [vmem:[#allocation41 + $0x718] sm:$0xff] }
 0x52a   : > { %3597 = vmatpush.msra.mxu2 %v3424_v22  ;;  %3623 = vmatpush.msra.mxu3 %v3488_v23  ;;  %v3429_v23 = vld [vmem:[#allocation41 + $0x570] sm:$0xff]  ;;  %v3398_v7 = vld [vmem:[#allocation41 + $0x478] sm:$0xff] }
 0x52b   : > { %3161 = vmatmul.f32.gmra.mxu2 %v3107_v61  ;;  %3187 = vmatmul.f32.gmra.mxu3 %v3107_v61  ;;  %v3452_v61 = vld [vmem:[#allocation41 + $0x628] sm:$0xff]  ;;  %v3394_v43 = vld [vmem:[#allocation41 + $0x458] sm:$0xff] }
 0x52c   : > { %3598 = vmatpush.msra.mxu2 %v3420_v27  ;;  %3624 = vmatpush.msra.mxu3 %v3484_v28  ;;  %v3494_v27 = vld [vmem:[#allocation41 + $0x778] sm:$0xff]  ;;  %v3425_v28 = vld [vmem:[#allocation41 + $0x550] sm:$0xff] }
 0x52d   : > { %3551 = vmatpush.msra.mxu0 %v3399_v46  ;;  %3673 = vmatpush.msrb.mxu1 %v3497_v19  ;;  %v3477_v46 = vld [vmem:[#allocation41 + $0x6f0] sm:$0xff]  ;;  %v3390_v14 = vld [vmem:[#allocation41 + $0x438] sm:$0xff] }
 0x52e   : > { %3599 = vmatpush.msra.mxu2 %v3416_v32  ;;  %3625 = vmatpush.msra.mxu3 %v3480_v33  ;;  %v3386_v19 = vld [vmem:[#allocation41 + $0x418] sm:$0xff] }
 0x52f   : > { %3552 = vmatpush.msra.mxu0 %v3395_v50  ;;  %3674 = vmatpush.msrb.mxu1 %v3493_v25  ;;  %v3473_v50 = vld [vmem:[#allocation41 + $0x6d0] sm:$0xff] }
 0x530   : > { %3600 = vmatpush.msra.mxu2 %v3412_v36  ;;  %3626 = vmatpush.msra.mxu3 %v3476_v37  ;;  %v3485_v36 = vld [vmem:[#allocation41 + $0x730] sm:$0xff]  ;;  %v3422_v37 = vld [vmem:[#allocation41 + $0x538] sm:$0xff] }
 0x531   : > { %3553 = vmatpush.msra.mxu0 %v3391_v54  ;;  %3675 = vmatpush.msrb.mxu1 %v3489_v29  ;;  %v3469_v54 = vld [vmem:[#allocation41 + $0x6b0] sm:$0xff] }
 0x532   : > { %3601 = vmatpush.msra.mxu2 %v3408_v39  ;;  %3627 = vmatpush.msra.mxu3 %v3472_v40  ;;  %v3481_v39 = vld [vmem:[#allocation41 + $0x710] sm:$0xff]  ;;  %v3418_v40 = vld [vmem:[#allocation41 + $0x518] sm:$0xff] }
 0x533   : > { %3164 = vmatmul.f32.gmra.mxu2 %v3108_v62  ;;  %3190 = vmatmul.f32.gmra.mxu3 %v3108_v62  ;;  %v3383_v62 = vld [vmem:[#allocation41 + $0x400] sm:$0xff] }
 0x534   : > { %3602 = vmatpush.msra.mxu2 %v3404_v44  ;;  %3628 = vmatpush.msra.mxu3 %v3468_v45  ;;  %v3413_v45 = vld [vmem:[#allocation41 + $0x4f0] sm:$0xff] }
 0x535   : > { %3554 = vmatpush.msra.mxu0 %v3387_v58  ;;  %3676 = vmatpush.msrb.mxu1 %v3485_v36  ;;  %v3470_v58 = vld [vmem:[#allocation41 + $0x6b8] sm:$0xff] }
 0x536   : > { %3603 = vmatpush.msra.mxu2 %v3400_v48  ;;  %3629 = vmatpush.msra.mxu3 %v3464_v49  ;;  %v3478_v48 = vld [vmem:[#allocation41 + $0x6f8] sm:$0xff]  ;;  %v3409_v49 = vld [vmem:[#allocation41 + $0x4d0] sm:$0xff] }
 0x537   : > { %3555 = vmatpush.msra.mxu0 %v3383_v62  ;;  %3677 = vmatpush.msrb.mxu1 %v3481_v39  ;;  %v3466_v62 = vld [vmem:[#allocation41 + $0x698] sm:$0xff] }
 0x538   : > { %3604 = vmatpush.msra.mxu2 %v3396_v52  ;;  %3630 = vmatpush.msra.mxu3 %v3460_v53  ;;  %v3474_v52 = vld [vmem:[#allocation41 + $0x6d8] sm:$0xff]  ;;  %v3405_v53 = vld [vmem:[#allocation41 + $0x4b0] sm:$0xff] }
 0x539   : > { %3644 = vmatpush.msrb.mxu0 %v3445_v5  ;;  %3678 = vmatpush.msrb.mxu1 %v3477_v46  ;;  %v3461_v5 = vld [vmem:[#allocation41 + $0x670] sm:$0xff] }
 0x53a   : > { %3605 = vmatpush.msra.mxu2 %v3392_v56  ;;  %3631 = vmatpush.msra.mxu3 %v3456_v57 }
 0x53b   : > { %3645 = vmatpush.msrb.mxu0 %v3441_v10  ;;  %3679 = vmatpush.msrb.mxu1 %v3473_v50  ;;  %v3457_v10 = vld [vmem:[#allocation41 + $0x650] sm:$0xff] }
 0x53c   : > { %3606 = vmatpush.msra.mxu2 %v3388_v60  ;;  %3632 = vmatpush.msra.mxu3 %v3452_v61  ;;  %v3465_v60 = vld [vmem:[#allocation41 + $0x690] sm:$0xff]  ;;  %v3402_v61 = vld [vmem:[#allocation41 + $0x498] sm:$0xff] }
 0x53d   : > { %3646 = vmatpush.msrb.mxu0 %v3437_v13  ;;  %3680 = vmatpush.msrb.mxu1 %v3469_v54  ;;  %v3453_v13 = vld [vmem:[#allocation41 + $0x630] sm:$0xff] }
 0x53e   : > { %3607 = vmatpush.msra.mxu2 %v3384_v1  ;;  %3633 = vmatpush.msra.mxu3 %v3448_v4  ;;  %v3397_v4 = vld [vmem:[#allocation41 + $0x470] sm:$0xff] }
 0x53f   : > { %3647 = vmatpush.msrb.mxu0 %v3433_v17  ;;  %3681 = vmatpush.msrb.mxu1 %v3465_v60  ;;  %v3449_v17 = vld [vmem:[#allocation41 + $0x610] sm:$0xff] }
 0x540   : > { %3696 = vmatpush.msrb.mxu2 %v3446_v8  ;;  %3722 = vmatpush.msrb.mxu3 %v3510_v9  ;;  %v3462_v8 = vld [vmem:[#allocation41 + $0x678] sm:$0xff]  ;;  %v3393_v9 = vld [vmem:[#allocation41 + $0x450] sm:$0xff] }
 0x541   : > { %3648 = vmatpush.msrb.mxu0 %v3429_v23  ;;  %3682 = vmatpush.msrb.mxu1 %v3461_v5  ;;  %v3450_v23 = vld [vmem:[#allocation41 + $0x618] sm:$0xff] }
 0x542   : > { %3697 = vmatpush.msrb.mxu2 %v3442_v11  ;;  %3723 = vmatpush.msrb.mxu3 %v3506_v12  ;;  %v3458_v11 = vld [vmem:[#allocation41 + $0x658] sm:$0xff]  ;;  %v3389_v12 = vld [vmem:[#allocation41 + $0x430] sm:$0xff] }
 0x543   : > { %3649 = vmatpush.msrb.mxu0 %v3425_v28  ;;  %3683 = vmatpush.msrb.mxu1 %v3457_v10 }
 0x544   : > { %3698 = vmatpush.msrb.mxu2 %v3438_v15  ;;  %3724 = vmatpush.msrb.mxu3 %v3502_v16  ;;  %v3454_v15 = vld [vmem:[#allocation41 + $0x638] sm:$0xff]  ;;  %v3385_v16 = vld [vmem:[#allocation41 + $0x410] sm:$0xff] }
 0x545   : > { %3650 = vmatpush.msrb.mxu0 %v3421_v35  ;;  %3684 = vmatpush.msrb.mxu1 %v3453_v13 }
 0x546   : > { %3699 = vmatpush.msrb.mxu2 %v3434_v0  ;;  %3725 = vmatpush.msrb.mxu3 %v3498_v20 }
 0x547   : > { %3651 = vmatpush.msrb.mxu0 %v3417_v24  ;;  %3685 = vmatpush.msrb.mxu1 %v3449_v17  ;;  %v3212_v24 = vld [vmem:[#allocation39] sm:$0x3]  ;;  %v3310_v17 = vld [vmem:[#allocation41 + $0x1e0] sm:$0xff] }
 0x548   : > { %3700 = vmatpush.msrb.mxu2 %v3430_v26  ;;  %3726 = vmatpush.msrb.mxu3 %v3494_v27 }
 0x549   : > { %3652 = vmatpush.msrb.mxu0 %v3413_v45 }
 0x54a   : > { %3701 = vmatpush.msrb.mxu2 %v3426_v30  ;;  %3727 = vmatpush.msrb.mxu3 %v3490_v34 }
 0x54b   : > { %3653 = vmatpush.msrb.mxu0 %v3409_v49  ;;  %v7173_v49 = vperm.slane %v3212_v24, 1 }
 0x54c   : > { %3702 = vmatpush.msrb.mxu2 %v3422_v37  ;;  %3728 = vmatpush.msrb.mxu3 %v3486_v38  ;;  %v3200_v38 = vld [vmem:[#allocation38] sm:$0x3] }
 0x54d   : > { %3654 = vmatpush.msrb.mxu0 %v3405_v53  ;;  %v7165_v45 = vperm.slane %v3200_v38, 1 }
 0x54e   : > { %3703 = vmatpush.msrb.mxu2 %v3418_v40  ;;  %3729 = vmatpush.msrb.mxu3 %v3482_v41  ;;  %v7163_v40 = vperm.slane %v3200_v38, 0  ;;  %v3371_v38 = vld [vmem:[#allocation41 + $0x3c8] sm:$0xff] }
 0x54f   : > { %3655 = vmatpush.msrb.mxu0 %v3401_v59 }
 0x550   : > { %3704 = vmatpush.msrb.mxu2 %v3414_v47  ;;  %3730 = vmatpush.msrb.mxu3 %v3478_v48  ;;  %v7171_v47 = vperm.slane %v3212_v24, 0 }
 0x551   : > { %3656 = vmatpush.msrb.mxu0 %v3397_v4 }
 0x552   : > { %3705 = vmatpush.msrb.mxu2 %v3410_v51  ;;  %3731 = vmatpush.msrb.mxu3 %v3474_v52 }
 0x553   : > { %3657 = vmatpush.msrb.mxu0 %v3393_v9 }
 0x554   : > { %3706 = vmatpush.msrb.mxu2 %v3406_v31  ;;  %3732 = vmatpush.msrb.mxu3 %v3470_v58 }
 0x555   : > { %3658 = vmatpush.msrb.mxu0 %v3389_v12 }
 0x556   : > { %3707 = vmatpush.msrb.mxu2 %v3402_v61  ;;  %3733 = vmatpush.msrb.mxu3 %v3466_v62 }
 0x557   : > { %3659 = vmatpush.msrb.mxu0 %v3385_v16 }
 0x558   : > { %3708 = vmatpush.msrb.mxu2 %v3398_v7  ;;  %3734 = vmatpush.msrb.mxu3 %v3462_v8 }
 0x55a   : > { %3709 = vmatpush.msrb.mxu2 %v3394_v43  ;;  %3735 = vmatpush.msrb.mxu3 %v3458_v11 }
 0x55c   : > { %3710 = vmatpush.msrb.mxu2 %v3390_v14  ;;  %3736 = vmatpush.msrb.mxu3 %v3454_v15 }
 0x55e   : > { %3711 = vmatpush.msrb.mxu2 %v3386_v19  ;;  %3737 = vmatpush.msrb.mxu3 %v3450_v23  ;;  %v3374_v19 = vld [vmem:[#allocation41 + $0x3e0] sm:$0xff]  ;;  %v3311_v23 = vld [vmem:[#allocation41 + $0x1e8] sm:$0xff] }
 0x571   : > { %v7147_v32 = vpop.f32.mrf.mxu0  ;;  %v7149_v33 = vpop.f32.mrf.mxu1 }
 0x576   : > { %v7139_v2 = vpop.f32.mrf.mxu2  ;;  %v7141_v3 = vpop.f32.mrf.mxu3 }
 0x577   : > { %v2884_v29 = vadd.f32 %v7147_v32, %v7139_v2  ;;  %v2910_v30 = vadd.f32 %v7149_v33, %v7141_v3 }
 0x579   : > { %v7155_v56 = vpop.f32.mrf.mxu0  ;;  %v7157_v57 = vpop.f32.mrf.mxu1 }
 0x57e   : > { %v7143_v21 = vpop.f32.mrf.mxu2  ;;  %v7145_v22 = vpop.f32.mrf.mxu3 }
 0x57f   : > { %v2887_v46 = vadd.f32 %v7155_v56, %v7143_v21  ;;  %v2913_v2 = vadd.f32 %v7157_v57, %v7145_v22  ;;  %v3378_v56 = vld [vmem:[#allocation9 + $0x20] sm:$0x80] }
 0x580   : > { %v3379_v57 = vld [vmem:[#allocation9] sm:$0x80]  ;;  %v3520_v5 = vrot.slane %v3378_v56, 7  ;;  %v3299_v56 = vld [vmem:[#allocation41 + $0x188] sm:$0xff] }
 0x581   : > { %v2889_v0 = vpop.f32.mrf.mxu0  ;;  %v2915_v20 = vpop.f32.mrf.mxu1  ;;  %v3523_v7 = vrot.slane %v3379_v57, 7  ;;  %v3363_v57 = vld [vmem:[#allocation41 + $0x388] sm:$0xff] }
 0x586   : > { %v7151_v42 = vpop.f32.mrf.mxu2  ;;  %v7153_v44 = vpop.f32.mrf.mxu3 }
 0x587   : > { %v2890_v58 = vadd.f32 %v2889_v0, %v7151_v42 }
 0x589   : > { %v3065_v34 = vpop.f32.mrf.mxu0  ;;  %v3091_v35 = vpop.f32.mrf.mxu1 }
 0x58e   : > { %v2971_v63 = vpop.f32.mrf.mxu2  ;;  %v2997_v1 = vpop.f32.mrf.mxu3 }
 0x58f   : > { %v3006_v36 = vadd.f32 %v2971_v63, %v2884_v29  ;;  %v3007_v37 = vadd.f32 %v2997_v1, %v2910_v30  ;;  %v2916_v63 = vadd.f32 %v2915_v20, %v7153_v44  ;;  %v3370_v29 = vld [vmem:[#allocation41 + $0x3c0] sm:$0xff] }
 0x591   : > { %v3100_v39 = vadd.f32 %v3065_v34, %v3006_v36  ;;  %v3101_v41 = vadd.f32 %v3091_v35, %v3007_v37  ;;  %v3068_v54 = vpop.f32.mrf.mxu0  ;;  %v3094_v31 = vpop.f32.mrf.mxu1  ;;  %v3307_v37 = vld [vmem:[#allocation41 + $0x1c8] sm:$0xff] }
 0x596   : > { %v2974_v25 = vpop.f32.mrf.mxu2  ;;  %v3000_v26 = vpop.f32.mrf.mxu3 }
 0x597   : > { %v3008_v50 = vadd.f32 %v2974_v25, %v2887_v46  ;;  %v3009_v51 = vadd.f32 %v3000_v26, %v2913_v2  ;;  %v3375_v25 = vld [vmem:[#allocation41 + $0x3e8] sm:$0xff]  ;;  %v3366_v46 = vld [vmem:[#allocation41 + $0x3a0] sm:$0xff] }
 0x599   : > { %v3102_v61 = vadd.f32 %v3068_v54, %v3008_v50  ;;  %v3103_v62 = vadd.f32 %v3094_v31, %v3009_v51  ;;  %v3071_v26 = vpop.f32.mrf.mxu0  ;;  %v3367_v50 = vld [vmem:[#allocation41 + $0x3a8] sm:$0xff]  ;;  %v3298_v51 = vld [vmem:[#allocation41 + $0x180] sm:$0xff] }
 0x59e   : > { %v2977_v27 = vpop.f32.mrf.mxu2  ;;  %v3003_v28 = vpop.f32.mrf.mxu3 }
 0x59f   : > { %v3010_v11 = vadd.f32 %v2977_v27, %v2890_v58  ;;  %v3011_v12 = vadd.f32 %v3003_v28, %v2916_v63  ;;  %v3097_v27 = vpop.f32.mrf.mxu1  ;;  %v3306_v28 = vld [vmem:[#allocation41 + $0x1c0] sm:$0xff] }
 0x5a1   : > { %v3104_v35 = vadd.f32 %v3071_v26, %v3010_v11  ;;  %v3105_v36 = vadd.f32 %v3097_v27, %v3011_v12  ;;  %v3350_v11 = vld [vmem:[#allocation41 + $0x320] sm:$0xff]  ;;  %v3287_v12 = vld [vmem:[#allocation41 + $0x128] sm:$0xff] }
 0x5a2   : > { %v3274_v26 = vld [vmem:[#allocation41 + $0xc0] sm:$0xff] }
 0x5a3   : > { %v3338_v27 = vld [vmem:[#allocation41 + $0x2c0] sm:$0xff] }
 0x5a6   : > { %v3159_v32 = vpop.f32.mrf.mxu2  ;;  %v3185_v3 = vpop.f32.mrf.mxu3 }
 0x5a7   : > { %v3194_v33 = vadd.f32 %v3159_v32, %v3100_v39  ;;  %v3195_v48 = vadd.f32 %v3185_v3, %v3101_v41  ;;  %v3302_v41 = vld [vmem:[#allocation41 + $0x1a0] sm:$0xff] }
 0x5a9   : > { %v3206_v52 = vmul.f32 %v7163_v40, %v3194_v33  ;;  %v3207_v53 = vmul.f32 %v7165_v45, %v3195_v48  ;;  %v3303_v48 = vld [vmem:[#allocation41 + $0x1a8] sm:$0xff] }
 0x5ab   : > { %v3218_v21 = vadd.f32 %v7171_v47, %v3206_v52  ;;  %v7179_v22 = vadd.f32 %v7173_v49, %v3207_v53  ;;  %v3362_v52 = vld [vmem:[#allocation41 + $0x380] sm:$0xff] }
 0x5ad   : > { %v3224_v59 = vmax.f32 %v3218_v21, 0.0  ;;  %v3225_v60 = vmax.f32 %v7179_v22, 0.0  ;;  %v4029_v22 = vld [vmem:[#allocation41 + $0x970] sm:$0xff] }
 0x5ae   : > { %v3162_v1 = vpop.f32.mrf.mxu2  ;;  %v3188_v4 = vpop.f32.mrf.mxu3 }
 0x5af   : > { %v7186_v8 = vsel %vm6954_vm2, %v3224_v59, 0.0  ;;  %v7192_v42 = vsel %vm6954_vm2, %v3225_v60, 0.0  ;;  %v3196_v9 = vadd.f32 %v3162_v1, %v3102_v61  ;;  %v3197_v10 = vadd.f32 %v3188_v4, %v3103_v62  ;;  %v3294_v61 = vld [vmem:[#allocation41 + $0x160] sm:$0xff]  ;;  %v3295_v4 = vld [vmem:[#allocation41 + $0x168] sm:$0xff] }
 0x5b0   : > { %3236 = vst [vmem:[#allocation9 + $0x8] sm:$0xff] %v7186_v8  ;;  %v3521_v44 = vrot.slane %v7186_v8, 7  ;;  %v3524_v43 = vrot.slane %v7192_v42, 7  ;;  %v3358_v62 = vld [vmem:[#allocation41 + $0x360] sm:$0xff] }
 0x5b1   : > { %3237 = vst [vmem:[#allocation9 + $0x10] sm:$0xff] %v7192_v42  ;;  %v3208_v13 = vmul.f32 %v7163_v40, %v3196_v9  ;;  %v3209_v14 = vmul.f32 %v7165_v45, %v3197_v10  ;;  %v3291_v10 = vld [vmem:[#allocation41 + $0x148] sm:$0xff] }
 0x5b2   : > { %v7201_v15 = vsel %vm3519_vm11, %v3520_v5, %v3521_v44  ;;  %v7204_v16 = vsel %vm3519_vm11, %v3523_v7, %v3524_v43  ;;  %v3359_v5 = vld [vmem:[#allocation41 + $0x368] sm:$0xff] }
 0x5b3   : > { %v3220_v0 = vadd.f32 %v7171_v47, %v3208_v13  ;;  %v3221_v20 = vadd.f32 %v7173_v49, %v3209_v14  ;;  %3556 = vmatmul.f32.vlgmr.msra.gmra.mxu0 %v7201_v15  ;;  %3582 = vmatmul.f32.vlgmr.msra.gmra.mxu1 %v7204_v16  ;;  %v3351_v13 = vld [vmem:[#allocation41 + $0x328] sm:$0xff]  ;;  %v3282_v14 = vld [vmem:[#allocation41 + $0x100] sm:$0xff] }
 0x5b4   : > { %3608 = vmatmul.f32.vlgmr.msra.gmra.mxu2 %v7201_v15  ;;  %3634 = vmatmul.f32.vlgmr.msra.gmra.mxu3 %v7204_v16 }
 0x5b5   : > { %v7212_v30 = vmax.f32 %v3220_v0, 0.0  ;;  %v7214_v34 = vmax.f32 %v3221_v20, 0.0  ;;  %3772 = vmatpush.msra.mxu0 %v3310_v17  ;;  %3798 = vmatpush.msra.mxu1 %v3374_v19  ;;  %v3346_v17 = vld [vmem:[#allocation41 + $0x300] sm:$0xff]  ;;  %v3347_v19 = vld [vmem:[#allocation41 + $0x308] sm:$0xff] }
 0x5b6   : > { %v3165_v24 = vpop.f32.mrf.mxu2  ;;  %v3191_v39 = vpop.f32.mrf.mxu3  ;;  %3824 = vmatpush.msra.mxu2 %v3311_v23  ;;  %3850 = vmatpush.msra.mxu3 %v3375_v25  ;;  %v3278_v0 = vld [vmem:[#allocation41 + $0xe0] sm:$0xff]  ;;  %v3279_v23 = vld [vmem:[#allocation41 + $0xe8] sm:$0xff] }
 0x5b7   : > { %v7219_v2 = vsel %vm6962_vm7, %v7212_v30, 0.0  ;;  %v7224_v32 = vsel %vm6962_vm7, %v7214_v34, 0.0  ;;  %v3198_v3 = vadd.f32 %v3165_v24, %v3104_v35  ;;  %v3199_v33 = vadd.f32 %v3191_v39, %v3105_v36  ;;  %3773 = vmatpush.msra.mxu0 %v3306_v28  ;;  %3799 = vmatpush.msra.mxu1 %v3370_v29  ;;  %v3342_v20 = vld [vmem:[#allocation41 + $0x2e0] sm:$0xff]  ;;  %v3343_v25 = vld [vmem:[#allocation41 + $0x2e8] sm:$0xff] }
 0x5b8   : > { %3238 = vst [vmem:[#allocation9 + $0x18] sm:$0xff] %v7219_v2  ;;  %3825 = vmatpush.msra.mxu2 %v3307_v37  ;;  %3851 = vmatpush.msra.mxu3 %v3371_v38  ;;  %v3526_v53 = vrot.slane %v7219_v2, 7  ;;  %v3528_v54 = vrot.slane %v7224_v32, 7  ;;  %v3275_v29 = vld [vmem:[#allocation41 + $0xc8] sm:$0xff]  ;;  %v3270_v39 = vld [vmem:[#allocation41 + $0xa0] sm:$0xff] }
 0x5b9   : > { %3239 = vst [vmem:[#allocation9 + $0x28] sm:$0xff] %v7224_v32  ;;  %v3210_v31 = vmul.f32 %v7163_v40, %v3198_v3  ;;  %v3211_v21 = vmul.f32 %v7165_v45, %v3199_v33  ;;  %3774 = vmatpush.msra.mxu0 %v3302_v41  ;;  %3800 = vmatpush.msra.mxu1 %v3366_v46  ;;  %v3339_v35 = vld [vmem:[#allocation41 + $0x2c8] sm:$0xff]  ;;  %v3334_v41 = vld [vmem:[#allocation41 + $0x2a0] sm:$0xff] }
 0x5ba   : > { %3826 = vmatpush.msra.mxu2 %v3303_v48  ;;  %3852 = vmatpush.msra.mxu3 %v3367_v50  ;;  %v7235_v58 = vsel %vm3519_vm11, %v3521_v44, %v3526_v53  ;;  %v7240_v59 = vsel %vm3519_vm11, %v3524_v43, %v3528_v54  ;;  %v3355_v44 = vld [vmem:[#allocation41 + $0x348] sm:$0xff]  ;;  %v3286_v43 = vld [vmem:[#allocation41 + $0x120] sm:$0xff] }
 0x5bb   : > { %v3222_v40 = vadd.f32 %v7171_v47, %v3210_v31  ;;  %v3223_v45 = vadd.f32 %v7173_v49, %v3211_v21  ;;  %3775 = vmatpush.msra.mxu0 %v3298_v51  ;;  %3801 = vmatpush.msra.mxu1 %v3362_v52  ;;  %v3290_v47 = vld [vmem:[#allocation41 + $0x140] sm:$0xff]  ;;  %v3271_v3 = vld [vmem:[#allocation41 + $0xa8] sm:$0xff] }
 0x5bc   : > { %3827 = vmatpush.msra.mxu2 %v3299_v56  ;;  %3853 = vmatpush.msra.mxu3 %v3363_v57  ;;  %v3354_v49 = vld [vmem:[#allocation41 + $0x340] sm:$0xff]  ;;  %v3335_v33 = vld [vmem:[#allocation41 + $0x2a8] sm:$0xff] }
 0x5bd   : > { %v3228_v63 = vmax.f32 %v3222_v40, 0.0  ;;  %v3229_v1 = vmax.f32 %v3223_v45, 0.0  ;;  %3559 = vmatmul.f32.gmra.mxu0 %v7235_v58  ;;  %3585 = vmatmul.f32.gmra.mxu1 %v7240_v59  ;;  %v3266_v48 = vld [vmem:[#allocation41 + $0x80] sm:$0xff]  ;;  %v3267_v51 = vld [vmem:[#allocation41 + $0x88] sm:$0xff] }
 0x5be   : > { %3611 = vmatmul.f32.gmra.mxu2 %v7235_v58  ;;  %3637 = vmatmul.f32.gmra.mxu3 %v7240_v59  ;;  %v3330_v50 = vld [vmem:[#allocation41 + $0x280] sm:$0xff]  ;;  %v3331_v52 = vld [vmem:[#allocation41 + $0x288] sm:$0xff] }
 0x5bf   : > { %v3234_v7 = vsel %vm6972_vm9, %v3228_v63, 0.0  ;;  %v3235_v9 = vsel %vm6972_vm9, %v3229_v1, 0.0  ;;  %3776 = vmatpush.msra.mxu0 %v3294_v61  ;;  %3802 = vmatpush.msra.mxu1 %v3358_v62  ;;  %v3326_v31 = vld [vmem:[#allocation41 + $0x260] sm:$0xff]  ;;  %v3327_v21 = vld [vmem:[#allocation41 + $0x268] sm:$0xff]  ;;  %vm5148_vm9 = vcmask 1046532  }
 0x5c0   : > { %3240 = vst [vmem:[#allocation9 + $0x38] sm:$0xf] %v3234_v7  ;;  %3828 = vmatpush.msra.mxu2 %v3295_v4  ;;  %3854 = vmatpush.msra.mxu3 %v3359_v5  ;;  %v3258_v56 = vld [vmem:[#allocation41 + $0x40] sm:$0xff]  ;;  %v3259_v40 = vld [vmem:[#allocation41 + $0x48] sm:$0xff]  ;;  %v3376_v7 = vld [vmem:[#allocation41 + $0x3f0] sm:$0xff] }
 0x5c1   : > { %3241 = vst [vmem:[#allocation9 + $0x30] sm:$0xf] %v3235_v9  ;;  %3777 = vmatpush.msra.mxu0 %v3290_v47  ;;  %3803 = vmatpush.msra.mxu1 %v3354_v49  ;;  %v3322_v57 = vld [vmem:[#allocation41 + $0x240] sm:$0xff]  ;;  %v3323_v45 = vld [vmem:[#allocation41 + $0x248] sm:$0xff]  ;;  %v3312_v49 = vld [vmem:[#allocation41 + $0x1f0] sm:$0xff] }
 0x5c2   : > { %3829 = vmatpush.msra.mxu2 %v3291_v10  ;;  %3855 = vmatpush.msra.mxu3 %v3355_v44  ;;  %v3254_v61 = vld [vmem:[#allocation41 + $0x20] sm:$0xff]  ;;  %v3255_v63 = vld [vmem:[#allocation41 + $0x28] sm:$0xff]  ;;  %v3377_v9 = vld [vmem:[#allocation41 + $0x3f8] sm:$0xff] }
 0x5c3   : > { %3778 = vmatpush.msra.mxu0 %v3286_v43  ;;  %3804 = vmatpush.msra.mxu1 %v3350_v11  ;;  %v3318_v62 = vld [vmem:[#allocation41 + $0x220] sm:$0xff]  ;;  %v3319_v1 = vld [vmem:[#allocation41 + $0x228] sm:$0xff]  ;;  %v3308_v10 = vld [vmem:[#allocation41 + $0x1d0] sm:$0xff] }
 0x5c4   : > { %3830 = vmatpush.msra.mxu2 %v3287_v12  ;;  %3856 = vmatpush.msra.mxu3 %v3351_v13  ;;  %v3250_v4 = vld [vmem:[#allocation41] sm:$0xff]  ;;  %v3251_v47 = vld [vmem:[#allocation41 + $0x8] sm:$0xff]  ;;  %v3372_v44 = vld [vmem:[#allocation41 + $0x3d0] sm:$0xff] }
 0x5c5   : > { %3779 = vmatpush.msra.mxu0 %v3282_v14  ;;  %3805 = vmatpush.msra.mxu1 %v3346_v17  ;;  %v3314_v5 = vld [vmem:[#allocation41 + $0x200] sm:$0xff]  ;;  %v3309_v43 = vld [vmem:[#allocation41 + $0x1d8] sm:$0xff]  ;;  %v3304_v12 = vld [vmem:[#allocation41 + $0x1b0] sm:$0xff] }
 0x5c6   : > { %3831 = vmatpush.msra.mxu2 %v3283_v18  ;;  %3857 = vmatpush.msra.mxu3 %v3347_v19  ;;  %v3373_v11 = vld [vmem:[#allocation41 + $0x3d8] sm:$0xff]  ;;  %v3368_v13 = vld [vmem:[#allocation41 + $0x3b0] sm:$0xff] }
 0x5c7   : > { %v3380_v28 = vld [vmem:[#allocation9 + $0x38] sm:$0x7]  ;;  %3780 = vmatpush.msra.mxu0 %v3278_v0  ;;  %3806 = vmatpush.msra.mxu1 %v3342_v20  ;;  %v3305_v14 = vld [vmem:[#allocation41 + $0x1b8] sm:$0xff] }
 0x5c8   : > { %v3530_v36 = vrot.slane %v3380_v28, 7  ;;  %v3381_v37 = vld [vmem:[#allocation9 + $0x30] sm:$0x7]  ;;  %3832 = vmatpush.msra.mxu2 %v3279_v23  ;;  %3858 = vmatpush.msra.mxu3 %v3343_v25  ;;  %v3369_v17 = vld [vmem:[#allocation41 + $0x3b8] sm:$0xff]  ;;  %v3300_v18 = vld [vmem:[#allocation41 + $0x190] sm:$0xff] }
 0x5c9   : > { %v3532_v38 = vrot.slane %v3381_v37, 7  ;;  %3781 = vmatpush.msra.mxu0 %v3274_v26  ;;  %3807 = vmatpush.msra.mxu1 %v3338_v27  ;;  %v3364_v19 = vld [vmem:[#allocation41 + $0x390] sm:$0xff]  ;;  %v3301_v0 = vld [vmem:[#allocation41 + $0x198] sm:$0xff] }
 0x5ca   : > { %v7255_v24 = vsel %vm3519_vm11, %v3526_v53, %v3530_v36  ;;  %3833 = vmatpush.msra.mxu2 %v3275_v29  ;;  %3859 = vmatpush.msra.mxu3 %v3339_v35  ;;  %v3262_v53 = vld [vmem:[#allocation41 + $0x60] sm:$0xff]  ;;  %v3365_v20 = vld [vmem:[#allocation41 + $0x398] sm:$0xff]  ;;  %v3296_v23 = vld [vmem:[#allocation41 + $0x170] sm:$0xff] }
 0x5cb   : > { %3562 = vmatmul.f32.gmra.mxu0 %v7255_v24  ;;  %v7261_v46 = vsel %vm3519_vm11, %v3528_v54, %v3532_v38  ;;  %3614 = vmatmul.f32.gmra.mxu2 %v7255_v24  ;;  %v3263_v54 = vld [vmem:[#allocation41 + $0x68] sm:$0xff]  ;;  %v3361_v25 = vld [vmem:[#allocation41 + $0x378] sm:$0xff]  ;;  %v3292_v26 = vld [vmem:[#allocation41 + $0x150] sm:$0xff] }
 0x5cc   : > { %3588 = vmatmul.f32.gmra.mxu1 %v7261_v46  ;;  %3640 = vmatmul.f32.gmra.mxu3 %v7261_v46  ;;  %v3356_v27 = vld [vmem:[#allocation41 + $0x350] sm:$0xff]  ;;  %v3293_v28 = vld [vmem:[#allocation41 + $0x158] sm:$0xff] }
 0x5cd   : > { %3782 = vmatpush.msra.mxu0 %v3270_v39  ;;  %3808 = vmatpush.msra.mxu1 %v3334_v41  ;;  %v3357_v29 = vld [vmem:[#allocation41 + $0x358] sm:$0xff]  ;;  %v3288_v35 = vld [vmem:[#allocation41 + $0x130] sm:$0xff] }
 0x5ce   : > { %3834 = vmatpush.msra.mxu2 %v3271_v3  ;;  %3860 = vmatpush.msra.mxu3 %v3335_v33  ;;  %v3352_v36 = vld [vmem:[#allocation41 + $0x330] sm:$0xff]  ;;  %v3242_v37 = vld [vmem:[#allocation9 + $0x20] sm:$0xc0] }
 0x5cf   : > { %3783 = vmatpush.msra.mxu0 %v3266_v48  ;;  %3809 = vmatpush.msra.mxu1 %v3330_v50  ;;  %v3289_v38 = vld [vmem:[#allocation41 + $0x138] sm:$0xff]  ;;  %v3284_v3 = vld [vmem:[#allocation41 + $0x110] sm:$0xff] }
 0x5d0   : > { %3835 = vmatpush.msra.mxu2 %v3267_v51  ;;  %3861 = vmatpush.msra.mxu3 %v3331_v52  ;;  %v3353_v39 = vld [vmem:[#allocation41 + $0x338] sm:$0xff]  ;;  %v3348_v33 = vld [vmem:[#allocation41 + $0x310] sm:$0xff]  ;;  %v3752_v51 = vrot.slane %v3242_v37, 6  ;;  %v3753_v52 = vrot.slane %v7186_v8, 6 }
 0x5d1   : > { %3784 = vmatpush.msra.mxu0 %v3262_v53  ;;  %3810 = vmatpush.msra.mxu1 %v3326_v31  ;;  %v3243_v41 = vld [vmem:[#allocation9] sm:$0xc0]  ;;  %v3756_v31 = vrot.slane %v7192_v42, 6  ;;  %v3276_v8 = vld [vmem:[#allocation41 + $0xd0] sm:$0xff] }
 0x5d2   : > { %3836 = vmatpush.msra.mxu2 %v3263_v54  ;;  %3862 = vmatpush.msra.mxu3 %v3327_v21  ;;  %v3285_v48 = vld [vmem:[#allocation41 + $0x118] sm:$0xff]  ;;  %v3755_v53 = vrot.slane %v3243_v41, 6  ;;  %v4103_v41 = vld [vmem:[#allocation41 + $0xbc0] sm:$0xff] }
 0x5d3   : > { %3660 = vmatmul.f32.vlgmr.msrb.gmra.mxu0 %v7201_v15  ;;  %3712 = vmatmul.f32.vlgmr.msrb.gmra.mxu2 %v7201_v15  ;;  %v3315_v15 = vld [vmem:[#allocation41 + $0x208] sm:$0xff]  ;;  %v3349_v50 = vld [vmem:[#allocation41 + $0x318] sm:$0xff] }
 0x5d4   : > { %3686 = vmatmul.f32.vlgmr.msrb.gmra.mxu1 %v7204_v16  ;;  %3738 = vmatmul.f32.vlgmr.msrb.gmra.mxu3 %v7204_v16  ;;  %v3313_v16 = vld [vmem:[#allocation41 + $0x1f8] sm:$0xff] }
 0x5d5   : > { %3785 = vmatpush.msra.mxu0 %v3258_v56  ;;  %3811 = vmatpush.msra.mxu1 %v3322_v57  ;;  %v3281_v54 = vld [vmem:[#allocation41 + $0xf8] sm:$0xff]  ;;  %v7281_v56 = vsel %vm1277_vm1, %v3752_v51, %v3753_v52  ;;  %v7284_v57 = vsel %vm1277_vm1, %v3755_v53, %v3756_v31  ;;  %v4031_v51 = vld [vmem:[#allocation41 + $0x980] sm:$0xff]  ;;  %v4032_v53 = vld [vmem:[#allocation41 + $0x988] sm:$0xff] }
 0x5d6   : > { %3837 = vmatpush.msra.mxu2 %v3259_v40  ;;  %3863 = vmatpush.msra.mxu3 %v3323_v45  ;;  %v3345_v21 = vld [vmem:[#allocation41 + $0x2f8] sm:$0xff]  ;;  %v3340_v40 = vld [vmem:[#allocation41 + $0x2d0] sm:$0xff] }
 0x5d7   : > { %3786 = vmatpush.msra.mxu0 %v3254_v61  ;;  %3812 = vmatpush.msra.mxu1 %v3318_v62  ;;  %v3277_v42 = vld [vmem:[#allocation41 + $0xd8] sm:$0xff]  ;;  %v3272_v61 = vld [vmem:[#allocation41 + $0xb0] sm:$0xff] }
 0x5d8   : > { %3838 = vmatpush.msra.mxu2 %v3255_v63  ;;  %3864 = vmatpush.msra.mxu3 %v3319_v1  ;;  %v3341_v45 = vld [vmem:[#allocation41 + $0x2d8] sm:$0xff]  ;;  %v3336_v62 = vld [vmem:[#allocation41 + $0x2b0] sm:$0xff] }
 0x5d9   : > { %3787 = vmatpush.msra.mxu0 %v3250_v4  ;;  %3813 = vmatpush.msra.mxu1 %v3314_v5  ;;  %v3273_v63 = vld [vmem:[#allocation41 + $0xb8] sm:$0xff]  ;;  %v3268_v4 = vld [vmem:[#allocation41 + $0x90] sm:$0xff] }
 0x5da   : > { %3839 = vmatpush.msra.mxu2 %v3251_v47  ;;  %3865 = vmatpush.msra.mxu3 %v3315_v15  ;;  %v3337_v1 = vld [vmem:[#allocation41 + $0x2b8] sm:$0xff]  ;;  %v3332_v5 = vld [vmem:[#allocation41 + $0x290] sm:$0xff] }
 0x5db   : > { %3876 = vmatpush.msrb.mxu0 %v3312_v49  ;;  %3902 = vmatpush.msrb.mxu1 %v3376_v7  ;;  %v3269_v47 = vld [vmem:[#allocation41 + $0x98] sm:$0xff]  ;;  %v3264_v49 = vld [vmem:[#allocation41 + $0x70] sm:$0xff] }
 0x5dc   : > { %3928 = vmatpush.msrb.mxu2 %v3313_v16  ;;  %3954 = vmatpush.msrb.mxu3 %v3377_v9  ;;  %v3333_v15 = vld [vmem:[#allocation41 + $0x298] sm:$0xff]  ;;  %v3328_v7 = vld [vmem:[#allocation41 + $0x270] sm:$0xff]  ;;  %v3758_v16 = vrot.slane %v7219_v2, 6  ;;  %v3760_v9 = vrot.slane %v7224_v32, 6 }
 0x5dd   : > { %3663 = vmatmul.f32.gmra.mxu0 %v7235_v58  ;;  %3689 = vmatmul.f32.gmra.mxu1 %v7240_v59  ;;  %v3324_v2 = vld [vmem:[#allocation41 + $0x250] sm:$0xff]  ;;  %v3261_v32 = vld [vmem:[#allocation41 + $0x58] sm:$0xff] }
 0x5de   : > { %3715 = vmatmul.f32.gmra.mxu2 %v7235_v58  ;;  %3741 = vmatmul.f32.gmra.mxu3 %v7240_v59  ;;  %v3360_v58 = vld [vmem:[#allocation41 + $0x370] sm:$0xff]  ;;  %v3297_v59 = vld [vmem:[#allocation41 + $0x178] sm:$0xff] }
 0x5df   : > { %3877 = vmatpush.msrb.mxu0 %v3308_v10  ;;  %3903 = vmatpush.msrb.mxu1 %v3372_v44  ;;  %v3265_v10 = vld [vmem:[#allocation41 + $0x78] sm:$0xff] }
 0x5e0   : > { %3929 = vmatpush.msrb.mxu2 %v3309_v43  ;;  %3955 = vmatpush.msrb.mxu3 %v3373_v11  ;;  %v3329_v44 = vld [vmem:[#allocation41 + $0x278] sm:$0xff]  ;;  %v7293_v43 = vsel %vm1277_vm1, %v3753_v52, %v3758_v16  ;;  %v7296_v11 = vsel %vm1277_vm1, %v3756_v31, %v3760_v9  ;;  %v4095_v52 = vld [vmem:[#allocation41 + $0xb80] sm:$0xff]  ;;  %v4096_v31 = vld [vmem:[#allocation41 + $0xb88] sm:$0xff] }
 0x5e1   : > { %3878 = vmatpush.msrb.mxu0 %v3304_v12  ;;  %3904 = vmatpush.msrb.mxu1 %v3368_v13  ;;  %v3260_v12 = vld [vmem:[#allocation41 + $0x50] sm:$0xff]  ;;  %v3325_v13 = vld [vmem:[#allocation41 + $0x258] sm:$0xff] }
 0x5e2   : > { %3930 = vmatpush.msrb.mxu2 %v3305_v14  ;;  %3956 = vmatpush.msrb.mxu3 %v3369_v17  ;;  %v3256_v14 = vld [vmem:[#allocation41 + $0x30] sm:$0xff] }
 0x5e3   : > { %3879 = vmatpush.msrb.mxu0 %v3300_v18  ;;  %3905 = vmatpush.msrb.mxu1 %v3364_v19  ;;  %v3320_v17 = vld [vmem:[#allocation41 + $0x230] sm:$0xff]  ;;  %v3257_v19 = vld [vmem:[#allocation41 + $0x38] sm:$0xff] }
 0x5e4   : > { %3931 = vmatpush.msrb.mxu2 %v3301_v0  ;;  %3957 = vmatpush.msrb.mxu3 %v3365_v20  ;;  %v3248_v18 = vld [vmem:[#allocation9 + $0x38] sm:$0x3]  ;;  %v3321_v0 = vld [vmem:[#allocation41 + $0x238] sm:$0xff]  ;;  %v3249_v20 = vld [vmem:[#allocation9 + $0x30] sm:$0x3] }
 0x5e5   : > { %3880 = vmatpush.msrb.mxu0 %v3296_v23  ;;  %3906 = vmatpush.msrb.mxu1 %v3360_v58  ;;  %v3252_v23 = vld [vmem:[#allocation41 + $0x10] sm:$0xff] }
 0x5e6   : > { %3932 = vmatpush.msrb.mxu2 %v3297_v59  ;;  %3958 = vmatpush.msrb.mxu3 %v3361_v25  ;;  %v3316_v58 = vld [vmem:[#allocation41 + $0x210] sm:$0xff]  ;;  %v3253_v59 = vld [vmem:[#allocation41 + $0x18] sm:$0xff] }
 0x5e7   : > { %3666 = vmatmul.f32.gmra.mxu0 %v7255_v24  ;;  %3692 = vmatmul.f32.gmra.mxu1 %v7261_v46  ;;  %v3317_v25 = vld [vmem:[#allocation41 + $0x218] sm:$0xff] }
 0x5e8   : > { %3718 = vmatmul.f32.gmra.mxu2 %v7255_v24  ;;  %3744 = vmatmul.f32.gmra.mxu3 %v7261_v46  ;;  %v3280_v24 = vld [vmem:[#allocation41 + $0xf0] sm:$0xff] }
 0x5e9   : > { %3881 = vmatpush.msrb.mxu0 %v3292_v26  ;;  %3907 = vmatpush.msrb.mxu1 %v3356_v27  ;;  %v3344_v46 = vld [vmem:[#allocation41 + $0x2f0] sm:$0xff]  ;;  %v4043_v26 = vld [vmem:[#allocation41 + $0x9e0] sm:$0xff] }
 0x5ea   : > { %3933 = vmatpush.msrb.mxu2 %v3293_v28  ;;  %3959 = vmatpush.msrb.mxu3 %v3357_v29  ;;  %v4107_v27 = vld [vmem:[#allocation41 + $0xbe0] sm:$0xff]  ;;  %v3762_v28 = vrot.slane %v3248_v18, 6  ;;  %v3764_v29 = vrot.slane %v3249_v20, 6  ;;  %v4064_v20 = vld [vmem:[#allocation41 + $0xa88] sm:$0xff] }
 0x5eb   : > { %3882 = vmatpush.msrb.mxu0 %v3288_v35  ;;  %3908 = vmatpush.msrb.mxu1 %v3352_v36  ;;  %v4044_v35 = vld [vmem:[#allocation41 + $0x9e8] sm:$0xff]  ;;  %v3999_v18 = vld [vmem:[#allocation41 + $0x880] sm:$0xff] }
 0x5ec   : > { %3934 = vmatpush.msrb.mxu2 %v3289_v38  ;;  %3960 = vmatpush.msrb.mxu3 %v3353_v39  ;;  %v4108_v36 = vld [vmem:[#allocation41 + $0xbe8] sm:$0xff]  ;;  %v7303_v37 = vsel %vm1277_vm1, %v3758_v16, %v3762_v28  ;;  %v7306_v38 = vsel %vm1277_vm1, %v3760_v9, %v3764_v29  ;;  %v4039_v39 = vld [vmem:[#allocation41 + $0x9c0] sm:$0xff]  ;;  %vm4468_vm1 = vcmask 1046528  }
 0x5ed   : > { %3883 = vmatpush.msrb.mxu0 %v3284_v3  ;;  %3909 = vmatpush.msrb.mxu1 %v3348_v33  ;;  %v4040_v3 = vld [vmem:[#allocation41 + $0x9c8] sm:$0xff]  ;;  %v4011_v16 = vld [vmem:[#allocation41 + $0x8e0] sm:$0xff] }
 0x5ee   : > { %3935 = vmatpush.msrb.mxu2 %v3285_v48  ;;  %3961 = vmatpush.msrb.mxu3 %v3349_v50  ;;  %v4104_v33 = vld [vmem:[#allocation41 + $0xbc8] sm:$0xff]  ;;  %v4035_v48 = vld [vmem:[#allocation41 + $0x9a0] sm:$0xff] }
 0x5ef   : > { %3884 = vmatpush.msrb.mxu0 %v3280_v24  ;;  %3910 = vmatpush.msrb.mxu1 %v3344_v46  ;;  %v4099_v50 = vld [vmem:[#allocation41 + $0xba0] sm:$0xff]  ;;  %v4036_v24 = vld [vmem:[#allocation41 + $0x9a8] sm:$0xff] }
 0x5f0   : > { %3936 = vmatpush.msrb.mxu2 %v3281_v54  ;;  %3962 = vmatpush.msrb.mxu3 %v3345_v21  ;;  %v4100_v46 = vld [vmem:[#allocation41 + $0xba8] sm:$0xff]  ;;  %v4027_v54 = vld [vmem:[#allocation41 + $0x960] sm:$0xff] }
 0x5f1   : > { %3788 = vmatmul.f32.vlgmr.msra.gmra.mxu0 %v7281_v56  ;;  %3814 = vmatmul.f32.vlgmr.msra.gmra.mxu1 %v7284_v57  ;;  %v4091_v21 = vld [vmem:[#allocation41 + $0xb60] sm:$0xff]  ;;  %v4076_v9 = vld [vmem:[#allocation41 + $0xae8] sm:$0xff] }
 0x5f2   : > { %3840 = vmatmul.f32.vlgmr.msra.gmra.mxu2 %v7281_v56  ;;  %3866 = vmatmul.f32.vlgmr.msra.gmra.mxu3 %v7284_v57  ;;  %v3987_v28 = vld [vmem:[#allocation41 + $0x820] sm:$0xff] }
 0x5f3   : > { %3885 = vmatpush.msrb.mxu0 %v3276_v8  ;;  %3911 = vmatpush.msrb.mxu1 %v3340_v40  ;;  %v4028_v8 = vld [vmem:[#allocation41 + $0x968] sm:$0xff]  ;;  %v4051_v29 = vld [vmem:[#allocation41 + $0xa20] sm:$0xff] }
 0x5f4   : > { %3937 = vmatpush.msrb.mxu2 %v3277_v42  ;;  %3963 = vmatpush.msrb.mxu3 %v3341_v45  ;;  %v4092_v40 = vld [vmem:[#allocation41 + $0xb68] sm:$0xff]  ;;  %v4023_v42 = vld [vmem:[#allocation41 + $0x940] sm:$0xff] }
 0x5f5   : > { %3886 = vmatpush.msrb.mxu0 %v3272_v61  ;;  %3912 = vmatpush.msrb.mxu1 %v3336_v62  ;;  %v4087_v45 = vld [vmem:[#allocation41 + $0xb40] sm:$0xff]  ;;  %v4024_v61 = vld [vmem:[#allocation41 + $0x948] sm:$0xff] }
 0x5f6   : > { %3938 = vmatpush.msrb.mxu2 %v3273_v63  ;;  %3964 = vmatpush.msrb.mxu3 %v3337_v1  ;;  %v4088_v62 = vld [vmem:[#allocation41 + $0xb48] sm:$0xff]  ;;  %v4019_v63 = vld [vmem:[#allocation41 + $0x920] sm:$0xff] }
 0x5f7   : > { %3887 = vmatpush.msrb.mxu0 %v3268_v4  ;;  %3913 = vmatpush.msrb.mxu1 %v3332_v5  ;;  %v4083_v1 = vld [vmem:[#allocation41 + $0xb20] sm:$0xff]  ;;  %v4020_v4 = vld [vmem:[#allocation41 + $0x928] sm:$0xff] }
 0x5f8   : > { %3939 = vmatpush.msrb.mxu2 %v3269_v47  ;;  %3965 = vmatpush.msrb.mxu3 %v3333_v15  ;;  %v4084_v5 = vld [vmem:[#allocation41 + $0xb28] sm:$0xff]  ;;  %v4015_v47 = vld [vmem:[#allocation41 + $0x900] sm:$0xff] }
 0x5f9   : > { %3888 = vmatpush.msrb.mxu0 %v3264_v49  ;;  %3914 = vmatpush.msrb.mxu1 %v3328_v7  ;;  %v4079_v15 = vld [vmem:[#allocation41 + $0xb00] sm:$0xff]  ;;  %v4016_v49 = vld [vmem:[#allocation41 + $0x908] sm:$0xff] }
 0x5fa   : > { %3940 = vmatpush.msrb.mxu2 %v3265_v10  ;;  %3966 = vmatpush.msrb.mxu3 %v3329_v44  ;;  %v4080_v7 = vld [vmem:[#allocation41 + $0xb08] sm:$0xff]  ;;  %v4007_v10 = vld [vmem:[#allocation41 + $0x8c0] sm:$0xff] }
 0x5fb   : > { %3791 = vmatmul.f32.gmra.mxu0 %v7293_v43  ;;  %3817 = vmatmul.f32.gmra.mxu1 %v7296_v11  ;;  %v4071_v44 = vld [vmem:[#allocation41 + $0xac0] sm:$0xff] }
 0x5fc   : > { %3843 = vmatmul.f32.gmra.mxu2 %v7293_v43  ;;  %3869 = vmatmul.f32.gmra.mxu3 %v7296_v11 }
 0x5fd   : > { %3889 = vmatpush.msrb.mxu0 %v3260_v12  ;;  %3915 = vmatpush.msrb.mxu1 %v3324_v2  ;;  %v4008_v12 = vld [vmem:[#allocation41 + $0x8c8] sm:$0xff] }
 0x5fe   : > { %3941 = vmatpush.msrb.mxu2 %v3261_v32  ;;  %3967 = vmatpush.msrb.mxu3 %v3325_v13  ;;  %v4072_v2 = vld [vmem:[#allocation41 + $0xac8] sm:$0xff]  ;;  %v4003_v32 = vld [vmem:[#allocation41 + $0x8a0] sm:$0xff] }
 0x5ff   : > { %3890 = vmatpush.msrb.mxu0 %v3256_v14  ;;  %3916 = vmatpush.msrb.mxu1 %v3320_v17  ;;  %v4067_v13 = vld [vmem:[#allocation41 + $0xaa0] sm:$0xff]  ;;  %v4004_v14 = vld [vmem:[#allocation41 + $0x8a8] sm:$0xff] }
 0x600   : > { %3942 = vmatpush.msrb.mxu2 %v3257_v19  ;;  %3968 = vmatpush.msrb.mxu3 %v3321_v0  ;;  %v4068_v17 = vld [vmem:[#allocation41 + $0xaa8] sm:$0xff]  ;;  %v4063_v19 = vld [vmem:[#allocation41 + $0xa80] sm:$0xff] }
 0x601   : > { %3891 = vmatpush.msrb.mxu0 %v3252_v23  ;;  %3917 = vmatpush.msrb.mxu1 %v3316_v58  ;;  %v4000_v0 = vld [vmem:[#allocation41 + $0x888] sm:$0xff]  ;;  %v3995_v23 = vld [vmem:[#allocation41 + $0x860] sm:$0xff] }
 0x602   : > { %3943 = vmatpush.msrb.mxu2 %v3253_v59  ;;  %3969 = vmatpush.msrb.mxu3 %v3317_v25  ;;  %v4060_v58 = vld [vmem:[#allocation41 + $0xa68] sm:$0xff]  ;;  %v3991_v59 = vld [vmem:[#allocation41 + $0x840] sm:$0xff] }
 0x603   : > { %4111 = vmatpush.msra.mxu0 %v4043_v26  ;;  %4137 = vmatpush.msra.mxu1 %v4107_v27  ;;  %v4055_v25 = vld [vmem:[#allocation41 + $0xa40] sm:$0xff]  ;;  %v3992_v26 = vld [vmem:[#allocation41 + $0x848] sm:$0xff] }
 0x604   : > { %4163 = vmatpush.msra.mxu2 %v4044_v35  ;;  %4189 = vmatpush.msra.mxu3 %v4108_v36  ;;  %v4056_v27 = vld [vmem:[#allocation41 + $0xa48] sm:$0xff] }
 0x605   : > { %3794 = vmatmul.f32.gmra.mxu0 %v7303_v37  ;;  %3820 = vmatmul.f32.gmra.mxu1 %v7306_v38  ;;  %v3988_v35 = vld [vmem:[#allocation41 + $0x828] sm:$0xff] }
 0x606   : > { %3846 = vmatmul.f32.gmra.mxu2 %v7303_v37  ;;  %3872 = vmatmul.f32.gmra.mxu3 %v7306_v38  ;;  %v4052_v36 = vld [vmem:[#allocation41 + $0xa28] sm:$0xff] }
 0x607   : > { %4112 = vmatpush.msra.mxu0 %v4039_v39  ;;  %4138 = vmatpush.msra.mxu1 %v4103_v41  ;;  %v3983_v39 = vld [vmem:[#allocation41 + $0x800] sm:$0xff] }
 0x608   : > { %4164 = vmatpush.msra.mxu2 %v4040_v3  ;;  %4190 = vmatpush.msra.mxu3 %v4104_v33  ;;  %v4047_v41 = vld [vmem:[#allocation41 + $0xa00] sm:$0xff]  ;;  %v3984_v3 = vld [vmem:[#allocation41 + $0x808] sm:$0xff] }
 0x609   : > { %4113 = vmatpush.msra.mxu0 %v4035_v48  ;;  %4139 = vmatpush.msra.mxu1 %v4099_v50  ;;  %v4048_v33 = vld [vmem:[#allocation41 + $0xa08] sm:$0xff]  ;;  %v4045_v48 = vld [vmem:[#allocation41 + $0x9f0] sm:$0xff]  ;;  %v4110_v50 = vld [vmem:[#allocation41 + $0xbf8] sm:$0xff] }
 0x60a   : > { %4165 = vmatpush.msra.mxu2 %v4036_v24  ;;  %4191 = vmatpush.msra.mxu3 %v4100_v46  ;;  %v4041_v24 = vld [vmem:[#allocation41 + $0x9d0] sm:$0xff] }
 0x60b   : > { %4114 = vmatpush.msra.mxu0 %v4031_v51  ;;  %4140 = vmatpush.msra.mxu1 %v4095_v52  ;;  %v4105_v46 = vld [vmem:[#allocation41 + $0xbd0] sm:$0xff]  ;;  %v4042_v51 = vld [vmem:[#allocation41 + $0x9d8] sm:$0xff] }
 0x60c   : > { %4166 = vmatpush.msra.mxu2 %v4032_v53  ;;  %4192 = vmatpush.msra.mxu3 %v4096_v31  ;;  %v4106_v52 = vld [vmem:[#allocation41 + $0xbd8] sm:$0xff]  ;;  %v4037_v53 = vld [vmem:[#allocation41 + $0x9b0] sm:$0xff] }
 0x60d   : > { %4115 = vmatpush.msra.mxu0 %v4027_v54  ;;  %4141 = vmatpush.msra.mxu1 %v4091_v21  ;;  %v4101_v31 = vld [vmem:[#allocation41 + $0xbb0] sm:$0xff]  ;;  %v7324_v54 = vld [vmem:[#allocation9 + $0x8] sm:$0xff]  ;;  %v4038_v21 = vld [vmem:[#allocation41 + $0x9b8] sm:$0xff] }
 0x60e   : > { %4167 = vmatpush.msra.mxu2 %v4028_v8  ;;  %4193 = vmatpush.msra.mxu3 %v4092_v40  ;;  %v4102_v8 = vld [vmem:[#allocation41 + $0xbb8] sm:$0xff]  ;;  %v7332_v40 = vld [vmem:[#allocation9 + $0x10] sm:$0xff] }
 0x60f   : > { %3892 = vmatmul.f32.vlgmr.msrb.gmra.mxu0 %v7281_v56  ;;  %3918 = vmatmul.f32.vlgmr.msrb.gmra.mxu1 %v7284_v57 }
 0x610   : > { %3944 = vmatmul.f32.vlgmr.msrb.gmra.mxu2 %v7281_v56  ;;  %3970 = vmatmul.f32.vlgmr.msrb.gmra.mxu3 %v7284_v57  ;;  %v4075_v56 = vld [vmem:[#allocation41 + $0xae0] sm:$0xff]  ;;  %v4012_v57 = vld [vmem:[#allocation41 + $0x8e8] sm:$0xff] }
 0x611   : > { %4116 = vmatpush.msra.mxu0 %v4023_v42  ;;  %4142 = vmatpush.msra.mxu1 %v4087_v45  ;;  %v4033_v42 = vld [vmem:[#allocation41 + $0x990] sm:$0xff] }
 0x612   : > { %4168 = vmatpush.msra.mxu2 %v4024_v61  ;;  %4194 = vmatpush.msra.mxu3 %v4088_v62  ;;  %v4097_v45 = vld [vmem:[#allocation41 + $0xb90] sm:$0xff]  ;;  %v4034_v61 = vld [vmem:[#allocation41 + $0x998] sm:$0xff] }
 0x613   : > { %4117 = vmatpush.msra.mxu0 %v4019_v63  ;;  %4143 = vmatpush.msra.mxu1 %v4083_v1  ;;  %v4098_v62 = vld [vmem:[#allocation41 + $0xb98] sm:$0xff]  ;;  %v4093_v63 = vld [vmem:[#allocation41 + $0xb70] sm:$0xff] }
 0x614   : > { %4169 = vmatpush.msra.mxu2 %v4020_v4  ;;  %4195 = vmatpush.msra.mxu3 %v4084_v5  ;;  %v4025_v1 = vld [vmem:[#allocation41 + $0x950] sm:$0xff]  ;;  %v4026_v5 = vld [vmem:[#allocation41 + $0x958] sm:$0xff] }
 0x615   : > { %4118 = vmatpush.msra.mxu0 %v4015_v47  ;;  %4144 = vmatpush.msra.mxu1 %v4079_v15  ;;  %v4089_v4 = vld [vmem:[#allocation41 + $0xb50] sm:$0xff]  ;;  %v4090_v47 = vld [vmem:[#allocation41 + $0xb58] sm:$0xff] }
 0x616   : > { %4170 = vmatpush.msra.mxu2 %v4016_v49  ;;  %4196 = vmatpush.msra.mxu3 %v4080_v7  ;;  %v4021_v7 = vld [vmem:[#allocation41 + $0x930] sm:$0xff] }
 0x617   : > { %4119 = vmatpush.msra.mxu0 %v4011_v16  ;;  %4145 = vmatpush.msra.mxu1 %v4075_v56  ;;  %v4085_v16 = vld [vmem:[#allocation41 + $0xb30] sm:$0xff]  ;;  %v4022_v56 = vld [vmem:[#allocation41 + $0x938] sm:$0xff] }
 0x618   : > { %4171 = vmatpush.msra.mxu2 %v4012_v57  ;;  %4197 = vmatpush.msra.mxu3 %v4076_v9  ;;  %v4086_v57 = vld [vmem:[#allocation41 + $0xb38] sm:$0xff]  ;;  %v4017_v9 = vld [vmem:[#allocation41 + $0x910] sm:$0xff] }
 0x619   : > { %3895 = vmatmul.f32.gmra.mxu0 %v7293_v43  ;;  %3921 = vmatmul.f32.gmra.mxu1 %v7296_v11 }
 0x61a   : > { %3947 = vmatmul.f32.gmra.mxu2 %v7293_v43  ;;  %3973 = vmatmul.f32.gmra.mxu3 %v7296_v11  ;;  %v4059_v43 = vld [vmem:[#allocation41 + $0xa60] sm:$0xff]  ;;  %v3996_v11 = vld [vmem:[#allocation41 + $0x868] sm:$0xff] }
 0x61b   : > { %4120 = vmatpush.msra.mxu0 %v4007_v10  ;;  %4146 = vmatpush.msra.mxu1 %v4071_v44  ;;  %v4081_v10 = vld [vmem:[#allocation41 + $0xb10] sm:$0xff]  ;;  %v4018_v44 = vld [vmem:[#allocation41 + $0x918] sm:$0xff] }
 0x61c   : > { %4172 = vmatpush.msra.mxu2 %v4008_v12  ;;  %4198 = vmatpush.msra.mxu3 %v4072_v2  ;;  %v4082_v12 = vld [vmem:[#allocation41 + $0xb18] sm:$0xff]  ;;  %v4013_v2 = vld [vmem:[#allocation41 + $0x8f0] sm:$0xff] }
 0x61d   : > { %4121 = vmatpush.msra.mxu0 %v4003_v32  ;;  %4147 = vmatpush.msra.mxu1 %v4067_v13  ;;  %v4077_v32 = vld [vmem:[#allocation41 + $0xaf0] sm:$0xff] }
 0x61e   : > { %4173 = vmatpush.msra.mxu2 %v4004_v14  ;;  %4199 = vmatpush.msra.mxu3 %v4068_v17  ;;  %v4014_v14 = vld [vmem:[#allocation41 + $0x8f8] sm:$0xff] }
 0x61f   : > { %4122 = vmatpush.msra.mxu0 %v3999_v18  ;;  %4148 = vmatpush.msra.mxu1 %v4063_v19  ;;  %v4010_v18 = vld [vmem:[#allocation41 + $0x8d8] sm:$0xff] }
 0x620   : > { %4174 = vmatpush.msra.mxu2 %v4000_v0  ;;  %4200 = vmatpush.msra.mxu3 %v4064_v20  ;;  %v4074_v19 = vld [vmem:[#allocation41 + $0xad8] sm:$0xff]  ;;  %v7357_v20 = vld [vmem:[#allocation9 + $0x38] sm:$0xf] }
 0x621   : > { %4123 = vmatpush.msra.mxu0 %v3995_v23  ;;  %4149 = vmatpush.msra.mxu1 %v4059_v43  ;;  %v7361_v43 = vld [vmem:[#allocation9 + $0x30] sm:$0xf] }
 0x622   : > { %4175 = vmatpush.msra.mxu2 %v3996_v11  ;;  %4201 = vmatpush.msra.mxu3 %v4060_v58  ;;  %v4005_v11 = vld [vmem:[#allocation41 + $0x8b0] sm:$0xff] }
 0x623   : > { %3898 = vmatmul.f32.gmra.mxu0 %v7303_v37  ;;  %3924 = vmatmul.f32.gmra.mxu1 %v7306_v38  ;;  %v4069_v58 = vld [vmem:[#allocation41 + $0xab0] sm:$0xff] }
 0x624   : > { %3950 = vmatmul.f32.gmra.mxu2 %v7303_v37  ;;  %3976 = vmatmul.f32.gmra.mxu3 %v7306_v38  ;;  %v4109_v37 = vld [vmem:[#allocation41 + $0xbf0] sm:$0xff]  ;;  %v4046_v38 = vld [vmem:[#allocation41 + $0x9f8] sm:$0xff] }
 0x625   : > { %4124 = vmatpush.msra.mxu0 %v3991_v59  ;;  %4150 = vmatpush.msra.mxu1 %v4055_v25  ;;  %v4006_v59 = vld [vmem:[#allocation41 + $0x8b8] sm:$0xff] }
 0x626   : > { %4176 = vmatpush.msra.mxu2 %v3992_v26  ;;  %4202 = vmatpush.msra.mxu3 %v4056_v27  ;;  %v4070_v25 = vld [vmem:[#allocation41 + $0xab8] sm:$0xff]  ;;  %v4001_v26 = vld [vmem:[#allocation41 + $0x890] sm:$0xff] }
 0x627   : > { %4125 = vmatpush.msra.mxu0 %v3987_v28  ;;  %4151 = vmatpush.msra.mxu1 %v4051_v29  ;;  %v4065_v27 = vld [vmem:[#allocation41 + $0xa90] sm:$0xff]  ;;  %v4002_v28 = vld [vmem:[#allocation41 + $0x898] sm:$0xff] }
 0x628   : > { %4177 = vmatpush.msra.mxu2 %v3988_v35  ;;  %4203 = vmatpush.msra.mxu3 %v4052_v36  ;;  %v4066_v29 = vld [vmem:[#allocation41 + $0xa98] sm:$0xff]  ;;  %v3997_v35 = vld [vmem:[#allocation41 + $0x870] sm:$0xff] }
 0x629   : > { %4126 = vmatpush.msra.mxu0 %v3983_v39  ;;  %4152 = vmatpush.msra.mxu1 %v4047_v41  ;;  %v4061_v36 = vld [vmem:[#allocation41 + $0xa70] sm:$0xff]  ;;  %v3998_v41 = vld [vmem:[#allocation41 + $0x878] sm:$0xff] }
 0x62a   : > { %4178 = vmatpush.msra.mxu2 %v3984_v3  ;;  %4204 = vmatpush.msra.mxu3 %v4048_v33  ;;  %v4062_v3 = vld [vmem:[#allocation41 + $0xa78] sm:$0xff] }
 0x62b   : > { %4215 = vmatpush.msrb.mxu0 %v4045_v48  ;;  %4241 = vmatpush.msrb.mxu1 %v4109_v37  ;;  %v3993_v48 = vld [vmem:[#allocation41 + $0x850] sm:$0xff] }
 0x62c   : > { %4267 = vmatpush.msrb.mxu2 %v4046_v38  ;;  %4293 = vmatpush.msrb.mxu3 %v4110_v50  ;;  %v4057_v37 = vld [vmem:[#allocation41 + $0xa50] sm:$0xff]  ;;  %v3994_v50 = vld [vmem:[#allocation41 + $0x858] sm:$0xff] }
 0x62d   : > { %4216 = vmatpush.msrb.mxu0 %v4041_v24  ;;  %4242 = vmatpush.msrb.mxu1 %v4105_v46  ;;  %v4058_v24 = vld [vmem:[#allocation41 + $0xa58] sm:$0xff] }
 0x62e   : > { %4268 = vmatpush.msrb.mxu2 %v4042_v51  ;;  %4294 = vmatpush.msrb.mxu3 %v4106_v52  ;;  %v3989_v51 = vld [vmem:[#allocation41 + $0x830] sm:$0xff] }
 0x62f   : > { %4127 = vmatmul.f32.vlgmr.msra.gmra.mxu0 %v7324_v54  ;;  %5802 = vmatmul.msk.f32.vlgmr.msra.gmra.mxu1 %vm6954_vm2, %v3225_v60  ;;  %v4094_v60 = vld [vmem:[#allocation41 + $0xb78] sm:$0xff]  ;;  %v4053_v52 = vld [vmem:[#allocation41 + $0xa30] sm:$0xff]  ;;  %vm4842_vm2 = vcmask 1045504  }
 0x630   : > { %4179 = vmatmul.f32.vlgmr.msra.gmra.mxu2 %v7324_v54  ;;  %4205 = vmatmul.f32.vlgmr.msra.gmra.mxu3 %v7332_v40  ;;  %v7335_v15 = vpop.f32.mrf.mxu0  ;;  %v7337_v49 = vpop.f32.mrf.mxu1 }
 0x631   : > { %4217 = vmatpush.msrb.mxu0 %v4037_v53  ;;  %4243 = vmatpush.msrb.mxu1 %v4101_v31  ;;  %v3990_v53 = vld [vmem:[#allocation41 + $0x838] sm:$0xff] }
 0x632   : > { %4269 = vmatpush.msrb.mxu2 %v4038_v21  ;;  %4295 = vmatpush.msrb.mxu3 %v4102_v8  ;;  %v4054_v31 = vld [vmem:[#allocation41 + $0xa38] sm:$0xff]  ;;  %v3985_v21 = vld [vmem:[#allocation41 + $0x810] sm:$0xff] }
 0x633   : > { %4218 = vmatpush.msrb.mxu0 %v4033_v42  ;;  %4244 = vmatpush.msrb.mxu1 %v4097_v45  ;;  %v4049_v8 = vld [vmem:[#allocation41 + $0xa10] sm:$0xff]  ;;  %v3986_v42 = vld [vmem:[#allocation41 + $0x818] sm:$0xff] }
 0x634   : > { %4270 = vmatpush.msrb.mxu2 %v4034_v61  ;;  %4296 = vmatpush.msrb.mxu3 %v4098_v62  ;;  %v4050_v45 = vld [vmem:[#allocation41 + $0xa18] sm:$0xff] }
 0x635   : > { %4219 = vmatpush.msrb.mxu0 %v4029_v22  ;;  %4245 = vmatpush.msrb.mxu1 %v4093_v63  ;;  %v4396_v22 = vld [vmem:[#allocation41 + $0xde0] sm:$0xff] }
 0x636   : > { %4271 = vmatpush.msrb.mxu2 %v4030_v55  ;;  %4297 = vmatpush.msrb.mxu3 %v4094_v60  ;;  %v4460_v63 = vld [vmem:[#allocation41 + $0xfe0] sm:$0xff]  ;;  %v4397_v60 = vld [vmem:[#allocation41 + $0xde8] sm:$0xff] }
 0x637   : > { %4220 = vmatpush.msrb.mxu0 %v4025_v1  ;;  %4246 = vmatpush.msrb.mxu1 %v4089_v4  ;;  %v7351_v13 = vpop.f32.mrf.mxu2  ;;  %v7353_v17 = vpop.f32.mrf.mxu3  ;;  %v4461_v1 = vld [vmem:[#allocation41 + $0xfe8] sm:$0xff]  ;;  %v4392_v4 = vld [vmem:[#allocation41 + $0xdc0] sm:$0xff] }
 0x638   : > { %4272 = vmatpush.msrb.mxu2 %v4026_v5  ;;  %4298 = vmatpush.msrb.mxu3 %v4090_v47  ;;  %v4456_v5 = vld [vmem:[#allocation41 + $0xfc0] sm:$0xff] }
 0x639   : > { %5803 = vmatmul.msk.f32.gmra.mxu0 %vm6962_vm7, %v7212_v30  ;;  %5804 = vmatmul.msk.f32.gmra.mxu1 %vm6962_vm7, %v7214_v34 }
 0x63a   : > { %5805 = vmatmul.msk.f32.gmra.mxu2 %vm6962_vm7, %v7212_v30  ;;  %5806 = vmatmul.msk.f32.gmra.mxu3 %vm6962_vm7, %v7214_v34  ;;  %v4078_v30 = vld [vmem:[#allocation41 + $0xaf8] sm:$0xff]  ;;  %v4073_v34 = vld [vmem:[#allocation41 + $0xad0] sm:$0xff]  ;;  %v7355_v0 = vpop.f32.mrf.mxu0  ;;  %v7359_v23 = vpop.f32.mrf.mxu1  ;;  %vm5147_vm7 = vcmask 1042432  }
 0x63b   : > { %4221 = vmatpush.msrb.mxu0 %v4021_v7  ;;  %4247 = vmatpush.msrb.mxu1 %v4085_v16  ;;  %v4393_v7 = vld [vmem:[#allocation41 + $0xdc8] sm:$0xff]  ;;  %vm7655_vm5 = vmor %vm5147_vm7, %vm5148_vm9 }
 0x63c   : > { %4273 = vmatpush.msrb.mxu2 %v4022_v56  ;;  %4299 = vmatpush.msrb.mxu3 %v4086_v57  ;;  %v4457_v16 = vld [vmem:[#allocation41 + $0xfc8] sm:$0xff]  ;;  %v4388_v56 = vld [vmem:[#allocation41 + $0xda0] sm:$0xff] }
 0x63d   : > { %4222 = vmatpush.msrb.mxu0 %v4017_v9  ;;  %4248 = vmatpush.msrb.mxu1 %v4081_v10  ;;  %v4452_v57 = vld [vmem:[#allocation41 + $0xfa0] sm:$0xff]  ;;  %v4389_v9 = vld [vmem:[#allocation41 + $0xda8] sm:$0xff] }
 0x63e   : > { %4274 = vmatpush.msrb.mxu2 %v4018_v44  ;;  %4300 = vmatpush.msrb.mxu3 %v4082_v12  ;;  %v4453_v10 = vld [vmem:[#allocation41 + $0xfa8] sm:$0xff] }
 0x63f   : > { %4223 = vmatpush.msrb.mxu0 %v4013_v2  ;;  %4249 = vmatpush.msrb.mxu1 %v4077_v32  ;;  %v4385_v44 = vld [vmem:[#allocation41 + $0xd88] sm:$0xff] }
 0x640   : > { %4275 = vmatpush.msrb.mxu2 %v4014_v14  ;;  %4301 = vmatpush.msrb.mxu3 %v4078_v30  ;;  %v4449_v12 = vld [vmem:[#allocation41 + $0xf88] sm:$0xff]  ;;  %v4380_v14 = vld [vmem:[#allocation41 + $0xd60] sm:$0xff] }
 0x641   : > { %4224 = vmatpush.msrb.mxu0 %v4009_v6  ;;  %4250 = vmatpush.msrb.mxu1 %v4073_v34  ;;  %v7367_v39 = vpop.f32.mrf.mxu2  ;;  %v7369_v33 = vpop.f32.mrf.mxu3  ;;  %v4444_v30 = vld [vmem:[#allocation41 + $0xf60] sm:$0xff]  ;;  %v7393_v34 = vld [vmem:[#allocation9 + $0x18] sm:$0xff] }
 0x642   : > { %4276 = vmatpush.msrb.mxu2 %v4010_v18  ;;  %4302 = vmatpush.msrb.mxu3 %v4074_v19  ;;  %v7396_v18 = vld [vmem:[#allocation9 + $0x28] sm:$0xff]  ;;  %v4381_v19 = vld [vmem:[#allocation41 + $0xd68] sm:$0xff] }
 0x643   : > { %4133 = vmatmul.f32.gmra.mxu0 %v7357_v20  ;;  %4159 = vmatmul.f32.gmra.mxu1 %v7361_v43 }
 0x644   : > { %4185 = vmatmul.f32.gmra.mxu2 %v7357_v20  ;;  %4211 = vmatmul.f32.gmra.mxu3 %v7361_v43 }
 0x645   : > { %4225 = vmatpush.msrb.mxu0 %v4005_v11  ;;  %4251 = vmatpush.msrb.mxu1 %v4069_v58  ;;  %v4445_v11 = vld [vmem:[#allocation41 + $0xf68] sm:$0xff]  ;;  %v4376_v58 = vld [vmem:[#allocation41 + $0xd40] sm:$0xff] }
 0x646   : > { %4277 = vmatpush.msrb.mxu2 %v4006_v59  ;;  %4303 = vmatpush.msrb.mxu3 %v4070_v25  ;;  %v4440_v59 = vld [vmem:[#allocation41 + $0xf40] sm:$0xff] }
 0x647   : > { %4226 = vmatpush.msrb.mxu0 %v4001_v26  ;;  %4252 = vmatpush.msrb.mxu1 %v4065_v27  ;;  %v4377_v26 = vld [vmem:[#allocation41 + $0xd48] sm:$0xff] }
 0x648   : > { %4278 = vmatpush.msrb.mxu2 %v4002_v28  ;;  %4304 = vmatpush.msrb.mxu3 %v4066_v29  ;;  %v7371_v38 = vpop.f32.mrf.mxu0  ;;  %v4441_v27 = vld [vmem:[#allocation41 + $0xf48] sm:$0xff]  ;;  %v4372_v28 = vld [vmem:[#allocation41 + $0xd20] sm:$0xff] }
 0x649   : > { %4227 = vmatpush.msrb.mxu0 %v3997_v35  ;;  %4253 = vmatpush.msrb.mxu1 %v4061_v36  ;;  %v7373_v46 = vpop.f32.mrf.mxu1  ;;  %v4436_v29 = vld [vmem:[#allocation41 + $0xf20] sm:$0xff]  ;;  %v4373_v35 = vld [vmem:[#allocation41 + $0xd28] sm:$0xff] }
 0x64a   : > { %4279 = vmatpush.msrb.mxu2 %v3998_v41  ;;  %4305 = vmatpush.msrb.mxu3 %v4062_v3  ;;  %v4437_v36 = vld [vmem:[#allocation41 + $0xf28] sm:$0xff]  ;;  %v4368_v41 = vld [vmem:[#allocation41 + $0xd00] sm:$0xff] }
 0x64b   : > { %4228 = vmatpush.msrb.mxu0 %v3993_v48  ;;  %4254 = vmatpush.msrb.mxu1 %v4057_v37  ;;  %v4432_v3 = vld [vmem:[#allocation41 + $0xf00] sm:$0xff]  ;;  %v4369_v48 = vld [vmem:[#allocation41 + $0xd08] sm:$0xff] }
 0x64c   : > { %4280 = vmatpush.msrb.mxu2 %v3994_v50  ;;  %4306 = vmatpush.msrb.mxu3 %v4058_v24  ;;  %v4433_v37 = vld [vmem:[#allocation41 + $0xf08] sm:$0xff] }
 0x64d   : > { %4229 = vmatpush.msrb.mxu0 %v3989_v51  ;;  %4255 = vmatpush.msrb.mxu1 %v4053_v52  ;;  %v4364_v51 = vld [vmem:[#allocation41 + $0xce0] sm:$0xff] }
 0x64e   : > { %4281 = vmatpush.msrb.mxu2 %v3990_v53  ;;  %4307 = vmatpush.msrb.mxu3 %v4054_v31  ;;  %v7375_v61 = vpop.f32.mrf.mxu2  ;;  %v4428_v52 = vld [vmem:[#allocation41 + $0xee0] sm:$0xff]  ;;  %v4365_v31 = vld [vmem:[#allocation41 + $0xce8] sm:$0xff] }
 0x64f   : > { %4230 = vmatpush.msrb.mxu0 %v3985_v21  ;;  %4256 = vmatpush.msrb.mxu1 %v4049_v8  ;;  %v7377_v62 = vpop.f32.mrf.mxu3  ;;  %v4429_v21 = vld [vmem:[#allocation41 + $0xee8] sm:$0xff]  ;;  %v4360_v8 = vld [vmem:[#allocation41 + $0xcc0] sm:$0xff] }
 0x650   : > { %4282 = vmatpush.msrb.mxu2 %v3986_v42  ;;  %4308 = vmatpush.msrb.mxu3 %v4050_v45  ;;  %v7379_v55 = vpop.f32.mrf.mxu0  ;;  %v4424_v42 = vld [vmem:[#allocation41 + $0xec0] sm:$0xff] }
 0x651   : > { %4231 = vmatmul.f32.vlgmr.msrb.gmra.mxu0 %v7324_v54  ;;  %4257 = vmatmul.f32.vlgmr.msrb.gmra.mxu1 %v7332_v40  ;;  %v7385_v47 = vpop.f32.mrf.mxu1 }
 0x652   : > { %4283 = vmatmul.f32.vlgmr.msrb.gmra.mxu2 %v7324_v54  ;;  %4309 = vmatmul.f32.vlgmr.msrb.gmra.mxu3 %v7332_v40  ;;  %v4384_v54 = vld [vmem:[#allocation41 + $0xd80] sm:$0xff] }
 0x653   : > { %4485 = vmatpush.msra.mxu0 %v4396_v22  ;;  %4511 = vmatpush.msra.mxu1 %v4460_v63  ;;  %v4448_v40 = vld [vmem:[#allocation41 + $0xf80] sm:$0xff]  ;;  %v4361_v22 = vld [vmem:[#allocation41 + $0xcc8] sm:$0xff] }
 0x654   : > { %4537 = vmatpush.msra.mxu2 %v4397_v60  ;;  %4563 = vmatpush.msra.mxu3 %v4461_v1  ;;  %v4425_v63 = vld [vmem:[#allocation41 + $0xec8] sm:$0xff]  ;;  %v4356_v60 = vld [vmem:[#allocation41 + $0xca0] sm:$0xff] }
 0x655   : > { %4486 = vmatpush.msra.mxu0 %v4392_v4  ;;  %4512 = vmatpush.msra.mxu1 %v4456_v5  ;;  %v4420_v1 = vld [vmem:[#allocation41 + $0xea0] sm:$0xff]  ;;  %v4357_v4 = vld [vmem:[#allocation41 + $0xca8] sm:$0xff] }
 0x656   : > { %4538 = vmatpush.msra.mxu2 %v4393_v7  ;;  %4564 = vmatpush.msra.mxu3 %v4457_v16  ;;  %v7387_v2 = vpop.f32.mrf.mxu2  ;;  %v4421_v5 = vld [vmem:[#allocation41 + $0xea8] sm:$0xff] }
 0x657   : > { %4487 = vmatpush.msra.mxu0 %v4388_v56  ;;  %4513 = vmatpush.msra.mxu1 %v4452_v57  ;;  %v7389_v32 = vpop.f32.mrf.mxu3  ;;  %v4353_v7 = vld [vmem:[#allocation41 + $0xc88] sm:$0xff]  ;;  %v4348_v57 = vld [vmem:[#allocation41 + $0xc60] sm:$0xff] }
 0x658   : > { %4539 = vmatpush.msra.mxu2 %v4389_v9  ;;  %4565 = vmatpush.msra.mxu3 %v4453_v10  ;;  %v4417_v16 = vld [vmem:[#allocation41 + $0xe88] sm:$0xff]  ;;  %v4412_v9 = vld [vmem:[#allocation41 + $0xe60] sm:$0xff]  ;;  %v3584_v10 = vadd.f32 %v7337_v49, %v7335_v15 }
 0x659   : > { %4488 = vmatpush.msra.mxu0 %v4384_v54  ;;  %4514 = vmatpush.msra.mxu1 %v4448_v40  ;;  %v4349_v54 = vld [vmem:[#allocation41 + $0xc68] sm:$0xff]  ;;  %v4340_v15 = vld [vmem:[#allocation41 + $0xc20] sm:$0xff] }
 0x65a   : > { %4540 = vmatpush.msra.mxu2 %v4385_v44  ;;  %4566 = vmatpush.msra.mxu3 %v4449_v12  ;;  %v7391_v6 = vpop.f32.mrf.mxu0  ;;  %v7401_v25 = vpop.f32.mrf.mxu1  ;;  %v4413_v40 = vld [vmem:[#allocation41 + $0xe68] sm:$0xff]  ;;  %v4344_v12 = vld [vmem:[#allocation41 + $0xc40] sm:$0xff] }
 0x65b   : > { %4234 = vmatmul.f32.gmra.mxu0 %v7393_v34  ;;  %4260 = vmatmul.f32.gmra.mxu1 %v7396_v18  ;;  %v4404_v49 = vld [vmem:[#allocation41 + $0xe20] sm:$0xff] }
 0x65c   : > { %4286 = vmatmul.f32.gmra.mxu2 %v7393_v34  ;;  %4312 = vmatmul.f32.gmra.mxu3 %v7396_v18 }
 0x65d   : > { %4489 = vmatpush.msra.mxu0 %v4380_v14  ;;  %4515 = vmatpush.msra.mxu1 %v4444_v30  ;;  %v4408_v14 = vld [vmem:[#allocation41 + $0xe40] sm:$0xff] }
 0x65e   : > { %4541 = vmatpush.msra.mxu2 %v4381_v19  ;;  %4567 = vmatpush.msra.mxu3 %v4445_v11  ;;  %v4331_v30 = vld [vmem:[#allocation9 + $0x8] sm:$0xfe]  ;;  %v4345_v11 = vld [vmem:[#allocation41 + $0xc48] sm:$0xff] }
 0x65f   : > { %4490 = vmatpush.msra.mxu0 %v4376_v58  ;;  %4516 = vmatpush.msra.mxu1 %v4440_v59  ;;  %v4409_v58 = vld [vmem:[#allocation41 + $0xe48] sm:$0xff] }
 0x660   : > { %4542 = vmatpush.msra.mxu2 %v4377_v26  ;;  %4568 = vmatpush.msra.mxu3 %v4441_v27  ;;  %v4332_v59 = vld [vmem:[#allocation9 + $0x10] sm:$0xfe] }
 0x661   : > { %4491 = vmatpush.msra.mxu0 %v4372_v28  ;;  %4517 = vmatpush.msra.mxu1 %v4436_v29  ;;  %v7403_v50 = vpop.f32.mrf.mxu2  ;;  %v7405_v24 = vpop.f32.mrf.mxu3  ;;  %v4341_v28 = vld [vmem:[#allocation41 + $0xc28] sm:$0xff] }
 0x662   : > { %4543 = vmatpush.msra.mxu2 %v4373_v35  ;;  %4569 = vmatpush.msra.mxu3 %v4437_v36  ;;  %v4405_v29 = vld [vmem:[#allocation41 + $0xe28] sm:$0xff]  ;;  %v4336_v36 = vld [vmem:[#allocation41 + $0xc00] sm:$0xff] }
 0x663   : > { %4492 = vmatpush.msra.mxu0 %v4368_v41  ;;  %4518 = vmatpush.msra.mxu1 %v4432_v3  ;;  %v4400_v41 = vld [vmem:[#allocation41 + $0xe00] sm:$0xff]  ;;  %v4469_v3 = vrot.slane %v4331_v30, 1  ;;  %v4455_v30 = vld [vmem:[#allocation41 + $0xfb8] sm:$0xff] }
 0x664   : > { %4544 = vmatpush.msra.mxu2 %v4369_v48  ;;  %4570 = vmatpush.msra.mxu3 %v4433_v37  ;;  %v7407_v53 = vpop.f32.mrf.mxu0  ;;  %v7413_v45 = vpop.f32.mrf.mxu1  ;;  %v4470_v48 = vrot.slane %v7393_v34, 1  ;;  %v4472_v37 = vrot.slane %v4332_v59, 1 }
 0x665   : > { %4237 = vmatmul.f32.gmra.mxu0 %v7357_v20  ;;  %4263 = vmatmul.f32.gmra.mxu1 %v7361_v43 }
 0x666   : > { %4289 = vmatmul.f32.gmra.mxu2 %v7357_v20  ;;  %4315 = vmatmul.f32.gmra.mxu3 %v7361_v43  ;;  %v4352_v20 = vld [vmem:[#allocation41 + $0xc80] sm:$0xff] }
 0x667   : > { %4493 = vmatpush.msra.mxu0 %v4364_v51  ;;  %4519 = vmatpush.msra.mxu1 %v4428_v52  ;;  %v4416_v43 = vld [vmem:[#allocation41 + $0xe80] sm:$0xff]  ;;  %v4473_v51 = vrot.slane %v7396_v18, 1  ;;  %v4337_v52 = vld [vmem:[#allocation41 + $0xc08] sm:$0xff] }
 0x668   : > { %4545 = vmatpush.msra.mxu2 %v4365_v31  ;;  %4571 = vmatpush.msra.mxu3 %v4429_v21  ;;  %v4401_v31 = vld [vmem:[#allocation41 + $0xe08] sm:$0xff]  ;;  %v3636_v21 = vadd.f32 %v7353_v17, %v7351_v13  ;;  %v3587_v17 = vadd.f32 %v7359_v23, %v7355_v0  ;;  %v4395_v0 = vld [vmem:[#allocation41 + $0xdd8] sm:$0xff] }
 0x669   : > { %4494 = vmatpush.msra.mxu0 %v4360_v8  ;;  %4520 = vmatpush.msra.mxu1 %v4424_v42  ;;  %v7430_v42 = vsel %vm4468_vm1, %v4469_v3, %v4470_v48  ;;  %v4459_v23 = vld [vmem:[#allocation41 + $0xfd8] sm:$0xff] }
 0x66a   : > { %4546 = vmatpush.msra.mxu2 %v4361_v22  ;;  %4572 = vmatpush.msra.mxu3 %v4425_v63  ;;  %v7435_v22 = vsel %vm4468_vm1, %v4472_v37, %v4473_v51  ;;  %v4398_v63 = vld [vmem:[#allocation41 + $0xdf0] sm:$0xff]  ;;  %v4447_v37 = vld [vmem:[#allocation41 + $0xf78] sm:$0xff] }
 0x66b   : > { %4495 = vmatpush.msra.mxu0 %v4356_v60  ;;  %4521 = vmatpush.msra.mxu1 %v4420_v1  ;;  %v7415_v56 = vpop.f32.mrf.mxu2  ;;  %v7419_v44 = vpop.f32.mrf.mxu3  ;;  %v4462_v60 = vld [vmem:[#allocation41 + $0xff0] sm:$0xff]  ;;  %v4399_v1 = vld [vmem:[#allocation41 + $0xdf8] sm:$0xff] }
 0x66c   : > { %4547 = vmatpush.msra.mxu2 %v4357_v4  ;;  %4573 = vmatpush.msra.mxu3 %v4421_v5  ;;  %v4463_v4 = vld [vmem:[#allocation41 + $0xff8] sm:$0xff] }
 0x66d   : > { %4496 = vmatpush.msra.mxu0 %v4352_v20  ;;  %4522 = vmatpush.msra.mxu1 %v4416_v43  ;;  %v4394_v20 = vld [vmem:[#allocation41 + $0xdd0] sm:$0xff] }
 0x66e   : > { %4548 = vmatpush.msra.mxu2 %v4353_v7  ;;  %4574 = vmatpush.msra.mxu3 %v4417_v16  ;;  %v3789_v19 = vpop.f32.mrf.mxu0  ;;  %v3815_v27 = vpop.f32.mrf.mxu1  ;;  %v4458_v43 = vld [vmem:[#allocation41 + $0xfd0] sm:$0xff] }
 0x66f   : > { %4497 = vmatpush.msra.mxu0 %v4348_v57  ;;  %4523 = vmatpush.msra.mxu1 %v4412_v9  ;;  %v3790_v26 = vadd.f32 %v3789_v19, %v3584_v10  ;;  %v4333_v7 = vld [vmem:[#allocation9 + $0x38] sm:$0x1f]  ;;  %v4334_v9 = vld [vmem:[#allocation9 + $0x30] sm:$0x1f] }
 0x670   : > { %4549 = vmatpush.msra.mxu2 %v4349_v54  ;;  %4575 = vmatpush.msra.mxu3 %v4413_v40  ;;  %v4390_v54 = vld [vmem:[#allocation41 + $0xdb0] sm:$0xff]  ;;  %v7447_v59 = vrot.slane %v4333_v7, 1  ;;  %v4371_v7 = vld [vmem:[#allocation41 + $0xd18] sm:$0xff] }
 0x671   : > { %4498 = vmatpush.msra.mxu0 %v4344_v12  ;;  %4524 = vmatpush.msra.mxu1 %v4408_v14  ;;  %v7421_v35 = vadd.f32 %v3815_v27, %v3790_v26  ;;  %v4454_v40 = vld [vmem:[#allocation41 + $0xfb0] sm:$0xff]  ;;  %v4391_v14 = vld [vmem:[#allocation41 + $0xdb8] sm:$0xff]  ;;  %v7449_v26 = vrot.slane %v4334_v9, 1  ;;  %v3639_v27 = vadd.f32 %v7369_v33, %v7367_v39  ;;  %v3590_v39 = vadd.f32 %v7373_v46, %v7371_v38 }
 0x672   : > { %4550 = vmatpush.msra.mxu2 %v4345_v11  ;;  %4576 = vmatpush.msra.mxu3 %v4409_v58  ;;  %v4386_v11 = vld [vmem:[#allocation41 + $0xd90] sm:$0xff]  ;;  %v4383_v33 = vld [vmem:[#allocation41 + $0xd78] sm:$0xff] }
 0x673   : > { %4499 = vmatpush.msra.mxu0 %v4340_v15  ;;  %4525 = vmatpush.msra.mxu1 %v4404_v49  ;;  %v4450_v58 = vld [vmem:[#allocation41 + $0xf90] sm:$0xff]  ;;  %v4387_v15 = vld [vmem:[#allocation41 + $0xd98] sm:$0xff] }
 0x674   : > { %4551 = vmatpush.msra.mxu2 %v4341_v28  ;;  %4577 = vmatpush.msra.mxu3 %v4405_v29  ;;  %v4451_v49 = vld [vmem:[#allocation41 + $0xf98] sm:$0xff]  ;;  %v7457_v28 = vsel %vm4468_vm1, %v4470_v48, %v7447_v59  ;;  %v7463_v29 = vsel %vm4468_vm1, %v4473_v51, %v7449_v26  ;;  %v4378_v51 = vld [vmem:[#allocation41 + $0xd50] sm:$0xff] }
 0x675   : > { %4500 = vmatpush.msra.mxu0 %v4336_v36  ;;  %4526 = vmatpush.msra.mxu1 %v4400_v41  ;;  %v3841_v8 = vpop.f32.mrf.mxu2  ;;  %v3867_v5 = vpop.f32.mrf.mxu3  ;;  %v4382_v36 = vld [vmem:[#allocation41 + $0xd70] sm:$0xff] }
 0x676   : > { %4552 = vmatpush.msra.mxu2 %v4337_v52  ;;  %4578 = vmatpush.msra.mxu3 %v4401_v31  ;;  %v3842_v13 = vadd.f32 %v3841_v8, %v3636_v21  ;;  %v4446_v41 = vld [vmem:[#allocation41 + $0xf70] sm:$0xff]  ;;  %v4379_v8 = vld [vmem:[#allocation41 + $0xd58] sm:$0xff] }
 0x677   : > { %4501 = vmatmul.f32.vlgmr.msra.gmra.mxu0 %v7430_v42  ;;  %4527 = vmatmul.f32.vlgmr.msra.gmra.mxu1 %v7435_v22  ;;  %v4442_v31 = vld [vmem:[#allocation41 + $0xf50] sm:$0xff] }
 0x678   : > { %4553 = vmatmul.f32.vlgmr.msra.gmra.mxu2 %v7430_v42  ;;  %4579 = vmatmul.f32.vlgmr.msra.gmra.mxu3 %v7435_v22  ;;  %v7443_v16 = vadd.f32 %v3867_v5, %v3842_v13  ;;  %v3792_v57 = vpop.f32.mrf.mxu0  ;;  %v3818_v12 = vpop.f32.mrf.mxu1  ;;  %v4438_v13 = vld [vmem:[#allocation41 + $0xf30] sm:$0xff] }
 0x679   : > { %4589 = vmatpush.msrb.mxu0 %v4398_v63  ;;  %4615 = vmatpush.msrb.mxu1 %v4462_v60  ;;  %v3793_v10 = vadd.f32 %v3792_v57, %v3587_v17  ;;  %v4443_v63 = vld [vmem:[#allocation41 + $0xf58] sm:$0xff]  ;;  %v4374_v60 = vld [vmem:[#allocation41 + $0xd30] sm:$0xff] }
 0x67a   : > { %4641 = vmatpush.msrb.mxu2 %v4399_v1  ;;  %4667 = vmatpush.msrb.mxu3 %v4463_v4  ;;  %v4375_v1 = vld [vmem:[#allocation41 + $0xd38] sm:$0xff]  ;;  %v4430_v9 = vld [vmem:[#allocation41 + $0xef0] sm:$0xff] }
 0x67b   : > { %4590 = vmatpush.msrb.mxu0 %v4394_v20  ;;  %4616 = vmatpush.msrb.mxu1 %v4458_v43  ;;  %v7445_v19 = vadd.f32 %v3818_v12, %v3793_v10  ;;  %v4439_v4 = vld [vmem:[#allocation41 + $0xf38] sm:$0xff]  ;;  %v4370_v20 = vld [vmem:[#allocation41 + $0xd10] sm:$0xff] }
 0x67c   : > { %4642 = vmatpush.msrb.mxu2 %v4395_v0  ;;  %4668 = vmatpush.msrb.mxu3 %v4459_v23  ;;  %v4434_v43 = vld [vmem:[#allocation41 + $0xf10] sm:$0xff]  ;;  %v4435_v57 = vld [vmem:[#allocation41 + $0xf18] sm:$0xff]  ;;  %v3642_v0 = vadd.f32 %v7377_v62, %v7375_v61 }
 0x67d   : > { %4591 = vmatpush.msrb.mxu0 %v4390_v54  ;;  %4617 = vmatpush.msrb.mxu1 %v4454_v40  ;;  %v4366_v23 = vld [vmem:[#allocation41 + $0xcf0] sm:$0xff]  ;;  %v3688_v54 = vadd.f32 %v7385_v47, %v7379_v55  ;;  %v4367_v40 = vld [vmem:[#allocation41 + $0xcf8] sm:$0xff] }
 0x67e   : > { %4643 = vmatpush.msrb.mxu2 %v4391_v14  ;;  %4669 = vmatpush.msrb.mxu3 %v4455_v30  ;;  %v4431_v12 = vld [vmem:[#allocation41 + $0xef8] sm:$0xff]  ;;  %v4362_v61 = vld [vmem:[#allocation41 + $0xcd0] sm:$0xff] }
 0x67f   : > { %4592 = vmatpush.msrb.mxu0 %v4386_v11  ;;  %4618 = vmatpush.msrb.mxu1 %v4450_v58  ;;  %v3844_v3 = vpop.f32.mrf.mxu2  ;;  %v3870_v52 = vpop.f32.mrf.mxu3  ;;  %v4426_v62 = vld [vmem:[#allocation41 + $0xed0] sm:$0xff]  ;;  %v4363_v58 = vld [vmem:[#allocation41 + $0xcd8] sm:$0xff] }
 0x680   : > { %4644 = vmatpush.msrb.mxu2 %v4387_v15  ;;  %4670 = vmatpush.msrb.mxu3 %v4451_v49  ;;  %v3845_v48 = vadd.f32 %v3844_v3, %v3639_v27  ;;  %v4427_v15 = vld [vmem:[#allocation41 + $0xed8] sm:$0xff]  ;;  %v4358_v49 = vld [vmem:[#allocation41 + $0xcb0] sm:$0xff] }
 0x681   : > { %4504 = vmatmul.f32.gmra.mxu0 %v7457_v28  ;;  %4530 = vmatmul.f32.gmra.mxu1 %v7463_v29  ;;  %v4422_v27 = vld [vmem:[#allocation41 + $0xeb0] sm:$0xff]  ;;  %v4423_v3 = vld [vmem:[#allocation41 + $0xeb8] sm:$0xff] }
 0x682   : > { %4556 = vmatmul.f32.gmra.mxu2 %v7457_v28  ;;  %4582 = vmatmul.f32.gmra.mxu3 %v7463_v29  ;;  %v3795_v21 = vpop.f32.mrf.mxu0  ;;  %v7471_v38 = vadd.f32 %v3870_v52, %v3845_v48  ;;  %v3821_v17 = vpop.f32.mrf.mxu1  ;;  %v4355_v48 = vld [vmem:[#allocation41 + $0xc98] sm:$0xff] }
 0x683   : > { %4593 = vmatpush.msrb.mxu0 %v4382_v36  ;;  %4619 = vmatpush.msrb.mxu1 %v4446_v41  ;;  %v3796_v46 = vadd.f32 %v3795_v21, %v3590_v39  ;;  %v4359_v41 = vld [vmem:[#allocation41 + $0xcb8] sm:$0xff]  ;;  %v3740_v21 = vadd.f32 %v7389_v32, %v7387_v2  ;;  %v4342_v2 = vld [vmem:[#allocation41 + $0xc30] sm:$0xff] }
 0x684   : > { %4645 = vmatpush.msrb.mxu2 %v4383_v33  ;;  %4671 = vmatpush.msrb.mxu3 %v4447_v37  ;;  %v4354_v33 = vld [vmem:[#allocation41 + $0xc90] sm:$0xff]  ;;  %v4419_v52 = vld [vmem:[#allocation41 + $0xe98] sm:$0xff] }
 0x685   : > { %4594 = vmatpush.msrb.mxu0 %v4378_v51  ;;  %4620 = vmatpush.msrb.mxu1 %v4442_v31  ;;  %v7473_v5 = vadd.f32 %v3821_v17, %v3796_v46  ;;  %v4418_v37 = vld [vmem:[#allocation41 + $0xe90] sm:$0xff]  ;;  %v3691_v17 = vadd.f32 %v7401_v25, %v7391_v6 }
 0x686   : > { %4646 = vmatpush.msrb.mxu2 %v4379_v8  ;;  %4672 = vmatpush.msrb.mxu3 %v4443_v63  ;;  %v4350_v51 = vld [vmem:[#allocation41 + $0xc70] sm:$0xff]  ;;  %v4351_v8 = vld [vmem:[#allocation41 + $0xc78] sm:$0xff] }
 0x687   : > { %4595 = vmatpush.msrb.mxu0 %v4374_v60  ;;  %4621 = vmatpush.msrb.mxu1 %v4438_v13  ;;  %v4414_v31 = vld [vmem:[#allocation41 + $0xe70] sm:$0xff]  ;;  %v4415_v63 = vld [vmem:[#allocation41 + $0xe78] sm:$0xff] }
 0x688   : > { %4647 = vmatpush.msrb.mxu2 %v4375_v1  ;;  %4673 = vmatpush.msrb.mxu3 %v4439_v4  ;;  %v4346_v46 = vld [vmem:[#allocation41 + $0xc50] sm:$0xff]  ;;  %v4347_v1 = vld [vmem:[#allocation41 + $0xc58] sm:$0xff] }
 0x689   : > { %4596 = vmatpush.msrb.mxu0 %v4370_v20  ;;  %4622 = vmatpush.msrb.mxu1 %v4434_v43  ;;  %v3847_v10 = vpop.f32.mrf.mxu2  ;;  %v3873_v30 = vpop.f32.mrf.mxu3  ;;  %v4410_v60 = vld [vmem:[#allocation41 + $0xe50] sm:$0xff]  ;;  %v4411_v4 = vld [vmem:[#allocation41 + $0xe58] sm:$0xff] }
 0x68a   : > { %4648 = vmatpush.msrb.mxu2 %v4371_v7  ;;  %4674 = vmatpush.msrb.mxu3 %v4435_v57  ;;  %v3848_v14 = vadd.f32 %v3847_v10, %v3642_v0  ;;  %v4406_v32 = vld [vmem:[#allocation41 + $0xe30] sm:$0xff]  ;;  %v4343_v57 = vld [vmem:[#allocation41 + $0xc38] sm:$0xff] }
 0x68b   : > { %4507 = vmatmul.f32.gmra.mxu0 %v7447_v59  ;;  %4533 = vmatmul.f32.gmra.mxu1 %v7449_v26  ;;  %v4407_v0 = vld [vmem:[#allocation41 + $0xe38] sm:$0xff]  ;;  %v4338_v6 = vld [vmem:[#allocation41 + $0xc10] sm:$0xff] }
 0x68c   : > { %4559 = vmatmul.f32.gmra.mxu2 %v7447_v59  ;;  %4585 = vmatmul.f32.gmra.mxu3 %v7449_v26  ;;  %v3893_v11 = vpop.f32.mrf.mxu0  ;;  %v7483_v55 = vadd.f32 %v3873_v30, %v3848_v14  ;;  %v3919_v36 = vpop.f32.mrf.mxu1  ;;  %v4402_v25 = vld [vmem:[#allocation41 + $0xe10] sm:$0xff]  ;;  %v3743_v14 = vadd.f32 %v7405_v24, %v7403_v50  ;;  %v4770_v30 = vld [vmem:[#allocation41 + $0x11e0] sm:$0xff]  ;;  %v3694_v50 = vadd.f32 %v7413_v45, %v7407_v53  ;;  %v4767_v24 = vld [vmem:[#allocation41 + $0x11c8] sm:$0xff] }
 0x68d   : > { %4597 = vmatpush.msrb.mxu0 %v4366_v23  ;;  %4623 = vmatpush.msrb.mxu1 %v4430_v9  ;;  %v3894_v47 = vadd.f32 %v3893_v11, %v3688_v54  ;;  %v4339_v54 = vld [vmem:[#allocation41 + $0xc18] sm:$0xff]  ;;  %v4835_v11 = vld [vmem:[#allocation41 + $0x13e8] sm:$0xff]  ;;  %v4758_v53 = vld [vmem:[#allocation41 + $0x1180] sm:$0xff] }
 0x68e   : > { %4649 = vmatpush.msrb.mxu2 %v4367_v40  ;;  %4675 = vmatpush.msrb.mxu3 %v4431_v12  ;;  %v4403_v40 = vld [vmem:[#allocation41 + $0xe18] sm:$0xff]  ;;  %v4822_v45 = vld [vmem:[#allocation41 + $0x1380] sm:$0xff] }
 0x68f   : > { %4598 = vmatpush.msrb.mxu0 %v4362_v61  ;;  %4624 = vmatpush.msrb.mxu1 %v4426_v62  ;;  %v7485_v39 = vadd.f32 %v3919_v36, %v3894_v47  ;;  %v4834_v61 = vld [vmem:[#allocation41 + $0x13e0] sm:$0xff]  ;;  %v4771_v62 = vld [vmem:[#allocation41 + $0x11e8] sm:$0xff] }
 0x690   : > { %4650 = vmatpush.msrb.mxu2 %v4363_v58  ;;  %4676 = vmatpush.msrb.mxu3 %v4427_v15  ;;  %v4766_v15 = vld [vmem:[#allocation41 + $0x11c0] sm:$0xff] }
 0x691   : > { %4599 = vmatpush.msrb.mxu0 %v4358_v49  ;;  %4625 = vmatpush.msrb.mxu1 %v4422_v27  ;;  %v4830_v47 = vld [vmem:[#allocation41 + $0x13c0] sm:$0xff]  ;;  %v4831_v27 = vld [vmem:[#allocation41 + $0x13c8] sm:$0xff] }
 0x692   : > { %4651 = vmatpush.msrb.mxu2 %v4359_v41  ;;  %4677 = vmatpush.msrb.mxu3 %v4423_v3  ;;  %v4762_v41 = vld [vmem:[#allocation41 + $0x11a0] sm:$0xff] }
 0x693   : > { %4600 = vmatpush.msrb.mxu0 %v4354_v33  ;;  %4626 = vmatpush.msrb.mxu1 %v4418_v37  ;;  %v3945_v13 = vpop.f32.mrf.mxu2  ;;  %v3971_v43 = vpop.f32.mrf.mxu3  ;;  %v4826_v3 = vld [vmem:[#allocation41 + $0x13a0] sm:$0xff]  ;;  %v4827_v37 = vld [vmem:[#allocation41 + $0x13a8] sm:$0xff] }
 0x694   : > { %4652 = vmatpush.msrb.mxu2 %v4355_v48  ;;  %4678 = vmatpush.msrb.mxu3 %v4419_v52  ;;  %v3946_v20 = vadd.f32 %v3945_v13, %v3740_v21  ;;  %v4819_v13 = vld [vmem:[#allocation41 + $0x1368] sm:$0xff] }
 0x695   : > { %4601 = vmatpush.msrb.mxu0 %v4350_v51  ;;  %4627 = vmatpush.msrb.mxu1 %v4414_v31  ;;  %v4759_v51 = vld [vmem:[#allocation41 + $0x1188] sm:$0xff] }
 0x696   : > { %4653 = vmatpush.msrb.mxu2 %v4351_v8  ;;  %4679 = vmatpush.msrb.mxu3 %v4415_v63  ;;  %v3896_v7 = vpop.f32.mrf.mxu0  ;;  %v7491_v23 = vadd.f32 %v3971_v43, %v3946_v20  ;;  %v3922_v10 = vpop.f32.mrf.mxu1  ;;  %v4823_v31 = vld [vmem:[#allocation41 + $0x1388] sm:$0xff]  ;;  %v3746_v8 = vadd.f32 %v7419_v44, %v7415_v56  ;;  %v4754_v63 = vld [vmem:[#allocation41 + $0x1160] sm:$0xff] }
 0x697   : > { %4602 = vmatpush.msrb.mxu0 %v4346_v46  ;;  %4628 = vmatpush.msrb.mxu1 %v4410_v60  ;;  %v3897_v9 = vadd.f32 %v3896_v7, %v3691_v17  ;;  %v4818_v46 = vld [vmem:[#allocation41 + $0x1360] sm:$0xff]  ;;  %v4755_v60 = vld [vmem:[#allocation41 + $0x1168] sm:$0xff] }
 0x698   : > { %4654 = vmatpush.msrb.mxu2 %v4347_v1  ;;  %4680 = vmatpush.msrb.mxu3 %v4411_v4  ;;  %v4750_v1 = vld [vmem:[#allocation41 + $0x1140] sm:$0xff]  ;;  %v4751_v56 = vld [vmem:[#allocation41 + $0x1148] sm:$0xff] }
 0x699   : > { %4603 = vmatpush.msrb.mxu0 %v4342_v2  ;;  %4629 = vmatpush.msrb.mxu1 %v4406_v32  ;;  %v7493_v12 = vadd.f32 %v3922_v10, %v3897_v9  ;;  %v4814_v4 = vld [vmem:[#allocation41 + $0x1340] sm:$0xff]  ;;  %v4815_v44 = vld [vmem:[#allocation41 + $0x1348] sm:$0xff] }
 0x69a   : > { %4655 = vmatpush.msrb.mxu2 %v4343_v57  ;;  %4681 = vmatpush.msrb.mxu3 %v4407_v0  ;;  %v4746_v2 = vld [vmem:[#allocation41 + $0x1120] sm:$0xff]  ;;  %v4747_v57 = vld [vmem:[#allocation41 + $0x1128] sm:$0xff] }
 0x69b   : > { %4604 = vmatpush.msrb.mxu0 %v4338_v6  ;;  %4630 = vmatpush.msrb.mxu1 %v4402_v25  ;;  %v4810_v32 = vld [vmem:[#allocation41 + $0x1320] sm:$0xff]  ;;  %v4743_v25 = vld [vmem:[#allocation41 + $0x1108] sm:$0xff] }
 0x69c   : > { %4656 = vmatpush.msrb.mxu2 %v4339_v54  ;;  %4682 = vmatpush.msrb.mxu3 %v4403_v40  ;;  %v4806_v0 = vld [vmem:[#allocation41 + $0x1300] sm:$0xff]  ;;  %v4807_v10 = vld [vmem:[#allocation41 + $0x1308] sm:$0xff] }
 0x69d   : > { %4605 = vmatmul.f32.vlgmr.msrb.gmra.mxu0 %v7430_v42  ;;  %4631 = vmatmul.f32.vlgmr.msrb.gmra.mxu1 %v7435_v22  ;;  %v3948_v58 = vpop.f32.mrf.mxu2  ;;  %v3974_v36 = vpop.f32.mrf.mxu3 }
 0x69e   : > { %4657 = vmatmul.f32.vlgmr.msrb.gmra.mxu2 %v7430_v42  ;;  %4683 = vmatmul.f32.vlgmr.msrb.gmra.mxu3 %v7435_v22  ;;  %v3949_v49 = vadd.f32 %v3948_v58, %v3743_v14  ;;  %v4763_v22 = vld [vmem:[#allocation41 + $0x11a8] sm:$0xff]  ;;  %v4738_v14 = vld [vmem:[#allocation41 + $0x10e0] sm:$0xff] }
 0x69f   : > { %4859 = vmatpush.msra.mxu0 %v4770_v30  ;;  %4885 = vmatpush.msra.mxu1 %v4834_v61  ;;  %v4802_v30 = vld [vmem:[#allocation41 + $0x12e0] sm:$0xff]  ;;  %v4739_v61 = vld [vmem:[#allocation41 + $0x10e8] sm:$0xff] }
 0x6a0   : > { %4911 = vmatpush.msra.mxu2 %v4771_v62  ;;  %4937 = vmatpush.msra.mxu3 %v4835_v11  ;;  %v7503_v33 = vadd.f32 %v3974_v36, %v3949_v49  ;;  %v3899_v42 = vpop.f32.mrf.mxu0  ;;  %v3925_v52 = vpop.f32.mrf.mxu1  ;;  %v4803_v62 = vld [vmem:[#allocation41 + $0x12e8] sm:$0xff]  ;;  %v4734_v11 = vld [vmem:[#allocation41 + $0x10c0] sm:$0xff] }
 0x6a1   : > { %4860 = vmatpush.msra.mxu0 %v4766_v15  ;;  %4886 = vmatpush.msra.mxu1 %v4830_v47  ;;  %v3900_v48 = vadd.f32 %v3899_v42, %v3694_v50  ;;  %v4798_v58 = vld [vmem:[#allocation41 + $0x12c0] sm:$0xff]  ;;  %v4799_v15 = vld [vmem:[#allocation41 + $0x12c8] sm:$0xff] }
 0x6a2   : > { %4912 = vmatpush.msra.mxu2 %v4767_v24  ;;  %4938 = vmatpush.msra.mxu3 %v4831_v27  ;;  %v4730_v50 = vld [vmem:[#allocation41 + $0x10a0] sm:$0xff]  ;;  %v4731_v36 = vld [vmem:[#allocation41 + $0x10a8] sm:$0xff] }
 0x6a3   : > { %4861 = vmatpush.msra.mxu0 %v4762_v41  ;;  %4887 = vmatpush.msra.mxu1 %v4826_v3  ;;  %v7505_v21 = vadd.f32 %v3925_v52, %v3900_v48  ;;  %v4794_v24 = vld [vmem:[#allocation41 + $0x12a0] sm:$0xff]  ;;  %v4795_v41 = vld [vmem:[#allocation41 + $0x12a8] sm:$0xff] }
 0x6a4   : > { %4913 = vmatpush.msra.mxu2 %v4763_v22  ;;  %4939 = vmatpush.msra.mxu3 %v4827_v37  ;;  %v4727_v37 = vld [vmem:[#allocation41 + $0x1088] sm:$0xff]  ;;  %v4786_v52 = vld [vmem:[#allocation41 + $0x1260] sm:$0xff] }
 0x6a5   : > { %4862 = vmatpush.msra.mxu0 %v4758_v53  ;;  %4888 = vmatpush.msra.mxu1 %v4822_v45  ;;  %v4791_v48 = vld [vmem:[#allocation41 + $0x1288] sm:$0xff]  ;;  %v4722_v45 = vld [vmem:[#allocation41 + $0x1060] sm:$0xff] }
 0x6a6   : > { %4914 = vmatpush.msra.mxu2 %v4759_v51  ;;  %4940 = vmatpush.msra.mxu3 %v4823_v31  ;;  %v4723_v51 = vld [vmem:[#allocation41 + $0x1068] sm:$0xff] }
 0x6a7   : > { %4608 = vmatmul.f32.gmra.mxu0 %v7457_v28  ;;  %4634 = vmatmul.f32.gmra.mxu1 %v7463_v29  ;;  %v3951_v17 = vpop.f32.mrf.mxu2  ;;  %v3977_v43 = vpop.f32.mrf.mxu3  ;;  %v4787_v31 = vld [vmem:[#allocation41 + $0x1268] sm:$0xff] }
 0x6a8   : > { %4660 = vmatmul.f32.gmra.mxu2 %v7457_v28  ;;  %4686 = vmatmul.f32.gmra.mxu3 %v7463_v29  ;;  %v3952_v20 = vadd.f32 %v3951_v17, %v3746_v8  ;;  %v4811_v28 = vld [vmem:[#allocation41 + $0x1328] sm:$0xff]  ;;  %v4742_v29 = vld [vmem:[#allocation41 + $0x1100] sm:$0xff] }
 0x6a9   : > { %4863 = vmatpush.msra.mxu0 %v4754_v63  ;;  %4889 = vmatpush.msra.mxu1 %v4818_v46  ;;  %v4782_v63 = vld [vmem:[#allocation41 + $0x1240] sm:$0xff]  ;;  %v4706_v17 = vld [vmem:[#allocation9 + $0x10] sm:$0xfc] }
 0x6aa   : > { %4915 = vmatpush.msra.mxu2 %v4755_v60  ;;  %4941 = vmatpush.msra.mxu3 %v4819_v13  ;;  %v7513_v7 = vadd.f32 %v3977_v43, %v3952_v20  ;;  %v4705_v46 = vld [vmem:[#allocation9 + $0x8] sm:$0xfc]  ;;  %v4719_v60 = vld [vmem:[#allocation41 + $0x1048] sm:$0xff] }
 0x6ab   : > { %4864 = vmatpush.msra.mxu0 %v4750_v1  ;;  %4890 = vmatpush.msra.mxu1 %v4814_v4  ;;  %v4783_v13 = vld [vmem:[#allocation41 + $0x1248] sm:$0xff]  ;;  %v4714_v1 = vld [vmem:[#allocation41 + $0x1020] sm:$0xff] }
 0x6ac   : > { %4916 = vmatpush.msra.mxu2 %v4751_v56  ;;  %4942 = vmatpush.msra.mxu3 %v4815_v44  ;;  %v4128_v9 = vpop.f32.mrf.mxu0  ;;  %v4154_v6 = vpop.f32.mrf.mxu1  ;;  %v4778_v4 = vld [vmem:[#allocation41 + $0x1220] sm:$0xff]  ;;  %v4715_v20 = vld [vmem:[#allocation41 + $0x1028] sm:$0xff] }
 0x6ad   : > { %4865 = vmatpush.msra.mxu0 %v4746_v2  ;;  %4891 = vmatpush.msra.mxu1 %v4810_v32  ;;  %v4155_v54 = vadd.f32 %v4154_v6, %v4128_v9  ;;  %v4779_v56 = vld [vmem:[#allocation41 + $0x1228] sm:$0xff]  ;;  %v4710_v2 = vld [vmem:[#allocation41 + $0x1000] sm:$0xff] }
 0x6ae   : > { %4917 = vmatpush.msra.mxu2 %v4747_v57  ;;  %4943 = vmatpush.msra.mxu3 %v4811_v28  ;;  %v4774_v32 = vld [vmem:[#allocation41 + $0x1200] sm:$0xff]  ;;  %v4843_v57 = vrot.slane %v4705_v46, 2  ;;  %v4846_v28 = vrot.slane %v4706_v17, 2  ;;  %v4711_v9 = vld [vmem:[#allocation41 + $0x1008] sm:$0xff]  ;;  %v4756_v46 = vld [vmem:[#allocation41 + $0x1170] sm:$0xff] }
 0x6af   : > { %4866 = vmatpush.msra.mxu0 %v4742_v29  ;;  %4892 = vmatpush.msra.mxu1 %v4806_v0  ;;  %v7516_v40 = vadd.f32 %v4155_v54, %v7421_v35  ;;  %v4735_v35 = vld [vmem:[#allocation41 + $0x10c8] sm:$0xff]  ;;  %v4847_v29 = vrot.slane %v7396_v18, 2  ;;  %v4816_v17 = vld [vmem:[#allocation41 + $0x1350] sm:$0xff]  ;;  %v4753_v18 = vld [vmem:[#allocation41 + $0x1158] sm:$0xff] }
 0x6b0   : > { %4918 = vmatpush.msra.mxu2 %v4743_v25  ;;  %4944 = vmatpush.msra.mxu3 %v4807_v10  ;;  %v4775_v6 = vld [vmem:[#allocation41 + $0x1208] sm:$0xff] }
 0x6b1   : > { %4611 = vmatmul.f32.gmra.mxu0 %v7447_v59  ;;  %4637 = vmatmul.f32.gmra.mxu1 %v7449_v26 }
 0x6b2   : > { %4663 = vmatmul.f32.gmra.mxu2 %v7447_v59  ;;  %4689 = vmatmul.f32.gmra.mxu3 %v7449_v26  ;;  %v4726_v59 = vld [vmem:[#allocation41 + $0x1080] sm:$0xff] }
 0x6b3   : > { %4867 = vmatpush.msra.mxu0 %v4738_v14  ;;  %4893 = vmatpush.msra.mxu1 %v4802_v30  ;;  %v4180_v47 = vpop.f32.mrf.mxu2  ;;  %v4206_v49 = vpop.f32.mrf.mxu3  ;;  %v4790_v26 = vld [vmem:[#allocation41 + $0x1280] sm:$0xff] }
 0x6b4   : > { %4919 = vmatpush.msra.mxu2 %v4739_v61  ;;  %4945 = vmatpush.msra.mxu3 %v4803_v62  ;;  %v4207_v27 = vadd.f32 %v4206_v49, %v4180_v47  ;;  %v7541_v61 = vsel %vm4842_vm2, %v4846_v28, %v4847_v29  ;;  %v4772_v62 = vld [vmem:[#allocation41 + $0x11f0] sm:$0xff] }
 0x6b5   : > { %4868 = vmatpush.msra.mxu0 %v4734_v11  ;;  %4894 = vmatpush.msra.mxu1 %v4798_v58  ;;  %v4773_v11 = vld [vmem:[#allocation41 + $0x11f8] sm:$0xff]  ;;  %v4832_v47 = vld [vmem:[#allocation41 + $0x13d0] sm:$0xff] }
 0x6b6   : > { %4920 = vmatpush.msra.mxu2 %v4735_v35  ;;  %4946 = vmatpush.msra.mxu3 %v4799_v15  ;;  %v7523_v3 = vadd.f32 %v4207_v27, %v7443_v16  ;;  %v4131_v42 = vpop.f32.mrf.mxu0  ;;  %v4157_v22 = vpop.f32.mrf.mxu1  ;;  %v4718_v16 = vld [vmem:[#allocation41 + $0x1040] sm:$0xff]  ;;  %v4837_v58 = vld [vmem:[#allocation41 + $0x13f8] sm:$0xff]  ;;  %v4768_v15 = vld [vmem:[#allocation41 + $0x11d0] sm:$0xff] }
 0x6b7   : > { %4869 = vmatpush.msra.mxu0 %v4730_v50  ;;  %4895 = vmatpush.msra.mxu1 %v4794_v24  ;;  %v4158_v53 = vadd.f32 %v4157_v22, %v4131_v42  ;;  %v4707_v49 = vld [vmem:[#allocation9 + $0x38] sm:$0x3f]  ;;  %v4769_v50 = vld [vmem:[#allocation41 + $0x11d8] sm:$0xff]  ;;  %v4708_v27 = vld [vmem:[#allocation9 + $0x30] sm:$0x3f] }
 0x6b8   : > { %4921 = vmatpush.msra.mxu2 %v4731_v36  ;;  %4947 = vmatpush.msra.mxu3 %v4795_v41  ;;  %v4833_v24 = vld [vmem:[#allocation41 + $0x13d8] sm:$0xff]  ;;  %v4764_v36 = vld [vmem:[#allocation41 + $0x11b0] sm:$0xff] }
 0x6b9   : > { %4870 = vmatpush.msra.mxu0 %v4726_v59  ;;  %4896 = vmatpush.msra.mxu1 %v4790_v26  ;;  %v7526_v8 = vadd.f32 %v4158_v53, %v7445_v19  ;;  %v4844_v19 = vrot.slane %v7393_v34, 2  ;;  %v4828_v41 = vld [vmem:[#allocation41 + $0x13b0] sm:$0xff]  ;;  %v4829_v59 = vld [vmem:[#allocation41 + $0x13b8] sm:$0xff]  ;;  %v7552_v53 = vrot.slane %v4708_v27, 2 }
 0x6ba   : > { %4922 = vmatpush.msra.mxu2 %v4727_v37  ;;  %4948 = vmatpush.msra.mxu3 %v4791_v48  ;;  %v4760_v22 = vld [vmem:[#allocation41 + $0x1190] sm:$0xff]  ;;  %v7550_v48 = vrot.slane %v4707_v49, 2  ;;  %v4737_v49 = vld [vmem:[#allocation41 + $0x10d8] sm:$0xff] }
 0x6bb   : > { %4871 = vmatpush.msra.mxu0 %v4722_v45  ;;  %4897 = vmatpush.msra.mxu1 %v4786_v52  ;;  %v7536_v30 = vsel %vm4842_vm2, %v4843_v57, %v4844_v19  ;;  %v4824_v37 = vld [vmem:[#allocation41 + $0x1390] sm:$0xff]  ;;  %v4761_v52 = vld [vmem:[#allocation41 + $0x1198] sm:$0xff] }
 0x6bc   : > { %4923 = vmatpush.msra.mxu2 %v4723_v51  ;;  %4949 = vmatpush.msra.mxu3 %v4787_v31  ;;  %v4825_v51 = vld [vmem:[#allocation41 + $0x1398] sm:$0xff]  ;;  %v4752_v34 = vld [vmem:[#allocation41 + $0x1150] sm:$0xff] }
 0x6bd   : > { %4872 = vmatpush.msra.mxu0 %v4718_v16  ;;  %4898 = vmatpush.msra.mxu1 %v4782_v63  ;;  %v4183_v44 = vpop.f32.mrf.mxu2  ;;  %v4209_v43 = vpop.f32.mrf.mxu3  ;;  %v7561_v16 = vsel %vm4842_vm2, %v4844_v19, %v7550_v48  ;;  %v7567_v63 = vsel %vm4842_vm2, %v4847_v29, %v7552_v53  ;;  %v4748_v19 = vld [vmem:[#allocation41 + $0x1130] sm:$0xff]  ;;  %v4745_v29 = vld [vmem:[#allocation41 + $0x1118] sm:$0xff] }
 0x6be   : > { %4924 = vmatpush.msra.mxu2 %v4719_v60  ;;  %4950 = vmatpush.msra.mxu3 %v4783_v13  ;;  %v4210_v0 = vadd.f32 %v4209_v43, %v4183_v44  ;;  %v4820_v60 = vld [vmem:[#allocation41 + $0x1370] sm:$0xff]  ;;  %v4821_v13 = vld [vmem:[#allocation41 + $0x1378] sm:$0xff] }
 0x6bf   : > { %4873 = vmatpush.msra.mxu0 %v4714_v1  ;;  %4899 = vmatpush.msra.mxu1 %v4778_v4  ;;  %v4812_v44 = vld [vmem:[#allocation41 + $0x1330] sm:$0xff]  ;;  %v4749_v43 = vld [vmem:[#allocation41 + $0x1138] sm:$0xff] }
 0x6c0   : > { %4925 = vmatpush.msra.mxu2 %v4715_v20  ;;  %4951 = vmatpush.msra.mxu3 %v4779_v56  ;;  %v7531_v25 = vadd.f32 %v4210_v0, %v7471_v38  ;;  %v4134_v10 = vpop.f32.mrf.mxu0  ;;  %v4160_v54 = vpop.f32.mrf.mxu1  ;;  %v4836_v38 = vld [vmem:[#allocation41 + $0x13f0] sm:$0xff]  ;;  %v4817_v20 = vld [vmem:[#allocation41 + $0x1358] sm:$0xff] }
 0x6c1   : > { %4874 = vmatpush.msra.mxu0 %v4710_v2  ;;  %4900 = vmatpush.msra.mxu1 %v4774_v32  ;;  %v4161_v14 = vadd.f32 %v4160_v54, %v4134_v10  ;;  %v4813_v2 = vld [vmem:[#allocation41 + $0x1338] sm:$0xff]  ;;  %v4744_v57 = vld [vmem:[#allocation41 + $0x1110] sm:$0xff] }
 0x6c2   : > { %4926 = vmatpush.msra.mxu2 %v4711_v9  ;;  %4952 = vmatpush.msra.mxu3 %v4775_v6  ;;  %v4808_v28 = vld [vmem:[#allocation41 + $0x1310] sm:$0xff]  ;;  %v4809_v0 = vld [vmem:[#allocation41 + $0x1318] sm:$0xff] }
 0x6c3   : > { %4875 = vmatmul.f32.vlgmr.msra.gmra.mxu0 %v7536_v30  ;;  %4901 = vmatmul.f32.vlgmr.msra.gmra.mxu1 %v7541_v61  ;;  %v7546_v35 = vadd.f32 %v4161_v14, %v7473_v5  ;;  %v4765_v5 = vld [vmem:[#allocation41 + $0x11b8] sm:$0xff]  ;;  %v4740_v10 = vld [vmem:[#allocation41 + $0x10f0] sm:$0xff] }
 0x6c4   : > { %4927 = vmatmul.f32.vlgmr.msra.gmra.mxu2 %v7536_v30  ;;  %4953 = vmatmul.f32.vlgmr.msra.gmra.mxu3 %v7541_v61  ;;  %v4804_v54 = vld [vmem:[#allocation41 + $0x12f0] sm:$0xff]  ;;  %v4741_v14 = vld [vmem:[#allocation41 + $0x10f8] sm:$0xff] }
 0x6c5   : > { %4963 = vmatpush.msrb.mxu0 %v4772_v62  ;;  %4989 = vmatpush.msrb.mxu1 %v4836_v38  ;;  %v4805_v62 = vld [vmem:[#allocation41 + $0x12f8] sm:$0xff]  ;;  %v4736_v38 = vld [vmem:[#allocation41 + $0x10d0] sm:$0xff] }
 0x6c6   : > { %5015 = vmatpush.msrb.mxu2 %v4773_v11  ;;  %5041 = vmatpush.msrb.mxu3 %v4837_v58  ;;  %v4800_v11 = vld [vmem:[#allocation41 + $0x12d0] sm:$0xff] }
 0x6c7   : > { %4964 = vmatpush.msrb.mxu0 %v4768_v15  ;;  %4990 = vmatpush.msrb.mxu1 %v4832_v47  ;;  %v4186_v26 = vpop.f32.mrf.mxu2  ;;  %v4212_v42 = vpop.f32.mrf.mxu3  ;;  %v4732_v27 = vld [vmem:[#allocation41 + $0x10b0] sm:$0xff] }
 0x6c8   : > { %5016 = vmatpush.msrb.mxu2 %v4769_v50  ;;  %5042 = vmatpush.msrb.mxu3 %v4833_v24  ;;  %v4213_v45 = vadd.f32 %v4212_v42, %v4186_v26  ;;  %v4801_v50 = vld [vmem:[#allocation41 + $0x12d8] sm:$0xff]  ;;  %v4792_v26 = vld [vmem:[#allocation41 + $0x1290] sm:$0xff] }
 0x6c9   : > { %4965 = vmatpush.msrb.mxu0 %v4764_v36  ;;  %4991 = vmatpush.msrb.mxu1 %v4828_v41  ;;  %v4796_v36 = vld [vmem:[#allocation41 + $0x12b0] sm:$0xff]  ;;  %v4733_v41 = vld [vmem:[#allocation41 + $0x10b8] sm:$0xff] }
 0x6ca   : > { %5017 = vmatpush.msrb.mxu2 %v4765_v5  ;;  %5043 = vmatpush.msrb.mxu3 %v4829_v59  ;;  %v7555_v31 = vadd.f32 %v4213_v45, %v7483_v55  ;;  %v4757_v55 = vld [vmem:[#allocation41 + $0x1178] sm:$0xff]  ;;  %v4788_v45 = vld [vmem:[#allocation41 + $0x1270] sm:$0xff] }
 0x6cb   : > { %4966 = vmatpush.msrb.mxu0 %v4760_v22  ;;  %4992 = vmatpush.msrb.mxu1 %v4824_v37  ;;  %v4797_v5 = vld [vmem:[#allocation41 + $0x12b8] sm:$0xff]  ;;  %v4724_v37 = vld [vmem:[#allocation41 + $0x1070] sm:$0xff] }
 0x6cc   : > { %5018 = vmatpush.msrb.mxu2 %v4761_v52  ;;  %5044 = vmatpush.msrb.mxu3 %v4825_v51  ;;  %v4729_v42 = vld [vmem:[#allocation41 + $0x1098] sm:$0xff] }
 0x6cd   : > { %4878 = vmatmul.f32.gmra.mxu0 %v7561_v16  ;;  %4904 = vmatmul.f32.gmra.mxu1 %v7567_v63  ;;  %v4793_v22 = vld [vmem:[#allocation41 + $0x1298] sm:$0xff] }
 0x6ce   : > { %4930 = vmatmul.f32.gmra.mxu2 %v7561_v16  ;;  %4956 = vmatmul.f32.gmra.mxu3 %v7567_v63  ;;  %v4232_v1 = vpop.f32.mrf.mxu0  ;;  %v4258_v4 = vpop.f32.mrf.mxu1  ;;  %v4725_v52 = vld [vmem:[#allocation41 + $0x1078] sm:$0xff] }
 0x6cf   : > { %4967 = vmatpush.msrb.mxu0 %v4756_v46  ;;  %4993 = vmatpush.msrb.mxu1 %v4820_v60  ;;  %v4259_v56 = vadd.f32 %v4258_v4, %v4232_v1  ;;  %v4789_v51 = vld [vmem:[#allocation41 + $0x1278] sm:$0xff]  ;;  %v4716_v1 = vld [vmem:[#allocation41 + $0x1030] sm:$0xff] }
 0x6d0   : > { %5019 = vmatpush.msrb.mxu2 %v4757_v55  ;;  %5045 = vmatpush.msrb.mxu3 %v4821_v13  ;;  %v4784_v55 = vld [vmem:[#allocation41 + $0x1250] sm:$0xff] }
 0x6d1   : > { %4968 = vmatpush.msrb.mxu0 %v4752_v34  ;;  %4994 = vmatpush.msrb.mxu1 %v4816_v17  ;;  %v7574_v32 = vadd.f32 %v4259_v56, %v7485_v39  ;;  %v4721_v34 = vld [vmem:[#allocation41 + $0x1058] sm:$0xff]  ;;  %v4780_v4 = vld [vmem:[#allocation41 + $0x1230] sm:$0xff] }
 0x6d2   : > { %5020 = vmatpush.msrb.mxu2 %v4753_v18  ;;  %5046 = vmatpush.msrb.mxu3 %v4817_v20  ;;  %v4785_v17 = vld [vmem:[#allocation41 + $0x1258] sm:$0xff] }
 0x6d3   : > { %4969 = vmatpush.msrb.mxu0 %v4748_v19  ;;  %4995 = vmatpush.msrb.mxu1 %v4812_v44  ;;  %v4717_v19 = vld [vmem:[#allocation41 + $0x1038] sm:$0xff] }
 0x6d4   : > { %5021 = vmatpush.msrb.mxu2 %v4749_v43  ;;  %5047 = vmatpush.msrb.mxu3 %v4813_v2  ;;  %v4781_v44 = vld [vmem:[#allocation41 + $0x1238] sm:$0xff]  ;;  %v4712_v2 = vld [vmem:[#allocation41 + $0x1010] sm:$0xff] }
 0x6d5   : > { %4970 = vmatpush.msrb.mxu0 %v4744_v57  ;;  %4996 = vmatpush.msrb.mxu1 %v4808_v28  ;;  %v4284_v9 = vpop.f32.mrf.mxu2  ;;  %v4310_v6 = vpop.f32.mrf.mxu3  ;;  %v4776_v57 = vld [vmem:[#allocation41 + $0x1210] sm:$0xff]  ;;  %v4713_v28 = vld [vmem:[#allocation41 + $0x1018] sm:$0xff] }
 0x6d6   : > { %5022 = vmatpush.msrb.mxu2 %v4745_v29  ;;  %5048 = vmatpush.msrb.mxu3 %v4809_v0  ;;  %v4311_v39 = vadd.f32 %v4310_v6, %v4284_v9  ;;  %v4777_v29 = vld [vmem:[#allocation41 + $0x1218] sm:$0xff] }
 0x6d7   : > { %4881 = vmatmul.f32.gmra.mxu0 %v7550_v48  ;;  %4907 = vmatmul.f32.gmra.mxu1 %v7552_v53 }
 0x6d8   : > { %4933 = vmatmul.f32.gmra.mxu2 %v7550_v48  ;;  %4959 = vmatmul.f32.gmra.mxu3 %v7552_v53  ;;  %v7581_v58 = vadd.f32 %v4311_v39, %v7491_v23  ;;  %v4235_v15 = vpop.f32.mrf.mxu0  ;;  %v4261_v47 = vpop.f32.mrf.mxu1  ;;  %v4728_v23 = vld [vmem:[#allocation41 + $0x1090] sm:$0xff] }
 0x6d9   : > { %4971 = vmatpush.msrb.mxu0 %v4740_v10  ;;  %4997 = vmatpush.msrb.mxu1 %v4804_v54  ;;  %v4262_v24 = vadd.f32 %v4261_v47, %v4235_v15 }
 0x6da   : > { %5023 = vmatpush.msrb.mxu2 %v4741_v14  ;;  %5049 = vmatpush.msrb.mxu3 %v4805_v62 }
 0x6db   : > { %4972 = vmatpush.msrb.mxu0 %v4736_v38  ;;  %4998 = vmatpush.msrb.mxu1 %v4800_v11  ;;  %v7584_v59 = vadd.f32 %v4262_v24, %v7493_v12  ;;  %v4720_v12 = vld [vmem:[#allocation41 + $0x1050] sm:$0xff] }
 0x6dc   : > { %5024 = vmatpush.msrb.mxu2 %v4737_v49  ;;  %5050 = vmatpush.msrb.mxu3 %v4801_v50 }
 0x6dd   : > { %4973 = vmatpush.msrb.mxu0 %v4732_v27  ;;  %4999 = vmatpush.msrb.mxu1 %v4796_v36 }
 0x6de   : > { %5025 = vmatpush.msrb.mxu2 %v4733_v41  ;;  %5051 = vmatpush.msrb.mxu3 %v4797_v5 }
 0x6df   : > { %4974 = vmatpush.msrb.mxu0 %v4728_v23  ;;  %5000 = vmatpush.msrb.mxu1 %v4792_v26  ;;  %v4287_v46 = vpop.f32.mrf.mxu2  ;;  %v4313_v60 = vpop.f32.mrf.mxu3 }
 0x6e0   : > { %5026 = vmatpush.msrb.mxu2 %v4729_v42  ;;  %5052 = vmatpush.msrb.mxu3 %v4793_v22  ;;  %v4314_v13 = vadd.f32 %v4313_v60, %v4287_v46  ;;  %v7630_v60 = vld [vmem:[#allocation42] sm:$0xf] }
 0x6e1   : > { %4975 = vmatpush.msrb.mxu0 %v4724_v37  ;;  %5001 = vmatpush.msrb.mxu1 %v4788_v45 }
 0x6e2   : > { %5027 = vmatpush.msrb.mxu2 %v4725_v52  ;;  %5053 = vmatpush.msrb.mxu3 %v4789_v51  ;;  %v4326_v18 = vadd.f32 %v4314_v13, %v7503_v33  ;;  %v4238_v20 = vpop.f32.mrf.mxu0  ;;  %v4264_v56 = vpop.f32.mrf.mxu1  ;;  %v5081_v13 = vperm.slane %v7630_v60, 0 }
 0x6e3   : > { %4976 = vmatpush.msrb.mxu0 %v4720_v12  ;;  %5002 = vmatpush.msrb.mxu1 %v4784_v55  ;;  %v4265_v43 = vadd.f32 %v4264_v56, %v4238_v20 }
 0x6e4   : > { %5028 = vmatpush.msrb.mxu2 %v4721_v34  ;;  %5054 = vmatpush.msrb.mxu3 %v4785_v17  ;;  %v7634_v34 = vld [vmem:[#allocation44] sm:$0xf] }
 0x6e5   : > { %4977 = vmatpush.msrb.mxu0 %v4716_v1  ;;  %5003 = vmatpush.msrb.mxu1 %v4780_v4  ;;  %v7588_v0 = vadd.f32 %v4265_v43, %v7505_v21  ;;  %v5103_v56 = vperm.slane %v7634_v34, 0 }
 0x6e6   : > { %5029 = vmatpush.msrb.mxu2 %v4717_v19  ;;  %5055 = vmatpush.msrb.mxu3 %v4781_v44  ;;  %v5082_v44 = vperm.slane %v7630_v60, 1 }
 0x6e7   : > { %4978 = vmatpush.msrb.mxu0 %v4712_v2  ;;  %5004 = vmatpush.msrb.mxu1 %v4776_v57 }
 0x6e8   : > { %5030 = vmatpush.msrb.mxu2 %v4713_v28  ;;  %5056 = vmatpush.msrb.mxu3 %v4777_v29 }
 0x6e9   : > { %4979 = vmatmul.f32.vlgmr.msrb.gmra.mxu0 %v7536_v30  ;;  %5005 = vmatmul.f32.vlgmr.msrb.gmra.mxu1 %v7541_v61  ;;  %v4290_v33 = vpop.f32.mrf.mxu2  ;;  %v4316_v9 = vpop.f32.mrf.mxu3 }
 0x6ea   : > { %5031 = vmatmul.f32.vlgmr.msrb.gmra.mxu2 %v7536_v30  ;;  %5057 = vmatmul.f32.vlgmr.msrb.gmra.mxu3 %v7541_v61  ;;  %v4317_v6 = vadd.f32 %v4316_v9, %v4290_v33 }
 0x6ec   : > { %v7595_v21 = vadd.f32 %v4317_v6, %v7513_v7 }
 0x6f1   : > { %4982 = vmatmul.f32.gmra.mxu0 %v7561_v16  ;;  %5008 = vmatmul.f32.gmra.mxu1 %v7567_v63 }
 0x6f2   : > { %5034 = vmatmul.f32.gmra.mxu2 %v7561_v16  ;;  %5060 = vmatmul.f32.gmra.mxu3 %v7567_v63 }
 0x6f4   : > { %v4502_v30 = vpop.f32.mrf.mxu0  ;;  %v4528_v61 = vpop.f32.mrf.mxu1 }
 0x6f5   : > { %v4529_v22 = vadd.f32 %v4528_v61, %v4502_v30 }
 0x6f9   : > { %4985 = vmatmul.f32.gmra.mxu0 %v7550_v48  ;;  %5011 = vmatmul.f32.gmra.mxu1 %v7552_v53 }
 0x6fa   : > { %5037 = vmatmul.f32.gmra.mxu2 %v7550_v48  ;;  %5063 = vmatmul.f32.gmra.mxu3 %v7552_v53 }
 0x6fb   : > { %v4554_v7 = vpop.f32.mrf.mxu2  ;;  %v4580_v10 = vpop.f32.mrf.mxu3 }
 0x6fc   : > { %v4581_v12 = vadd.f32 %v4580_v10, %v4554_v7 }
 0x6fe   : > { %v4505_v54 = vpop.f32.mrf.mxu0  ;;  %v4531_v39 = vpop.f32.mrf.mxu1  ;;  %v4694_v17 = vadd.f32 %v4581_v12, %v7523_v3 }
 0x6ff   : > { %v4532_v1 = vadd.f32 %v4531_v39, %v4505_v54 }
 0x701   : > { %v4697_v29 = vadd.f32 %v4532_v1, %v7526_v8 }
 0x705   : > { %v4557_v14 = vpop.f32.mrf.mxu2  ;;  %v4583_v62 = vpop.f32.mrf.mxu3 }
 0x706   : > { %v4584_v9 = vadd.f32 %v4583_v62, %v4557_v14 }
 0x708   : > { %v4508_v38 = vpop.f32.mrf.mxu0  ;;  %v4534_v16 = vpop.f32.mrf.mxu1  ;;  %v4698_v10 = vadd.f32 %v4584_v9, %v7531_v25 }
 0x70f   : > { %v7605_v11 = vpop.f32.mrf.mxu2  ;;  %v7607_v63 = vpop.f32.mrf.mxu3 }
 0x71a   : > { %v7609_v15 = vpop.f32.mrf.mxu0  ;;  %v7611_v47 = vpop.f32.mrf.mxu1 }
 0x721   : > { %v7613_v48 = vpop.f32.mrf.mxu2  ;;  %v7615_v53 = vpop.f32.mrf.mxu3 }
 0x724   : > { %v4609_v49 = vpop.f32.mrf.mxu0  ;;  %v4635_v50 = vpop.f32.mrf.mxu1 }
 0x725   : > { %v4636_v24 = vadd.f32 %v4635_v50, %v4609_v49  ;;  %v4535_v49 = vadd.f32 %v4534_v16, %v4508_v38 }
 0x727   : > { %v7618_v27 = vadd.f32 %v4636_v24, %v7584_v59  ;;  %v4693_v59 = vadd.f32 %v4529_v22, %v7516_v40  ;;  %v5104_v40 = vperm.slane %v7634_v34, 1 }
 0x72b   : > { %v4661_v36 = vpop.f32.mrf.mxu2  ;;  %v4687_v41 = vpop.f32.mrf.mxu3 }
 0x72c   : > { %v4688_v5 = vadd.f32 %v4687_v41, %v4661_v36 }
 0x72e   : > { %v7620_v23 = vadd.f32 %v4688_v5, %v4326_v18  ;;  %v7622_v26 = vpop.f32.mrf.mxu0  ;;  %v7624_v42 = vpop.f32.mrf.mxu1  ;;  %v4701_v5 = vadd.f32 %v4535_v49, %v7546_v35 }
 0x735   : > { %v7626_v37 = vpop.f32.mrf.mxu2  ;;  %v7628_v45 = vpop.f32.mrf.mxu3 }
 0x740   : > { %v4876_v52 = vpop.f32.mrf.mxu0  ;;  %v4902_v51 = vpop.f32.mrf.mxu1 }
 0x741   : > { %v4903_v46 = vadd.f32 %v4902_v51, %v4876_v52  ;;  %v4587_v51 = vadd.f32 %v7607_v63, %v7605_v11 }
 0x743   : > { %v5067_v55 = vadd.f32 %v4903_v46, %v4693_v59 }
 0x745   : > { %v5089_v20 = vmul.f32 %v5081_v13, %v5067_v55  ;;  %v4702_v55 = vadd.f32 %v4587_v51, %v7555_v31 }
 0x747   : > { %v4928_v4 = vpop.f32.mrf.mxu2  ;;  %v4954_v18 = vpop.f32.mrf.mxu3  ;;  %v5111_v33 = vadd.f32 %v5103_v56, %v5089_v20 }
 0x748   : > { %v4955_v19 = vadd.f32 %v4954_v18, %v4928_v4 }
 0x749   : > { %v5123_v61 = vmax.f32 %v5111_v33, 0.0  ;;  %v5083_v33 = vperm.slane %v7630_v60, 2 }
 0x74a   : > { %v5068_v43 = vadd.f32 %v4955_v19, %v4694_v17  ;;  %v4879_v2 = vpop.f32.mrf.mxu0  ;;  %v4905_v57 = vpop.f32.mrf.mxu1 }
 0x74b   : > { %v4906_v28 = vadd.f32 %v4905_v57, %v4879_v2 }
 0x74c   : > { %v5090_v3 = vmul.f32 %v5082_v44, %v5068_v43  ;;  %v4633_v43 = vadd.f32 %v7611_v47, %v7609_v15  ;;  %v4685_v15 = vadd.f32 %v7615_v53, %v7613_v48 }
 0x74d   : > { %v5071_v30 = vadd.f32 %v4906_v28, %v4697_v29 }
 0x74e   : > { %v5112_v6 = vadd.f32 %v5104_v40, %v5090_v3  ;;  %v4696_v3 = vadd.f32 %v4685_v15, %v7581_v58  ;;  %v4639_v58 = vadd.f32 %v7624_v42, %v7622_v26 }
 0x74f   : > { %v5093_v50 = vmul.f32 %v5081_v13, %v5071_v30 }
 0x750   : > { %v5124_v7 = vmax.f32 %v5112_v6, 0.0 }
 0x751   : > { %v4931_v54 = vpop.f32.mrf.mxu2  ;;  %v4957_v39 = vpop.f32.mrf.mxu3  ;;  %v5115_v22 = vadd.f32 %v5103_v56, %v5093_v50 }
 0x752   : > { %v5135_v8 = vpack.c.bf16 %v5124_v7, %v5123_v61  ;;  %v4958_v24 = vadd.f32 %v4957_v39, %v4931_v54  ;;  %v5105_v61 = vperm.slane %v7634_v34, 2  ;;  %v5084_v7 = vperm.slane %v7630_v60, 3 }
 0x753   : > { %v5127_v59 = vmax.f32 %v5115_v22, 0.0  ;;  %v5106_v39 = vperm.slane %v7634_v34, 3  ;;  %v4703_v34 = vadd.f32 %v4639_v58, %v7588_v0 }
 0x754   : > { %5137 = vst [vmem:[%s7645_s24] sm:$0xff] %v5135_v8  ;;  %v5072_v14 = vadd.f32 %v4958_v24, %v4698_v10  ;;  %v4882_v62 = vpop.f32.mrf.mxu0  ;;  %v4908_v36 = vpop.f32.mrf.mxu1 }
 0x755   : > { %v4909_v41 = vadd.f32 %v4908_v36, %v4882_v62 }
 0x756   : > { %v5094_v52 = vmul.f32 %v5082_v44, %v5072_v14 }
 0x757   : > { %v5075_v25 = vadd.f32 %v4909_v41, %v4701_v5 }
 0x758   : > { %v5116_v46 = vadd.f32 %v5104_v40, %v5094_v52 }
 0x759   : > { %v5097_v1 = vmul.f32 %v5081_v13, %v5075_v25 }
 0x75a   : > { %v5128_v12 = vmax.f32 %v5116_v46, 0.0 }
 0x75b   : > { %v4934_v38 = vpop.f32.mrf.mxu2  ;;  %v4960_v16 = vpop.f32.mrf.mxu3  ;;  %v5119_v20 = vadd.f32 %v5103_v56, %v5097_v1  ;;  %v4695_v56 = vadd.f32 %v4633_v43, %v7574_v32 }
 0x75c   : > { %v5139_v17 = vpack.c.bf16 %v5128_v12, %v5127_v59  ;;  %v4961_v4 = vadd.f32 %v4960_v16, %v4934_v38 }
 0x75d   : > { %v5131_v2 = vmax.f32 %v5119_v20, 0.0 }
 0x75e   : > { %v5076_v18 = vadd.f32 %v4961_v4, %v4702_v55 }
 0x760   : > { %v5098_v19 = vmul.f32 %v5082_v44, %v5076_v18  ;;  %v5596_v44 = vrot.slane %v5139_v17, 9 }
 0x762   : > { %v5120_v35 = vadd.f32 %v5104_v40, %v5098_v19 }
 0x764   : > { %v5132_v11 = vmax.f32 %v5120_v35, 0.0 }
 0x766   : > { %v5141_v63 = vpack.c.bf16 %v5132_v11, %v5131_v2  ;;  %v4980_v57 = vpop.f32.mrf.mxu0  ;;  %v5006_v28 = vpop.f32.mrf.mxu1 }
 0x767   : > { %v5007_v13 = vadd.f32 %v5006_v28, %v4980_v57 }
 0x768   : > { %v5152_v40 = vrot.slane %v5141_v63, 5 }
 0x769   : > { %v5069_v29 = vadd.f32 %v5007_v13, %v4695_v56 }
 0x76a   : > { %v5153_v47 = vsel %vm7655_vm5, %v5596_v44, %v5152_v40 }
 0x76b   : > { %5160 = vst [vmem:[%s7645_s24 + $0x10] sm:$0xff] %v5153_v47  ;;  %v5091_v30 = vmul.f32 %v5083_v33, %v5069_v29 }
 0x76d   : > { %v5032_v9 = vpop.f32.mrf.mxu2  ;;  %v5058_v6 = vpop.f32.mrf.mxu3  ;;  %v5113_v49 = vadd.f32 %v5105_v61, %v5091_v30 }
 0x76e   : > { %v5059_v32 = vadd.f32 %v5058_v6, %v5032_v9  ;;  %v4983_v10 = vpop.f32.mrf.mxu0  ;;  %v5009_v54 = vpop.f32.mrf.mxu1 }
 0x76f   : > { %v5010_v48 = vadd.f32 %v5009_v54, %v4983_v10  ;;  %v5125_v36 = vmax.f32 %v5113_v49, 0.0 }
 0x770   : > { %v5070_v53 = vadd.f32 %v5059_v32, %v4696_v3 }
 0x771   : > { %v5073_v50 = vadd.f32 %v5010_v48, %v7618_v27  ;;  %v4691_v27 = vadd.f32 %v7628_v45, %v7626_v37 }
 0x772   : > { %v5092_v8 = vmul.f32 %v5084_v7, %v5070_v53 }
 0x773   : > { %v5095_v60 = vmul.f32 %v5083_v33, %v5073_v50  ;;  %v4704_v38 = vadd.f32 %v4691_v27, %v7595_v21 }
 0x774   : > { %v5114_v24 = vadd.f32 %v5106_v39, %v5092_v8 }
 0x775   : > { %v5035_v14 = vpop.f32.mrf.mxu2  ;;  %v5061_v62 = vpop.f32.mrf.mxu3  ;;  %v5117_v26 = vadd.f32 %v5105_v61, %v5095_v60 }
 0x776   : > { %v5126_v41 = vmax.f32 %v5114_v24, 0.0  ;;  %v5062_v5 = vadd.f32 %v5061_v62, %v5035_v14  ;;  %v4986_v22 = vpop.f32.mrf.mxu0  ;;  %v5012_v52 = vpop.f32.mrf.mxu1 }
 0x777   : > { %v5013_v51 = vadd.f32 %v5012_v52, %v4986_v22  ;;  %v5129_v17 = vmax.f32 %v5117_v26, 0.0 }
 0x778   : > { %v5136_v46 = vpack.c.bf16 %v5126_v41, %v5125_v36  ;;  %v5074_v25 = vadd.f32 %v5062_v5, %v7620_v23 }
 0x779   : > { %v5077_v59 = vadd.f32 %v5013_v51, %v4703_v34 }
 0x77a   : > { %5138 = vst [vmem:[%s7645_s24 + $0x8] sm:$0xff] %v5136_v46  ;;  %v5096_v42 = vmul.f32 %v5084_v7, %v5074_v25 }
 0x77b   : > { %v5099_v4 = vmul.f32 %v5083_v33, %v5077_v59 }
 0x77c   : > { %v5118_v12 = vadd.f32 %v5106_v39, %v5096_v42 }
 0x77d   : > { %v5038_v16 = vpop.f32.mrf.mxu2  ;;  %v5064_v55 = vpop.f32.mrf.mxu3  ;;  %v5121_v23 = vadd.f32 %v5105_v61, %v5099_v4 }
 0x77e   : > { %v5130_v1 = vmax.f32 %v5118_v12, 0.0  ;;  %v5065_v0 = vadd.f32 %v5064_v55, %v5038_v16 }
 0x77f   : > { %v5133_v37 = vmax.f32 %v5121_v23, 0.0 }
 0x780   : > { %v5140_v18 = vpack.c.bf16 %v5130_v1, %v5129_v17  ;;  %v5078_v20 = vadd.f32 %v5065_v0, %v4704_v38 }
 0x782   : > { %v5100_v19 = vmul.f32 %v5084_v7, %v5078_v20  ;;  %v5597_v2 = vrot.slane %v5140_v18, 9 }
 0x784   : > { %v5122_v35 = vadd.f32 %v5106_v39, %v5100_v19 }
 0x786   : > { %v5134_v45 = vmax.f32 %v5122_v35, 0.0 }
 0x788   : > { %v5142_v43 = vpack.c.bf16 %v5134_v45, %v5133_v37 }
 0x78a   : > { %v5156_v11 = vrot.slane %v5142_v43, 5 }
 0x78c   : > { %v5157_v21 = vsel %vm7655_vm5, %v5597_v2, %v5156_v11 }
 0x78d   : > { %5161 = vst [vmem:[%s7645_s24 + $0x18] sm:$0xff] %v5157_v21 }
 0x78e PF: > { %s7758_s2 = sld [smem:[#allocation57_spill]] }
 0x794   : > { %s47_s29 = sadd.s32 1, %s7758_s2  }
 0x795   : > { %p44_p6 = scmp.ge.s32.totalorder %s47_s29, 4  }
 0x797   :  { %46 = sbr.rel (!%p44_p6) target bundleno = 25 (0x19), region = 275 }
 0x79c   :  { %5183 = vsyncpa [#allocation11], 1 }
 0x79d   :  { %5185 = vsyncpa [#allocation11 + $0x1], 1 }
 0x79e   :  { %5186 = vsyncpa [#allocation13], 1 }
 0x79f   :  { %5187 = vsyncpa [#allocation16], 1 }
 0x7a0   :  { %5188 = vsyncpa [#allocation19], 1 }
 0x7a1   :  { %5189 = vsyncpa [#allocation22], 1 }
 0x7a2   :  { %5190 = vsyncpa [#allocation25], 1 }
 0x7a3   :  { %5191 = vsyncpa [#allocation28], 1 }
 0x7a4   :  { %5192 = vsyncpa [#allocation31], 1 }
 0x7a5   :  { %5193 = vsyncpa [#allocation34], 1 }
 0x7a6   :  { %5194 = vsyncpa [#allocation37], 1 }
 0x7a7   :  { %5195 = vsyncpa [#allocation40], 1 }
 0x7a8   :  { %5196 = vsyncpa [#allocation43], 1 }

// kernel: network_forward.3
= control target key start
LH: loop header
LB: loop body
LE: loop exit
PB: predicated region body
PF: predicated region fallthrough
CT: control target
= control target key end

     0   :  { %s9171_s0 = inlined_call_operand.vmem [shape: bf16[2,8192], index: 0, kind: input, shape index: {}]   ;;  %s9172_s1 = inlined_call_operand.hbm [shape: bf16[8192,512], index: 1, kind: input, shape index: {}]   ;;  %s9173_s2 = inlined_call_operand.hbm [shape: f32[1,512], index: 2, kind: input, shape index: {}]   ;;  %s9174_s3 = inlined_call_operand.hbm [shape: f32[512,128], index: 3, kind: input, shape index: {}]   ;;  %s9175_s4 = inlined_call_operand.hbm [shape: f32[1,128], index: 4, kind: input, shape index: {}]   ;;  %s9176_s5 = inlined_call_operand.vmem [shape: f32[128,32], index: 5, kind: input, shape index: {}]   ;;  %s9177_s6 = inlined_call_operand.hbm [shape: f32[1,32], index: 6, kind: input, shape index: {}]   ;;  %s9178_s7 = inlined_call_operand.vmem [shape: f32[32,8], index: 7, kind: input, shape index: {}]   ;;  %s9179_s8 = inlined_call_operand.hbm [shape: f32[1,8], index: 8, kind: input, shape index: {}]   ;;  %s9180_s9 = inlined_call_operand.vmem [shape: f32[8,1], index: 9, kind: input, shape index: {}]   ;;  %s9181_s10 = inlined_call_operand.<no memory space> [shape: f32[1,1], index: 10, kind: input, shape index: {}]   ;;  %s9182_s11 = inlined_call_operand.vmem [shape: f32[2,1], index: 11, kind: output, shape index: {}]  }
   0x1   :  { %9183 = sst [smem:[#allocation18_spill]] %s9173_s2  ;;  %v16_v0 = vstv %s9181_s10 }
   0x2   :  { %9184 = sst [smem:[#allocation19_spill]] %s9174_s3  ;;  %17 = vst [vmem:[#allocation3] sm:$0x1] %v16_v0 }
   0x3   :  { %18 = vsyncpa [#allocation5], 0 }
   0x4   :  { %20 = vsyncpa [#allocation5 + $0x1], 0 }
   0x5   :  { %21 = vsyncpa [#allocation7], 0 }
   0x6   :  { %22 = vsyncpa [#allocation10], 0 }
   0x7   :  { %23 = vsyncpa [#allocation13], 0  ;;  %s7848_s19 = smov 0   ;;  %s7850_s20 = smov 0  }
   0x8   :  { %s7852_s21 = smov 0   ;;  %s7854_s22 = smov 0  }
   0x9 LB: > { %s9185_s2 = sld [smem:[#allocation18_spill]]  ;;  %s7872_s25 = sadd.s32 4294967295, %s7773_s22   ;;  %s7773_s22 = sphi %s7854_s22, %s9194_s22   ;;  %s7769_s21 = sphi %s7852_s21, %s9193_s21   ;;  %s7765_s20 = sphi %s7850_s20, %s9192_s20   ;;  %s7761_s19 = sphi %s7848_s19, %s9191_s19  }
   0xa   : > { %p4837_p0 = scmp.ge.s32.totalorder %s7773_s22, 1  ;;  %p76_p1 = scmp.eq.s32.totalorder %s7872_s25, 0 }
   0xb   : > { %p296_p2 = scmp.lt.s32.totalorder %s7773_s22, 5  ;;  %p4838_p3 = scmp.ne.s32.totalorder %s7872_s25, 0 }
   0xc   : > { %s7775_s27 = smov [#allocation6]   ;;  %s334_s12 = sshll.u32 %s9175_s4, 4  ;;  %s335_s12 = int_to_ptr.hbm [resolvable:$true] %s334_s12 }
   0xd   : > { %p7878_p4 = pnand %p4837_p0, %p296_p2  ;;  %s310_s28 = sshll.u32 %s7775_s27, 4  ;;  %s311_s28 = int_to_ptr.vmem [resolvable:$true] %s310_s28 }
   0xe   : > { %s7776_s14 = smov [#allocation9]   ;;  %s9188_s3 = sld [smem:[#allocation19_spill]] }
   0xf   : > { %s308_s24 = sshll.u32 %s9185_s2, 4  ;;  %p7446_p5 = pneg %p7878_p4  ;;  %s309_s24 = int_to_ptr.hbm [resolvable:$true] %s308_s24 }
  0x10   : > { %s336_s15 = sshll.u32 %s7776_s14, 4  ;;  %s7777_s10 = smov [#allocation8]   ;;  %s337_s15 = int_to_ptr.vmem [resolvable:$true] %s336_s15 }
  0x11   : > { %p7889_p6 = pnand %p7446_p5, %p76_p1  ;;  %s321_s23 = sshll.u32 %s7777_s10, 4  ;;  %s322_s23 = int_to_ptr.vmem [resolvable:$true] %s321_s23 }
  0x12   : > { %s349_s30 = sshll.u32 %s9177_s6, 4  ;;  %s7778_s14 = smov 128   ;;  %s350_s30 = int_to_ptr.hbm [resolvable:$true] %s349_s30 }
  0x13   : > { %7449 = dma.hbm_to_vmem [thread:$0]  (!%p7889_p6), %s309_s24, 64, %s311_s28, [#allocation7]  }
  0x14   : > { %s319_s18 = sshll.u32 %s9188_s3, 4  ;;  %s7779_s16 = smov 8   ;;  %s320_s18 = int_to_ptr.hbm [resolvable:$true] %s319_s18 }
  0x15   : > { %7455 = dma.hbm_to_vmem [thread:$0]  (!%p7889_p6), %s335_s12, 16, %s337_s15, [#allocation10]  }
  0x16   : > { %7452 = dma.hbm_to_vmem [thread:$0]  (!%p7889_p6), %s320_s18, 8192, %s322_s23, [#allocation7], %s7778_s14, %s7778_s14, %s7779_s16  }
  0x17   : > { %s7780_s24 = smov [#allocation11]   ;;  %s364_s17 = sshll.u32 %s9179_s8, 4  ;;  %s365_s17 = int_to_ptr.hbm [resolvable:$true] %s364_s17 }
  0x18   : > { %s351_s28 = sshll.u32 %s7780_s24, 4  ;;  %s7781_s18 = smov [#allocation12]   ;;  %s352_s28 = int_to_ptr.vmem [resolvable:$true] %s351_s28 }
  0x19   : > { %7458 = dma.hbm_to_vmem [thread:$0]  (!%p7889_p6), %s350_s30, 16, %s352_s28, [#allocation10]  }
  0x1a   : > { %s366_s10 = sshll.u32 %s7781_s18, 4  ;;  %s7913_s23 = sadd.s32 1, %s7773_s22   ;;  %s367_s10 = int_to_ptr.vmem [resolvable:$true] %s366_s10 }
  0x1b   : > { %7461 = dma.hbm_to_vmem [thread:$0]  (!%p7889_p6), %s365_s17, 16, %s367_s10, [#allocation13]  }
  0x1c   : > { %s59_s27 = ssub.s32 %s7773_s22, %s7913_s23  ;;  %s62_s29 = sadd.s32 1, %s7769_s21 }
  0x1d   : > { %p60_p7 = scmp.eq.s32.totalorder %s59_s27, 0  ;;  %p69_p8 = scmp.ne.s32.totalorder %s7769_s21, %s7765_s20 }
  0x1e   : > { %p70_p9 = scmp.eq.s32.totalorder %s7773_s22, 0  ;;  %p75_p10 = scmp.ne.s32.totalorder %s7765_s20, %s7761_s19 }
  0x1f   : > { %s7924_s14 = scalar_select %p60_p7, %s7769_s21, %s62_s29  }
  0x20   : > { %p71_p11 = por %p70_p9, %p69_p8  ;;  %p7928_p12 = por %p76_p1, %p75_p10 }
  0x21   : > { %p7471_p13 = scmp.lt.s32.totalorder %s7773_s22, 4  ;;  %s391_s13 = sand.u32 1, %s7769_s21  }
  0x22   : > { %s4844_s16 = sshll.u32 %s391_s13, 12  ;;  %s6911_s24 = sshll.u32 %s7773_s22, 12 }
  0x23   : > { %s401_s15 = scalar_lea.hbm %s9172_s1, %s6911_s24  ;;  %s395_s17 = scalar_lea.vmem [#allocation4], %s4844_s16 }
  0x24   : > { %s404_s18 = sshll.u32 %s395_s17, 4  ;;  %s402_s10 = sshll.u32 %s401_s15, 4  ;;  %s405_s18 = int_to_ptr.vmem [resolvable:$true] %s404_s18  ;;  %s403_s10 = int_to_ptr.hbm [resolvable:$true] %s402_s10 }
  0x25   : > { %p7938_p0 = pnand %p7471_p13, %p71_p11  ;;  %s392_s27 = scalar_lea.sflag [#allocation5], %s391_s13 }
  0x26   : > { %s7697_s29 = sshra.s32 %s403_s10, 4  ;;  %s7704_s24 = scalar_lea.hbm %s9172_s1, 16384  ;;  %s7698_s29 = int_to_ptr.hbm [resolvable:$true] %s7697_s29 }
  0x27   : > { %s7699_s2 = scalar_lea.hbm %s7698_s29, 4096  ;;  %p7701_p5 = pneg %p7938_p0 }
  0x28   : > { %p7700_p2 = scmp.ne.s32.totalorder %s7698_s29, %s7699_s2  ;;  %p7705_p8 = scmp.lt.s32.totalorder %s7698_s29, %s9172_s1 }
  0x29   : > { %p7706_p9 = scmp.lt.s32.totalorder %s7704_s24, %s7699_s2 }
  0x2a   : > { %p7702_p6 = pnand %p7701_p5, %p7700_p2 }
  0x2b   : > { %p7707_p10 = por %p7706_p9, %p7705_p8 }
  0x2c   : > { %p7703_p7 = pneg %p7702_p6 }
  0x2e   : > { %p7708_p11 = pnand %p7707_p10, %p7703_p7 }
  0x30   : > { %7711 = shalt.err (!%p7708_p11)
}
  0x31   : > { %s7782_s13 = smov 256   ;;  %s7783_s15 = smov 16  }
  0x32   : > { %7465 = dma.hbm_to_vmem [thread:$0]  (!%p7938_p0), %s403_s10, 65536, %s405_s18, %s392_s27, %s7782_s13, %s7782_s13, %s7783_s15  }
  0x33   : > { %416 = sbr.rel (%p7878_p4) target bundleno = 1303 (0x517), region = 64  ;;  %s418_s17 = sand.u32 (!%p7878_p4), 1, %s7765_s20  }
  0x34   : > { %s4849_s22 = sshll.u32 (!%p7878_p4), %s418_s17, 12  ;;  %s419_s16 = scalar_lea.sflag (!%p7878_p4), [#allocation5], %s418_s17 }
  0x35   : > { %s7955_s3 = scalar_lea.vmem (!%p7878_p4), [#allocation4], %s4849_s22 }
  0x38   : > { %7744 = dma.done.wait (%p7928_p12), %s419_s16, 65536  }
  0x39   : > { %7746 = vsyncadd (%p7928_p12), %s419_s16, 4294901760 }
  0x3a   : > { %7748 = dma.done.wait (%p76_p1), [#allocation7], 8256  }
  0x3b   : > { %7750 = vsyncadd (%p76_p1), [#allocation7], 4294959040 }
  0x3c   : > { %7752 = dma.done.wait (%p76_p1), [#allocation10], 32  }
  0x3d   : > { %7754 = vsyncadd (%p76_p1), [#allocation10], 4294967264 }
  0x3e   : > { %7756 = dma.done.wait (%p76_p1), [#allocation13], 16  }
  0x3f   : > { %7758 = vsyncadd (%p76_p1), [#allocation13], 4294967280  ;;  %s4855_s2 = sshll.u32 %s7872_s25, 4  ;;  %495 = sbr.rel (%p4838_p3) target bundleno = 70 (0x46), region = 92 }
  0x40   : > { %p487_p4 = scmp.lt.s32.totalorder %s4855_s2, 63 }
  0x42   : > { %s9196_s2 = smov (!%p487_p4, %s4855_s2), 63 }
  0x43   : > { %s7977_s18 = scalar_lea.vmem %s9171_s0, %s9196_s2 }
  0x44   : > { %v7784_v1 = vmov 0.0  }
  0x45   : > { %496 = vst [vmem:[#allocation2] sm:$0xff] %v7784_v1 }
  0x46 PF: > { %v4971_v2 = vld [vmem:[%s7955_s3 + $0xe0] sm:$0xf]  ;;  %v6942_v3 = vld [vmem:[%s7955_s3 + $0xec] sm:$0xf0]  ;;  %vm4447_vm0 = vcmask 1041408   ;;  %vm4449_vm1 = vcmask 1045508  }
  0x47   : > { %v5099_v4 = vld [vmem:[%s7955_s3 + $0x1e0] sm:$0xf]  ;;  %v4972_v5 = vor.u32 %v6942_v3, %v4971_v2  ;;  %v6974_v6 = vld [vmem:[%s7955_s3 + $0x1ec] sm:$0xf0]  ;;  %vm4451_vm2 = vcmask 1043456   ;;  %p6905_p1 = scmp.ne.s32.totalorder %s7872_s25, 3 }
  0x48   : > { %v5227_v7 = vld [vmem:[%s7955_s3 + $0x2e0] sm:$0xf]  ;;  %v7006_v8 = vld [vmem:[%s7955_s3 + $0x2ec] sm:$0xf0]  ;;  %v5100_v9 = vor.u32 %v6974_v6, %v5099_v4 }
  0x49   : > { %v5228_v10 = vor.u32 %v7006_v8, %v5227_v7  ;;  %v5355_v11 = vld [vmem:[%s7955_s3 + $0x3e0] sm:$0xf]  ;;  %v7038_v12 = vld [vmem:[%s7955_s3 + $0x3ec] sm:$0xf0]  ;;  %3608 = vmatpush.bf16.msra.mxu0 %v4972_v5 }
  0x4a   : > { %v4955_v13 = vld [vmem:[%s7955_s3 + $0xc0] sm:$0xf]  ;;  %v5356_v14 = vor.u32 %v7038_v12, %v5355_v11  ;;  %v6938_v15 = vld [vmem:[%s7955_s3 + $0xcc] sm:$0xf0]  ;;  %3621 = vmatpush.bf16.msra.mxu1 %v5100_v9 }
  0x4b   : > { %v5083_v16 = vld [vmem:[%s7955_s3 + $0x1c0] sm:$0xf]  ;;  %v6970_v17 = vld [vmem:[%s7955_s3 + $0x1cc] sm:$0xf0]  ;;  %3634 = vmatpush.bf16.msra.mxu2 %v5228_v10  ;;  %v4956_v18 = vor.u32 %v6938_v15, %v4955_v13 }
  0x4c   : > { %v5084_v19 = vor.u32 %v6970_v17, %v5083_v16  ;;  %v5211_v20 = vld [vmem:[%s7955_s3 + $0x2c0] sm:$0xf]  ;;  %v7002_v21 = vld [vmem:[%s7955_s3 + $0x2cc] sm:$0xf0]  ;;  %3647 = vmatpush.bf16.msra.mxu3 %v5356_v14 }
  0x4d   : > { %v5339_v22 = vld [vmem:[%s7955_s3 + $0x3c0] sm:$0xf]  ;;  %v5212_v23 = vor.u32 %v7002_v21, %v5211_v20  ;;  %v7034_v24 = vld [vmem:[%s7955_s3 + $0x3cc] sm:$0xf0]  ;;  %3609 = vmatpush.bf16.msra.mxu0 %v4956_v18 }
  0x4e   : > { %v4939_v25 = vld [vmem:[%s7955_s3 + $0xa0] sm:$0xf]  ;;  %v6934_v26 = vld [vmem:[%s7955_s3 + $0xac] sm:$0xf0]  ;;  %v5340_v27 = vor.u32 %v7034_v24, %v5339_v22  ;;  %3622 = vmatpush.bf16.msra.mxu1 %v5084_v19 }
  0x4f   : > { %v5067_v28 = vld [vmem:[%s7955_s3 + $0x1a0] sm:$0xf]  ;;  %v6966_v29 = vld [vmem:[%s7955_s3 + $0x1ac] sm:$0xf0]  ;;  %v4940_v31 = vor.u32 %v6934_v26, %v4939_v25  ;;  %3635 = vmatpush.bf16.msra.mxu2 %v5212_v23 }
  0x50   : > { %v5195_v30 = vld [vmem:[%s7955_s3 + $0x2a0] sm:$0xf]  ;;  %v6998_v32 = vld [vmem:[%s7955_s3 + $0x2ac] sm:$0xf0]  ;;  %v5068_v35 = vor.u32 %v6966_v29, %v5067_v28  ;;  %3648 = vmatpush.bf16.msra.mxu3 %v5340_v27 }
  0x51   : > { %v5323_v33 = vld [vmem:[%s7955_s3 + $0x3a0] sm:$0xf]  ;;  %v7030_v34 = vld [vmem:[%s7955_s3 + $0x3ac] sm:$0xf0]  ;;  %v5196_v36 = vor.u32 %v6998_v32, %v5195_v30  ;;  %3610 = vmatpush.bf16.msra.mxu0 %v4940_v31 }
  0x52   : > { %v4923_v37 = vld [vmem:[%s7955_s3 + $0x80] sm:$0xf]  ;;  %v6930_v38 = vld [vmem:[%s7955_s3 + $0x8c] sm:$0xf0]  ;;  %v5324_v40 = vor.u32 %v7030_v34, %v5323_v33  ;;  %3623 = vmatpush.bf16.msra.mxu1 %v5068_v35 }
  0x53   : > { %v5051_v39 = vld [vmem:[%s7955_s3 + $0x180] sm:$0xf]  ;;  %v6962_v41 = vld [vmem:[%s7955_s3 + $0x18c] sm:$0xf0]  ;;  %v4924_v46 = vor.u32 %v6930_v38, %v4923_v37  ;;  %3636 = vmatpush.bf16.msra.mxu2 %v5196_v36 }
  0x54   : > { %v5179_v42 = vld [vmem:[%s7955_s3 + $0x280] sm:$0xf]  ;;  %v6994_v43 = vld [vmem:[%s7955_s3 + $0x28c] sm:$0xf0]  ;;  %v5052_v47 = vor.u32 %v6962_v41, %v5051_v39  ;;  %3649 = vmatpush.bf16.msra.mxu3 %v5324_v40 }
  0x55   : > { %v5307_v44 = vld [vmem:[%s7955_s3 + $0x380] sm:$0xf]  ;;  %v7026_v45 = vld [vmem:[%s7955_s3 + $0x38c] sm:$0xf0]  ;;  %v5180_v48 = vor.u32 %v6994_v43, %v5179_v42  ;;  %3611 = vmatpush.bf16.msra.mxu0 %v4924_v46 }
  0x56   : > { %v4907_v49 = vld [vmem:[%s7955_s3 + $0x60] sm:$0xf]  ;;  %v6926_v50 = vld [vmem:[%s7955_s3 + $0x6c] sm:$0xf0]  ;;  %v5308_v52 = vor.u32 %v7026_v45, %v5307_v44  ;;  %3624 = vmatpush.bf16.msra.mxu1 %v5052_v47 }
  0x57   : > { %v5035_v51 = vld [vmem:[%s7955_s3 + $0x160] sm:$0xf]  ;;  %v6958_v53 = vld [vmem:[%s7955_s3 + $0x16c] sm:$0xf0]  ;;  %v4908_v58 = vor.u32 %v6926_v50, %v4907_v49  ;;  %3637 = vmatpush.bf16.msra.mxu2 %v5180_v48 }
  0x58   : > { %v5163_v54 = vld [vmem:[%s7955_s3 + $0x260] sm:$0xf]  ;;  %v6990_v55 = vld [vmem:[%s7955_s3 + $0x26c] sm:$0xf0]  ;;  %v5036_v59 = vor.u32 %v6958_v53, %v5035_v51  ;;  %3650 = vmatpush.bf16.msra.mxu3 %v5308_v52 }
  0x59   : > { %v5291_v56 = vld [vmem:[%s7955_s3 + $0x360] sm:$0xf]  ;;  %v7022_v57 = vld [vmem:[%s7955_s3 + $0x36c] sm:$0xf0]  ;;  %v5164_v60 = vor.u32 %v6990_v55, %v5163_v54  ;;  %3612 = vmatpush.bf16.msra.mxu0 %v4908_v58 }
  0x5a   : > { %v4891_v61 = vld [vmem:[%s7955_s3 + $0x40] sm:$0xf]  ;;  %v6922_v62 = vld [vmem:[%s7955_s3 + $0x4c] sm:$0xf0]  ;;  %v5292_v0 = vor.u32 %v7022_v57, %v5291_v56  ;;  %3625 = vmatpush.bf16.msra.mxu1 %v5036_v59 }
  0x5b   : > { %v5019_v63 = vld [vmem:[%s7955_s3 + $0x140] sm:$0xf]  ;;  %v6954_v1 = vld [vmem:[%s7955_s3 + $0x14c] sm:$0xf0]  ;;  %v4892_v6 = vor.u32 %v6922_v62, %v4891_v61  ;;  %3638 = vmatpush.bf16.msra.mxu2 %v5164_v60 }
  0x5c   : > { %v5147_v2 = vld [vmem:[%s7955_s3 + $0x240] sm:$0xf]  ;;  %v6986_v3 = vld [vmem:[%s7955_s3 + $0x24c] sm:$0xf0]  ;;  %v5020_v7 = vor.u32 %v6954_v1, %v5019_v63  ;;  %3651 = vmatpush.bf16.msra.mxu3 %v5292_v0 }
  0x5d   : > { %v5275_v4 = vld [vmem:[%s7955_s3 + $0x340] sm:$0xf]  ;;  %v7018_v5 = vld [vmem:[%s7955_s3 + $0x34c] sm:$0xf0]  ;;  %v5148_v8 = vor.u32 %v6986_v3, %v5147_v2  ;;  %3613 = vmatpush.bf16.msra.mxu0 %v4892_v6 }
  0x5e   : > { %v4875_v9 = vld [vmem:[%s7955_s3 + $0x20] sm:$0xf]  ;;  %v6918_v10 = vld [vmem:[%s7955_s3 + $0x2c] sm:$0xf0]  ;;  %v5276_v12 = vor.u32 %v7018_v5, %v5275_v4  ;;  %3626 = vmatpush.bf16.msra.mxu1 %v5020_v7 }
  0x5f   : > { %v5003_v11 = vld [vmem:[%s7955_s3 + $0x120] sm:$0xf]  ;;  %v6950_v13 = vld [vmem:[%s7955_s3 + $0x12c] sm:$0xf0]  ;;  %v4876_v18 = vor.u32 %v6918_v10, %v4875_v9  ;;  %3639 = vmatpush.bf16.msra.mxu2 %v5148_v8 }
  0x60   : > { %v5131_v14 = vld [vmem:[%s7955_s3 + $0x220] sm:$0xf]  ;;  %v6982_v15 = vld [vmem:[%s7955_s3 + $0x22c] sm:$0xf0]  ;;  %v5004_v21 = vor.u32 %v6950_v13, %v5003_v11  ;;  %3652 = vmatpush.bf16.msra.mxu3 %v5276_v12 }
  0x61   : > { %v5259_v16 = vld [vmem:[%s7955_s3 + $0x320] sm:$0xf]  ;;  %v7014_v17 = vld [vmem:[%s7955_s3 + $0x32c] sm:$0xf0]  ;;  %v5132_v22 = vor.u32 %v6982_v15, %v5131_v14  ;;  %3614 = vmatpush.bf16.msra.mxu0 %v4876_v18 }
  0x62   : > { %v4859_v19 = vld [vmem:[%s7955_s3] sm:$0xf]  ;;  %v6914_v20 = vld [vmem:[%s7955_s3 + $0xc] sm:$0xf0]  ;;  %v5260_v26 = vor.u32 %v7014_v17, %v5259_v16  ;;  %3627 = vmatpush.bf16.msra.mxu1 %v5004_v21 }
  0x63   : > { %v4987_v23 = vld [vmem:[%s7955_s3 + $0x100] sm:$0xf]  ;;  %v6946_v24 = vld [vmem:[%s7955_s3 + $0x10c] sm:$0xf0]  ;;  %v4860_v33 = vor.u32 %v6914_v20, %v4859_v19  ;;  %3640 = vmatpush.bf16.msra.mxu2 %v5132_v22 }
  0x64   : > { %v5115_v25 = vld [vmem:[%s7955_s3 + $0x200] sm:$0xf]  ;;  %v6978_v27 = vld [vmem:[%s7955_s3 + $0x20c] sm:$0xf0]  ;;  %v4988_v37 = vor.u32 %v6946_v24, %v4987_v23  ;;  %3653 = vmatpush.bf16.msra.mxu3 %v5260_v26 }
  0x65   : > { %v5243_v28 = vld [vmem:[%s7955_s3 + $0x300] sm:$0xf]  ;;  %v7010_v29 = vld [vmem:[%s7955_s3 + $0x30c] sm:$0xf0]  ;;  %v5116_v38 = vor.u32 %v6978_v27, %v5115_v25  ;;  %3615 = vmatpush.bf16.msra.mxu0 %v4860_v33 }
  0x66   : > { %v5483_v30 = vld [vmem:[%s7955_s3 + $0x4e0] sm:$0xf]  ;;  %v7070_v31 = vld [vmem:[%s7955_s3 + $0x4ec] sm:$0xf0]  ;;  %v5244_v41 = vor.u32 %v7010_v29, %v5243_v28  ;;  %3628 = vmatpush.bf16.msra.mxu1 %v4988_v37 }
  0x67   : > { %v5611_v32 = vld [vmem:[%s7955_s3 + $0x5e0] sm:$0xf]  ;;  %v7102_v34 = vld [vmem:[%s7955_s3 + $0x5ec] sm:$0xf0]  ;;  %v5484_v42 = vor.u32 %v7070_v31, %v5483_v30  ;;  %3641 = vmatpush.bf16.msra.mxu2 %v5116_v38 }
  0x68   : > { %v5739_v35 = vld [vmem:[%s7955_s3 + $0x6e0] sm:$0xf]  ;;  %v7134_v36 = vld [vmem:[%s7955_s3 + $0x6ec] sm:$0xf0]  ;;  %v5612_v43 = vor.u32 %v7102_v34, %v5611_v32  ;;  %3654 = vmatpush.bf16.msra.mxu3 %v5244_v41 }
  0x69   : > { %v5867_v39 = vld [vmem:[%s7955_s3 + $0x7e0] sm:$0xf]  ;;  %v7166_v40 = vld [vmem:[%s7955_s3 + $0x7ec] sm:$0xf0]  ;;  %v5740_v44 = vor.u32 %v7134_v36, %v5739_v35  ;;  %3660 = vmatpush.bf16.msrb.mxu0 %v5484_v42 }
  0x6a   : > { %v5467_v45 = vld [vmem:[%s7955_s3 + $0x4c0] sm:$0xf]  ;;  %v7066_v46 = vld [vmem:[%s7955_s3 + $0x4cc] sm:$0xf0]  ;;  %v5868_v48 = vor.u32 %v7166_v40, %v5867_v39  ;;  %3673 = vmatpush.bf16.msrb.mxu1 %v5612_v43 }
  0x6b   : > { %v5595_v47 = vld [vmem:[%s7955_s3 + $0x5c0] sm:$0xf]  ;;  %v7098_v49 = vld [vmem:[%s7955_s3 + $0x5cc] sm:$0xf0]  ;;  %v5468_v54 = vor.u32 %v7066_v46, %v5467_v45  ;;  %3686 = vmatpush.bf16.msrb.mxu2 %v5740_v44 }
  0x6c   : > { %v5723_v50 = vld [vmem:[%s7955_s3 + $0x6c0] sm:$0xf]  ;;  %v7130_v51 = vld [vmem:[%s7955_s3 + $0x6cc] sm:$0xf0]  ;;  %v5596_v57 = vor.u32 %v7098_v49, %v5595_v47  ;;  %3699 = vmatpush.bf16.msrb.mxu3 %v5868_v48 }
  0x6d   : > { %v5851_v52 = vld [vmem:[%s7955_s3 + $0x7c0] sm:$0xf]  ;;  %v7162_v53 = vld [vmem:[%s7955_s3 + $0x7cc] sm:$0xf0]  ;;  %v5724_v58 = vor.u32 %v7130_v51, %v5723_v50  ;;  %3661 = vmatpush.bf16.msrb.mxu0 %v5468_v54 }
  0x6e   : > { %v5451_v55 = vld [vmem:[%s7955_s3 + $0x4a0] sm:$0xf]  ;;  %v7062_v56 = vld [vmem:[%s7955_s3 + $0x4ac] sm:$0xf0]  ;;  %v5852_v62 = vor.u32 %v7162_v53, %v5851_v52  ;;  %3674 = vmatpush.bf16.msrb.mxu1 %v5596_v57 }
  0x6f   : > { %v5579_v59 = vld [vmem:[%s7955_s3 + $0x5a0] sm:$0xf]  ;;  %v7094_v60 = vld [vmem:[%s7955_s3 + $0x5ac] sm:$0xf0]  ;;  %v5452_v3 = vor.u32 %v7062_v56, %v5451_v55  ;;  %3687 = vmatpush.bf16.msrb.mxu2 %v5724_v58 }
  0x70   : > { %v498_v61 = vld [vmem:[%s7977_s18] sm:$0xff]  ;;  %v5707_v63 = vld [vmem:[%s7955_s3 + $0x6a0] sm:$0xf]  ;;  %v5580_v4 = vor.u32 %v7094_v60, %v5579_v59  ;;  %3700 = vmatpush.bf16.msrb.mxu3 %v5852_v62 }
  0x71   : > { %v7126_v0 = vld [vmem:[%s7955_s3 + $0x6ac] sm:$0xf0]  ;;  %1013 = vst [vmem:[#allocation1] ss:$9 sm:$0xff] %v498_v61  ;;  %v5835_v1 = vld [vmem:[%s7955_s3 + $0x7a0] sm:$0xf]  ;;  %3662 = vmatpush.bf16.msrb.mxu0 %v5452_v3 }
  0x72   : > { %v7158_v2 = vld [vmem:[%s7955_s3 + $0x7ac] sm:$0xf0]  ;;  %v5708_v5 = vor.u32 %v7126_v0, %v5707_v63  ;;  %v5435_v6 = vld [vmem:[%s7955_s3 + $0x480] sm:$0xf]  ;;  %3675 = vmatpush.bf16.msrb.mxu1 %v5580_v4  ;;  %v499_v63 = vld [vmem:[%s7977_s18 + $0x8] sm:$0xff] }
  0x73   : > { %v7058_v7 = vld [vmem:[%s7955_s3 + $0x48c] sm:$0xf0]  ;;  %v5563_v8 = vld [vmem:[%s7955_s3 + $0x580] sm:$0xf]  ;;  %v5836_v9 = vor.u32 %v7158_v2, %v5835_v1 }
  0x74   : > { %v7090_v10 = vld [vmem:[%s7955_s3 + $0x58c] sm:$0xf0]  ;;  %v5691_v11 = vld [vmem:[%s7955_s3 + $0x680] sm:$0xf]  ;;  %v5436_v16 = vor.u32 %v7058_v7, %v5435_v6  ;;  %3688 = vmatpush.bf16.msrb.mxu2 %v5708_v5 }
  0x75   : > { %v7122_v12 = vld [vmem:[%s7955_s3 + $0x68c] sm:$0xf0]  ;;  %v5819_v13 = vld [vmem:[%s7955_s3 + $0x780] sm:$0xf]  ;;  %v5564_v20 = vor.u32 %v7090_v10, %v5563_v8  ;;  %3701 = vmatpush.bf16.msrb.mxu3 %v5836_v9 }
  0x76   : > { %v7154_v14 = vld [vmem:[%s7955_s3 + $0x78c] sm:$0xf0]  ;;  %v5419_v15 = vld [vmem:[%s7955_s3 + $0x460] sm:$0xf]  ;;  %v5692_v21 = vor.u32 %v7122_v12, %v5691_v11  ;;  %3663 = vmatpush.bf16.msrb.mxu0 %v5436_v16 }
  0x77   : > { %v7054_v17 = vld [vmem:[%s7955_s3 + $0x46c] sm:$0xf0]  ;;  %v5547_v18 = vld [vmem:[%s7955_s3 + $0x560] sm:$0xf]  ;;  %v5820_v25 = vor.u32 %v7154_v14, %v5819_v13  ;;  %3676 = vmatpush.bf16.msrb.mxu1 %v5564_v20 }
  0x78   : > { %v7086_v19 = vld [vmem:[%s7955_s3 + $0x56c] sm:$0xf0]  ;;  %v8082_v22 = vld [vmem:[#allocation1 + $0x12] sm:$0xff]  ;;  %v8091_v28 = vld [vmem:[#allocation1 + $0x9] sm:$0xff]  ;;  %v5420_v31 = vor.u32 %v7054_v17, %v5419_v15  ;;  %3689 = vmatpush.bf16.msrb.mxu2 %v5692_v21 }
  0x79   : > { %v8084_v23 = vld [vmem:[#allocation1] sm:$0xff]  ;;  %v5675_v26 = vld [vmem:[%s7955_s3 + $0x660] sm:$0xf]  ;;  %3642 = vmatmul.bf16.vlgmr.msra.gmra.mxu2 %v8082_v22  ;;  %3629 = vmatmul.bf16.vlgmr.msra.gmra.mxu1 %v8091_v28  ;;  %v5548_v32 = vor.u32 %v7086_v19, %v5547_v18  ;;  %v8120_v62 = vld [vmem:[#allocation1 + $0x36] sm:$0xff] }
  0x7a   : > { %v8086_v24 = vld [vmem:[#allocation1 + $0x1b] sm:$0xff]  ;;  %v5803_v29 = vld [vmem:[%s7955_s3 + $0x760] sm:$0xf]  ;;  %3616 = vmatmul.bf16.vlgmr.msra.gmra.mxu0 %v8084_v23  ;;  %3702 = vmatpush.bf16.msrb.mxu3 %v5820_v25  ;;  %v8123_v2 = vld [vmem:[#allocation1 + $0x24] sm:$0xff] }
  0x7b   : > { %v7118_v27 = vld [vmem:[%s7955_s3 + $0x66c] sm:$0xf0]  ;;  %3655 = vmatmul.bf16.vlgmr.msra.gmra.mxu3 %v8086_v24  ;;  %v5403_v34 = vld [vmem:[%s7955_s3 + $0x440] sm:$0xf]  ;;  %3664 = vmatpush.bf16.msrb.mxu0 %v5420_v31 }
  0x7c   : > { %v7150_v30 = vld [vmem:[%s7955_s3 + $0x76c] sm:$0xf0]  ;;  %v5676_v33 = vor.u32 %v7118_v27, %v5675_v26  ;;  %v5531_v36 = vld [vmem:[%s7955_s3 + $0x540] sm:$0xf]  ;;  %3677 = vmatpush.bf16.msrb.mxu1 %v5548_v32 }
  0x7d   : > { %v7050_v35 = vld [vmem:[%s7955_s3 + $0x44c] sm:$0xf0]  ;;  %v5804_v37 = vor.u32 %v7150_v30, %v5803_v29  ;;  %v5659_v39 = vld [vmem:[%s7955_s3 + $0x640] sm:$0xf] }
  0x7e   : > { %v7082_v38 = vld [vmem:[%s7955_s3 + $0x54c] sm:$0xf0]  ;;  %v5787_v41 = vld [vmem:[%s7955_s3 + $0x740] sm:$0xf]  ;;  %v5404_v43 = vor.u32 %v7050_v35, %v5403_v34  ;;  %3690 = vmatpush.bf16.msrb.mxu2 %v5676_v33 }
  0x7f   : > { %v7114_v40 = vld [vmem:[%s7955_s3 + $0x64c] sm:$0xf0]  ;;  %v5387_v44 = vld [vmem:[%s7955_s3 + $0x420] sm:$0xf]  ;;  %v5532_v45 = vor.u32 %v7082_v38, %v5531_v36  ;;  %3703 = vmatpush.bf16.msrb.mxu3 %v5804_v37 }
  0x80   : > { %v7146_v42 = vld [vmem:[%s7955_s3 + $0x74c] sm:$0xf0]  ;;  %v5660_v46 = vor.u32 %v7114_v40, %v5659_v39  ;;  %v5515_v48 = vld [vmem:[%s7955_s3 + $0x520] sm:$0xf]  ;;  %3665 = vmatpush.bf16.msrb.mxu0 %v5404_v43 }
  0x81   : > { %v7046_v47 = vld [vmem:[%s7955_s3 + $0x42c] sm:$0xf0]  ;;  %v5788_v50 = vor.u32 %v7146_v42, %v5787_v41  ;;  %v5643_v51 = vld [vmem:[%s7955_s3 + $0x620] sm:$0xf]  ;;  %3678 = vmatpush.bf16.msrb.mxu1 %v5532_v45 }
  0x82   : > { %v7078_v49 = vld [vmem:[%s7955_s3 + $0x52c] sm:$0xf0]  ;;  %v5771_v53 = vld [vmem:[%s7955_s3 + $0x720] sm:$0xf]  ;;  %v5388_v57 = vor.u32 %v7046_v47, %v5387_v44  ;;  %3691 = vmatpush.bf16.msrb.mxu2 %v5660_v46 }
  0x83   : > { %v7110_v52 = vld [vmem:[%s7955_s3 + $0x62c] sm:$0xf0]  ;;  %v5371_v55 = vld [vmem:[%s7955_s3 + $0x400] sm:$0xf]  ;;  %v5516_v0 = vor.u32 %v7078_v49, %v5515_v48  ;;  %3704 = vmatpush.bf16.msrb.mxu3 %v5788_v50 }
  0x84   : > { %v7142_v54 = vld [vmem:[%s7955_s3 + $0x72c] sm:$0xf0]  ;;  %v5499_v58 = vld [vmem:[%s7955_s3 + $0x500] sm:$0xf]  ;;  %v5644_v1 = vor.u32 %v7110_v52, %v5643_v51  ;;  %3666 = vmatpush.bf16.msrb.mxu0 %v5388_v57 }
  0x85   : > { %v7042_v56 = vld [vmem:[%s7955_s3 + $0x40c] sm:$0xf0]  ;;  %v5627_v60 = vld [vmem:[%s7955_s3 + $0x600] sm:$0xf]  ;;  %v5772_v5 = vor.u32 %v7142_v54, %v5771_v53  ;;  %3679 = vmatpush.bf16.msrb.mxu1 %v5516_v0 }
  0x86   : > { %v7074_v59 = vld [vmem:[%s7955_s3 + $0x50c] sm:$0xf0]  ;;  %v8127_v4 = vld [vmem:[#allocation1 + $0x2d] sm:$0xff]  ;;  %v5372_v11 = vor.u32 %v7042_v56, %v5371_v55  ;;  %3692 = vmatpush.bf16.msrb.mxu2 %v5644_v1 }
  0x87   : > { %v7106_v61 = vld [vmem:[%s7955_s3 + $0x60c] sm:$0xf0]  ;;  %v5755_v6 = vld [vmem:[%s7955_s3 + $0x700] sm:$0xf]  ;;  %v5500_v15 = vor.u32 %v7074_v59, %v5499_v58  ;;  %3705 = vmatpush.bf16.msrb.mxu3 %v5772_v5 }
  0x88   : > { %v8125_v3 = vld [vmem:[#allocation1 + $0x3f] sm:$0xff]  ;;  %v5995_v8 = vld [vmem:[%s7955_s3 + $0x8e0] sm:$0xf]  ;;  %v5628_v16 = vor.u32 %v7106_v61, %v5627_v60  ;;  %3667 = vmatpush.bf16.msrb.mxu0 %v5372_v11 }
  0x89   : > { %v7138_v7 = vld [vmem:[%s7955_s3 + $0x70c] sm:$0xf0]  ;;  %1023 = vst [vmem:[#allocation1] ss:$9 sm:$0xff] %v499_v63  ;;  %v6123_v10 = vld [vmem:[%s7955_s3 + $0x9e0] sm:$0xf]  ;;  %3680 = vmatpush.bf16.msrb.mxu1 %v5500_v15 }
  0x8a   : > { %v7198_v9 = vld [vmem:[%s7955_s3 + $0x8ec] sm:$0xf0]  ;;  %v6251_v13 = vld [vmem:[%s7955_s3 + $0xae0] sm:$0xf]  ;;  %v5756_v19 = vor.u32 %v7138_v7, %v5755_v6  ;;  %3693 = vmatpush.bf16.msrb.mxu2 %v5628_v16 }
  0x8b   : > { %v7230_v12 = vld [vmem:[%s7955_s3 + $0x9ec] sm:$0xf0]  ;;  %v6379_v17 = vld [vmem:[%s7955_s3 + $0xbe0] sm:$0xf]  ;;  %v5996_v20 = vor.u32 %v7198_v9, %v5995_v8  ;;  %3668 = vmatmul.bf16.vlgmr.msrb.gmra.mxu0 %v8123_v2 }
  0x8c   : > { %v7262_v14 = vld [vmem:[%s7955_s3 + $0xaec] sm:$0xf0]  ;;  %v6124_v21 = vor.u32 %v7230_v12, %v6123_v10  ;;  %v5979_v26 = vld [vmem:[%s7955_s3 + $0x8c0] sm:$0xf]  ;;  %3706 = vmatpush.bf16.msrb.mxu3 %v5756_v19  ;;  %3681 = vmatmul.bf16.vlgmr.msrb.gmra.mxu1 %v8127_v4 }
  0x8d   : > { %v7294_v18 = vld [vmem:[%s7955_s3 + $0xbec] sm:$0xf0]  ;;  %v6252_v25 = vor.u32 %v7262_v14, %v6251_v13  ;;  %v6107_v29 = vld [vmem:[%s7955_s3 + $0x9c0] sm:$0xf]  ;;  %3712 = vmatpush.bf16.msra.mxu0 %v5996_v20  ;;  %3694 = vmatmul.bf16.vlgmr.msrb.gmra.mxu2 %v8120_v62 }
  0x8e   : > { %v7194_v27 = vld [vmem:[%s7955_s3 + $0x8cc] sm:$0xf0]  ;;  %v6380_v30 = vor.u32 %v7294_v18, %v6379_v17  ;;  %v6235_v32 = vld [vmem:[%s7955_s3 + $0xac0] sm:$0xf]  ;;  %3725 = vmatpush.bf16.msra.mxu1 %v6124_v21 }
  0x8f   : > { %v7226_v31 = vld [vmem:[%s7955_s3 + $0x9cc] sm:$0xf0]  ;;  %v6363_v34 = vld [vmem:[%s7955_s3 + $0xbc0] sm:$0xf]  ;;  %v5980_v36 = vor.u32 %v7194_v27, %v5979_v26  ;;  %3738 = vmatpush.bf16.msra.mxu2 %v6252_v25  ;;  %3707 = vmatmul.bf16.vlgmr.msrb.gmra.mxu3 %v8125_v3 }
  0x90   : > { %v7258_v33 = vld [vmem:[%s7955_s3 + $0xacc] sm:$0xf0]  ;;  %v6108_v37 = vor.u32 %v7226_v31, %v6107_v29  ;;  %v5963_v39 = vld [vmem:[%s7955_s3 + $0x8a0] sm:$0xf]  ;;  %3751 = vmatpush.bf16.msra.mxu3 %v6380_v30 }
  0x91   : > { %v7290_v35 = vld [vmem:[%s7955_s3 + $0xbcc] sm:$0xf0]  ;;  %v6236_v38 = vor.u32 %v7258_v33, %v6235_v32  ;;  %v6091_v41 = vld [vmem:[%s7955_s3 + $0x9a0] sm:$0xf]  ;;  %3713 = vmatpush.bf16.msra.mxu0 %v5980_v36 }
  0x92   : > { %v7190_v40 = vld [vmem:[%s7955_s3 + $0x8ac] sm:$0xf0]  ;;  %v6364_v42 = vor.u32 %v7290_v35, %v6363_v34  ;;  %v6219_v44 = vld [vmem:[%s7955_s3 + $0xaa0] sm:$0xf]  ;;  %3726 = vmatpush.bf16.msra.mxu1 %v6108_v37 }
  0x93   : > { %v7222_v43 = vld [vmem:[%s7955_s3 + $0x9ac] sm:$0xf0]  ;;  %v6347_v46 = vld [vmem:[%s7955_s3 + $0xba0] sm:$0xf]  ;;  %v5964_v48 = vor.u32 %v7190_v40, %v5963_v39  ;;  %3739 = vmatpush.bf16.msra.mxu2 %v6236_v38 }
  0x94   : > { %v7254_v45 = vld [vmem:[%s7955_s3 + $0xaac] sm:$0xf0]  ;;  %v6092_v49 = vor.u32 %v7222_v43, %v6091_v41  ;;  %v5947_v51 = vld [vmem:[%s7955_s3 + $0x880] sm:$0xf]  ;;  %3752 = vmatpush.bf16.msra.mxu3 %v6364_v42 }
  0x95   : > { %v7286_v47 = vld [vmem:[%s7955_s3 + $0xbac] sm:$0xf0]  ;;  %v6220_v50 = vor.u32 %v7254_v45, %v6219_v44  ;;  %v6075_v53 = vld [vmem:[%s7955_s3 + $0x980] sm:$0xf]  ;;  %3714 = vmatpush.bf16.msra.mxu0 %v5964_v48 }
  0x96   : > { %v7186_v52 = vld [vmem:[%s7955_s3 + $0x88c] sm:$0xf0]  ;;  %v6348_v54 = vor.u32 %v7286_v47, %v6347_v46  ;;  %v6203_v56 = vld [vmem:[%s7955_s3 + $0xa80] sm:$0xf]  ;;  %3727 = vmatpush.bf16.msra.mxu1 %v6092_v49 }
  0x97   : > { %v7218_v55 = vld [vmem:[%s7955_s3 + $0x98c] sm:$0xf0]  ;;  %v6331_v58 = vld [vmem:[%s7955_s3 + $0xb80] sm:$0xf]  ;;  %v5948_v60 = vor.u32 %v7186_v52, %v5947_v51  ;;  %3740 = vmatpush.bf16.msra.mxu2 %v6220_v50 }
  0x98   : > { %v7250_v57 = vld [vmem:[%s7955_s3 + $0xa8c] sm:$0xf0]  ;;  %v6076_v61 = vor.u32 %v7218_v55, %v6075_v53  ;;  %v5931_v0 = vld [vmem:[%s7955_s3 + $0x860] sm:$0xf]  ;;  %3753 = vmatpush.bf16.msra.mxu3 %v6348_v54 }
  0x99   : > { %v7282_v59 = vld [vmem:[%s7955_s3 + $0xb8c] sm:$0xf0]  ;;  %v6204_v63 = vor.u32 %v7250_v57, %v6203_v56  ;;  %v6059_v5 = vld [vmem:[%s7955_s3 + $0x960] sm:$0xf]  ;;  %3715 = vmatpush.bf16.msra.mxu0 %v5948_v60 }
  0x9a   : > { %v7182_v1 = vld [vmem:[%s7955_s3 + $0x86c] sm:$0xf0]  ;;  %v6332_v6 = vor.u32 %v7282_v59, %v6331_v58  ;;  %v6187_v8 = vld [vmem:[%s7955_s3 + $0xa60] sm:$0xf]  ;;  %3728 = vmatpush.bf16.msra.mxu1 %v6076_v61 }
  0x9b   : > { %v7214_v7 = vld [vmem:[%s7955_s3 + $0x96c] sm:$0xf0]  ;;  %v6315_v10 = vld [vmem:[%s7955_s3 + $0xb60] sm:$0xf]  ;;  %v5932_v12 = vor.u32 %v7182_v1, %v5931_v0  ;;  %3741 = vmatpush.bf16.msra.mxu2 %v6204_v63 }
  0x9c   : > { %v7246_v9 = vld [vmem:[%s7955_s3 + $0xa6c] sm:$0xf0]  ;;  %v6060_v13 = vor.u32 %v7214_v7, %v6059_v5  ;;  %v5915_v15 = vld [vmem:[%s7955_s3 + $0x840] sm:$0xf]  ;;  %3754 = vmatpush.bf16.msra.mxu3 %v6332_v6 }
  0x9d   : > { %v7278_v11 = vld [vmem:[%s7955_s3 + $0xb6c] sm:$0xf0]  ;;  %v6188_v14 = vor.u32 %v7246_v9, %v6187_v8  ;;  %v6043_v17 = vld [vmem:[%s7955_s3 + $0x940] sm:$0xf]  ;;  %3716 = vmatpush.bf16.msra.mxu0 %v5932_v12 }
  0x9e   : > { %v7178_v16 = vld [vmem:[%s7955_s3 + $0x84c] sm:$0xf0]  ;;  %v6316_v18 = vor.u32 %v7278_v11, %v6315_v10  ;;  %v6171_v20 = vld [vmem:[%s7955_s3 + $0xa40] sm:$0xf]  ;;  %3729 = vmatpush.bf16.msra.mxu1 %v6060_v13 }
  0x9f   : > { %v7210_v19 = vld [vmem:[%s7955_s3 + $0x94c] sm:$0xf0]  ;;  %v6299_v25 = vld [vmem:[%s7955_s3 + $0xb40] sm:$0xf]  ;;  %v5916_v27 = vor.u32 %v7178_v16, %v5915_v15  ;;  %3742 = vmatpush.bf16.msra.mxu2 %v6188_v14 }
  0xa0   : > { %v7242_v21 = vld [vmem:[%s7955_s3 + $0xa4c] sm:$0xf0]  ;;  %v6044_v29 = vor.u32 %v7210_v19, %v6043_v17  ;;  %v5899_v31 = vld [vmem:[%s7955_s3 + $0x820] sm:$0xf]  ;;  %3755 = vmatpush.bf16.msra.mxu3 %v6316_v18  ;;  %v1025_v18 = vld [vmem:[#allocation1 + $0x9] sm:$0xff] }
  0xa1   : > { %v7274_v26 = vld [vmem:[%s7955_s3 + $0xb4c] sm:$0xf0]  ;;  %v6172_v30 = vor.u32 %v7242_v21, %v6171_v20  ;;  %v6027_v33 = vld [vmem:[%s7955_s3 + $0x920] sm:$0xf]  ;;  %3717 = vmatpush.bf16.msra.mxu0 %v5916_v27 }
  0xa2   : > { %v7174_v32 = vld [vmem:[%s7955_s3 + $0x82c] sm:$0xf0]  ;;  %v6300_v34 = vor.u32 %v7274_v26, %v6299_v25  ;;  %v6155_v36 = vld [vmem:[%s7955_s3 + $0xa20] sm:$0xf]  ;;  %3730 = vmatpush.bf16.msra.mxu1 %v6044_v29 }
  0xa3   : > { %v7206_v35 = vld [vmem:[%s7955_s3 + $0x92c] sm:$0xf0]  ;;  %v6283_v38 = vld [vmem:[%s7955_s3 + $0xb20] sm:$0xf]  ;;  %v5900_v40 = vor.u32 %v7174_v32, %v5899_v31  ;;  %3743 = vmatpush.bf16.msra.mxu2 %v6172_v30 }
  0xa4   : > { %v7238_v37 = vld [vmem:[%s7955_s3 + $0xa2c] sm:$0xf0]  ;;  %v5883_v41 = vld [vmem:[%s7955_s3 + $0x800] sm:$0xf]  ;;  %v6028_v43 = vor.u32 %v7206_v35, %v6027_v33  ;;  %3756 = vmatpush.bf16.msra.mxu3 %v6300_v34 }
  0xa5   : > { %v7270_v39 = vld [vmem:[%s7955_s3 + $0xb2c] sm:$0xf0]  ;;  %v6156_v44 = vor.u32 %v7238_v37, %v6155_v36  ;;  %v6011_v45 = vld [vmem:[%s7955_s3 + $0x900] sm:$0xf]  ;;  %3718 = vmatpush.bf16.msra.mxu0 %v5900_v40 }
  0xa6   : > { %v7170_v42 = vld [vmem:[%s7955_s3 + $0x80c] sm:$0xf0]  ;;  %v6139_v47 = vld [vmem:[%s7955_s3 + $0xa00] sm:$0xf]  ;;  %v6284_v48 = vor.u32 %v7270_v39, %v6283_v38  ;;  %3731 = vmatpush.bf16.msra.mxu1 %v6028_v43 }
  0xa7   : > { %v7202_v46 = vld [vmem:[%s7955_s3 + $0x90c] sm:$0xf0]  ;;  %v6267_v50 = vld [vmem:[%s7955_s3 + $0xb00] sm:$0xf]  ;;  %v5884_v55 = vor.u32 %v7170_v42, %v5883_v41  ;;  %3744 = vmatpush.bf16.msra.mxu2 %v6156_v44 }
  0xa8   : > { %v7234_v49 = vld [vmem:[%s7955_s3 + $0xa0c] sm:$0xf0]  ;;  %v6507_v52 = vld [vmem:[%s7955_s3 + $0xce0] sm:$0xf]  ;;  %v6012_v59 = vor.u32 %v7202_v46, %v6011_v45  ;;  %3757 = vmatpush.bf16.msra.mxu3 %v6284_v48 }
  0xa9   : > { %v7266_v51 = vld [vmem:[%s7955_s3 + $0xb0c] sm:$0xf0]  ;;  %v6635_v54 = vld [vmem:[%s7955_s3 + $0xde0] sm:$0xf]  ;;  %v6140_v60 = vor.u32 %v7234_v49, %v6139_v47  ;;  %3719 = vmatpush.bf16.msra.mxu0 %v5884_v55 }
  0xaa   : > { %v7326_v53 = vld [vmem:[%s7955_s3 + $0xcec] sm:$0xf0]  ;;  %v6763_v57 = vld [vmem:[%s7955_s3 + $0xee0] sm:$0xf]  ;;  %v6268_v0 = vor.u32 %v7266_v51, %v6267_v50  ;;  %3732 = vmatpush.bf16.msra.mxu1 %v6012_v59 }
  0xab   : > { %v7358_v56 = vld [vmem:[%s7955_s3 + $0xdec] sm:$0xf0]  ;;  %v6891_v61 = vld [vmem:[%s7955_s3 + $0xfe0] sm:$0xf]  ;;  %v6508_v1 = vor.u32 %v7326_v53, %v6507_v52  ;;  %3745 = vmatpush.bf16.msra.mxu2 %v6140_v60 }
  0xac   : > { %v7390_v58 = vld [vmem:[%s7955_s3 + $0xeec] sm:$0xf0]  ;;  %v6636_v5 = vor.u32 %v7358_v56, %v6635_v54  ;;  %v6491_v7 = vld [vmem:[%s7955_s3 + $0xcc0] sm:$0xf]  ;;  %3758 = vmatpush.bf16.msra.mxu3 %v6268_v0 }
  0xad   : > { %v7422_v63 = vld [vmem:[%s7955_s3 + $0xfec] sm:$0xf0]  ;;  %v6764_v6 = vor.u32 %v7390_v58, %v6763_v57  ;;  %v6619_v9 = vld [vmem:[%s7955_s3 + $0xdc0] sm:$0xf]  ;;  %3764 = vmatpush.bf16.msrb.mxu0 %v6508_v1  ;;  %3733 = vmatmul.bf16.vlgmr.msra.gmra.mxu1 %v1025_v18 }
  0xae   : > { %v7322_v8 = vld [vmem:[%s7955_s3 + $0xccc] sm:$0xf0]  ;;  %v6892_v10 = vor.u32 %v7422_v63, %v6891_v61  ;;  %v6747_v12 = vld [vmem:[%s7955_s3 + $0xec0] sm:$0xf]  ;;  %3777 = vmatpush.bf16.msrb.mxu1 %v6636_v5 }
  0xaf   : > { %v7354_v11 = vld [vmem:[%s7955_s3 + $0xdcc] sm:$0xf0]  ;;  %v6875_v15 = vld [vmem:[%s7955_s3 + $0xfc0] sm:$0xf]  ;;  %v6492_v20 = vor.u32 %v7322_v8, %v6491_v7  ;;  %3790 = vmatpush.bf16.msrb.mxu2 %v6764_v6 }
  0xb0   : > { %v7386_v13 = vld [vmem:[%s7955_s3 + $0xecc] sm:$0xf0]  ;;  %v1026_v17 = vld [vmem:[#allocation1 + $0x12] sm:$0xff]  ;;  %v6620_v21 = vor.u32 %v7354_v11, %v6619_v9  ;;  %3803 = vmatpush.bf16.msrb.mxu3 %v6892_v10 }
  0xb1   : > { %v1024_v14 = vld [vmem:[#allocation1] sm:$0xff]  ;;  %v6748_v25 = vor.u32 %v7386_v13, %v6747_v12  ;;  %v6475_v26 = vld [vmem:[%s7955_s3 + $0xca0] sm:$0xf]  ;;  %3746 = vmatmul.bf16.vlgmr.msra.gmra.mxu2 %v1026_v17  ;;  %3765 = vmatpush.bf16.msrb.mxu0 %v6492_v20 }
  0xb2   : > { %v7418_v16 = vld [vmem:[%s7955_s3 + $0xfcc] sm:$0xf0]  ;;  %v6603_v29 = vld [vmem:[%s7955_s3 + $0xda0] sm:$0xf]  ;;  %3720 = vmatmul.bf16.vlgmr.msra.gmra.mxu0 %v1024_v14  ;;  %3778 = vmatpush.bf16.msrb.mxu1 %v6620_v21 }
  0xb3   : > { %v1027_v19 = vld [vmem:[#allocation1 + $0x1b] sm:$0xff]  ;;  %v6876_v30 = vor.u32 %v7418_v16, %v6875_v15  ;;  %v6731_v32 = vld [vmem:[%s7955_s3 + $0xea0] sm:$0xf]  ;;  %3791 = vmatpush.bf16.msrb.mxu2 %v6748_v25 }
  0xb4   : > { %v7318_v27 = vld [vmem:[%s7955_s3 + $0xcac] sm:$0xf0]  ;;  %v6859_v34 = vld [vmem:[%s7955_s3 + $0xfa0] sm:$0xf]  ;;  %3759 = vmatmul.bf16.vlgmr.msra.gmra.mxu3 %v1027_v19 }
  0xb5   : > { %v7350_v31 = vld [vmem:[%s7955_s3 + $0xdac] sm:$0xf0]  ;;  %v6476_v36 = vor.u32 %v7318_v27, %v6475_v26  ;;  %v6459_v39 = vld [vmem:[%s7955_s3 + $0xc80] sm:$0xf]  ;;  %3804 = vmatpush.bf16.msrb.mxu3 %v6876_v30 }
  0xb6   : > { %v7382_v33 = vld [vmem:[%s7955_s3 + $0xeac] sm:$0xf0]  ;;  %v6604_v37 = vor.u32 %v7350_v31, %v6603_v29  ;;  %v6587_v41 = vld [vmem:[%s7955_s3 + $0xd80] sm:$0xf] }
  0xb7   : > { %v7414_v35 = vld [vmem:[%s7955_s3 + $0xfac] sm:$0xf0]  ;;  %v6732_v38 = vor.u32 %v7382_v33, %v6731_v32  ;;  %v6715_v44 = vld [vmem:[%s7955_s3 + $0xe80] sm:$0xf]  ;;  %3766 = vmatpush.bf16.msrb.mxu0 %v6476_v36 }
  0xb8   : > { %v7314_v40 = vld [vmem:[%s7955_s3 + $0xc8c] sm:$0xf0]  ;;  %v6860_v42 = vor.u32 %v7414_v35, %v6859_v34  ;;  %v6843_v46 = vld [vmem:[%s7955_s3 + $0xf80] sm:$0xf]  ;;  %3779 = vmatpush.bf16.msrb.mxu1 %v6604_v37 }
  0xb9   : > { %v7346_v43 = vld [vmem:[%s7955_s3 + $0xd8c] sm:$0xf0]  ;;  %v6460_v48 = vor.u32 %v7314_v40, %v6459_v39  ;;  %3792 = vmatpush.bf16.msrb.mxu2 %v6732_v38  ;;  %v6443_v51 = vld [vmem:[%s7955_s3 + $0xc60] sm:$0xf]  ;;  %v6940_v40 = vld [vmem:[%s7955_s3 + $0xe4] sm:$0xf] }
  0xba   : > { %v7378_v45 = vld [vmem:[%s7955_s3 + $0xe8c] sm:$0xf0]  ;;  %v6588_v49 = vor.u32 %v7346_v43, %v6587_v41  ;;  %v6571_v53 = vld [vmem:[%s7955_s3 + $0xd60] sm:$0xf]  ;;  %3805 = vmatpush.bf16.msrb.mxu3 %v6860_v42  ;;  %v4973_v41 = vld [vmem:[%s7955_s3 + $0xf0] sm:$0xf0] }
  0xbb   : > { %v7410_v47 = vld [vmem:[%s7955_s3 + $0xf8c] sm:$0xf0]  ;;  %v6716_v50 = vor.u32 %v7378_v45, %v6715_v44  ;;  %v6699_v56 = vld [vmem:[%s7955_s3 + $0xe60] sm:$0xf]  ;;  %3767 = vmatpush.bf16.msrb.mxu0 %v6460_v48  ;;  %v6972_v42 = vld [vmem:[%s7955_s3 + $0x1e4] sm:$0xf] }
  0xbc   : > { %v7310_v52 = vld [vmem:[%s7955_s3 + $0xc6c] sm:$0xf0]  ;;  %v6844_v54 = vor.u32 %v7410_v47, %v6843_v46  ;;  %v6827_v58 = vld [vmem:[%s7955_s3 + $0xf60] sm:$0xf]  ;;  %3780 = vmatpush.bf16.msrb.mxu1 %v6588_v49  ;;  %v5101_v44 = vld [vmem:[%s7955_s3 + $0x1f0] sm:$0xf0] }
  0xbd   : > { %v7342_v55 = vld [vmem:[%s7955_s3 + $0xd6c] sm:$0xf0]  ;;  %v6444_v60 = vor.u32 %v7310_v52, %v6443_v51  ;;  %3793 = vmatpush.bf16.msrb.mxu2 %v6716_v50  ;;  %v6427_v0 = vld [vmem:[%s7955_s3 + $0xc40] sm:$0xf]  ;;  %v7004_v45 = vld [vmem:[%s7955_s3 + $0x2e4] sm:$0xf]  ;;  %v4976_v52 = vor.u32 %v6940_v40, %v4973_v41 }
  0xbe   : > { %v7374_v57 = vld [vmem:[%s7955_s3 + $0xe6c] sm:$0xf0]  ;;  %v6572_v61 = vor.u32 %v7342_v55, %v6571_v53  ;;  %v6555_v5 = vld [vmem:[%s7955_s3 + $0xd40] sm:$0xf]  ;;  %3806 = vmatpush.bf16.msrb.mxu3 %v6844_v54  ;;  %v5229_v46 = vld [vmem:[%s7955_s3 + $0x2f0] sm:$0xf0]  ;;  %v5104_v53 = vor.u32 %v6972_v42, %v5101_v44 }
  0xbf   : > { %v7406_v59 = vld [vmem:[%s7955_s3 + $0xf6c] sm:$0xf0]  ;;  %v6700_v63 = vor.u32 %v7374_v57, %v6699_v56  ;;  %v6683_v8 = vld [vmem:[%s7955_s3 + $0xe40] sm:$0xf]  ;;  %3768 = vmatpush.bf16.msrb.mxu0 %v6444_v60  ;;  %v7036_v49 = vld [vmem:[%s7955_s3 + $0x3e4] sm:$0xf]  ;;  %v5232_v54 = vor.u32 %v7004_v45, %v5229_v46 }
  0xc0   : > { %v7306_v1 = vld [vmem:[%s7955_s3 + $0xc4c] sm:$0xf0]  ;;  %v6828_v6 = vor.u32 %v7406_v59, %v6827_v58  ;;  %v6811_v10 = vld [vmem:[%s7955_s3 + $0xf40] sm:$0xf]  ;;  %3781 = vmatpush.bf16.msrb.mxu1 %v6572_v61  ;;  %v5357_v50 = vld [vmem:[%s7955_s3 + $0x3f0] sm:$0xf0] }
  0xc1   : > { %v7338_v7 = vld [vmem:[%s7955_s3 + $0xd4c] sm:$0xf0]  ;;  %v6428_v12 = vor.u32 %v7306_v1, %v6427_v0  ;;  %3794 = vmatpush.bf16.msrb.mxu2 %v6700_v63  ;;  %v6411_v15 = vld [vmem:[%s7955_s3 + $0xc20] sm:$0xf]  ;;  %v6936_v55 = vld [vmem:[%s7955_s3 + $0xc4] sm:$0xf]  ;;  %v5360_v58 = vor.u32 %v7036_v49, %v5357_v50 }
  0xc2   : > { %v7370_v9 = vld [vmem:[%s7955_s3 + $0xe4c] sm:$0xf0]  ;;  %v6556_v13 = vor.u32 %v7338_v7, %v6555_v5  ;;  %v6539_v17 = vld [vmem:[%s7955_s3 + $0xd20] sm:$0xf]  ;;  %3807 = vmatpush.bf16.msrb.mxu3 %v6828_v6  ;;  %v4957_v56 = vld [vmem:[%s7955_s3 + $0xd0] sm:$0xf0] }
  0xc3   : > { %v7402_v11 = vld [vmem:[%s7955_s3 + $0xf4c] sm:$0xf0]  ;;  %v6684_v14 = vor.u32 %v7370_v9, %v6683_v8  ;;  %v6667_v20 = vld [vmem:[%s7955_s3 + $0xe20] sm:$0xf]  ;;  %3769 = vmatpush.bf16.msrb.mxu0 %v6428_v12  ;;  %v6968_v57 = vld [vmem:[%s7955_s3 + $0x1c4] sm:$0xf]  ;;  %v4960_v8 = vor.u32 %v6936_v55, %v4957_v56 }
  0xc4   : > { %v7302_v16 = vld [vmem:[%s7955_s3 + $0xc2c] sm:$0xf0]  ;;  %v6812_v18 = vor.u32 %v7402_v11, %v6811_v10  ;;  %v6795_v25 = vld [vmem:[%s7955_s3 + $0xf20] sm:$0xf]  ;;  %3782 = vmatpush.bf16.msrb.mxu1 %v6556_v13  ;;  %v5085_v59 = vld [vmem:[%s7955_s3 + $0x1d0] sm:$0xf0] }
  0xc5   : > { %v7334_v19 = vld [vmem:[%s7955_s3 + $0xd2c] sm:$0xf0]  ;;  %v6412_v27 = vor.u32 %v7302_v16, %v6411_v15  ;;  %v6395_v29 = vld [vmem:[%s7955_s3 + $0xc00] sm:$0xf]  ;;  %3795 = vmatpush.bf16.msrb.mxu2 %v6684_v14  ;;  %v7000_v60 = vld [vmem:[%s7955_s3 + $0x2c4] sm:$0xf]  ;;  %v5088_v9 = vor.u32 %v6968_v57, %v5085_v59 }
  0xc6   : > { %v7366_v21 = vld [vmem:[%s7955_s3 + $0xe2c] sm:$0xf0]  ;;  %v6540_v31 = vor.u32 %v7334_v19, %v6539_v17  ;;  %v6523_v33 = vld [vmem:[%s7955_s3 + $0xd00] sm:$0xf]  ;;  %3808 = vmatpush.bf16.msrb.mxu3 %v6812_v18  ;;  %v5213_v61 = vld [vmem:[%s7955_s3 + $0x2d0] sm:$0xf0] }
  0xc7   : > { %v7398_v26 = vld [vmem:[%s7955_s3 + $0xf2c] sm:$0xf0]  ;;  %v6668_v32 = vor.u32 %v7366_v21, %v6667_v20  ;;  %v6651_v35 = vld [vmem:[%s7955_s3 + $0xe00] sm:$0xf]  ;;  %3770 = vmatpush.bf16.msrb.mxu0 %v6412_v27  ;;  %v7032_v0 = vld [vmem:[%s7955_s3 + $0x3c4] sm:$0xf]  ;;  %v5216_v10 = vor.u32 %v7000_v60, %v5213_v61 }
  0xc8   : > { %v7298_v30 = vld [vmem:[%s7955_s3 + $0xc0c] sm:$0xf0]  ;;  %v6796_v36 = vor.u32 %v7398_v26, %v6795_v25  ;;  %v6779_v38 = vld [vmem:[%s7955_s3 + $0xf00] sm:$0xf]  ;;  %3783 = vmatpush.bf16.msrb.mxu1 %v6540_v31  ;;  %v5341_v1 = vld [vmem:[%s7955_s3 + $0x3d0] sm:$0xf0] }
  0xc9   : > { %v7330_v34 = vld [vmem:[%s7955_s3 + $0xd0c] sm:$0xf0]  ;;  %v6396_v43 = vor.u32 %v7298_v30, %v6395_v29  ;;  %3796 = vmatpush.bf16.msrb.mxu2 %v6668_v32  ;;  %v1030_v5 = vld [vmem:[#allocation1 + $0x36] sm:$0xff]  ;;  %v1029_v6 = vld [vmem:[#allocation1 + $0x2d] sm:$0xff]  ;;  %v5344_v14 = vor.u32 %v7032_v0, %v5341_v1 }
  0xca   : > { %v7362_v37 = vld [vmem:[%s7955_s3 + $0xe0c] sm:$0xf0]  ;;  %v6524_v47 = vor.u32 %v7330_v34, %v6523_v33  ;;  %3809 = vmatpush.bf16.msrb.mxu3 %v6796_v36  ;;  %v6932_v11 = vld [vmem:[%s7955_s3 + $0xa4] sm:$0xf]  ;;  %v4941_v12 = vld [vmem:[%s7955_s3 + $0xb0] sm:$0xf0] }
  0xcb   : > { %v7394_v39 = vld [vmem:[%s7955_s3 + $0xf0c] sm:$0xf0]  ;;  %v6652_v48 = vor.u32 %v7362_v37, %v6651_v35  ;;  %3771 = vmatpush.bf16.msrb.mxu0 %v6396_v43  ;;  %v6964_v13 = vld [vmem:[%s7955_s3 + $0x1a4] sm:$0xf]  ;;  %v5069_v15 = vld [vmem:[%s7955_s3 + $0x1b0] sm:$0xf0]  ;;  %v4944_v20 = vor.u32 %v6932_v11, %v4941_v12 }
  0xcc   : > { %v6780_v51 = vor.u32 %v7394_v39, %v6779_v38  ;;  %3784 = vmatpush.bf16.msrb.mxu1 %v6524_v47  ;;  %v1028_v63 = vld [vmem:[#allocation1 + $0x24] sm:$0xff]  ;;  %v6996_v16 = vld [vmem:[%s7955_s3 + $0x2a4] sm:$0xf]  ;;  %v5072_v21 = vor.u32 %v6964_v13, %v5069_v15 }
  0xcd   : > { %3797 = vmatpush.bf16.msrb.mxu2 %v6652_v48  ;;  %v1031_v7 = vld [vmem:[#allocation1 + $0x3f] sm:$0xff]  ;;  %v7028_v18 = vld [vmem:[%s7955_s3 + $0x3a4] sm:$0xf] }
  0xce   : > { %3810 = vmatpush.bf16.msrb.mxu3 %v6780_v51  ;;  %3772 = vmatmul.bf16.vlgmr.msrb.gmra.mxu0 %v1028_v63  ;;  %v5197_v17 = vld [vmem:[%s7955_s3 + $0x2b0] sm:$0xf0]  ;;  %v6928_v26 = vld [vmem:[%s7955_s3 + $0x84] sm:$0xf] }
  0xcf   : > { %3816 = vmatpush.bf16.msra.mxu0 %v4976_v52  ;;  %3785 = vmatmul.bf16.vlgmr.msrb.gmra.mxu1 %v1029_v6  ;;  %v5325_v19 = vld [vmem:[%s7955_s3 + $0x3b0] sm:$0xf0]  ;;  %v5200_v25 = vor.u32 %v6996_v16, %v5197_v17  ;;  %v6960_v29 = vld [vmem:[%s7955_s3 + $0x184] sm:$0xf] }
  0xd0   : > { %3829 = vmatpush.bf16.msra.mxu1 %v5104_v53  ;;  %3798 = vmatmul.bf16.vlgmr.msrb.gmra.mxu2 %v1030_v5  ;;  %v4925_v27 = vld [vmem:[%s7955_s3 + $0x90] sm:$0xf0]  ;;  %v5328_v30 = vor.u32 %v7028_v18, %v5325_v19  ;;  %v6992_v32 = vld [vmem:[%s7955_s3 + $0x284] sm:$0xf] }
  0xd1   : > { %3842 = vmatpush.bf16.msra.mxu2 %v5232_v54  ;;  %3811 = vmatmul.bf16.vlgmr.msrb.gmra.mxu3 %v1031_v7  ;;  %v5053_v31 = vld [vmem:[%s7955_s3 + $0x190] sm:$0xf0]  ;;  %v7024_v34 = vld [vmem:[%s7955_s3 + $0x384] sm:$0xf]  ;;  %v4928_v36 = vor.u32 %v6928_v26, %v4925_v27 }
  0xd2   : > { %3855 = vmatpush.bf16.msra.mxu3 %v5360_v58  ;;  %v5181_v33 = vld [vmem:[%s7955_s3 + $0x290] sm:$0xf0]  ;;  %v5056_v37 = vor.u32 %v6960_v29, %v5053_v31  ;;  %v6924_v39 = vld [vmem:[%s7955_s3 + $0x64] sm:$0xf] }
  0xd3   : > { %3817 = vmatpush.bf16.msra.mxu0 %v4960_v8  ;;  %v5309_v35 = vld [vmem:[%s7955_s3 + $0x390] sm:$0xf0]  ;;  %v5184_v38 = vor.u32 %v6992_v32, %v5181_v33  ;;  %v6956_v41 = vld [vmem:[%s7955_s3 + $0x164] sm:$0xf] }
  0xd4   : > { %3830 = vmatpush.bf16.msra.mxu1 %v5088_v9  ;;  %v4909_v40 = vld [vmem:[%s7955_s3 + $0x70] sm:$0xf0]  ;;  %v5312_v42 = vor.u32 %v7024_v34, %v5309_v35  ;;  %v6988_v44 = vld [vmem:[%s7955_s3 + $0x264] sm:$0xf] }
  0xd5   : > { %3843 = vmatpush.bf16.msra.mxu2 %v5216_v10  ;;  %v5037_v43 = vld [vmem:[%s7955_s3 + $0x170] sm:$0xf0]  ;;  %v7020_v46 = vld [vmem:[%s7955_s3 + $0x364] sm:$0xf]  ;;  %v4912_v48 = vor.u32 %v6924_v39, %v4909_v40 }
  0xd6   : > { %3856 = vmatpush.bf16.msra.mxu3 %v5344_v14  ;;  %v5165_v45 = vld [vmem:[%s7955_s3 + $0x270] sm:$0xf0]  ;;  %v5040_v49 = vor.u32 %v6956_v41, %v5037_v43  ;;  %v6920_v51 = vld [vmem:[%s7955_s3 + $0x44] sm:$0xf] }
  0xd7   : > { %3818 = vmatpush.bf16.msra.mxu0 %v4944_v20  ;;  %v5293_v47 = vld [vmem:[%s7955_s3 + $0x370] sm:$0xf0]  ;;  %v5168_v50 = vor.u32 %v6988_v44, %v5165_v45  ;;  %v6952_v53 = vld [vmem:[%s7955_s3 + $0x144] sm:$0xf] }
  0xd8   : > { %3831 = vmatpush.bf16.msra.mxu1 %v5072_v21  ;;  %v4893_v52 = vld [vmem:[%s7955_s3 + $0x50] sm:$0xf0]  ;;  %v5296_v54 = vor.u32 %v7020_v46, %v5293_v47  ;;  %v6984_v56 = vld [vmem:[%s7955_s3 + $0x244] sm:$0xf] }
  0xd9   : > { %3844 = vmatpush.bf16.msra.mxu2 %v5200_v25  ;;  %v5021_v55 = vld [vmem:[%s7955_s3 + $0x150] sm:$0xf0]  ;;  %v7016_v58 = vld [vmem:[%s7955_s3 + $0x344] sm:$0xf]  ;;  %v4896_v60 = vor.u32 %v6920_v51, %v4893_v52 }
  0xda   : > { %3857 = vmatpush.bf16.msra.mxu3 %v5328_v30  ;;  %v5149_v57 = vld [vmem:[%s7955_s3 + $0x250] sm:$0xf0]  ;;  %v5024_v61 = vor.u32 %v6952_v53, %v5021_v55  ;;  %v6916_v0 = vld [vmem:[%s7955_s3 + $0x24] sm:$0xf] }
  0xdb   : > { %3819 = vmatpush.bf16.msra.mxu0 %v4928_v36  ;;  %v5277_v59 = vld [vmem:[%s7955_s3 + $0x350] sm:$0xf0]  ;;  %v5152_v63 = vor.u32 %v6984_v56, %v5149_v57  ;;  %v6948_v5 = vld [vmem:[%s7955_s3 + $0x124] sm:$0xf] }
  0xdc   : > { %3832 = vmatpush.bf16.msra.mxu1 %v5056_v37  ;;  %v4877_v1 = vld [vmem:[%s7955_s3 + $0x30] sm:$0xf0]  ;;  %v5280_v6 = vor.u32 %v7016_v58, %v5277_v59  ;;  %v6980_v8 = vld [vmem:[%s7955_s3 + $0x224] sm:$0xf] }
  0xdd   : > { %3845 = vmatpush.bf16.msra.mxu2 %v5184_v38  ;;  %v5005_v7 = vld [vmem:[%s7955_s3 + $0x130] sm:$0xf0]  ;;  %v7012_v10 = vld [vmem:[%s7955_s3 + $0x324] sm:$0xf]  ;;  %v4880_v12 = vor.u32 %v6916_v0, %v4877_v1 }
  0xde   : > { %3858 = vmatpush.bf16.msra.mxu3 %v5312_v42  ;;  %v5133_v9 = vld [vmem:[%s7955_s3 + $0x230] sm:$0xf0]  ;;  %v6912_v13 = vld [vmem:[%s7955_s3 + $0x4] sm:$0xf]  ;;  %v5008_v15 = vor.u32 %v6948_v5, %v5005_v7 }
  0xdf   : > { %3820 = vmatpush.bf16.msra.mxu0 %v4912_v48  ;;  %v5261_v11 = vld [vmem:[%s7955_s3 + $0x330] sm:$0xf0]  ;;  %v5136_v16 = vor.u32 %v6980_v8, %v5133_v9  ;;  %v6944_v17 = vld [vmem:[%s7955_s3 + $0x104] sm:$0xf] }
  0xe0   : > { %3833 = vmatpush.bf16.msra.mxu1 %v5040_v49  ;;  %v4861_v14 = vld [vmem:[%s7955_s3 + $0x10] sm:$0xf0]  ;;  %v6976_v19 = vld [vmem:[%s7955_s3 + $0x204] sm:$0xf]  ;;  %v5264_v20 = vor.u32 %v7012_v10, %v5261_v11 }
  0xe1   : > { %3846 = vmatpush.bf16.msra.mxu2 %v5168_v50  ;;  %v4989_v18 = vld [vmem:[%s7955_s3 + $0x110] sm:$0xf0]  ;;  %v7008_v25 = vld [vmem:[%s7955_s3 + $0x304] sm:$0xf]  ;;  %v4864_v31 = vor.u32 %v6912_v13, %v4861_v14 }
  0xe2   : > { %3859 = vmatpush.bf16.msra.mxu3 %v5296_v54  ;;  %v5117_v21 = vld [vmem:[%s7955_s3 + $0x210] sm:$0xf0]  ;;  %v7068_v27 = vld [vmem:[%s7955_s3 + $0x4e4] sm:$0xf]  ;;  %v4992_v35 = vor.u32 %v6944_v17, %v4989_v18 }
  0xe3   : > { %3821 = vmatpush.bf16.msra.mxu0 %v4896_v60  ;;  %v5245_v26 = vld [vmem:[%s7955_s3 + $0x310] sm:$0xf0]  ;;  %v7100_v30 = vld [vmem:[%s7955_s3 + $0x5e4] sm:$0xf]  ;;  %v5120_v36 = vor.u32 %v6976_v19, %v5117_v21 }
  0xe4   : > { %3834 = vmatpush.bf16.msra.mxu1 %v5024_v61  ;;  %v5485_v29 = vld [vmem:[%s7955_s3 + $0x4f0] sm:$0xf0]  ;;  %v7132_v33 = vld [vmem:[%s7955_s3 + $0x6e4] sm:$0xf]  ;;  %v5248_v39 = vor.u32 %v7008_v25, %v5245_v26 }
  0xe5   : > { %3847 = vmatpush.bf16.msra.mxu2 %v5152_v63  ;;  %v5613_v32 = vld [vmem:[%s7955_s3 + $0x5f0] sm:$0xf0]  ;;  %v7164_v37 = vld [vmem:[%s7955_s3 + $0x7e4] sm:$0xf]  ;;  %v5488_v40 = vor.u32 %v7068_v27, %v5485_v29 }
  0xe6   : > { %3860 = vmatpush.bf16.msra.mxu3 %v5280_v6  ;;  %v5741_v34 = vld [vmem:[%s7955_s3 + $0x6f0] sm:$0xf0]  ;;  %v5616_v41 = vor.u32 %v7100_v30, %v5613_v32  ;;  %v7064_v43 = vld [vmem:[%s7955_s3 + $0x4c4] sm:$0xf] }
  0xe7   : > { %3822 = vmatpush.bf16.msra.mxu0 %v4880_v12  ;;  %v5869_v38 = vld [vmem:[%s7955_s3 + $0x7f0] sm:$0xf0]  ;;  %v5744_v42 = vor.u32 %v7132_v33, %v5741_v34  ;;  %v7096_v45 = vld [vmem:[%s7955_s3 + $0x5c4] sm:$0xf] }
  0xe8   : > { %3835 = vmatpush.bf16.msra.mxu1 %v5008_v15  ;;  %v5469_v44 = vld [vmem:[%s7955_s3 + $0x4d0] sm:$0xf0]  ;;  %v5872_v46 = vor.u32 %v7164_v37, %v5869_v38  ;;  %v7128_v48 = vld [vmem:[%s7955_s3 + $0x6c4] sm:$0xf] }
  0xe9   : > { %3848 = vmatpush.bf16.msra.mxu2 %v5136_v16  ;;  %v5597_v47 = vld [vmem:[%s7955_s3 + $0x5d0] sm:$0xf0]  ;;  %v7160_v50 = vld [vmem:[%s7955_s3 + $0x7c4] sm:$0xf]  ;;  %v5472_v52 = vor.u32 %v7064_v43, %v5469_v44 }
  0xea   : > { %3861 = vmatpush.bf16.msra.mxu3 %v5264_v20  ;;  %v5725_v49 = vld [vmem:[%s7955_s3 + $0x6d0] sm:$0xf0]  ;;  %v5600_v53 = vor.u32 %v7096_v45, %v5597_v47  ;;  %v7060_v55 = vld [vmem:[%s7955_s3 + $0x4a4] sm:$0xf] }
  0xeb   : > { %3823 = vmatpush.bf16.msra.mxu0 %v4864_v31  ;;  %v5853_v51 = vld [vmem:[%s7955_s3 + $0x7d0] sm:$0xf0]  ;;  %v5728_v54 = vor.u32 %v7128_v48, %v5725_v49  ;;  %v7092_v57 = vld [vmem:[%s7955_s3 + $0x5a4] sm:$0xf] }
  0xec   : > { %3836 = vmatpush.bf16.msra.mxu1 %v4992_v35  ;;  %v5453_v56 = vld [vmem:[%s7955_s3 + $0x4b0] sm:$0xf0]  ;;  %v5856_v58 = vor.u32 %v7160_v50, %v5853_v51  ;;  %v7124_v60 = vld [vmem:[%s7955_s3 + $0x6a4] sm:$0xf] }
  0xed   : > { %3849 = vmatpush.bf16.msra.mxu2 %v5120_v36  ;;  %v5581_v59 = vld [vmem:[%s7955_s3 + $0x5b0] sm:$0xf0]  ;;  %v7156_v63 = vld [vmem:[%s7955_s3 + $0x7a4] sm:$0xf]  ;;  %v5456_v1 = vor.u32 %v7060_v55, %v5453_v56 }
  0xee   : > { %3862 = vmatpush.bf16.msra.mxu3 %v5248_v39  ;;  %v5709_v61 = vld [vmem:[%s7955_s3 + $0x6b0] sm:$0xf0]  ;;  %3824 = vmatmul.bf16.vlgmr.msra.gmra.mxu0 %v8084_v23  ;;  %v5584_v5 = vor.u32 %v7092_v57, %v5581_v59  ;;  %v7056_v7 = vld [vmem:[%s7955_s3 + $0x484] sm:$0xf] }
  0xef   : > { %3868 = vmatpush.bf16.msrb.mxu0 %v5488_v40  ;;  %v5837_v0 = vld [vmem:[%s7955_s3 + $0x7b0] sm:$0xf0]  ;;  %3837 = vmatmul.bf16.vlgmr.msra.gmra.mxu1 %v8091_v28  ;;  %v5712_v6 = vor.u32 %v7124_v60, %v5709_v61  ;;  %v7088_v9 = vld [vmem:[%s7955_s3 + $0x584] sm:$0xf] }
  0xf0   : > { %3881 = vmatpush.bf16.msrb.mxu1 %v5616_v41  ;;  %3850 = vmatmul.bf16.vlgmr.msra.gmra.mxu2 %v8082_v22  ;;  %v5437_v8 = vld [vmem:[%s7955_s3 + $0x490] sm:$0xf0]  ;;  %v5840_v10 = vor.u32 %v7156_v63, %v5837_v0  ;;  %v7120_v12 = vld [vmem:[%s7955_s3 + $0x684] sm:$0xf] }
  0xf1   : > { %3894 = vmatpush.bf16.msrb.mxu2 %v5744_v42  ;;  %3863 = vmatmul.bf16.vlgmr.msra.gmra.mxu3 %v8086_v24  ;;  %v5565_v11 = vld [vmem:[%s7955_s3 + $0x590] sm:$0xf0]  ;;  %v7152_v14 = vld [vmem:[%s7955_s3 + $0x784] sm:$0xf]  ;;  %v5440_v16 = vor.u32 %v7056_v7, %v5437_v8 }
  0xf2   : > { %3907 = vmatpush.bf16.msrb.mxu3 %v5872_v46  ;;  %v5693_v13 = vld [vmem:[%s7955_s3 + $0x690] sm:$0xf0]  ;;  %v5568_v17 = vor.u32 %v7088_v9, %v5565_v11  ;;  %v7052_v19 = vld [vmem:[%s7955_s3 + $0x464] sm:$0xf] }
  0xf3   : > { %3869 = vmatpush.bf16.msrb.mxu0 %v5472_v52  ;;  %v5821_v15 = vld [vmem:[%s7955_s3 + $0x790] sm:$0xf0]  ;;  %v5696_v18 = vor.u32 %v7120_v12, %v5693_v13  ;;  %v7084_v21 = vld [vmem:[%s7955_s3 + $0x564] sm:$0xf] }
  0xf4   : > { %3882 = vmatpush.bf16.msrb.mxu1 %v5600_v53  ;;  %v5421_v20 = vld [vmem:[%s7955_s3 + $0x470] sm:$0xf0]  ;;  %v5824_v25 = vor.u32 %v7152_v14, %v5821_v15  ;;  %v7116_v27 = vld [vmem:[%s7955_s3 + $0x664] sm:$0xf] }
  0xf5   : > { %3895 = vmatpush.bf16.msrb.mxu2 %v5728_v54  ;;  %v5549_v26 = vld [vmem:[%s7955_s3 + $0x570] sm:$0xf0]  ;;  %v7148_v30 = vld [vmem:[%s7955_s3 + $0x764] sm:$0xf]  ;;  %v5424_v32 = vor.u32 %v7052_v19, %v5421_v20 }
  0xf6   : > { %3908 = vmatpush.bf16.msrb.mxu3 %v5856_v58  ;;  %v5677_v29 = vld [vmem:[%s7955_s3 + $0x670] sm:$0xf0]  ;;  %v5552_v33 = vor.u32 %v7084_v21, %v5549_v26  ;;  %v7048_v35 = vld [vmem:[%s7955_s3 + $0x444] sm:$0xf]  ;;  %v3630_v51 = vpop.f32.mrf.mxu1 }
  0xf7   : > { %3870 = vmatpush.bf16.msrb.mxu0 %v5456_v1  ;;  %v5805_v31 = vld [vmem:[%s7955_s3 + $0x770] sm:$0xf0]  ;;  %v5680_v34 = vor.u32 %v7116_v27, %v5677_v29  ;;  %v7080_v37 = vld [vmem:[%s7955_s3 + $0x544] sm:$0xf]  ;;  %v3617_v45 = vpop.f32.mrf.mxu0 }
  0xf8   : > { %3883 = vmatpush.bf16.msrb.mxu1 %v5584_v5  ;;  %v5405_v36 = vld [vmem:[%s7955_s3 + $0x450] sm:$0xf0]  ;;  %v5808_v38 = vor.u32 %v7148_v30, %v5805_v31  ;;  %v7112_v40 = vld [vmem:[%s7955_s3 + $0x644] sm:$0xf]  ;;  %v3631_v56 = vadd.f32 %v3630_v51, %v3617_v45 }
  0xf9   : > { %3896 = vmatpush.bf16.msrb.mxu2 %v5712_v6  ;;  %v5533_v39 = vld [vmem:[%s7955_s3 + $0x550] sm:$0xf0]  ;;  %v7144_v42 = vld [vmem:[%s7955_s3 + $0x744] sm:$0xf]  ;;  %v5408_v44 = vor.u32 %v7048_v35, %v5405_v36 }
  0xfa   : > { %3909 = vmatpush.bf16.msrb.mxu3 %v5840_v10  ;;  %v5661_v41 = vld [vmem:[%s7955_s3 + $0x650] sm:$0xf0]  ;;  %v5536_v46 = vor.u32 %v7080_v37, %v5533_v39  ;;  %v7044_v48 = vld [vmem:[%s7955_s3 + $0x424] sm:$0xf] }
  0xfb   : > { %3871 = vmatpush.bf16.msrb.mxu0 %v5440_v16  ;;  %v5789_v43 = vld [vmem:[%s7955_s3 + $0x750] sm:$0xf0]  ;;  %v5664_v47 = vor.u32 %v7112_v40, %v5661_v41  ;;  %v7076_v50 = vld [vmem:[%s7955_s3 + $0x524] sm:$0xf] }
  0xfc   : > { %3884 = vmatpush.bf16.msrb.mxu1 %v5568_v17  ;;  %v5389_v49 = vld [vmem:[%s7955_s3 + $0x430] sm:$0xf0]  ;;  %v5792_v52 = vor.u32 %v7144_v42, %v5789_v43  ;;  %v7108_v54 = vld [vmem:[%s7955_s3 + $0x624] sm:$0xf]  ;;  %v3643_v7 = vpop.f32.mrf.mxu2 }
  0xfd   : > { %3897 = vmatpush.bf16.msrb.mxu2 %v5696_v18  ;;  %v5517_v53 = vld [vmem:[%s7955_s3 + $0x530] sm:$0xf0]  ;;  %v7140_v57 = vld [vmem:[%s7955_s3 + $0x724] sm:$0xf]  ;;  %v5392_v59 = vor.u32 %v7044_v48, %v5389_v49  ;;  %v3644_v12 = vadd.f32 %v3643_v7, %v3631_v56 }
  0xfe   : > { %3910 = vmatpush.bf16.msrb.mxu3 %v5824_v25  ;;  %v5645_v55 = vld [vmem:[%s7955_s3 + $0x630] sm:$0xf0]  ;;  %v7040_v60 = vld [vmem:[%s7955_s3 + $0x404] sm:$0xf]  ;;  %v5520_v63 = vor.u32 %v7076_v50, %v5517_v53  ;;  %v3656_v13 = vpop.f32.mrf.mxu3  ;;  %v3632_v31 = vpop.f32.mrf.mxu1 }
  0xff   : > { %3872 = vmatpush.bf16.msrb.mxu0 %v5424_v32  ;;  %v5773_v58 = vld [vmem:[%s7955_s3 + $0x730] sm:$0xf0]  ;;  %v5648_v0 = vor.u32 %v7108_v54, %v5645_v55  ;;  %v7072_v1 = vld [vmem:[%s7955_s3 + $0x504] sm:$0xf]  ;;  %v8401_v21 = vadd.f32 %v3656_v13, %v3644_v12  ;;  %v3619_v25 = vpop.f32.mrf.mxu0 }
 0x100   : > { %3885 = vmatpush.bf16.msrb.mxu1 %v5552_v33  ;;  %v5373_v61 = vld [vmem:[%s7955_s3 + $0x410] sm:$0xf0]  ;;  %v7104_v6 = vld [vmem:[%s7955_s3 + $0x604] sm:$0xf]  ;;  %v5776_v8 = vor.u32 %v7140_v57, %v5773_v58 }
 0x101   : > { %3898 = vmatpush.bf16.msrb.mxu2 %v5680_v34  ;;  %v5501_v5 = vld [vmem:[%s7955_s3 + $0x510] sm:$0xf0]  ;;  %v7136_v10 = vld [vmem:[%s7955_s3 + $0x704] sm:$0xf]  ;;  %v5376_v17 = vor.u32 %v7040_v60, %v5373_v61 }
 0x102   : > { %3911 = vmatpush.bf16.msrb.mxu3 %v5808_v38  ;;  %v5629_v9 = vld [vmem:[%s7955_s3 + $0x610] sm:$0xf0]  ;;  %v7196_v14 = vld [vmem:[%s7955_s3 + $0x8e4] sm:$0xf]  ;;  %v5504_v26 = vor.u32 %v7072_v1, %v5501_v5 }
 0x103   : > { %3873 = vmatpush.bf16.msrb.mxu0 %v5408_v44  ;;  %v5757_v11 = vld [vmem:[%s7955_s3 + $0x710] sm:$0xf0]  ;;  %v7228_v16 = vld [vmem:[%s7955_s3 + $0x9e4] sm:$0xf]  ;;  %v5632_v27 = vor.u32 %v7104_v6, %v5629_v9 }
 0x104   : > { %3886 = vmatpush.bf16.msrb.mxu1 %v5536_v46  ;;  %v5997_v15 = vld [vmem:[%s7955_s3 + $0x8f0] sm:$0xf0]  ;;  %v7260_v19 = vld [vmem:[%s7955_s3 + $0xae4] sm:$0xf]  ;;  %v5760_v32 = vor.u32 %v7136_v10, %v5757_v11  ;;  %v3645_v45 = vpop.f32.mrf.mxu2 }
 0x105   : > { %3899 = vmatpush.bf16.msrb.mxu2 %v5664_v47  ;;  %v6125_v18 = vld [vmem:[%s7955_s3 + $0x9f0] sm:$0xf0]  ;;  %v7292_v29 = vld [vmem:[%s7955_s3 + $0xbe4] sm:$0xf]  ;;  %v6000_v33 = vor.u32 %v7196_v14, %v5997_v15 }
 0x106   : > { %3912 = vmatpush.bf16.msrb.mxu3 %v5792_v52  ;;  %v6253_v20 = vld [vmem:[%s7955_s3 + $0xaf0] sm:$0xf0]  ;;  %v6128_v34 = vor.u32 %v7228_v16, %v6125_v18  ;;  %v7192_v36 = vld [vmem:[%s7955_s3 + $0x8c4] sm:$0xf]  ;;  %v3658_v47 = vpop.f32.mrf.mxu3 }
 0x107   : > { %3874 = vmatpush.bf16.msrb.mxu0 %v5392_v59  ;;  %v6381_v30 = vld [vmem:[%s7955_s3 + $0xbf0] sm:$0xf0]  ;;  %v6256_v35 = vor.u32 %v7260_v19, %v6253_v20  ;;  %v7224_v38 = vld [vmem:[%s7955_s3 + $0x9c4] sm:$0xf] }
 0x108   : > { %3887 = vmatpush.bf16.msrb.mxu1 %v5520_v63  ;;  %v5981_v37 = vld [vmem:[%s7955_s3 + $0x8d0] sm:$0xf0]  ;;  %v6384_v39 = vor.u32 %v7292_v29, %v6381_v30  ;;  %v7256_v41 = vld [vmem:[%s7955_s3 + $0xac4] sm:$0xf]  ;;  %v3669_v12 = vpop.f32.mrf.mxu0 }
 0x109   : > { %3900 = vmatpush.bf16.msrb.mxu2 %v5648_v0  ;;  %v6109_v40 = vld [vmem:[%s7955_s3 + $0x9d0] sm:$0xf0]  ;;  %v7288_v43 = vld [vmem:[%s7955_s3 + $0xbc4] sm:$0xf]  ;;  %v5984_v46 = vor.u32 %v7192_v36, %v5981_v37  ;;  %v3670_v18 = vadd.f32 %v3669_v12, %v8401_v21  ;;  %v3682_v19 = vpop.f32.mrf.mxu1 }
 0x10a   : > { %3913 = vmatpush.bf16.msrb.mxu3 %v5776_v8  ;;  %v6237_v42 = vld [vmem:[%s7955_s3 + $0xad0] sm:$0xf0]  ;;  %v6112_v48 = vor.u32 %v7224_v38, %v6109_v40  ;;  %v7188_v50 = vld [vmem:[%s7955_s3 + $0x8a4] sm:$0xf] }
 0x10b   : > { %3875 = vmatpush.bf16.msrb.mxu0 %v5376_v17  ;;  %v6365_v44 = vld [vmem:[%s7955_s3 + $0xbd0] sm:$0xf0]  ;;  %v6240_v49 = vor.u32 %v7256_v41, %v6237_v42  ;;  %v7220_v52 = vld [vmem:[%s7955_s3 + $0x9a4] sm:$0xf]  ;;  %v3683_v31 = vadd.f32 %v3682_v19, %v3670_v18 }
 0x10c   : > { %3888 = vmatpush.bf16.msrb.mxu1 %v5504_v26  ;;  %v5965_v51 = vld [vmem:[%s7955_s3 + $0x8b0] sm:$0xf0]  ;;  %v6368_v53 = vor.u32 %v7288_v43, %v6365_v44  ;;  %v7252_v55 = vld [vmem:[%s7955_s3 + $0xaa4] sm:$0xf] }
 0x10d   : > { %3901 = vmatpush.bf16.msrb.mxu2 %v5632_v27  ;;  %v6093_v54 = vld [vmem:[%s7955_s3 + $0x9b0] sm:$0xf0]  ;;  %v7284_v57 = vld [vmem:[%s7955_s3 + $0xba4] sm:$0xf]  ;;  %v5968_v59 = vor.u32 %v7188_v50, %v5965_v51 }
 0x10e   : > { %3914 = vmatpush.bf16.msrb.mxu3 %v5760_v32  ;;  %v6221_v56 = vld [vmem:[%s7955_s3 + $0xab0] sm:$0xf0]  ;;  %3876 = vmatmul.bf16.vlgmr.msrb.gmra.mxu0 %v8123_v2  ;;  %v6096_v60 = vor.u32 %v7220_v52, %v6093_v54  ;;  %v7184_v63 = vld [vmem:[%s7955_s3 + $0x884] sm:$0xf] }
 0x10f   : > { %3920 = vmatpush.bf16.msra.mxu0 %v6000_v33  ;;  %v6349_v58 = vld [vmem:[%s7955_s3 + $0xbb0] sm:$0xf0]  ;;  %3889 = vmatmul.bf16.vlgmr.msrb.gmra.mxu1 %v8127_v4  ;;  %v6224_v61 = vor.u32 %v7252_v55, %v6221_v56  ;;  %v7216_v1 = vld [vmem:[%s7955_s3 + $0x984] sm:$0xf] }
 0x110   : > { %3933 = vmatpush.bf16.msra.mxu1 %v6128_v34  ;;  %3902 = vmatmul.bf16.vlgmr.msrb.gmra.mxu2 %v8120_v62  ;;  %v5949_v0 = vld [vmem:[%s7955_s3 + $0x890] sm:$0xf0]  ;;  %v6352_v5 = vor.u32 %v7284_v57, %v6349_v58  ;;  %v7248_v7 = vld [vmem:[%s7955_s3 + $0xa84] sm:$0xf]  ;;  %v3695_v37 = vpop.f32.mrf.mxu2 }
 0x111   : > { %3946 = vmatpush.bf16.msra.mxu2 %v6256_v35  ;;  %3915 = vmatmul.bf16.vlgmr.msrb.gmra.mxu3 %v8125_v3  ;;  %v6077_v6 = vld [vmem:[%s7955_s3 + $0x990] sm:$0xf0]  ;;  %v7280_v9 = vld [vmem:[%s7955_s3 + $0xb84] sm:$0xf]  ;;  %v5952_v11 = vor.u32 %v7184_v63, %v5949_v0  ;;  %v3696_v42 = vadd.f32 %v3695_v37, %v3683_v31  ;;  %v3684_v54 = vpop.f32.mrf.mxu1 }
 0x112   : > { %3959 = vmatpush.bf16.msra.mxu3 %v6384_v39  ;;  %v6205_v8 = vld [vmem:[%s7955_s3 + $0xa90] sm:$0xf0]  ;;  %v6080_v13 = vor.u32 %v7216_v1, %v6077_v6  ;;  %v7180_v15 = vld [vmem:[%s7955_s3 + $0x864] sm:$0xf]  ;;  %v3708_v43 = vpop.f32.mrf.mxu3 }
 0x113   : > { %3921 = vmatpush.bf16.msra.mxu0 %v5984_v46  ;;  %v6333_v10 = vld [vmem:[%s7955_s3 + $0xb90] sm:$0xf0]  ;;  %v6208_v14 = vor.u32 %v7248_v7, %v6205_v8  ;;  %v7212_v17 = vld [vmem:[%s7955_s3 + $0x964] sm:$0xf]  ;;  %v8450_v47 = vadd.f32 %v3708_v43, %v3696_v42 }
 0x114   : > { %3934 = vmatpush.bf16.msra.mxu1 %v6112_v48  ;;  %v5933_v16 = vld [vmem:[%s7955_s3 + $0x870] sm:$0xf0]  ;;  %v6336_v20 = vor.u32 %v7280_v9, %v6333_v10  ;;  %v7244_v26 = vld [vmem:[%s7955_s3 + $0xa64] sm:$0xf]  ;;  %v3671_v48 = vpop.f32.mrf.mxu0 }
 0x115   : > { %3947 = vmatpush.bf16.msra.mxu2 %v6240_v49  ;;  %v6061_v25 = vld [vmem:[%s7955_s3 + $0x970] sm:$0xf0]  ;;  %v7276_v29 = vld [vmem:[%s7955_s3 + $0xb64] sm:$0xf]  ;;  %v5936_v32 = vor.u32 %v7180_v15, %v5933_v16 }
 0x116   : > { %3960 = vmatpush.bf16.msra.mxu3 %v6368_v53  ;;  %v6189_v27 = vld [vmem:[%s7955_s3 + $0xa70] sm:$0xf0]  ;;  %v6064_v21 = vor.u32 %v7212_v17, %v6061_v25  ;;  %v7176_v34 = vld [vmem:[%s7955_s3 + $0x844] sm:$0xf] }
 0x117   : > { %3922 = vmatpush.bf16.msra.mxu0 %v5968_v59  ;;  %v6317_v30 = vld [vmem:[%s7955_s3 + $0xb70] sm:$0xf0]  ;;  %v6192_v33 = vor.u32 %v7244_v26, %v6189_v27  ;;  %v7208_v36 = vld [vmem:[%s7955_s3 + $0x944] sm:$0xf] }
 0x118   : > { %3935 = vmatpush.bf16.msra.mxu1 %v6096_v60  ;;  %v5917_v35 = vld [vmem:[%s7955_s3 + $0x850] sm:$0xf0]  ;;  %v6320_v38 = vor.u32 %v7276_v29, %v6317_v30  ;;  %v7240_v40 = vld [vmem:[%s7955_s3 + $0xa44] sm:$0xf]  ;;  %v3697_v9 = vpop.f32.mrf.mxu2 }
 0x119   : > { %3948 = vmatpush.bf16.msra.mxu2 %v6224_v61  ;;  %v6045_v39 = vld [vmem:[%s7955_s3 + $0x950] sm:$0xf0]  ;;  %v7272_v44 = vld [vmem:[%s7955_s3 + $0xb44] sm:$0xf]  ;;  %v5920_v46 = vor.u32 %v7176_v34, %v5917_v35 }
 0x11a   : > { %3961 = vmatpush.bf16.msra.mxu3 %v6352_v5  ;;  %v6173_v41 = vld [vmem:[%s7955_s3 + $0xa50] sm:$0xf0]  ;;  %v6048_v49 = vor.u32 %v7208_v36, %v6045_v39  ;;  %v7172_v51 = vld [vmem:[%s7955_s3 + $0x824] sm:$0xf] }
 0x11b   : > { %3923 = vmatpush.bf16.msra.mxu0 %v5952_v11  ;;  %v6301_v45 = vld [vmem:[%s7955_s3 + $0xb50] sm:$0xf0]  ;;  %v6176_v50 = vor.u32 %v7240_v40, %v6173_v41  ;;  %v7204_v53 = vld [vmem:[%s7955_s3 + $0x924] sm:$0xf] }
 0x11c   : > { %3936 = vmatpush.bf16.msra.mxu1 %v6080_v13  ;;  %v5901_v52 = vld [vmem:[%s7955_s3 + $0x830] sm:$0xf0]  ;;  %v6304_v55 = vor.u32 %v7272_v44, %v6301_v45  ;;  %v7236_v57 = vld [vmem:[%s7955_s3 + $0xa24] sm:$0xf] }
 0x11d   : > { %3949 = vmatpush.bf16.msra.mxu2 %v6208_v14  ;;  %v6029_v56 = vld [vmem:[%s7955_s3 + $0x930] sm:$0xf0]  ;;  %v7268_v59 = vld [vmem:[%s7955_s3 + $0xb24] sm:$0xf]  ;;  %v5904_v61 = vor.u32 %v7172_v51, %v5901_v52  ;;  %v3710_v14 = vpop.f32.mrf.mxu3 }
 0x11e   : > { %3962 = vmatpush.bf16.msra.mxu3 %v6336_v20  ;;  %v6157_v58 = vld [vmem:[%s7955_s3 + $0xa30] sm:$0xf0]  ;;  %v7168_v63 = vld [vmem:[%s7955_s3 + $0x804] sm:$0xf]  ;;  %v6032_v1 = vor.u32 %v7204_v53, %v6029_v56  ;;  %v7521_v56 = vld [vmem:[#allocation1 + $0x9] sm:$0xff] }
 0x11f   : > { %3924 = vmatpush.bf16.msra.mxu0 %v5936_v32  ;;  %v6285_v60 = vld [vmem:[%s7955_s3 + $0xb30] sm:$0xf0]  ;;  %v6160_v5 = vor.u32 %v7236_v57, %v6157_v58  ;;  %v7200_v6 = vld [vmem:[%s7955_s3 + $0x904] sm:$0xf] }
 0x120   : > { %3937 = vmatpush.bf16.msra.mxu1 %v6064_v21  ;;  %v5885_v0 = vld [vmem:[%s7955_s3 + $0x810] sm:$0xf0]  ;;  %v7232_v8 = vld [vmem:[%s7955_s3 + $0xa04] sm:$0xf]  ;;  %v6288_v10 = vor.u32 %v7268_v59, %v6285_v60  ;;  %v7522_v59 = vld [vmem:[#allocation1 + $0x1b] sm:$0xff] }
 0x121   : > { %3950 = vmatpush.bf16.msra.mxu2 %v6192_v33  ;;  %v6013_v7 = vld [vmem:[%s7955_s3 + $0x910] sm:$0xf0]  ;;  %v7264_v12 = vld [vmem:[%s7955_s3 + $0xb04] sm:$0xf]  ;;  %v5888_v18 = vor.u32 %v7168_v63, %v5885_v0 }
 0x122   : > { %3963 = vmatpush.bf16.msra.mxu3 %v6320_v38  ;;  %v6141_v11 = vld [vmem:[%s7955_s3 + $0xa10] sm:$0xf0]  ;;  %v7324_v15 = vld [vmem:[%s7955_s3 + $0xce4] sm:$0xf]  ;;  %v6016_v26 = vor.u32 %v7200_v6, %v6013_v7 }
 0x123   : > { %3925 = vmatpush.bf16.msra.mxu0 %v5920_v46  ;;  %v6269_v13 = vld [vmem:[%s7955_s3 + $0xb10] sm:$0xf0]  ;;  %v7356_v17 = vld [vmem:[%s7955_s3 + $0xde4] sm:$0xf]  ;;  %v6144_v27 = vor.u32 %v7232_v8, %v6141_v11 }
 0x124   : > { %3938 = vmatpush.bf16.msra.mxu1 %v6048_v49  ;;  %v6509_v16 = vld [vmem:[%s7955_s3 + $0xcf0] sm:$0xf0]  ;;  %v7388_v20 = vld [vmem:[%s7955_s3 + $0xee4] sm:$0xf]  ;;  %v6272_v31 = vor.u32 %v7264_v12, %v6269_v13 }
 0x125   : > { %3951 = vmatpush.bf16.msra.mxu2 %v6176_v50  ;;  %v6637_v19 = vld [vmem:[%s7955_s3 + $0xdf0] sm:$0xf0]  ;;  %v7420_v29 = vld [vmem:[%s7955_s3 + $0xfe4] sm:$0xf]  ;;  %v6512_v32 = vor.u32 %v7324_v15, %v6509_v16 }
 0x126   : > { %3964 = vmatpush.bf16.msra.mxu3 %v6304_v55  ;;  %v6765_v25 = vld [vmem:[%s7955_s3 + $0xef0] sm:$0xf0]  ;;  %v6640_v21 = vor.u32 %v7356_v17, %v6637_v19  ;;  %v7320_v34 = vld [vmem:[%s7955_s3 + $0xcc4] sm:$0xf] }
 0x127   : > { %3926 = vmatpush.bf16.msra.mxu0 %v5904_v61  ;;  %v6893_v30 = vld [vmem:[%s7955_s3 + $0xff0] sm:$0xf0]  ;;  %v6768_v33 = vor.u32 %v7388_v20, %v6765_v25  ;;  %v7352_v36 = vld [vmem:[%s7955_s3 + $0xdc4] sm:$0xf] }
 0x128   : > { %3939 = vmatpush.bf16.msra.mxu1 %v6032_v1  ;;  %v6493_v35 = vld [vmem:[%s7955_s3 + $0xcd0] sm:$0xf0]  ;;  %v6896_v37 = vor.u32 %v7420_v29, %v6893_v30  ;;  %v7384_v39 = vld [vmem:[%s7955_s3 + $0xec4] sm:$0xf] }
 0x129   : > { %3952 = vmatpush.bf16.msra.mxu2 %v6160_v5  ;;  %v6621_v38 = vld [vmem:[%s7955_s3 + $0xdd0] sm:$0xf0]  ;;  %v7416_v41 = vld [vmem:[%s7955_s3 + $0xfc4] sm:$0xf]  ;;  %v6496_v43 = vor.u32 %v7320_v34, %v6493_v35 }
 0x12a   : > { %3965 = vmatpush.bf16.msra.mxu3 %v6288_v10  ;;  %v6749_v40 = vld [vmem:[%s7955_s3 + $0xed0] sm:$0xf0]  ;;  %v6624_v44 = vor.u32 %v7352_v36, %v6621_v38  ;;  %v7316_v46 = vld [vmem:[%s7955_s3 + $0xca4] sm:$0xf]  ;;  %v3734_v15 = vpop.f32.mrf.mxu1 }
 0x12b   : > { %3927 = vmatpush.bf16.msra.mxu0 %v5888_v18  ;;  %v6877_v42 = vld [vmem:[%s7955_s3 + $0xfd0] sm:$0xf0]  ;;  %v6752_v45 = vor.u32 %v7384_v39, %v6749_v40  ;;  %v7348_v49 = vld [vmem:[%s7955_s3 + $0xda4] sm:$0xf] }
 0x12c   : > { %3940 = vmatpush.bf16.msra.mxu1 %v6016_v26  ;;  %v6477_v48 = vld [vmem:[%s7955_s3 + $0xcb0] sm:$0xf0]  ;;  %v6880_v51 = vor.u32 %v7416_v41, %v6877_v42  ;;  %v7380_v53 = vld [vmem:[%s7955_s3 + $0xea4] sm:$0xf] }
 0x12d   : > { %3953 = vmatpush.bf16.msra.mxu2 %v6144_v27  ;;  %v7519_v50 = vld [vmem:[#allocation1] sm:$0xff]  ;;  %v7520_v55 = vld [vmem:[#allocation1 + $0x12] sm:$0xff]  ;;  %v6480_v60 = vor.u32 %v7316_v46, %v6477_v48 }
 0x12e   : > { %3966 = vmatpush.bf16.msra.mxu3 %v6272_v31  ;;  %3928 = vmatmul.bf16.vlgmr.msra.gmra.mxu0 %v7519_v50  ;;  %v6605_v52 = vld [vmem:[%s7955_s3 + $0xdb0] sm:$0xf0]  ;;  %v7412_v57 = vld [vmem:[%s7955_s3 + $0xfa4] sm:$0xf] }
 0x12f   : > { %3972 = vmatpush.bf16.msrb.mxu0 %v6512_v32  ;;  %v6733_v54 = vld [vmem:[%s7955_s3 + $0xeb0] sm:$0xf0]  ;;  %3941 = vmatmul.bf16.vlgmr.msra.gmra.mxu1 %v7521_v56  ;;  %v6608_v61 = vor.u32 %v7348_v49, %v6605_v52  ;;  %v7312_v0 = vld [vmem:[%s7955_s3 + $0xc84] sm:$0xf]  ;;  %v3721_v10 = vpop.f32.mrf.mxu0 }
 0x130   : > { %3985 = vmatpush.bf16.msrb.mxu1 %v6640_v21  ;;  %3954 = vmatmul.bf16.vlgmr.msra.gmra.mxu2 %v7520_v55  ;;  %v6861_v58 = vld [vmem:[%s7955_s3 + $0xfb0] sm:$0xf0]  ;;  %v6736_v63 = vor.u32 %v7380_v53, %v6733_v54  ;;  %v7344_v5 = vld [vmem:[%s7955_s3 + $0xd84] sm:$0xf]  ;;  %v3722_v13 = vadd.f32 %v3721_v10, %v8450_v47 }
 0x131   : > { %3998 = vmatpush.bf16.msrb.mxu2 %v6768_v33  ;;  %3967 = vmatmul.bf16.vlgmr.msra.gmra.mxu3 %v7522_v59  ;;  %v6461_v1 = vld [vmem:[%s7955_s3 + $0xc90] sm:$0xf0]  ;;  %v6864_v6 = vor.u32 %v7412_v57, %v6861_v58  ;;  %v7376_v8 = vld [vmem:[%s7955_s3 + $0xe84] sm:$0xf] }
 0x132   : > { %4011 = vmatpush.bf16.msrb.mxu3 %v6896_v37  ;;  %v6589_v7 = vld [vmem:[%s7955_s3 + $0xd90] sm:$0xf0]  ;;  %v7408_v11 = vld [vmem:[%s7955_s3 + $0xf84] sm:$0xf]  ;;  %v6464_v14 = vor.u32 %v7312_v0, %v6461_v1  ;;  %v3735_v26 = vadd.f32 %v3734_v15, %v3722_v13  ;;  %v3736_v49 = vpop.f32.mrf.mxu1  ;;  %v4979_v15 = vld [vmem:[%s7955_s3 + $0xe8] sm:$0xf] }
 0x133   : > { %3973 = vmatpush.bf16.msrb.mxu0 %v6496_v43  ;;  %v6717_v9 = vld [vmem:[%s7955_s3 + $0xe90] sm:$0xf0]  ;;  %v6592_v16 = vor.u32 %v7344_v5, %v6589_v7  ;;  %v7308_v18 = vld [vmem:[%s7955_s3 + $0xc64] sm:$0xf]  ;;  %v5075_v49 = vld [vmem:[%s7955_s3 + $0x1a8] sm:$0xf] }
 0x134   : > { %3986 = vmatpush.bf16.msrb.mxu1 %v6624_v44  ;;  %v6845_v12 = vld [vmem:[%s7955_s3 + $0xf90] sm:$0xf0]  ;;  %v6720_v17 = vor.u32 %v7376_v8, %v6717_v9  ;;  %v7340_v20 = vld [vmem:[%s7955_s3 + $0xd64] sm:$0xf]  ;;  %v3747_v38 = vpop.f32.mrf.mxu2 }
 0x135   : > { %3999 = vmatpush.bf16.msrb.mxu2 %v6752_v45  ;;  %v6445_v19 = vld [vmem:[%s7955_s3 + $0xc70] sm:$0xf0]  ;;  %v6848_v25 = vor.u32 %v7408_v11, %v6845_v12  ;;  %v7372_v29 = vld [vmem:[%s7955_s3 + $0xe64] sm:$0xf]  ;;  %v3748_v42 = vadd.f32 %v3747_v38, %v3735_v26  ;;  %v7007_v26 = vld [vmem:[%s7955_s3 + $0x2f4] sm:$0xf0] }
 0x136   : > { %4012 = vmatpush.bf16.msrb.mxu3 %v6880_v51  ;;  %v6573_v27 = vld [vmem:[%s7955_s3 + $0xd70] sm:$0xf0]  ;;  %v7404_v30 = vld [vmem:[%s7955_s3 + $0xf64] sm:$0xf]  ;;  %v6448_v32 = vor.u32 %v7308_v18, %v6445_v19  ;;  %v6971_v38 = vld [vmem:[%s7955_s3 + $0x1d4] sm:$0xf0] }
 0x137   : > { %3974 = vmatpush.bf16.msrb.mxu0 %v6480_v60  ;;  %v6701_v47 = vld [vmem:[%s7955_s3 + $0xe70] sm:$0xf0]  ;;  %v6576_v21 = vor.u32 %v7340_v20, %v6573_v27  ;;  %v7304_v34 = vld [vmem:[%s7955_s3 + $0xc44] sm:$0xf]  ;;  %v3760_v43 = vpop.f32.mrf.mxu3  ;;  %v3723_v46 = vpop.f32.mrf.mxu0  ;;  %v6975_v20 = vld [vmem:[%s7955_s3 + $0x1f4] sm:$0xf0] }
 0x138   : > { %3987 = vmatpush.bf16.msrb.mxu1 %v6608_v61  ;;  %v6829_v31 = vld [vmem:[%s7955_s3 + $0xf70] sm:$0xf0]  ;;  %v6704_v33 = vor.u32 %v7372_v29, %v6701_v47  ;;  %v7336_v36 = vld [vmem:[%s7955_s3 + $0xd44] sm:$0xf]  ;;  %v8517_v50 = vadd.f32 %v3760_v43, %v3748_v42  ;;  %v5363_v47 = vld [vmem:[%s7955_s3 + $0x3e8] sm:$0xf] }
 0x139   : > { %4000 = vmatpush.bf16.msrb.mxu2 %v6736_v63  ;;  %v6429_v35 = vld [vmem:[%s7955_s3 + $0xc50] sm:$0xf0]  ;;  %v6832_v37 = vor.u32 %v7404_v30, %v6829_v31  ;;  %v7368_v40 = vld [vmem:[%s7955_s3 + $0xe44] sm:$0xf]  ;;  %v7039_v30 = vld [vmem:[%s7955_s3 + $0x3f4] sm:$0xf0] }
 0x13a   : > { %4013 = vmatpush.bf16.msrb.mxu3 %v6864_v6  ;;  %v6557_v39 = vld [vmem:[%s7955_s3 + $0xd50] sm:$0xf0]  ;;  %v7400_v44 = vld [vmem:[%s7955_s3 + $0xf44] sm:$0xf]  ;;  %v6432_v48 = vor.u32 %v7304_v34, %v6429_v35  ;;  %v4963_v34 = vld [vmem:[%s7955_s3 + $0xc8] sm:$0xf] }
 0x13b   : > { %3975 = vmatpush.bf16.msrb.mxu0 %v6464_v14  ;;  %v6685_v41 = vld [vmem:[%s7955_s3 + $0xe50] sm:$0xf0]  ;;  %v6560_v51 = vor.u32 %v7336_v36, %v6557_v39  ;;  %v7300_v53 = vld [vmem:[%s7955_s3 + $0xc24] sm:$0xf]  ;;  %v6939_v35 = vld [vmem:[%s7955_s3 + $0xd4] sm:$0xf0] }
 0x13c   : > { %3988 = vmatpush.bf16.msrb.mxu1 %v6592_v16  ;;  %v6813_v45 = vld [vmem:[%s7955_s3 + $0xf50] sm:$0xf0]  ;;  %v6688_v52 = vor.u32 %v7368_v40, %v6685_v41  ;;  %v7332_v55 = vld [vmem:[%s7955_s3 + $0xd24] sm:$0xf]  ;;  %v3749_v14 = vpop.f32.mrf.mxu2  ;;  %v6943_v16 = vld [vmem:[%s7955_s3 + $0xf4] sm:$0xf0]  ;;  %v4964_v43 = vor.u32 %v6939_v35, %v4963_v34 }
 0x13d   : > { %4001 = vmatpush.bf16.msrb.mxu2 %v6720_v17  ;;  %v6413_v54 = vld [vmem:[%s7955_s3 + $0xc30] sm:$0xf0]  ;;  %v6816_v56 = vor.u32 %v7400_v44, %v6813_v45  ;;  %v7364_v58 = vld [vmem:[%s7955_s3 + $0xe24] sm:$0xf]  ;;  %v5107_v17 = vld [vmem:[%s7955_s3 + $0x1e8] sm:$0xf] }
 0x13e   : > { %4014 = vmatpush.bf16.msrb.mxu3 %v6848_v25  ;;  %v6541_v57 = vld [vmem:[%s7955_s3 + $0xd30] sm:$0xf0]  ;;  %v7396_v60 = vld [vmem:[%s7955_s3 + $0xf24] sm:$0xf]  ;;  %v6416_v63 = vor.u32 %v7300_v53, %v6413_v54  ;;  %v5235_v25 = vld [vmem:[%s7955_s3 + $0x2e8] sm:$0xf] }
 0x13f   : > { %3976 = vmatpush.bf16.msrb.mxu0 %v6448_v32  ;;  %v6669_v59 = vld [vmem:[%s7955_s3 + $0xe30] sm:$0xf0]  ;;  %v7296_v0 = vld [vmem:[%s7955_s3 + $0xc04] sm:$0xf]  ;;  %v6544_v5 = vor.u32 %v7332_v55, %v6541_v57  ;;  %v3762_v18 = vpop.f32.mrf.mxu3  ;;  %v4980_v32 = vor.u32 %v6943_v16, %v4979_v15  ;;  %v5091_v36 = vld [vmem:[%s7955_s3 + $0x1c8] sm:$0xf] }
 0x140   : > { %3989 = vmatpush.bf16.msrb.mxu1 %v6576_v21  ;;  %v6797_v61 = vld [vmem:[%s7955_s3 + $0xf30] sm:$0xf0]  ;;  %v6672_v6 = vor.u32 %v7364_v58, %v6669_v59  ;;  %v7328_v7 = vld [vmem:[%s7955_s3 + $0xd04] sm:$0xf]  ;;  %v5108_v21 = vor.u32 %v6975_v20, %v5107_v17  ;;  %v5219_v39 = vld [vmem:[%s7955_s3 + $0x2c8] sm:$0xf]  ;;  %v5092_v44 = vor.u32 %v6971_v38, %v5091_v36 }
 0x141   : > { %4002 = vmatpush.bf16.msrb.mxu2 %v6704_v33  ;;  %v6397_v1 = vld [vmem:[%s7955_s3 + $0xc10] sm:$0xf0]  ;;  %v7360_v9 = vld [vmem:[%s7955_s3 + $0xe04] sm:$0xf]  ;;  %v6800_v10 = vor.u32 %v7396_v60, %v6797_v61  ;;  %v5236_v33 = vor.u32 %v7007_v26, %v5235_v25  ;;  %v7003_v40 = vld [vmem:[%s7955_s3 + $0x2d4] sm:$0xf0] }
 0x142   : > { %4015 = vmatpush.bf16.msrb.mxu3 %v6832_v37  ;;  %v6525_v8 = vld [vmem:[%s7955_s3 + $0xd10] sm:$0xf0]  ;;  %v7392_v12 = vld [vmem:[%s7955_s3 + $0xf04] sm:$0xf]  ;;  %v6400_v19 = vor.u32 %v7296_v0, %v6397_v1  ;;  %v5364_v37 = vor.u32 %v7039_v30, %v5363_v47  ;;  %v5347_v41 = vld [vmem:[%s7955_s3 + $0x3c8] sm:$0xf]  ;;  %v5220_v45 = vor.u32 %v7003_v40, %v5219_v39 }
 0x143   : > { %3977 = vmatpush.bf16.msrb.mxu0 %v6432_v48  ;;  %v6653_v11 = vld [vmem:[%s7955_s3 + $0xe10] sm:$0xf0]  ;;  %v6528_v27 = vor.u32 %v7328_v7, %v6525_v8  ;;  %v7035_v42 = vld [vmem:[%s7955_s3 + $0x3d4] sm:$0xf0]  ;;  %v4947_v46 = vld [vmem:[%s7955_s3 + $0xa8] sm:$0xf] }
 0x144   : > { %3990 = vmatpush.bf16.msrb.mxu1 %v6560_v51  ;;  %v6781_v13 = vld [vmem:[%s7955_s3 + $0xf10] sm:$0xf0]  ;;  %v6656_v29 = vor.u32 %v7360_v9, %v6653_v11  ;;  %v6935_v48 = vld [vmem:[%s7955_s3 + $0xb4] sm:$0xf0]  ;;  %v5203_v54 = vld [vmem:[%s7955_s3 + $0x2a8] sm:$0xf] }
 0x145   : > { %4003 = vmatpush.bf16.msrb.mxu2 %v6688_v52  ;;  %v6784_v31 = vor.u32 %v7392_v12, %v6781_v13  ;;  %v7523_v51 = vld [vmem:[#allocation1 + $0x24] sm:$0xff]  ;;  %v5348_v52 = vor.u32 %v7035_v42, %v5347_v41  ;;  %v7525_v57 = vld [vmem:[#allocation1 + $0x2d] sm:$0xff]  ;;  %v5331_v58 = vld [vmem:[%s7955_s3 + $0x3a8] sm:$0xf]  ;;  %v4948_v61 = vor.u32 %v6935_v48, %v4947_v46 }
 0x146   : > { %4016 = vmatpush.bf16.msrb.mxu3 %v6816_v56  ;;  %v6967_v53 = vld [vmem:[%s7955_s3 + $0x1b4] sm:$0xf0]  ;;  %v7524_v56 = vld [vmem:[#allocation1 + $0x36] sm:$0xff]  ;;  %v7526_v60 = vld [vmem:[#allocation1 + $0x3f] sm:$0xff] }
 0x147   : > { %3978 = vmatpush.bf16.msrb.mxu0 %v6416_v63  ;;  %v6999_v55 = vld [vmem:[%s7955_s3 + $0x2b4] sm:$0xf0]  ;;  %v5076_v63 = vor.u32 %v6967_v53, %v5075_v49  ;;  %v4931_v1 = vld [vmem:[%s7955_s3 + $0x88] sm:$0xf] }
 0x148   : > { %3991 = vmatpush.bf16.msrb.mxu1 %v6544_v5  ;;  %v7031_v59 = vld [vmem:[%s7955_s3 + $0x3b4] sm:$0xf0]  ;;  %v5204_v0 = vor.u32 %v6999_v55, %v5203_v54  ;;  %v5187_v9 = vld [vmem:[%s7955_s3 + $0x288] sm:$0xf] }
 0x149   : > { %4004 = vmatpush.bf16.msrb.mxu2 %v6672_v6  ;;  %v6931_v5 = vld [vmem:[%s7955_s3 + $0x94] sm:$0xf0]  ;;  %v5059_v6 = vld [vmem:[%s7955_s3 + $0x188] sm:$0xf]  ;;  %v5332_v7 = vor.u32 %v7031_v59, %v5331_v58 }
 0x14a   : > { %4017 = vmatpush.bf16.msrb.mxu3 %v6800_v10  ;;  %v6963_v8 = vld [vmem:[%s7955_s3 + $0x194] sm:$0xf0]  ;;  %v5315_v12 = vld [vmem:[%s7955_s3 + $0x388] sm:$0xf]  ;;  %v4932_v15 = vor.u32 %v6931_v5, %v4931_v1 }
 0x14b   : > { %3979 = vmatpush.bf16.msrb.mxu0 %v6400_v19  ;;  %v6995_v10 = vld [vmem:[%s7955_s3 + $0x294] sm:$0xf0]  ;;  %v3773_v11 = vpop.f32.mrf.mxu0  ;;  %v5060_v17 = vor.u32 %v6963_v8, %v5059_v6  ;;  %v4915_v19 = vld [vmem:[%s7955_s3 + $0x68] sm:$0xf] }
 0x14c   : > { %3992 = vmatpush.bf16.msrb.mxu1 %v6528_v27  ;;  %v7027_v13 = vld [vmem:[%s7955_s3 + $0x394] sm:$0xf0]  ;;  %v3774_v14 = vadd.f32 %v3773_v11, %v8517_v50  ;;  %v3786_v16 = vpop.f32.mrf.mxu1  ;;  %v5188_v18 = vor.u32 %v6995_v10, %v5187_v9  ;;  %v5043_v25 = vld [vmem:[%s7955_s3 + $0x168] sm:$0xf] }
 0x14d   : > { %4005 = vmatpush.bf16.msrb.mxu2 %v6656_v29  ;;  %v6927_v20 = vld [vmem:[%s7955_s3 + $0x74] sm:$0xf0]  ;;  %v5316_v26 = vor.u32 %v7027_v13, %v5315_v12  ;;  %v5171_v47 = vld [vmem:[%s7955_s3 + $0x268] sm:$0xf] }
 0x14e   : > { %4018 = vmatpush.bf16.msrb.mxu3 %v6784_v31  ;;  %3980 = vmatmul.bf16.vlgmr.msrb.gmra.mxu0 %v7523_v51  ;;  %v3787_v27 = vadd.f32 %v3786_v16, %v3774_v14  ;;  %v6959_v29 = vld [vmem:[%s7955_s3 + $0x174] sm:$0xf0]  ;;  %v5299_v30 = vld [vmem:[%s7955_s3 + $0x368] sm:$0xf] }
 0x14f   : > { %4024 = vmatpush.bf16.msra.mxu0 %v4980_v32  ;;  %3993 = vmatmul.bf16.vlgmr.msrb.gmra.mxu1 %v7525_v57  ;;  %v6991_v50 = vld [vmem:[%s7955_s3 + $0x274] sm:$0xf0]  ;;  %v4916_v32 = vor.u32 %v6927_v20, %v4915_v19  ;;  %v4899_v34 = vld [vmem:[%s7955_s3 + $0x48] sm:$0xf] }
 0x150   : > { %4037 = vmatpush.bf16.msra.mxu1 %v5108_v21  ;;  %4006 = vmatmul.bf16.vlgmr.msrb.gmra.mxu2 %v7524_v56  ;;  %v7023_v31 = vld [vmem:[%s7955_s3 + $0x374] sm:$0xf0]  ;;  %v5044_v21 = vor.u32 %v6959_v29, %v5043_v25  ;;  %v5027_v36 = vld [vmem:[%s7955_s3 + $0x148] sm:$0xf] }
 0x151   : > { %4050 = vmatpush.bf16.msra.mxu2 %v5236_v33  ;;  %4019 = vmatmul.bf16.vlgmr.msrb.gmra.mxu3 %v7526_v60  ;;  %v5172_v33 = vor.u32 %v6991_v50, %v5171_v47  ;;  %v6923_v35 = vld [vmem:[%s7955_s3 + $0x54] sm:$0xf0]  ;;  %v5155_v40 = vld [vmem:[%s7955_s3 + $0x248] sm:$0xf] }
 0x152   : > { %4063 = vmatpush.bf16.msra.mxu3 %v5364_v37  ;;  %v5300_v37 = vor.u32 %v7023_v31, %v5299_v30  ;;  %v6955_v39 = vld [vmem:[%s7955_s3 + $0x154] sm:$0xf0]  ;;  %v4900_v48 = vor.u32 %v6923_v35, %v4899_v34  ;;  %v4883_v54 = vld [vmem:[%s7955_s3 + $0x28] sm:$0xf] }
 0x153   : > { %4025 = vmatpush.bf16.msra.mxu0 %v4964_v43  ;;  %v3799_v38 = vpop.f32.mrf.mxu2  ;;  %v6987_v41 = vld [vmem:[%s7955_s3 + $0x254] sm:$0xf0]  ;;  %v3775_v46 = vpop.f32.mrf.mxu0  ;;  %v5011_v56 = vld [vmem:[%s7955_s3 + $0x128] sm:$0xf] }
 0x154   : > { %4038 = vmatpush.bf16.msra.mxu1 %v5092_v44  ;;  %v3800_v42 = vadd.f32 %v3799_v38, %v3787_v27  ;;  %v3812_v43 = vpop.f32.mrf.mxu3  ;;  %v5283_v44 = vld [vmem:[%s7955_s3 + $0x348] sm:$0xf]  ;;  %v3788_v49 = vpop.f32.mrf.mxu1  ;;  %v5156_v53 = vor.u32 %v6987_v41, %v5155_v40  ;;  %v6919_v55 = vld [vmem:[%s7955_s3 + $0x34] sm:$0xf0] }
 0x155   : > { %4051 = vmatpush.bf16.msra.mxu2 %v5220_v45  ;;  %v7019_v45 = vld [vmem:[%s7955_s3 + $0x354] sm:$0xf0]  ;;  %v5139_v59 = vld [vmem:[%s7955_s3 + $0x228] sm:$0xf] }
 0x156   : > { %4064 = vmatpush.bf16.msra.mxu3 %v5348_v52  ;;  %v8584_v51 = vadd.f32 %v3812_v43, %v3800_v42  ;;  %v5028_v52 = vor.u32 %v6955_v39, %v5027_v36  ;;  %v5284_v57 = vor.u32 %v7019_v45, %v5283_v44  ;;  %v6951_v58 = vld [vmem:[%s7955_s3 + $0x134] sm:$0xf0]  ;;  %v4867_v1 = vld [vmem:[%s7955_s3 + $0x8] sm:$0xf] }
 0x157   : > { %4026 = vmatpush.bf16.msra.mxu0 %v4948_v61  ;;  %v6983_v60 = vld [vmem:[%s7955_s3 + $0x234] sm:$0xf0]  ;;  %v5267_v61 = vld [vmem:[%s7955_s3 + $0x328] sm:$0xf]  ;;  %v5012_v6 = vor.u32 %v6951_v58, %v5011_v56 }
 0x158   : > { %4039 = vmatpush.bf16.msra.mxu1 %v5076_v63  ;;  %v7015_v63 = vld [vmem:[%s7955_s3 + $0x334] sm:$0xf0]  ;;  %v4995_v8 = vld [vmem:[%s7955_s3 + $0x108] sm:$0xf] }
 0x159   : > { %4052 = vmatpush.bf16.msra.mxu2 %v5204_v0  ;;  %v4884_v0 = vor.u32 %v6919_v55, %v4883_v54  ;;  %v6915_v5 = vld [vmem:[%s7955_s3 + $0x14] sm:$0xf0]  ;;  %v5123_v10 = vld [vmem:[%s7955_s3 + $0x208] sm:$0xf]  ;;  %v5268_v11 = vor.u32 %v7015_v63, %v5267_v61 }
 0x15a   : > { %4065 = vmatpush.bf16.msra.mxu3 %v5332_v7  ;;  %v5140_v7 = vor.u32 %v6983_v60, %v5139_v59  ;;  %v6947_v9 = vld [vmem:[%s7955_s3 + $0x114] sm:$0xf0]  ;;  %v5251_v13 = vld [vmem:[%s7955_s3 + $0x308] sm:$0xf]  ;;  %v4868_v20 = vor.u32 %v6915_v5, %v4867_v1 }
 0x15b   : > { %4027 = vmatpush.bf16.msra.mxu0 %v4932_v15  ;;  %v6979_v12 = vld [vmem:[%s7955_s3 + $0x214] sm:$0xf0]  ;;  %v3801_v15 = vpop.f32.mrf.mxu2  ;;  %v5491_v16 = vld [vmem:[%s7955_s3 + $0x4e8] sm:$0xf]  ;;  %v4996_v29 = vor.u32 %v6947_v9, %v4995_v8 }
 0x15c   : > { %4040 = vmatpush.bf16.msra.mxu1 %v5060_v17  ;;  %v7011_v14 = vld [vmem:[%s7955_s3 + $0x314] sm:$0xf0]  ;;  %v3814_v19 = vpop.f32.mrf.mxu3  ;;  %v5124_v47 = vor.u32 %v6979_v12, %v5123_v10  ;;  %v5875_v50 = vld [vmem:[%s7955_s3 + $0x7e8] sm:$0xf] }
 0x15d   : > { %4053 = vmatpush.bf16.msra.mxu2 %v5188_v18  ;;  %v7071_v17 = vld [vmem:[%s7955_s3 + $0x4f4] sm:$0xf0]  ;;  %v5619_v18 = vld [vmem:[%s7955_s3 + $0x5e8] sm:$0xf]  ;;  %v5252_v31 = vor.u32 %v7011_v14, %v5251_v13 }
 0x15e   : > { %4066 = vmatpush.bf16.msra.mxu3 %v5316_v26  ;;  %v7103_v25 = vld [vmem:[%s7955_s3 + $0x5f4] sm:$0xf0]  ;;  %v5747_v26 = vld [vmem:[%s7955_s3 + $0x6e8] sm:$0xf] }
 0x15f   : > { %4028 = vmatpush.bf16.msra.mxu0 %v4916_v32  ;;  %v7135_v27 = vld [vmem:[%s7955_s3 + $0x6f4] sm:$0xf0]  ;;  %v5492_v32 = vor.u32 %v7071_v17, %v5491_v16  ;;  %v5475_v34 = vld [vmem:[%s7955_s3 + $0x4c8] sm:$0xf] }
 0x160   : > { %4041 = vmatpush.bf16.msra.mxu1 %v5044_v21  ;;  %v7167_v30 = vld [vmem:[%s7955_s3 + $0x7f4] sm:$0xf0]  ;;  %v5620_v21 = vor.u32 %v7103_v25, %v5619_v18  ;;  %v5603_v36 = vld [vmem:[%s7955_s3 + $0x5c8] sm:$0xf] }
 0x161   : > { %4054 = vmatpush.bf16.msra.mxu2 %v5172_v33  ;;  %v5748_v33 = vor.u32 %v7135_v27, %v5747_v26  ;;  %v7067_v35 = vld [vmem:[%s7955_s3 + $0x4d4] sm:$0xf0]  ;;  %v5731_v39 = vld [vmem:[%s7955_s3 + $0x6c8] sm:$0xf] }
 0x162   : > { %4067 = vmatpush.bf16.msra.mxu3 %v5300_v37  ;;  %v5876_v37 = vor.u32 %v7167_v30, %v5875_v50  ;;  %v7099_v38 = vld [vmem:[%s7955_s3 + $0x5d4] sm:$0xf0]  ;;  %v5859_v41 = vld [vmem:[%s7955_s3 + $0x7c8] sm:$0xf]  ;;  %v5476_v43 = vor.u32 %v7067_v35, %v5475_v34 }
 0x163   : > { %4029 = vmatpush.bf16.msra.mxu0 %v4900_v48  ;;  %v7131_v40 = vld [vmem:[%s7955_s3 + $0x6d4] sm:$0xf0]  ;;  %v5604_v44 = vor.u32 %v7099_v38, %v5603_v36  ;;  %v5459_v46 = vld [vmem:[%s7955_s3 + $0x4a8] sm:$0xf] }
 0x164   : > { %4042 = vmatpush.bf16.msra.mxu1 %v5028_v52  ;;  %v7163_v42 = vld [vmem:[%s7955_s3 + $0x7d4] sm:$0xf0]  ;;  %v5732_v45 = vor.u32 %v7131_v40, %v5731_v39  ;;  %v5587_v49 = vld [vmem:[%s7955_s3 + $0x5a8] sm:$0xf] }
 0x165   : > { %4055 = vmatpush.bf16.msra.mxu2 %v5156_v53  ;;  %v7063_v48 = vld [vmem:[%s7955_s3 + $0x4b4] sm:$0xf0]  ;;  %v5860_v52 = vor.u32 %v7163_v42, %v5859_v41  ;;  %v5715_v54 = vld [vmem:[%s7955_s3 + $0x6a8] sm:$0xf] }
 0x166   : > { %4068 = vmatpush.bf16.msra.mxu3 %v5284_v57  ;;  %v7095_v53 = vld [vmem:[%s7955_s3 + $0x5b4] sm:$0xf0]  ;;  %v5843_v56 = vld [vmem:[%s7955_s3 + $0x7a8] sm:$0xf]  ;;  %v5460_v58 = vor.u32 %v7063_v48, %v5459_v46 }
 0x167   : > { %4030 = vmatpush.bf16.msra.mxu0 %v4884_v0  ;;  %v7127_v55 = vld [vmem:[%s7955_s3 + $0x6b4] sm:$0xf0]  ;;  %v5588_v59 = vor.u32 %v7095_v53, %v5587_v49  ;;  %v5443_v61 = vld [vmem:[%s7955_s3 + $0x488] sm:$0xf] }
 0x168   : > { %4043 = vmatpush.bf16.msra.mxu1 %v5012_v6  ;;  %v7159_v57 = vld [vmem:[%s7955_s3 + $0x7b4] sm:$0xf0]  ;;  %v5716_v60 = vor.u32 %v7127_v55, %v5715_v54  ;;  %v5571_v0 = vld [vmem:[%s7955_s3 + $0x588] sm:$0xf] }
 0x169   : > { %4056 = vmatpush.bf16.msra.mxu2 %v5140_v7  ;;  %v7059_v63 = vld [vmem:[%s7955_s3 + $0x494] sm:$0xf0]  ;;  %v5844_v1 = vor.u32 %v7159_v57, %v5843_v56  ;;  %v5699_v6 = vld [vmem:[%s7955_s3 + $0x688] sm:$0xf] }
 0x16a   : > { %4069 = vmatpush.bf16.msra.mxu3 %v5268_v11  ;;  %v7091_v5 = vld [vmem:[%s7955_s3 + $0x594] sm:$0xf0]  ;;  %v5827_v8 = vld [vmem:[%s7955_s3 + $0x788] sm:$0xf]  ;;  %v5444_v10 = vor.u32 %v7059_v63, %v5443_v61 }
 0x16b   : > { %4031 = vmatpush.bf16.msra.mxu0 %v4868_v20  ;;  %v7123_v7 = vld [vmem:[%s7955_s3 + $0x694] sm:$0xf0]  ;;  %v3825_v11 = vpop.f32.mrf.mxu0  ;;  %v5572_v12 = vor.u32 %v7091_v5, %v5571_v0  ;;  %v5427_v14 = vld [vmem:[%s7955_s3 + $0x468] sm:$0xf] }
 0x16c   : > { %4044 = vmatpush.bf16.msra.mxu1 %v4996_v29  ;;  %v7155_v9 = vld [vmem:[%s7955_s3 + $0x794] sm:$0xf0]  ;;  %v5700_v13 = vor.u32 %v7123_v7, %v5699_v6  ;;  %v5555_v16 = vld [vmem:[%s7955_s3 + $0x568] sm:$0xf]  ;;  %v3838_v17 = vpop.f32.mrf.mxu1 }
 0x16d   : > { %4057 = vmatpush.bf16.msra.mxu2 %v5124_v47  ;;  %v7055_v15 = vld [vmem:[%s7955_s3 + $0x474] sm:$0xf0]  ;;  %v5828_v18 = vor.u32 %v7155_v9, %v5827_v8  ;;  %v5683_v20 = vld [vmem:[%s7955_s3 + $0x668] sm:$0xf]  ;;  %v3839_v26 = vadd.f32 %v3838_v17, %v3825_v11 }
 0x16e   : > { %4070 = vmatpush.bf16.msra.mxu3 %v5252_v31  ;;  %4032 = vmatmul.bf16.vlgmr.msra.gmra.mxu0 %v8084_v23  ;;  %v7087_v19 = vld [vmem:[%s7955_s3 + $0x574] sm:$0xf0]  ;;  %v5811_v27 = vld [vmem:[%s7955_s3 + $0x768] sm:$0xf]  ;;  %v5428_v47 = vor.u32 %v7055_v15, %v5427_v14 }
 0x16f   : > { %4076 = vmatpush.bf16.msrb.mxu0 %v5492_v32  ;;  %4045 = vmatmul.bf16.vlgmr.msra.gmra.mxu1 %v8091_v28  ;;  %v7119_v25 = vld [vmem:[%s7955_s3 + $0x674] sm:$0xf0]  ;;  %v5556_v50 = vor.u32 %v7087_v19, %v5555_v16  ;;  %v5411_v31 = vld [vmem:[%s7955_s3 + $0x448] sm:$0xf] }
 0x170   : > { %4089 = vmatpush.bf16.msrb.mxu1 %v5620_v21  ;;  %4058 = vmatmul.bf16.vlgmr.msra.gmra.mxu2 %v8082_v22  ;;  %v7151_v29 = vld [vmem:[%s7955_s3 + $0x774] sm:$0xf0]  ;;  %v5684_v30 = vor.u32 %v7119_v25, %v5683_v20  ;;  %v5539_v21 = vld [vmem:[%s7955_s3 + $0x548] sm:$0xf] }
 0x171   : > { %4102 = vmatpush.bf16.msrb.mxu2 %v5748_v33  ;;  %4071 = vmatmul.bf16.vlgmr.msra.gmra.mxu3 %v8086_v24  ;;  %v7051_v32 = vld [vmem:[%s7955_s3 + $0x454] sm:$0xf0]  ;;  %v5812_v34 = vor.u32 %v7151_v29, %v5811_v27  ;;  %v5667_v36 = vld [vmem:[%s7955_s3 + $0x648] sm:$0xf] }
 0x172   : > { %4115 = vmatpush.bf16.msrb.mxu3 %v5876_v37  ;;  %v7083_v35 = vld [vmem:[%s7955_s3 + $0x554] sm:$0xf0]  ;;  %v5795_v40 = vld [vmem:[%s7955_s3 + $0x748] sm:$0xf]  ;;  %v5412_v42 = vor.u32 %v7051_v32, %v5411_v31 }
 0x173   : > { %4077 = vmatpush.bf16.msrb.mxu0 %v5476_v43  ;;  %v3851_v33 = vpop.f32.mrf.mxu2  ;;  %v7115_v37 = vld [vmem:[%s7955_s3 + $0x654] sm:$0xf0]  ;;  %v5395_v48 = vld [vmem:[%s7955_s3 + $0x428] sm:$0xf] }
 0x174   : > { %4090 = vmatpush.bf16.msrb.mxu1 %v5604_v44  ;;  %v3852_v38 = vadd.f32 %v3851_v33, %v3839_v26  ;;  %v3864_v39 = vpop.f32.mrf.mxu3  ;;  %v7147_v41 = vld [vmem:[%s7955_s3 + $0x754] sm:$0xf0]  ;;  %v3827_v44 = vpop.f32.mrf.mxu0  ;;  %v5668_v46 = vor.u32 %v7115_v37, %v5667_v36  ;;  %v5651_v56 = vld [vmem:[%s7955_s3 + $0x628] sm:$0xf] }
 0x175   : > { %4103 = vmatpush.bf16.msrb.mxu2 %v5732_v45  ;;  %v5540_v45 = vor.u32 %v7083_v35, %v5539_v21  ;;  %v7047_v49 = vld [vmem:[%s7955_s3 + $0x434] sm:$0xf0]  ;;  %v3840_v53 = vpop.f32.mrf.mxu1  ;;  %v5796_v54 = vor.u32 %v7147_v41, %v5795_v40  ;;  %v5379_v61 = vld [vmem:[%s7955_s3 + $0x408] sm:$0xf] }
 0x176   : > { %4116 = vmatpush.bf16.msrb.mxu3 %v5860_v52  ;;  %v8654_v43 = vadd.f32 %v3864_v39, %v3852_v38  ;;  %v5523_v52 = vld [vmem:[%s7955_s3 + $0x528] sm:$0xf]  ;;  %v7079_v55 = vld [vmem:[%s7955_s3 + $0x534] sm:$0xf0] }
 0x177   : > { %4078 = vmatpush.bf16.msrb.mxu0 %v5460_v58  ;;  %v7111_v57 = vld [vmem:[%s7955_s3 + $0x634] sm:$0xf0]  ;;  %v5779_v58 = vld [vmem:[%s7955_s3 + $0x728] sm:$0xf]  ;;  %v5524_v0 = vor.u32 %v7079_v55, %v5523_v52 }
 0x178   : > { %4091 = vmatpush.bf16.msrb.mxu1 %v5588_v59  ;;  %v7143_v59 = vld [vmem:[%s7955_s3 + $0x734] sm:$0xf0]  ;;  %v5507_v5 = vld [vmem:[%s7955_s3 + $0x508] sm:$0xf] }
 0x179   : > { %4104 = vmatpush.bf16.msrb.mxu2 %v5716_v60  ;;  %v5396_v60 = vor.u32 %v7047_v49, %v5395_v48  ;;  %v7043_v63 = vld [vmem:[%s7955_s3 + $0x414] sm:$0xf0]  ;;  %v5635_v7 = vld [vmem:[%s7955_s3 + $0x608] sm:$0xf]  ;;  %v5780_v9 = vor.u32 %v7143_v59, %v5779_v58 }
 0x17a   : > { %4117 = vmatpush.bf16.msrb.mxu3 %v5844_v1  ;;  %v5652_v1 = vor.u32 %v7111_v57, %v5651_v56  ;;  %v7075_v6 = vld [vmem:[%s7955_s3 + $0x514] sm:$0xf0]  ;;  %v5763_v11 = vld [vmem:[%s7955_s3 + $0x708] sm:$0xf]  ;;  %v5380_v17 = vor.u32 %v7043_v63, %v5379_v61 }
 0x17b   : > { %4079 = vmatpush.bf16.msrb.mxu0 %v5444_v10  ;;  %v3853_v8 = vpop.f32.mrf.mxu2  ;;  %v7107_v10 = vld [vmem:[%s7955_s3 + $0x614] sm:$0xf0]  ;;  %v6003_v14 = vld [vmem:[%s7955_s3 + $0x8e8] sm:$0xf]  ;;  %v5508_v25 = vor.u32 %v7075_v6, %v5507_v5 }
 0x17c   : > { %4092 = vmatpush.bf16.msrb.mxu1 %v5572_v12  ;;  %v7139_v12 = vld [vmem:[%s7955_s3 + $0x714] sm:$0xf0]  ;;  %v6131_v16 = vld [vmem:[%s7955_s3 + $0x9e8] sm:$0xf]  ;;  %v5636_v26 = vor.u32 %v7107_v10, %v5635_v7 }
 0x17d   : > { %4105 = vmatpush.bf16.msrb.mxu2 %v5700_v13  ;;  %v3866_v13 = vpop.f32.mrf.mxu3  ;;  %v7199_v15 = vld [vmem:[%s7955_s3 + $0x8f4] sm:$0xf0]  ;;  %v6259_v19 = vld [vmem:[%s7955_s3 + $0xae8] sm:$0xf] }
 0x17e   : > { %4118 = vmatpush.bf16.msrb.mxu3 %v5828_v18  ;;  %v7231_v18 = vld [vmem:[%s7955_s3 + $0x9f4] sm:$0xf0]  ;;  %v6387_v27 = vld [vmem:[%s7955_s3 + $0xbe8] sm:$0xf] }
 0x17f   : > { %4080 = vmatpush.bf16.msrb.mxu0 %v5428_v47  ;;  %v7263_v20 = vld [vmem:[%s7955_s3 + $0xaf4] sm:$0xf0]  ;;  %v5764_v47 = vor.u32 %v7139_v12, %v5763_v11  ;;  %v5987_v32 = vld [vmem:[%s7955_s3 + $0x8c8] sm:$0xf] }
 0x180   : > { %4093 = vmatpush.bf16.msrb.mxu1 %v5556_v50  ;;  %v7295_v29 = vld [vmem:[%s7955_s3 + $0xbf4] sm:$0xf0]  ;;  %v6004_v50 = vor.u32 %v7199_v15, %v6003_v14  ;;  %v6260_v31 = vor.u32 %v7263_v20, %v6259_v19  ;;  %v6115_v33 = vld [vmem:[%s7955_s3 + $0x9c8] sm:$0xf] }
 0x181   : > { %4106 = vmatpush.bf16.msrb.mxu2 %v5684_v30  ;;  %v6132_v30 = vor.u32 %v7231_v18, %v6131_v16  ;;  %v7195_v21 = vld [vmem:[%s7955_s3 + $0x8d4] sm:$0xf0]  ;;  %v6243_v36 = vld [vmem:[%s7955_s3 + $0xac8] sm:$0xf] }
 0x182   : > { %4119 = vmatpush.bf16.msrb.mxu3 %v5812_v34  ;;  %v6388_v34 = vor.u32 %v7295_v29, %v6387_v27  ;;  %v7227_v35 = vld [vmem:[%s7955_s3 + $0x9d4] sm:$0xf0]  ;;  %v6371_v38 = vld [vmem:[%s7955_s3 + $0xbc8] sm:$0xf]  ;;  %v5988_v40 = vor.u32 %v7195_v21, %v5987_v32 }
 0x183   : > { %4081 = vmatpush.bf16.msrb.mxu0 %v5412_v42  ;;  %v7259_v37 = vld [vmem:[%s7955_s3 + $0xad4] sm:$0xf0]  ;;  %v6116_v41 = vor.u32 %v7227_v35, %v6115_v33  ;;  %v5971_v44 = vld [vmem:[%s7955_s3 + $0x8a8] sm:$0xf] }
 0x184   : > { %4094 = vmatpush.bf16.msrb.mxu1 %v5540_v45  ;;  %v7291_v39 = vld [vmem:[%s7955_s3 + $0xbd4] sm:$0xf0]  ;;  %v6244_v42 = vor.u32 %v7259_v37, %v6243_v36  ;;  %v6227_v52 = vld [vmem:[%s7955_s3 + $0xaa8] sm:$0xf] }
 0x185   : > { %4107 = vmatpush.bf16.msrb.mxu2 %v5668_v46  ;;  %v7191_v45 = vld [vmem:[%s7955_s3 + $0x8b4] sm:$0xf0]  ;;  %v6099_v46 = vld [vmem:[%s7955_s3 + $0x9a8] sm:$0xf]  ;;  %v6372_v48 = vor.u32 %v7291_v39, %v6371_v38 }
 0x186   : > { %4120 = vmatpush.bf16.msrb.mxu3 %v5796_v54  ;;  %v7223_v49 = vld [vmem:[%s7955_s3 + $0x9b4] sm:$0xf0]  ;;  %v6355_v54 = vld [vmem:[%s7955_s3 + $0xba8] sm:$0xf]  ;;  %v5972_v56 = vor.u32 %v7191_v45, %v5971_v44 }
 0x187   : > { %4082 = vmatpush.bf16.msrb.mxu0 %v5396_v60  ;;  %v7255_v53 = vld [vmem:[%s7955_s3 + $0xab4] sm:$0xf0]  ;;  %v6100_v57 = vor.u32 %v7223_v49, %v6099_v46  ;;  %v5955_v59 = vld [vmem:[%s7955_s3 + $0x888] sm:$0xf] }
 0x188   : > { %4095 = vmatpush.bf16.msrb.mxu1 %v5524_v0  ;;  %v7287_v55 = vld [vmem:[%s7955_s3 + $0xbb4] sm:$0xf0]  ;;  %v6228_v58 = vor.u32 %v7255_v53, %v6227_v52  ;;  %v6083_v61 = vld [vmem:[%s7955_s3 + $0x988] sm:$0xf] }
 0x189   : > { %4108 = vmatpush.bf16.msrb.mxu2 %v5652_v1  ;;  %v7187_v60 = vld [vmem:[%s7955_s3 + $0x894] sm:$0xf0]  ;;  %v6356_v63 = vor.u32 %v7287_v55, %v6355_v54  ;;  %v6211_v1 = vld [vmem:[%s7955_s3 + $0xa88] sm:$0xf] }
 0x18a   : > { %4121 = vmatpush.bf16.msrb.mxu3 %v5780_v9  ;;  %v7219_v0 = vld [vmem:[%s7955_s3 + $0x994] sm:$0xf0]  ;;  %v6339_v6 = vld [vmem:[%s7955_s3 + $0xb88] sm:$0xf]  ;;  %v5956_v8 = vor.u32 %v7187_v60, %v5955_v59 }
 0x18b   : > { %4083 = vmatpush.bf16.msrb.mxu0 %v5380_v17  ;;  %v7251_v5 = vld [vmem:[%s7955_s3 + $0xa94] sm:$0xf0]  ;;  %v3877_v9 = vpop.f32.mrf.mxu0  ;;  %v6084_v10 = vor.u32 %v7219_v0, %v6083_v61  ;;  %v5939_v12 = vld [vmem:[%s7955_s3 + $0x868] sm:$0xf] }
 0x18c   : > { %4096 = vmatpush.bf16.msrb.mxu1 %v5508_v25  ;;  %v7283_v7 = vld [vmem:[%s7955_s3 + $0xb94] sm:$0xf0]  ;;  %v6212_v11 = vor.u32 %v7251_v5, %v6211_v1  ;;  %v6067_v14 = vld [vmem:[%s7955_s3 + $0x968] sm:$0xf]  ;;  %v3878_v15 = vadd.f32 %v3877_v9, %v8654_v43  ;;  %v3890_v16 = vpop.f32.mrf.mxu1 }
 0x18d   : > { %4109 = vmatpush.bf16.msrb.mxu2 %v5636_v26  ;;  %v7183_v13 = vld [vmem:[%s7955_s3 + $0x874] sm:$0xf0]  ;;  %v6340_v17 = vor.u32 %v7283_v7, %v6339_v6  ;;  %v6195_v19 = vld [vmem:[%s7955_s3 + $0xa68] sm:$0xf] }
 0x18e   : > { %4122 = vmatpush.bf16.msrb.mxu3 %v5764_v47  ;;  %4084 = vmatmul.bf16.vlgmr.msrb.gmra.mxu0 %v8123_v2  ;;  %v7215_v18 = vld [vmem:[%s7955_s3 + $0x974] sm:$0xf0]  ;;  %v6323_v25 = vld [vmem:[%s7955_s3 + $0xb68] sm:$0xf]  ;;  %v3891_v27 = vadd.f32 %v3890_v16, %v3878_v15  ;;  %v5940_v29 = vor.u32 %v7183_v13, %v5939_v12 }
 0x18f   : > { %4128 = vmatpush.bf16.msra.mxu0 %v6004_v50  ;;  %4097 = vmatmul.bf16.vlgmr.msrb.gmra.mxu1 %v8127_v4  ;;  %v7247_v20 = vld [vmem:[%s7955_s3 + $0xa74] sm:$0xf0]  ;;  %v6068_v43 = vor.u32 %v7215_v18, %v6067_v14  ;;  %v5923_v50 = vld [vmem:[%s7955_s3 + $0x848] sm:$0xf] }
 0x190   : > { %4141 = vmatpush.bf16.msra.mxu1 %v6132_v30  ;;  %4110 = vmatmul.bf16.vlgmr.msrb.gmra.mxu2 %v8120_v62  ;;  %v7279_v26 = vld [vmem:[%s7955_s3 + $0xb74] sm:$0xf0]  ;;  %v6196_v47 = vor.u32 %v7247_v20, %v6195_v19  ;;  %v6307_v38 = vld [vmem:[%s7955_s3 + $0xb48] sm:$0xf] }
 0x191   : > { %4154 = vmatpush.bf16.msra.mxu2 %v6260_v31  ;;  %4123 = vmatmul.bf16.vlgmr.msrb.gmra.mxu3 %v8125_v3  ;;  %v7179_v30 = vld [vmem:[%s7955_s3 + $0x854] sm:$0xf0]  ;;  %v6051_v31 = vld [vmem:[%s7955_s3 + $0x948] sm:$0xf]  ;;  %v6324_v21 = vor.u32 %v7279_v26, %v6323_v25 }
 0x192   : > { %4167 = vmatpush.bf16.msra.mxu3 %v6388_v34  ;;  %v7211_v33 = vld [vmem:[%s7955_s3 + $0x954] sm:$0xf0]  ;;  %v6179_v34 = vld [vmem:[%s7955_s3 + $0xa48] sm:$0xf] }
 0x193   : > { %4129 = vmatpush.bf16.msra.mxu0 %v5988_v40  ;;  %v3903_v32 = vpop.f32.mrf.mxu2  ;;  %v7243_v35 = vld [vmem:[%s7955_s3 + $0xa54] sm:$0xf0]  ;;  %v5924_v40 = vor.u32 %v7179_v30, %v5923_v50  ;;  %v6052_v44 = vor.u32 %v7211_v33, %v6051_v31  ;;  %v5907_v46 = vld [vmem:[%s7955_s3 + $0x828] sm:$0xf] }
 0x194   : > { %4142 = vmatpush.bf16.msra.mxu1 %v6116_v41  ;;  %v3904_v36 = vadd.f32 %v3903_v32, %v3891_v27  ;;  %v3916_v37 = vpop.f32.mrf.mxu3  ;;  %v7275_v39 = vld [vmem:[%s7955_s3 + $0xb54] sm:$0xf0]  ;;  %v6180_v45 = vor.u32 %v7243_v35, %v6179_v34  ;;  %v6035_v49 = vld [vmem:[%s7955_s3 + $0x928] sm:$0xf]  ;;  %v3892_v52 = vpop.f32.mrf.mxu1 }
 0x195   : > { %4155 = vmatpush.bf16.msra.mxu2 %v6244_v42  ;;  %v3879_v42 = vpop.f32.mrf.mxu0  ;;  %v6308_v53 = vor.u32 %v7275_v39, %v6307_v38  ;;  %v7207_v54 = vld [vmem:[%s7955_s3 + $0x934] sm:$0xf0]  ;;  %v6163_v55 = vld [vmem:[%s7955_s3 + $0xa28] sm:$0xf] }
 0x196   : > { %4168 = vmatpush.bf16.msra.mxu3 %v6372_v48  ;;  %v8725_v41 = vadd.f32 %v3916_v37, %v3904_v36  ;;  %v7175_v48 = vld [vmem:[%s7955_s3 + $0x834] sm:$0xf0]  ;;  %v5891_v60 = vld [vmem:[%s7955_s3 + $0x808] sm:$0xf] }
 0x197   : > { %4130 = vmatpush.bf16.msra.mxu0 %v5972_v56  ;;  %v7239_v56 = vld [vmem:[%s7955_s3 + $0xa34] sm:$0xf0]  ;;  %v5908_v59 = vor.u32 %v7175_v48, %v5907_v46  ;;  %v6019_v1 = vld [vmem:[%s7955_s3 + $0x908] sm:$0xf]  ;;  %v7527_v46 = vld [vmem:[#allocation1] sm:$0xff] }
 0x198   : > { %4143 = vmatpush.bf16.msra.mxu1 %v6100_v57  ;;  %v6291_v57 = vld [vmem:[%s7955_s3 + $0xb28] sm:$0xf]  ;;  %v7171_v61 = vld [vmem:[%s7955_s3 + $0x814] sm:$0xf0]  ;;  %v6164_v0 = vor.u32 %v7239_v56, %v6163_v55 }
 0x199   : > { %4156 = vmatpush.bf16.msra.mxu2 %v6228_v58  ;;  %v7271_v58 = vld [vmem:[%s7955_s3 + $0xb34] sm:$0xf0]  ;;  %v6147_v6 = vld [vmem:[%s7955_s3 + $0xa08] sm:$0xf]  ;;  %v5892_v16 = vor.u32 %v7171_v61, %v5891_v60 }
 0x19a   : > { %4169 = vmatpush.bf16.msra.mxu3 %v6356_v63  ;;  %v6036_v63 = vor.u32 %v7207_v54, %v6035_v49  ;;  %v7203_v5 = vld [vmem:[%s7955_s3 + $0x914] sm:$0xf0]  ;;  %v6515_v13 = vld [vmem:[%s7955_s3 + $0xce8] sm:$0xf] }
 0x19b   : > { %4131 = vmatpush.bf16.msra.mxu0 %v5956_v8  ;;  %v3905_v7 = vpop.f32.mrf.mxu2  ;;  %v6292_v8 = vor.u32 %v7271_v58, %v6291_v57  ;;  %v7235_v9 = vld [vmem:[%s7955_s3 + $0xa14] sm:$0xf0]  ;;  %v6643_v15 = vld [vmem:[%s7955_s3 + $0xde8] sm:$0xf]  ;;  %v6020_v20 = vor.u32 %v7203_v5, %v6019_v1 }
 0x19c   : > { %4144 = vmatpush.bf16.msra.mxu1 %v6084_v10  ;;  %v6275_v10 = vld [vmem:[%s7955_s3 + $0xb08] sm:$0xf]  ;;  %v3918_v12 = vpop.f32.mrf.mxu3  ;;  %v7327_v14 = vld [vmem:[%s7955_s3 + $0xcf4] sm:$0xf0]  ;;  %v6148_v25 = vor.u32 %v7235_v9, %v6147_v6 }
 0x19d   : > { %4157 = vmatpush.bf16.msra.mxu2 %v6212_v11  ;;  %v7267_v11 = vld [vmem:[%s7955_s3 + $0xb14] sm:$0xf0]  ;;  %v6771_v18 = vld [vmem:[%s7955_s3 + $0xee8] sm:$0xf] }
 0x19e   : > { %4170 = vmatpush.bf16.msra.mxu3 %v6340_v17  ;;  %v7359_v17 = vld [vmem:[%s7955_s3 + $0xdf4] sm:$0xf0]  ;;  %v6899_v26 = vld [vmem:[%s7955_s3 + $0xfe8] sm:$0xf] }
 0x19f   : > { %4132 = vmatpush.bf16.msra.mxu0 %v5940_v29  ;;  %v7391_v19 = vld [vmem:[%s7955_s3 + $0xef4] sm:$0xf0]  ;;  %v6276_v29 = vor.u32 %v7267_v11, %v6275_v10  ;;  %v6499_v30 = vld [vmem:[%s7955_s3 + $0xcc8] sm:$0xf] }
 0x1a0   : > { %4145 = vmatpush.bf16.msra.mxu1 %v6068_v43  ;;  %v7423_v27 = vld [vmem:[%s7955_s3 + $0xff4] sm:$0xf0]  ;;  %v6516_v43 = vor.u32 %v7327_v14, %v6515_v13  ;;  %v6772_v50 = vor.u32 %v7391_v19, %v6771_v18  ;;  %v6627_v32 = vld [vmem:[%s7955_s3 + $0xdc8] sm:$0xf] }
 0x1a1   : > { %4158 = vmatpush.bf16.msra.mxu2 %v6196_v47  ;;  %v6644_v47 = vor.u32 %v7359_v17, %v6643_v15  ;;  %v7323_v31 = vld [vmem:[%s7955_s3 + $0xcd4] sm:$0xf0]  ;;  %v6755_v34 = vld [vmem:[%s7955_s3 + $0xec8] sm:$0xf] }
 0x1a2   : > { %4171 = vmatpush.bf16.msra.mxu3 %v6324_v21  ;;  %v6900_v21 = vor.u32 %v7423_v27, %v6899_v26  ;;  %v7355_v33 = vld [vmem:[%s7955_s3 + $0xdd4] sm:$0xf0]  ;;  %v6883_v36 = vld [vmem:[%s7955_s3 + $0xfc8] sm:$0xf]  ;;  %v6500_v38 = vor.u32 %v7323_v31, %v6499_v30 }
 0x1a3   : > { %4133 = vmatpush.bf16.msra.mxu0 %v5924_v40  ;;  %v7387_v35 = vld [vmem:[%s7955_s3 + $0xed4] sm:$0xf0]  ;;  %v6628_v39 = vor.u32 %v7355_v33, %v6627_v32  ;;  %v6483_v42 = vld [vmem:[%s7955_s3 + $0xca8] sm:$0xf] }
 0x1a4   : > { %4146 = vmatpush.bf16.msra.mxu1 %v6052_v44  ;;  %v7419_v37 = vld [vmem:[%s7955_s3 + $0xfd4] sm:$0xf0]  ;;  %v6756_v40 = vor.u32 %v7387_v35, %v6755_v34  ;;  %v6739_v52 = vld [vmem:[%s7955_s3 + $0xea8] sm:$0xf] }
 0x1a5   : > { %4159 = vmatpush.bf16.msra.mxu2 %v6180_v45  ;;  %v7319_v44 = vld [vmem:[%s7955_s3 + $0xcb4] sm:$0xf0]  ;;  %v6611_v45 = vld [vmem:[%s7955_s3 + $0xda8] sm:$0xf]  ;;  %v6884_v48 = vor.u32 %v7419_v37, %v6883_v36 }
 0x1a6   : > { %4172 = vmatpush.bf16.msra.mxu3 %v6308_v53  ;;  %v7351_v49 = vld [vmem:[%s7955_s3 + $0xdb4] sm:$0xf0]  ;;  %v7528_v54 = vld [vmem:[#allocation1 + $0x12] sm:$0xff]  ;;  %v7530_v58 = vld [vmem:[#allocation1 + $0x1b] sm:$0xff] }
 0x1a7   : > { %4134 = vmatpush.bf16.msra.mxu0 %v5908_v59  ;;  %v7383_v53 = vld [vmem:[%s7955_s3 + $0xeb4] sm:$0xf0]  ;;  %v6867_v56 = vld [vmem:[%s7955_s3 + $0xfa8] sm:$0xf]  ;;  %v6484_v59 = vor.u32 %v7319_v44, %v6483_v42  ;;  %v6612_v60 = vor.u32 %v7351_v49, %v6611_v45 }
 0x1a8   : > { %4147 = vmatpush.bf16.msra.mxu1 %v6036_v63  ;;  %v7529_v55 = vld [vmem:[#allocation1 + $0x9] sm:$0xff]  ;;  %v6740_v61 = vor.u32 %v7383_v53, %v6739_v52  ;;  %v6467_v63 = vld [vmem:[%s7955_s3 + $0xc88] sm:$0xf] }
 0x1a9   : > { %4160 = vmatpush.bf16.msra.mxu2 %v6164_v0  ;;  %v7415_v57 = vld [vmem:[%s7955_s3 + $0xfb4] sm:$0xf0]  ;;  %v6595_v1 = vld [vmem:[%s7955_s3 + $0xd88] sm:$0xf] }
 0x1aa   : > { %4173 = vmatpush.bf16.msra.mxu3 %v6292_v8  ;;  %v7315_v0 = vld [vmem:[%s7955_s3 + $0xc94] sm:$0xf0]  ;;  %v6868_v5 = vor.u32 %v7415_v57, %v6867_v56  ;;  %v6723_v7 = vld [vmem:[%s7955_s3 + $0xe88] sm:$0xf] }
 0x1ab   : > { %4135 = vmatpush.bf16.msra.mxu0 %v5892_v16  ;;  %v7347_v6 = vld [vmem:[%s7955_s3 + $0xd94] sm:$0xf0]  ;;  %v3929_v9 = vpop.f32.mrf.mxu0  ;;  %v6851_v10 = vld [vmem:[%s7955_s3 + $0xf88] sm:$0xf]  ;;  %v6468_v13 = vor.u32 %v7315_v0, %v6467_v63 }
 0x1ac   : > { %4148 = vmatpush.bf16.msra.mxu1 %v6020_v20  ;;  %v7379_v8 = vld [vmem:[%s7955_s3 + $0xe94] sm:$0xf0]  ;;  %v3930_v12 = vadd.f32 %v3929_v9, %v8725_v41  ;;  %v3942_v14 = vpop.f32.mrf.mxu1  ;;  %v6596_v15 = vor.u32 %v7347_v6, %v6595_v1  ;;  %v6451_v17 = vld [vmem:[%s7955_s3 + $0xc68] sm:$0xf] }
 0x1ad   : > { %4161 = vmatpush.bf16.msra.mxu2 %v6148_v25  ;;  %v7411_v11 = vld [vmem:[%s7955_s3 + $0xf94] sm:$0xf0]  ;;  %v6724_v16 = vor.u32 %v7379_v8, %v6723_v7  ;;  %v6579_v19 = vld [vmem:[%s7955_s3 + $0xd68] sm:$0xf] }
 0x1ae   : > { %4174 = vmatpush.bf16.msra.mxu3 %v6276_v29  ;;  %4136 = vmatmul.bf16.vlgmr.msra.gmra.mxu0 %v7527_v46  ;;  %v7311_v18 = vld [vmem:[%s7955_s3 + $0xc74] sm:$0xf0]  ;;  %v6852_v20 = vor.u32 %v7411_v11, %v6851_v10  ;;  %v3943_v25 = vadd.f32 %v3942_v14, %v3930_v12  ;;  %v6707_v27 = vld [vmem:[%s7955_s3 + $0xe68] sm:$0xf] }
 0x1af   : > { %4180 = vmatpush.bf16.msrb.mxu0 %v6516_v43  ;;  %4149 = vmatmul.bf16.vlgmr.msra.gmra.mxu1 %v7529_v55  ;;  %v7343_v26 = vld [vmem:[%s7955_s3 + $0xd74] sm:$0xf0]  ;;  %v6835_v29 = vld [vmem:[%s7955_s3 + $0xf68] sm:$0xf] }
 0x1b0   : > { %4193 = vmatpush.bf16.msrb.mxu1 %v6644_v47  ;;  %4162 = vmatmul.bf16.vlgmr.msra.gmra.mxu2 %v7528_v54  ;;  %v7375_v41 = vld [vmem:[%s7955_s3 + $0xe74] sm:$0xf0]  ;;  %v6452_v47 = vor.u32 %v7311_v18, %v6451_v17  ;;  %v6435_v31 = vld [vmem:[%s7955_s3 + $0xc48] sm:$0xf]  ;;  %v6973_v17 = vld [vmem:[%s7955_s3 + $0x1ec] sm:$0xf] }
 0x1b1   : > { %4206 = vmatpush.bf16.msrb.mxu2 %v6772_v50  ;;  %4175 = vmatmul.bf16.vlgmr.msra.gmra.mxu3 %v7530_v58  ;;  %v7407_v43 = vld [vmem:[%s7955_s3 + $0xf74] sm:$0xf0]  ;;  %v6580_v50 = vor.u32 %v7343_v26, %v6579_v19  ;;  %v6708_v30 = vor.u32 %v7375_v41, %v6707_v27  ;;  %v6691_v36 = vld [vmem:[%s7955_s3 + $0xe48] sm:$0xf]  ;;  %v5237_v26 = vld [vmem:[%s7955_s3 + $0x2f8] sm:$0xf0] }
 0x1b2   : > { %4219 = vmatpush.bf16.msrb.mxu3 %v6900_v21  ;;  %v7307_v32 = vld [vmem:[%s7955_s3 + $0xc54] sm:$0xf0]  ;;  %v6563_v21 = vld [vmem:[%s7955_s3 + $0xd48] sm:$0xf]  ;;  %v6836_v33 = vor.u32 %v7407_v43, %v6835_v29  ;;  %v7037_v29 = vld [vmem:[%s7955_s3 + $0x3ec] sm:$0xf] }
 0x1b3   : > { %4181 = vmatpush.bf16.msrb.mxu0 %v6500_v38  ;;  %v3955_v34 = vpop.f32.mrf.mxu2  ;;  %v7339_v35 = vld [vmem:[%s7955_s3 + $0xd54] sm:$0xf0]  ;;  %v3931_v44 = vpop.f32.mrf.mxu0  ;;  %v6436_v45 = vor.u32 %v7307_v32, %v6435_v31  ;;  %v6419_v53 = vld [vmem:[%s7955_s3 + $0xc28] sm:$0xf]  ;;  %v5365_v43 = vld [vmem:[%s7955_s3 + $0x3f8] sm:$0xf0] }
 0x1b4   : > { %4194 = vmatpush.bf16.msrb.mxu1 %v6628_v39  ;;  %v7371_v37 = vld [vmem:[%s7955_s3 + $0xe54] sm:$0xf0]  ;;  %v3956_v38 = vadd.f32 %v3955_v34, %v3943_v25  ;;  %v3968_v39 = vpop.f32.mrf.mxu3  ;;  %v3944_v46 = vpop.f32.mrf.mxu1  ;;  %v6564_v49 = vor.u32 %v7339_v35, %v6563_v21  ;;  %v6547_v55 = vld [vmem:[%s7955_s3 + $0xd28] sm:$0xf]  ;;  %v7005_v25 = vld [vmem:[%s7955_s3 + $0x2ec] sm:$0xf]  ;;  %v5368_v34 = vor.u32 %v7037_v29, %v5365_v43 }
 0x1b5   : > { %4207 = vmatpush.bf16.msrb.mxu2 %v6756_v40  ;;  %v6819_v40 = vld [vmem:[%s7955_s3 + $0xf48] sm:$0xf]  ;;  %v7403_v42 = vld [vmem:[%s7955_s3 + $0xf54] sm:$0xf0]  ;;  %v6692_v52 = vor.u32 %v7371_v37, %v6691_v36  ;;  %v5240_v31 = vor.u32 %v7005_v25, %v5237_v26  ;;  %v6937_v32 = vld [vmem:[%s7955_s3 + $0xcc] sm:$0xf] }
 0x1b6   : > { %4220 = vmatpush.bf16.msrb.mxu3 %v6884_v48  ;;  %v8792_v48 = vadd.f32 %v3968_v39, %v3956_v38  ;;  %v7303_v54 = vld [vmem:[%s7955_s3 + $0xc34] sm:$0xf0]  ;;  %v6820_v56 = vor.u32 %v7403_v42, %v6819_v40  ;;  %v6675_v58 = vld [vmem:[%s7955_s3 + $0xe28] sm:$0xf]  ;;  %v4965_v21 = vld [vmem:[%s7955_s3 + $0xd8] sm:$0xf0] }
 0x1b7   : > { %4182 = vmatpush.bf16.msrb.mxu0 %v6484_v59  ;;  %v7335_v57 = vld [vmem:[%s7955_s3 + $0xd34] sm:$0xf0]  ;;  %v6420_v63 = vor.u32 %v7303_v54, %v6419_v53  ;;  %v6403_v0 = vld [vmem:[%s7955_s3 + $0xc08] sm:$0xf]  ;;  %v5093_v35 = vld [vmem:[%s7955_s3 + $0x1d8] sm:$0xf0]  ;;  %v4968_v40 = vor.u32 %v6937_v32, %v4965_v21 }
 0x1b8   : > { %4195 = vmatpush.bf16.msrb.mxu1 %v6612_v60  ;;  %v7367_v59 = vld [vmem:[%s7955_s3 + $0xe34] sm:$0xf0]  ;;  %v6803_v60 = vld [vmem:[%s7955_s3 + $0xf28] sm:$0xf]  ;;  %v7001_v36 = vld [vmem:[%s7955_s3 + $0x2cc] sm:$0xf] }
 0x1b9   : > { %4208 = vmatpush.bf16.msrb.mxu2 %v6740_v61  ;;  %v7399_v61 = vld [vmem:[%s7955_s3 + $0xf34] sm:$0xf0]  ;;  %v6676_v6 = vor.u32 %v7367_v59, %v6675_v58  ;;  %v6531_v7 = vld [vmem:[%s7955_s3 + $0xd08] sm:$0xf]  ;;  %v5221_v37 = vld [vmem:[%s7955_s3 + $0x2d8] sm:$0xf0] }
 0x1ba   : > { %4221 = vmatpush.bf16.msrb.mxu3 %v6868_v5  ;;  %v7299_v1 = vld [vmem:[%s7955_s3 + $0xc14] sm:$0xf0]  ;;  %v6548_v5 = vor.u32 %v7335_v57, %v6547_v55  ;;  %v6659_v9 = vld [vmem:[%s7955_s3 + $0xe08] sm:$0xf]  ;;  %v6804_v10 = vor.u32 %v7399_v61, %v6803_v60  ;;  %v7033_v38 = vld [vmem:[%s7955_s3 + $0x3cc] sm:$0xf]  ;;  %v5224_v44 = vor.u32 %v7001_v36, %v5221_v37 }
 0x1bb   : > { %4183 = vmatpush.bf16.msrb.mxu0 %v6468_v13  ;;  %v7331_v8 = vld [vmem:[%s7955_s3 + $0xd14] sm:$0xf0]  ;;  %v6787_v12 = vld [vmem:[%s7955_s3 + $0xf08] sm:$0xf]  ;;  %v3957_v14 = vpop.f32.mrf.mxu2  ;;  %v6404_v19 = vor.u32 %v7299_v1, %v6403_v0  ;;  %v5349_v39 = vld [vmem:[%s7955_s3 + $0x3d8] sm:$0xf0] }
 0x1bc   : > { %4196 = vmatpush.bf16.msrb.mxu1 %v6596_v15  ;;  %v7363_v11 = vld [vmem:[%s7955_s3 + $0xe14] sm:$0xf0]  ;;  %v6941_v15 = vld [vmem:[%s7955_s3 + $0xec] sm:$0xf]  ;;  %v3970_v18 = vpop.f32.mrf.mxu3  ;;  %v6532_v27 = vor.u32 %v7331_v8, %v6531_v7  ;;  %v4949_v46 = vld [vmem:[%s7955_s3 + $0xb8] sm:$0xf0]  ;;  %v5352_v53 = vor.u32 %v7033_v38, %v5349_v39 }
 0x1bd   : > { %4209 = vmatpush.bf16.msrb.mxu2 %v6724_v16  ;;  %v7395_v13 = vld [vmem:[%s7955_s3 + $0xf14] sm:$0xf0]  ;;  %v4981_v16 = vld [vmem:[%s7955_s3 + $0xf8] sm:$0xf0]  ;;  %v6660_v41 = vor.u32 %v7363_v11, %v6659_v9  ;;  %v6997_v55 = vld [vmem:[%s7955_s3 + $0x2ac] sm:$0xf] }
 0x1be   : > { %4222 = vmatpush.bf16.msrb.mxu3 %v6852_v20  ;;  %v5109_v20 = vld [vmem:[%s7955_s3 + $0x1f8] sm:$0xf0]  ;;  %v7532_v57 = vld [vmem:[#allocation1 + $0x36] sm:$0xff]  ;;  %v7534_v61 = vld [vmem:[#allocation1 + $0x3f] sm:$0xff] }
 0x1bf   : > { %4184 = vmatpush.bf16.msrb.mxu0 %v6452_v47  ;;  %v6788_v47 = vor.u32 %v7395_v13, %v6787_v12  ;;  %v5077_v54 = vld [vmem:[%s7955_s3 + $0x1b8] sm:$0xf0]  ;;  %v7029_v59 = vld [vmem:[%s7955_s3 + $0x3ac] sm:$0xf] }
 0x1c0   : > { %4197 = vmatpush.bf16.msrb.mxu1 %v6580_v50  ;;  %v4984_v50 = vor.u32 %v6941_v15, %v4981_v16  ;;  %v7533_v58 = vld [vmem:[#allocation1 + $0x2d] sm:$0xff]  ;;  %v6961_v7 = vld [vmem:[%s7955_s3 + $0x18c] sm:$0xf] }
 0x1c1   : > { %4210 = vmatpush.bf16.msrb.mxu2 %v6708_v30  ;;  %v5112_v30 = vor.u32 %v6973_v17, %v5109_v20  ;;  %v5333_v60 = vld [vmem:[%s7955_s3 + $0x3b8] sm:$0xf0]  ;;  %v7025_v13 = vld [vmem:[%s7955_s3 + $0x38c] sm:$0xf] }
 0x1c2   : > { %4223 = vmatpush.bf16.msrb.mxu3 %v6836_v33  ;;  %v6969_v33 = vld [vmem:[%s7955_s3 + $0x1cc] sm:$0xf]  ;;  %v5336_v8 = vor.u32 %v7029_v59, %v5333_v60  ;;  %v5061_v9 = vld [vmem:[%s7955_s3 + $0x198] sm:$0xf0] }
 0x1c3   : > { %4185 = vmatpush.bf16.msrb.mxu0 %v6436_v45  ;;  %v5096_v42 = vor.u32 %v6969_v33, %v5093_v35  ;;  %v6933_v45 = vld [vmem:[%s7955_s3 + $0xac] sm:$0xf]  ;;  %v5189_v11 = vld [vmem:[%s7955_s3 + $0x298] sm:$0xf0]  ;;  %v5064_v18 = vor.u32 %v6961_v7, %v5061_v9 }
 0x1c4   : > { %4198 = vmatpush.bf16.msrb.mxu1 %v6564_v49  ;;  %v6965_v49 = vld [vmem:[%s7955_s3 + $0x1ac] sm:$0xf]  ;;  %v5317_v14 = vld [vmem:[%s7955_s3 + $0x398] sm:$0xf0] }
 0x1c5   : > { %4211 = vmatpush.bf16.msrb.mxu2 %v6692_v52  ;;  %v7531_v52 = vld [vmem:[#allocation1 + $0x24] sm:$0xff]  ;;  %v5080_v0 = vor.u32 %v6965_v49, %v5077_v54  ;;  %v6925_v20 = vld [vmem:[%s7955_s3 + $0x6c] sm:$0xf]  ;;  %v4917_v25 = vld [vmem:[%s7955_s3 + $0x78] sm:$0xf0] }
 0x1c6   : > { %4224 = vmatpush.bf16.msrb.mxu3 %v6820_v56  ;;  %v5205_v56 = vld [vmem:[%s7955_s3 + $0x2b8] sm:$0xf0]  ;;  %v6957_v26 = vld [vmem:[%s7955_s3 + $0x16c] sm:$0xf] }
 0x1c7   : > { %4186 = vmatpush.bf16.msrb.mxu0 %v6420_v63  ;;  %v4952_v63 = vor.u32 %v6933_v45, %v4949_v46  ;;  %v5208_v1 = vor.u32 %v6997_v55, %v5205_v56  ;;  %v5045_v29 = vld [vmem:[%s7955_s3 + $0x178] sm:$0xf0]  ;;  %v6989_v43 = vld [vmem:[%s7955_s3 + $0x26c] sm:$0xf] }
 0x1c8   : > { %4199 = vmatpush.bf16.msrb.mxu1 %v6548_v5  ;;  %v6929_v5 = vld [vmem:[%s7955_s3 + $0x8c] sm:$0xf]  ;;  %v4901_v33 = vld [vmem:[%s7955_s3 + $0x58] sm:$0xf0] }
 0x1c9   : > { %4212 = vmatpush.bf16.msrb.mxu2 %v6676_v6  ;;  %v4933_v6 = vld [vmem:[%s7955_s3 + $0x98] sm:$0xf0]  ;;  %v6921_v21 = vld [vmem:[%s7955_s3 + $0x4c] sm:$0xf] }
 0x1ca   : > { %4225 = vmatpush.bf16.msrb.mxu3 %v6804_v10  ;;  %v6993_v10 = vld [vmem:[%s7955_s3 + $0x28c] sm:$0xf]  ;;  %v4936_v16 = vor.u32 %v6929_v5, %v4933_v6  ;;  %v5029_v37 = vld [vmem:[%s7955_s3 + $0x158] sm:$0xf0]  ;;  %v4904_v49 = vor.u32 %v6921_v21, %v4901_v33 }
 0x1cb   : > { %4187 = vmatpush.bf16.msrb.mxu0 %v6404_v19  ;;  %v3981_v12 = vpop.f32.mrf.mxu0  ;;  %v5192_v19 = vor.u32 %v6993_v10, %v5189_v11  ;;  %v6985_v38 = vld [vmem:[%s7955_s3 + $0x24c] sm:$0xf]  ;;  %v5157_v39 = vld [vmem:[%s7955_s3 + $0x258] sm:$0xf0] }
 0x1cc   : > { %4200 = vmatpush.bf16.msrb.mxu1 %v6532_v27  ;;  %v3982_v15 = vadd.f32 %v3981_v12, %v8792_v48  ;;  %v3994_v17 = vpop.f32.mrf.mxu1  ;;  %v5320_v27 = vor.u32 %v7025_v13, %v5317_v14  ;;  %v5173_v48 = vld [vmem:[%s7955_s3 + $0x278] sm:$0xf0]  ;;  %v5160_v55 = vor.u32 %v6985_v38, %v5157_v39  ;;  %v6917_v56 = vld [vmem:[%s7955_s3 + $0x2c] sm:$0xf] }
 0x1cd   : > { %4213 = vmatpush.bf16.msrb.mxu2 %v6660_v41  ;;  %v5176_v32 = vor.u32 %v6989_v43, %v5173_v48  ;;  %v5285_v45 = vld [vmem:[%s7955_s3 + $0x358] sm:$0xf0]  ;;  %v6913_v7 = vld [vmem:[%s7955_s3 + $0xc] sm:$0xf] }
 0x1ce   : > { %4226 = vmatpush.bf16.msrb.mxu3 %v6788_v47  ;;  %4188 = vmatmul.bf16.vlgmr.msrb.gmra.mxu0 %v7531_v52  ;;  %v3995_v41 = vadd.f32 %v3994_v17, %v3982_v15  ;;  %v7021_v47 = vld [vmem:[%s7955_s3 + $0x36c] sm:$0xf]  ;;  %v5013_v60 = vld [vmem:[%s7955_s3 + $0x138] sm:$0xf0] }
 0x1cf   : > { %4232 = vmatpush.bf16.msra.mxu0 %v4984_v50  ;;  %4201 = vmatmul.bf16.vlgmr.msrb.gmra.mxu1 %v7533_v58  ;;  %v5301_v50 = vld [vmem:[%s7955_s3 + $0x378] sm:$0xf0]  ;;  %v6949_v58 = vld [vmem:[%s7955_s3 + $0x12c] sm:$0xf] }
 0x1d0   : > { %4245 = vmatpush.bf16.msra.mxu1 %v5112_v30  ;;  %4214 = vmatmul.bf16.vlgmr.msrb.gmra.mxu2 %v7532_v57  ;;  %v4920_v30 = vor.u32 %v6925_v20, %v4917_v25  ;;  %v5304_v35 = vor.u32 %v7021_v47, %v5301_v50  ;;  %v4885_v57 = vld [vmem:[%s7955_s3 + $0x38] sm:$0xf0]  ;;  %v5016_v10 = vor.u32 %v6949_v58, %v5013_v60  ;;  %v6945_v12 = vld [vmem:[%s7955_s3 + $0x10c] sm:$0xf] }
 0x1d1   : > { %4258 = vmatpush.bf16.msra.mxu2 %v5240_v31  ;;  %4227 = vmatmul.bf16.vlgmr.msrb.gmra.mxu3 %v7534_v61  ;;  %v5048_v31 = vor.u32 %v6957_v26, %v5045_v29  ;;  %v6981_v61 = vld [vmem:[%s7955_s3 + $0x22c] sm:$0xf]  ;;  %v5269_v5 = vld [vmem:[%s7955_s3 + $0x338] sm:$0xf0]  ;;  %v4888_v6 = vor.u32 %v6917_v56, %v4885_v57 }
 0x1d2   : > { %4271 = vmatpush.bf16.msra.mxu3 %v5368_v34  ;;  %v6953_v34 = vld [vmem:[%s7955_s3 + $0x14c] sm:$0xf]  ;;  %v4997_v13 = vld [vmem:[%s7955_s3 + $0x118] sm:$0xf0] }
 0x1d3   : > { %4233 = vmatpush.bf16.msra.mxu0 %v4968_v40  ;;  %v4007_v36 = vpop.f32.mrf.mxu2  ;;  %v3983_v46 = vpop.f32.mrf.mxu0  ;;  %v5032_v54 = vor.u32 %v6953_v34, %v5029_v37  ;;  %v6977_v14 = vld [vmem:[%s7955_s3 + $0x20c] sm:$0xf]  ;;  %v5493_v20 = vld [vmem:[%s7955_s3 + $0x4f8] sm:$0xf0]  ;;  %v5000_v48 = vor.u32 %v6945_v12, %v4997_v13 }
 0x1d4   : > { %4246 = vmatpush.bf16.msra.mxu1 %v5096_v42  ;;  %v4008_v40 = vadd.f32 %v4007_v36, %v3995_v41  ;;  %v4020_v42 = vpop.f32.mrf.mxu3  ;;  %v3996_v52 = vpop.f32.mrf.mxu1  ;;  %v7009_v17 = vld [vmem:[%s7955_s3 + $0x30c] sm:$0xf]  ;;  %v5621_v41 = vld [vmem:[%s7955_s3 + $0x5f8] sm:$0xf0] }
 0x1d5   : > { %4259 = vmatpush.bf16.msra.mxu2 %v5224_v44  ;;  %v7017_v44 = vld [vmem:[%s7955_s3 + $0x34c] sm:$0xf]  ;;  %v5749_v43 = vld [vmem:[%s7955_s3 + $0x6f8] sm:$0xf0] }
 0x1d6   : > { %4272 = vmatpush.bf16.msra.mxu3 %v5352_v53  ;;  %v4021_v53 = vadd.f32 %v4020_v42, %v4008_v40  ;;  %v5288_v59 = vor.u32 %v7017_v44, %v5285_v45  ;;  %v7101_v25 = vld [vmem:[%s7955_s3 + $0x5ec] sm:$0xf]  ;;  %v5605_v38 = vld [vmem:[%s7955_s3 + $0x5d8] sm:$0xf0] }
 0x1d7   : > { %4234 = vmatpush.bf16.msra.mxu0 %v4952_v63  ;;  %v5141_v63 = vld [vmem:[%s7955_s3 + $0x238] sm:$0xf0]  ;;  %v7133_v29 = vld [vmem:[%s7955_s3 + $0x6ec] sm:$0xf]  ;;  %v5624_v21 = vor.u32 %v7101_v25, %v5621_v41 }
 0x1d8   : > { %4247 = vmatpush.bf16.msra.mxu1 %v5080_v0  ;;  %v4444_v0 = vrot.slane %v4021_v53, 6  ;;  %v5144_v11 = vor.u32 %v6981_v61, %v5141_v63  ;;  %v7165_v50 = vld [vmem:[%s7955_s3 + $0x7ec] sm:$0xf]  ;;  %v5752_v33 = vor.u32 %v7133_v29, %v5749_v43  ;;  %v5733_v40 = vld [vmem:[%s7955_s3 + $0x6d8] sm:$0xf0] }
 0x1d9   : > { %4260 = vmatpush.bf16.msra.mxu2 %v5208_v1  ;;  %v7013_v1 = vld [vmem:[%s7955_s3 + $0x32c] sm:$0xf]  ;;  %v5861_v44 = vld [vmem:[%s7955_s3 + $0x7d8] sm:$0xf0] }
 0x1da   : > { %4273 = vmatpush.bf16.msra.mxu3 %v5336_v8  ;;  %v4869_v8 = vld [vmem:[%s7955_s3 + $0x18] sm:$0xf0]  ;;  %v8871_v9 = vsel %vm4447_vm0, %v8584_v51, %v4444_v0  ;;  %v5272_v15 = vor.u32 %v7013_v1, %v5269_v5  ;;  %v7065_v34 = vld [vmem:[%s7955_s3 + $0x4cc] sm:$0xf] }
 0x1db   : > { %4235 = vmatpush.bf16.msra.mxu0 %v4936_v16  ;;  %v5125_v16 = vld [vmem:[%s7955_s3 + $0x218] sm:$0xf0]  ;;  %v4009_v51 = vpop.f32.mrf.mxu2  ;;  %v7097_v36 = vld [vmem:[%s7955_s3 + $0x5cc] sm:$0xf] }
 0x1dc   : > { %4248 = vmatpush.bf16.msra.mxu1 %v5064_v18  ;;  %v5253_v18 = vld [vmem:[%s7955_s3 + $0x318] sm:$0xf0]  ;;  %v4022_v26 = vpop.f32.mrf.mxu3  ;;  %v5128_v47 = vor.u32 %v6977_v14, %v5125_v16  ;;  %v7129_v39 = vld [vmem:[%s7955_s3 + $0x6cc] sm:$0xf]  ;;  %v5608_v46 = vor.u32 %v7097_v36, %v5605_v38 }
 0x1dd   : > { %4261 = vmatpush.bf16.msra.mxu2 %v5192_v19  ;;  %v7069_v19 = vld [vmem:[%s7955_s3 + $0x4ec] sm:$0xf]  ;;  %v5461_v53 = vld [vmem:[%s7955_s3 + $0x4b8] sm:$0xf0] }
 0x1de   : > { %4274 = vmatpush.bf16.msra.mxu3 %v5320_v27  ;;  %v4872_v27 = vor.u32 %v6913_v7, %v4869_v8  ;;  %v7161_v42 = vld [vmem:[%s7955_s3 + $0x7cc] sm:$0xf]  ;;  %v5589_v56 = vld [vmem:[%s7955_s3 + $0x5b8] sm:$0xf0] }
 0x1df   : > { %4236 = vmatpush.bf16.msra.mxu0 %v4920_v30  ;;  %v5877_v30 = vld [vmem:[%s7955_s3 + $0x7f8] sm:$0xf0]  ;;  %v7061_v52 = vld [vmem:[%s7955_s3 + $0x4ac] sm:$0xf] }
 0x1e0   : > { %4249 = vmatpush.bf16.msra.mxu1 %v5048_v31  ;;  %v5256_v31 = vor.u32 %v7009_v17, %v5253_v18  ;;  %v5880_v37 = vor.u32 %v7165_v50, %v5877_v30  ;;  %v7125_v57 = vld [vmem:[%s7955_s3 + $0x6ac] sm:$0xf]  ;;  %v5717_v58 = vld [vmem:[%s7955_s3 + $0x6b8] sm:$0xf0]  ;;  %v5464_v61 = vor.u32 %v7061_v52, %v5461_v53 }
 0x1e1   : > { %4262 = vmatpush.bf16.msra.mxu2 %v5176_v32  ;;  %v5496_v32 = vor.u32 %v7069_v19, %v5493_v20  ;;  %v5845_v60 = vld [vmem:[%s7955_s3 + $0x7b8] sm:$0xf0]  ;;  %v5720_v0 = vor.u32 %v7125_v57, %v5717_v58  ;;  %v7089_v5 = vld [vmem:[%s7955_s3 + $0x58c] sm:$0xf] }
 0x1e2   : > { %4275 = vmatpush.bf16.msra.mxu3 %v5304_v35  ;;  %v5477_v35 = vld [vmem:[%s7955_s3 + $0x4d8] sm:$0xf0]  ;;  %v7153_v8 = vld [vmem:[%s7955_s3 + $0x78c] sm:$0xf] }
 0x1e3   : > { %4237 = vmatpush.bf16.msra.mxu0 %v4904_v49  ;;  %v5480_v45 = vor.u32 %v7065_v34, %v5477_v35  ;;  %v5736_v49 = vor.u32 %v7129_v39, %v5733_v40  ;;  %v5445_v1 = vld [vmem:[%s7955_s3 + $0x498] sm:$0xf0]  ;;  %v7053_v14 = vld [vmem:[%s7955_s3 + $0x46c] sm:$0xf] }
 0x1e4   : > { %4250 = vmatpush.bf16.msra.mxu1 %v5032_v54  ;;  %v7093_v54 = vld [vmem:[%s7955_s3 + $0x5ac] sm:$0xf]  ;;  %v5701_v7 = vld [vmem:[%s7955_s3 + $0x698] sm:$0xf0] }
 0x1e5   : > { %4263 = vmatpush.bf16.msra.mxu2 %v5160_v55  ;;  %v5864_v55 = vor.u32 %v7161_v42, %v5861_v44  ;;  %v5592_v63 = vor.u32 %v7093_v54, %v5589_v56  ;;  %v7085_v16 = vld [vmem:[%s7955_s3 + $0x56c] sm:$0xf]  ;;  %v5557_v51 = vld [vmem:[%s7955_s3 + $0x578] sm:$0xf0] }
 0x1e6   : > { %4276 = vmatpush.bf16.msra.mxu3 %v5288_v59  ;;  %v7157_v59 = vld [vmem:[%s7955_s3 + $0x7ac] sm:$0xf]  ;;  %v5685_v20 = vld [vmem:[%s7955_s3 + $0x678] sm:$0xf0]  ;;  %v5560_v29 = vor.u32 %v7085_v16, %v5557_v51 }
 0x1e7   : > { %4238 = vmatpush.bf16.msra.mxu0 %v4888_v6  ;;  %v5573_v6 = vld [vmem:[%s7955_s3 + $0x598] sm:$0xf0]  ;;  %v7117_v19 = vld [vmem:[%s7955_s3 + $0x66c] sm:$0xf] }
 0x1e8   : > { %4251 = vmatpush.bf16.msra.mxu1 %v5016_v10  ;;  %v5829_v10 = vld [vmem:[%s7955_s3 + $0x798] sm:$0xf0]  ;;  %v5576_v12 = vor.u32 %v7089_v5, %v5573_v6  ;;  %v7149_v26 = vld [vmem:[%s7955_s3 + $0x76c] sm:$0xf]  ;;  %v5688_v43 = vor.u32 %v7117_v19, %v5685_v20 }
 0x1e9   : > { %4264 = vmatpush.bf16.msra.mxu2 %v5144_v11  ;;  %v5832_v18 = vor.u32 %v7153_v8, %v5829_v10  ;;  %v7081_v50 = vld [vmem:[%s7955_s3 + $0x54c] sm:$0xf]  ;;  %v5525_v54 = vld [vmem:[%s7955_s3 + $0x538] sm:$0xf0] }
 0x1ea   : > { %4277 = vmatpush.bf16.msra.mxu3 %v5272_v15  ;;  %v5429_v15 = vld [vmem:[%s7955_s3 + $0x478] sm:$0xf0]  ;;  %v7145_v36 = vld [vmem:[%s7955_s3 + $0x74c] sm:$0xf] }
 0x1eb   : > { %4239 = vmatpush.bf16.msra.mxu0 %v4872_v27  ;;  %v4033_v11 = vpop.f32.mrf.mxu0  ;;  %v5813_v27 = vld [vmem:[%s7955_s3 + $0x778] sm:$0xf0]  ;;  %v5432_v41 = vor.u32 %v7053_v14, %v5429_v15  ;;  %v7141_v57 = vld [vmem:[%s7955_s3 + $0x72c] sm:$0xf] }
 0x1ec   : > { %4252 = vmatpush.bf16.msra.mxu1 %v5000_v48  ;;  %v4046_v17 = vpop.f32.mrf.mxu1  ;;  %v7049_v48 = vld [vmem:[%s7955_s3 + $0x44c] sm:$0xf]  ;;  %v5653_v56 = vld [vmem:[%s7955_s3 + $0x638] sm:$0xf0] }
 0x1ed   : > { %4265 = vmatpush.bf16.msra.mxu2 %v5128_v47  ;;  %v4047_v25 = vadd.f32 %v4046_v17, %v4033_v11  ;;  %v5413_v47 = vld [vmem:[%s7955_s3 + $0x458] sm:$0xf0]  ;;  %v7105_v5 = vld [vmem:[%s7955_s3 + $0x60c] sm:$0xf] }
 0x1ee   : > { %4278 = vmatpush.bf16.msra.mxu3 %v5256_v31  ;;  %4240 = vmatmul.bf16.vlgmr.msra.gmra.mxu0 %v8084_v23  ;;  %v5848_v23 = vor.u32 %v7157_v59, %v5845_v60  ;;  %v5816_v31 = vor.u32 %v7149_v26, %v5813_v27  ;;  %v5416_v38 = vor.u32 %v7049_v48, %v5413_v47  ;;  %v5781_v58 = vld [vmem:[%s7955_s3 + $0x738] sm:$0xf0]  ;;  %v7041_v60 = vld [vmem:[%s7955_s3 + $0x40c] sm:$0xf] }
 0x1ef   : > { %4284 = vmatpush.bf16.msrb.mxu0 %v5496_v32  ;;  %4253 = vmatmul.bf16.vlgmr.msra.gmra.mxu1 %v8091_v28  ;;  %v5541_v32 = vld [vmem:[%s7955_s3 + $0x558] sm:$0xf0]  ;;  %v5784_v6 = vor.u32 %v7141_v57, %v5781_v58  ;;  %v7261_v15 = vld [vmem:[%s7955_s3 + $0xaec] sm:$0xf] }
 0x1f0   : > { %4297 = vmatpush.bf16.msrb.mxu1 %v5624_v21  ;;  %4266 = vmatmul.bf16.vlgmr.msra.gmra.mxu2 %v8082_v22  ;;  %v7057_v22 = vld [vmem:[%s7955_s3 + $0x48c] sm:$0xf]  ;;  %v5544_v42 = vor.u32 %v7081_v50, %v5541_v32  ;;  %v5765_v8 = vld [vmem:[%s7955_s3 + $0x718] sm:$0xf0] }
 0x1f1   : > { %4310 = vmatpush.bf16.msrb.mxu2 %v5752_v33  ;;  %4279 = vmatmul.bf16.vlgmr.msra.gmra.mxu3 %v8086_v24  ;;  %v7121_v24 = vld [vmem:[%s7955_s3 + $0x68c] sm:$0xf]  ;;  %v5448_v28 = vor.u32 %v7057_v22, %v5445_v1  ;;  %v5669_v33 = vld [vmem:[%s7955_s3 + $0x658] sm:$0xf0] }
 0x1f2   : > { %4323 = vmatpush.bf16.msrb.mxu3 %v5880_v37  ;;  %v5704_v13 = vor.u32 %v7121_v24, %v5701_v7  ;;  %v7113_v21 = vld [vmem:[%s7955_s3 + $0x64c] sm:$0xf]  ;;  %v5797_v37 = vld [vmem:[%s7955_s3 + $0x758] sm:$0xf0] }
 0x1f3   : > { %4285 = vmatpush.bf16.msrb.mxu0 %v5480_v45  ;;  %v4059_v30 = vpop.f32.mrf.mxu2  ;;  %v4035_v40 = vpop.f32.mrf.mxu0  ;;  %v5672_v44 = vor.u32 %v7113_v21, %v5669_v33  ;;  %v7045_v45 = vld [vmem:[%s7955_s3 + $0x42c] sm:$0xf]  ;;  %v5800_v53 = vor.u32 %v7145_v36, %v5797_v37  ;;  %v5509_v1 = vld [vmem:[%s7955_s3 + $0x518] sm:$0xf0] }
 0x1f4   : > { %4298 = vmatpush.bf16.msrb.mxu1 %v5608_v46  ;;  %v4060_v34 = vadd.f32 %v4059_v30, %v4047_v25  ;;  %v4072_v35 = vpop.f32.mrf.mxu3  ;;  %v5397_v46 = vld [vmem:[%s7955_s3 + $0x438] sm:$0xf0]  ;;  %v4048_v52 = vpop.f32.mrf.mxu1  ;;  %v7073_v22 = vld [vmem:[%s7955_s3 + $0x50c] sm:$0xf] }
 0x1f5   : > { %4311 = vmatpush.bf16.msrb.mxu2 %v5736_v49  ;;  %v7077_v49 = vld [vmem:[%s7955_s3 + $0x52c] sm:$0xf]  ;;  %v5400_v59 = vor.u32 %v7045_v45, %v5397_v46  ;;  %v5637_v24 = vld [vmem:[%s7955_s3 + $0x618] sm:$0xf0]  ;;  %v5512_v17 = vor.u32 %v7073_v22, %v5509_v1 }
 0x1f6   : > { %4324 = vmatpush.bf16.msrb.mxu3 %v5864_v55  ;;  %v8931_v39 = vadd.f32 %v4072_v35, %v4060_v34  ;;  %v7109_v55 = vld [vmem:[%s7955_s3 + $0x62c] sm:$0xf]  ;;  %v6005_v11 = vld [vmem:[%s7955_s3 + $0x8f8] sm:$0xf0] }
 0x1f7   : > { %4286 = vmatpush.bf16.msrb.mxu0 %v5464_v61  ;;  %v5381_v61 = vld [vmem:[%s7955_s3 + $0x418] sm:$0xf0]  ;;  %v7137_v7 = vld [vmem:[%s7955_s3 + $0x70c] sm:$0xf] }
 0x1f8   : > { %4299 = vmatpush.bf16.msrb.mxu1 %v5592_v63  ;;  %v5528_v63 = vor.u32 %v7077_v49, %v5525_v54  ;;  %v6133_v14 = vld [vmem:[%s7955_s3 + $0x9f8] sm:$0xf0]  ;;  %v7293_v51 = vld [vmem:[%s7955_s3 + $0xbec] sm:$0xf]  ;;  %v5768_v20 = vor.u32 %v7137_v7, %v5765_v8 }
 0x1f9   : > { %4312 = vmatpush.bf16.msrb.mxu2 %v5720_v0  ;;  %v5656_v0 = vor.u32 %v7109_v55, %v5653_v56  ;;  %v6261_v16 = vld [vmem:[%s7955_s3 + $0xaf8] sm:$0xf0]  ;;  %v7257_v50 = vld [vmem:[%s7955_s3 + $0xacc] sm:$0xf] }
 0x1fa   : > { %4325 = vmatpush.bf16.msrb.mxu3 %v5848_v23  ;;  %v6389_v19 = vld [vmem:[%s7955_s3 + $0xbf8] sm:$0xf0]  ;;  %v6264_v27 = vor.u32 %v7261_v15, %v6261_v16  ;;  %v7189_v35 = vld [vmem:[%s7955_s3 + $0x8ac] sm:$0xf] }
 0x1fb   : > { %4287 = vmatpush.bf16.msrb.mxu0 %v5448_v28  ;;  %v4061_v23 = vpop.f32.mrf.mxu2  ;;  %v7197_v28 = vld [vmem:[%s7955_s3 + $0x8ec] sm:$0xf]  ;;  %v6392_v48 = vor.u32 %v7293_v51, %v6389_v19  ;;  %v6117_v47 = vld [vmem:[%s7955_s3 + $0x9d8] sm:$0xf0] }
 0x1fc   : > { %4300 = vmatpush.bf16.msrb.mxu1 %v5576_v12  ;;  %v4074_v10 = vpop.f32.mrf.mxu3  ;;  %v7229_v12 = vld [vmem:[%s7955_s3 + $0x9ec] sm:$0xf]  ;;  %v6008_v25 = vor.u32 %v7197_v28, %v6005_v11  ;;  %v6245_v30 = vld [vmem:[%s7955_s3 + $0xad8] sm:$0xf0] }
 0x1fd   : > { %4313 = vmatpush.bf16.msrb.mxu2 %v5704_v13  ;;  %v5384_v13 = vor.u32 %v7041_v60, %v5381_v61  ;;  %v6136_v26 = vor.u32 %v7229_v12, %v6133_v14  ;;  %v6373_v32 = vld [vmem:[%s7955_s3 + $0xbd8] sm:$0xf0]  ;;  %v6248_v34 = vor.u32 %v7257_v50, %v6245_v30  ;;  %v7221_v37 = vld [vmem:[%s7955_s3 + $0x9ac] sm:$0xf] }
 0x1fe   : > { %4326 = vmatpush.bf16.msrb.mxu3 %v5832_v18  ;;  %v5640_v18 = vor.u32 %v7105_v5, %v5637_v24  ;;  %v5973_v36 = vld [vmem:[%s7955_s3 + $0x8b8] sm:$0xf0]  ;;  %v7285_v45 = vld [vmem:[%s7955_s3 + $0xbac] sm:$0xf] }
 0x1ff   : > { %4288 = vmatpush.bf16.msrb.mxu0 %v5432_v41  ;;  %v7193_v41 = vld [vmem:[%s7955_s3 + $0x8cc] sm:$0xf]  ;;  %v6101_v40 = vld [vmem:[%s7955_s3 + $0x9b8] sm:$0xf0]  ;;  %v5976_v49 = vor.u32 %v7189_v35, %v5973_v36 }
 0x200   : > { %4301 = vmatpush.bf16.msrb.mxu1 %v5560_v29  ;;  %v5989_v29 = vld [vmem:[%s7955_s3 + $0x8d8] sm:$0xf0]  ;;  %v7249_v56 = vld [vmem:[%s7955_s3 + $0xa8c] sm:$0xf] }
 0x201   : > { %4314 = vmatpush.bf16.msrb.mxu2 %v5688_v43  ;;  %v7225_v43 = vld [vmem:[%s7955_s3 + $0x9cc] sm:$0xf]  ;;  %v5992_v21 = vor.u32 %v7193_v41, %v5989_v29  ;;  %v6357_v46 = vld [vmem:[%s7955_s3 + $0xbb8] sm:$0xf0] }
 0x202   : > { %4327 = vmatpush.bf16.msrb.mxu3 %v5816_v31  ;;  %v7289_v31 = vld [vmem:[%s7955_s3 + $0xbcc] sm:$0xf]  ;;  %v6120_v33 = vor.u32 %v7225_v43, %v6117_v47  ;;  %v5957_v54 = vld [vmem:[%s7955_s3 + $0x898] sm:$0xf0] }
 0x203   : > { %4289 = vmatpush.bf16.msrb.mxu0 %v5416_v38  ;;  %v6376_v38 = vor.u32 %v7289_v31, %v6373_v32  ;;  %v6085_v55 = vld [vmem:[%s7955_s3 + $0x998] sm:$0xf0]  ;;  %v7281_v58 = vld [vmem:[%s7955_s3 + $0xb8c] sm:$0xf] }
 0x204   : > { %4302 = vmatpush.bf16.msrb.mxu1 %v5544_v42  ;;  %v7253_v42 = vld [vmem:[%s7955_s3 + $0xaac] sm:$0xf]  ;;  %v6213_v57 = vld [vmem:[%s7955_s3 + $0xa98] sm:$0xf0] }
 0x205   : > { %4315 = vmatpush.bf16.msrb.mxu2 %v5672_v44  ;;  %v6229_v44 = vld [vmem:[%s7955_s3 + $0xab8] sm:$0xf0]  ;;  %v7213_v1 = vld [vmem:[%s7955_s3 + $0x96c] sm:$0xf] }
 0x206   : > { %4328 = vmatpush.bf16.msrb.mxu3 %v5800_v53  ;;  %v6232_v52 = vor.u32 %v7253_v42, %v6229_v44  ;;  %v7185_v53 = vld [vmem:[%s7955_s3 + $0x88c] sm:$0xf]  ;;  %v5941_v22 = vld [vmem:[%s7955_s3 + $0x878] sm:$0xf0] }
 0x207   : > { %4290 = vmatpush.bf16.msrb.mxu0 %v5400_v59  ;;  %v6341_v59 = vld [vmem:[%s7955_s3 + $0xb98] sm:$0xf0]  ;;  %v7245_v7 = vld [vmem:[%s7955_s3 + $0xa6c] sm:$0xf] }
 0x208   : > { %4303 = vmatpush.bf16.msrb.mxu1 %v5528_v63  ;;  %v6216_v63 = vor.u32 %v7249_v56, %v6213_v57  ;;  %v6069_v24 = vld [vmem:[%s7955_s3 + $0x978] sm:$0xf0]  ;;  %v7277_v10 = vld [vmem:[%s7955_s3 + $0xb6c] sm:$0xf] }
 0x209   : > { %4316 = vmatpush.bf16.msrb.mxu2 %v5656_v0  ;;  %v7181_v0 = vld [vmem:[%s7955_s3 + $0x86c] sm:$0xf]  ;;  %v6197_v8 = vld [vmem:[%s7955_s3 + $0xa78] sm:$0xf0] }
 0x20a   : > { %4329 = vmatpush.bf16.msrb.mxu3 %v5784_v6  ;;  %v6344_v6 = vor.u32 %v7281_v58, %v6341_v59  ;;  %v6325_v28 = vld [vmem:[%s7955_s3 + $0xb78] sm:$0xf0]  ;;  %v5944_v12 = vor.u32 %v7181_v0, %v5941_v22  ;;  %v7177_v14 = vld [vmem:[%s7955_s3 + $0x84c] sm:$0xf] }
 0x20b   : > { %4291 = vmatpush.bf16.msrb.mxu0 %v5384_v13  ;;  %v4085_v60 = vpop.f32.mrf.mxu0  ;;  %v6200_v13 = vor.u32 %v7245_v7, %v6197_v8  ;;  %v5925_v15 = vld [vmem:[%s7955_s3 + $0x858] sm:$0xf0]  ;;  %v7209_v16 = vld [vmem:[%s7955_s3 + $0x94c] sm:$0xf] }
 0x20c   : > { %4304 = vmatpush.bf16.msrb.mxu1 %v5512_v17  ;;  %v4086_v5 = vadd.f32 %v4085_v60, %v8931_v39  ;;  %v4098_v23 = vpop.f32.mrf.mxu1  ;;  %v6072_v39 = vor.u32 %v7213_v1, %v6069_v24  ;;  %v6053_v51 = vld [vmem:[%s7955_s3 + $0x958] sm:$0xf0]  ;;  %v7241_v19 = vld [vmem:[%s7955_s3 + $0xa4c] sm:$0xf]  ;;  %v5928_v29 = vor.u32 %v7177_v14, %v5925_v15 }
 0x20d   : > { %4317 = vmatpush.bf16.msrb.mxu2 %v5640_v18  ;;  %v6328_v18 = vor.u32 %v7277_v10, %v6325_v28  ;;  %v6309_v41 = vld [vmem:[%s7955_s3 + $0xb58] sm:$0xf0]  ;;  %v6056_v47 = vor.u32 %v7209_v16, %v6053_v51  ;;  %v7173_v30 = vld [vmem:[%s7955_s3 + $0x82c] sm:$0xf] }
 0x20e   : > { %4330 = vmatpush.bf16.msrb.mxu3 %v5768_v20  ;;  %4292 = vmatmul.bf16.vlgmr.msrb.gmra.mxu0 %v8123_v2  ;;  %v7217_v2 = vld [vmem:[%s7955_s3 + $0x98c] sm:$0xf]  ;;  %v4099_v11 = vadd.f32 %v4098_v23, %v4086_v5  ;;  %v6181_v20 = vld [vmem:[%s7955_s3 + $0xa58] sm:$0xf0] }
 0x20f   : > { %4336 = vmatpush.bf16.msra.mxu0 %v6008_v25  ;;  %4305 = vmatmul.bf16.vlgmr.msrb.gmra.mxu1 %v8127_v4  ;;  %v5960_v4 = vor.u32 %v7185_v53, %v5957_v54  ;;  %v6088_v61 = vor.u32 %v7217_v2, %v6085_v55  ;;  %v6184_v50 = vor.u32 %v7241_v19, %v6181_v20  ;;  %v5909_v31 = vld [vmem:[%s7955_s3 + $0x838] sm:$0xf0]  ;;  %v7205_v32 = vld [vmem:[%s7955_s3 + $0x92c] sm:$0xf] }
 0x210   : > { %4349 = vmatpush.bf16.msra.mxu1 %v6136_v26  ;;  %4318 = vmatmul.bf16.vlgmr.msrb.gmra.mxu2 %v8120_v62  ;;  %v6104_v62 = vor.u32 %v7221_v37, %v6101_v40  ;;  %v7237_v35 = vld [vmem:[%s7955_s3 + $0xa2c] sm:$0xf]  ;;  %v6165_v36 = vld [vmem:[%s7955_s3 + $0xa38] sm:$0xf0]  ;;  %v5912_v40 = vor.u32 %v7173_v30, %v5909_v31 }
 0x211   : > { %4362 = vmatpush.bf16.msra.mxu2 %v6264_v27  ;;  %4331 = vmatmul.bf16.vlgmr.msrb.gmra.mxu3 %v8125_v3  ;;  %v6360_v3 = vor.u32 %v7285_v45, %v6357_v46  ;;  %v7273_v27 = vld [vmem:[%s7955_s3 + $0xb4c] sm:$0xf]  ;;  %v5893_v44 = vld [vmem:[%s7955_s3 + $0x818] sm:$0xf0]  ;;  %v6168_v46 = vor.u32 %v7237_v35, %v6165_v36 }
 0x212   : > { %4375 = vmatpush.bf16.msra.mxu3 %v6392_v48  ;;  %v7269_v37 = vld [vmem:[%s7955_s3 + $0xb2c] sm:$0xf]  ;;  %v6149_v2 = vld [vmem:[%s7955_s3 + $0xa18] sm:$0xf0] }
 0x213   : > { %4337 = vmatpush.bf16.msra.mxu0 %v5992_v21  ;;  %v4111_v17 = vpop.f32.mrf.mxu2  ;;  %v4087_v48 = vpop.f32.mrf.mxu0  ;;  %v7169_v42 = vld [vmem:[%s7955_s3 + $0x80c] sm:$0xf]  ;;  %v6277_v55 = vld [vmem:[%s7955_s3 + $0xb18] sm:$0xf0] }
 0x214   : > { %4350 = vmatpush.bf16.msra.mxu1 %v6120_v33  ;;  %v4112_v25 = vadd.f32 %v4111_v17, %v4099_v11  ;;  %v4124_v26 = vpop.f32.mrf.mxu3  ;;  %v4100_v21 = vpop.f32.mrf.mxu1  ;;  %v6312_v33 = vor.u32 %v7273_v27, %v6309_v41  ;;  %v7325_v57 = vld [vmem:[%s7955_s3 + $0xcec] sm:$0xf]  ;;  %v6517_v58 = vld [vmem:[%s7955_s3 + $0xcf8] sm:$0xf0]  ;;  %v7536_v48 = vld [vmem:[#allocation1 + $0x12] sm:$0xff] }
 0x215   : > { %4363 = vmatpush.bf16.msra.mxu2 %v6248_v34  ;;  %v6037_v34 = vld [vmem:[%s7955_s3 + $0x938] sm:$0xf0]  ;;  %v7357_v59 = vld [vmem:[%s7955_s3 + $0xdec] sm:$0xf] }
 0x216   : > { %4376 = vmatpush.bf16.msra.mxu3 %v6376_v38  ;;  %v9002_v43 = vadd.f32 %v4124_v26, %v4112_v25  ;;  %v6293_v38 = vld [vmem:[%s7955_s3 + $0xb38] sm:$0xf0]  ;;  %v6040_v45 = vor.u32 %v7205_v32, %v6037_v34  ;;  %v7421_v1 = vld [vmem:[%s7955_s3 + $0xfec] sm:$0xf] }
 0x217   : > { %4338 = vmatpush.bf16.msra.mxu0 %v5976_v49  ;;  %v7201_v49 = vld [vmem:[%s7955_s3 + $0x90c] sm:$0xf]  ;;  %v6296_v54 = vor.u32 %v7269_v37, %v6293_v38  ;;  %v6645_v60 = vld [vmem:[%s7955_s3 + $0xdf8] sm:$0xf0] }
 0x218   : > { %4351 = vmatpush.bf16.msra.mxu1 %v6104_v62  ;;  %v6021_v62 = vld [vmem:[%s7955_s3 + $0x918] sm:$0xf0]  ;;  %v6648_v24 = vor.u32 %v7357_v59, %v6645_v60  ;;  %v7321_v8 = vld [vmem:[%s7955_s3 + $0xccc] sm:$0xf] }
 0x219   : > { %4364 = vmatpush.bf16.msra.mxu2 %v6232_v52  ;;  %v7233_v52 = vld [vmem:[%s7955_s3 + $0xa0c] sm:$0xf]  ;;  %v6024_v0 = vor.u32 %v7201_v49, %v6021_v62  ;;  %v6901_v5 = vld [vmem:[%s7955_s3 + $0xff8] sm:$0xf0] }
 0x21a   : > { %4377 = vmatpush.bf16.msra.mxu3 %v6360_v3  ;;  %v7265_v3 = vld [vmem:[%s7955_s3 + $0xb0c] sm:$0xf]  ;;  %v6152_v22 = vor.u32 %v7233_v52, %v6149_v2  ;;  %v6501_v10 = vld [vmem:[%s7955_s3 + $0xcd8] sm:$0xf0]  ;;  %v6904_v11 = vor.u32 %v7421_v1, %v6901_v5 }
 0x21b   : > { %4339 = vmatpush.bf16.msra.mxu0 %v5960_v4  ;;  %v4113_v53 = vpop.f32.mrf.mxu2  ;;  %v5896_v4 = vor.u32 %v7169_v42, %v5893_v44  ;;  %v6280_v23 = vor.u32 %v7265_v3, %v6277_v55  ;;  %v7353_v28 = vld [vmem:[%s7955_s3 + $0xdcc] sm:$0xf]  ;;  %v6885_v15 = vld [vmem:[%s7955_s3 + $0xfd8] sm:$0xf0]  ;;  %v6504_v16 = vor.u32 %v7321_v8, %v6501_v10 }
 0x21c   : > { %4352 = vmatpush.bf16.msra.mxu1 %v6088_v61  ;;  %v4126_v56 = vpop.f32.mrf.mxu3  ;;  %v7389_v61 = vld [vmem:[%s7955_s3 + $0xeec] sm:$0xf]  ;;  %v6485_v19 = vld [vmem:[%s7955_s3 + $0xcb8] sm:$0xf0] }
 0x21d   : > { %4365 = vmatpush.bf16.msra.mxu2 %v6216_v63  ;;  %v6773_v63 = vld [vmem:[%s7955_s3 + $0xef8] sm:$0xf0]  ;;  %v7417_v14 = vld [vmem:[%s7955_s3 + $0xfcc] sm:$0xf] }
 0x21e   : > { %4378 = vmatpush.bf16.msra.mxu3 %v6344_v6  ;;  %v6520_v6 = vor.u32 %v7325_v57, %v6517_v58  ;;  %v6776_v7 = vor.u32 %v7389_v61, %v6773_v63  ;;  %v7317_v51 = vld [vmem:[%s7955_s3 + $0xcac] sm:$0xf]  ;;  %v6888_v26 = vor.u32 %v7417_v14, %v6885_v15  ;;  %v6613_v27 = vld [vmem:[%s7955_s3 + $0xdb8] sm:$0xf0] }
 0x21f   : > { %4340 = vmatpush.bf16.msra.mxu0 %v5944_v12  ;;  %v6629_v12 = vld [vmem:[%s7955_s3 + $0xdd8] sm:$0xf0]  ;;  %v7349_v20 = vld [vmem:[%s7955_s3 + $0xdac] sm:$0xf]  ;;  %v6488_v32 = vor.u32 %v7317_v51, %v6485_v19 }
 0x220   : > { %4353 = vmatpush.bf16.msra.mxu1 %v6072_v39  ;;  %v7385_v39 = vld [vmem:[%s7955_s3 + $0xecc] sm:$0xf]  ;;  %v6632_v17 = vor.u32 %v7353_v28, %v6629_v12  ;;  %v6869_v30 = vld [vmem:[%s7955_s3 + $0xfb8] sm:$0xf0]  ;;  %v6616_v21 = vor.u32 %v7349_v20, %v6613_v27 }
 0x221   : > { %4366 = vmatpush.bf16.msra.mxu2 %v6200_v13  ;;  %v6757_v13 = vld [vmem:[%s7955_s3 + $0xed8] sm:$0xf0]  ;;  %v7535_v25 = vld [vmem:[#allocation1] sm:$0xff] }
 0x222   : > { %4379 = vmatpush.bf16.msra.mxu3 %v6328_v18  ;;  %v6760_v18 = vor.u32 %v7385_v39, %v6757_v13  ;;  %v7381_v41 = vld [vmem:[%s7955_s3 + $0xeac] sm:$0xf]  ;;  %v6469_v35 = vld [vmem:[%s7955_s3 + $0xc98] sm:$0xf0] }
 0x223   : > { %4341 = vmatpush.bf16.msra.mxu0 %v5928_v29  ;;  %v6741_v29 = vld [vmem:[%s7955_s3 + $0xeb8] sm:$0xf0]  ;;  %v7538_v31 = vld [vmem:[#allocation1 + $0x1b] sm:$0xff] }
 0x224   : > { %4354 = vmatpush.bf16.msra.mxu1 %v6056_v47  ;;  %v7537_v47 = vld [vmem:[#allocation1 + $0x9] sm:$0xff]  ;;  %v7313_v34 = vld [vmem:[%s7955_s3 + $0xc8c] sm:$0xf] }
 0x225   : > { %4367 = vmatpush.bf16.msra.mxu2 %v6184_v50  ;;  %v7413_v50 = vld [vmem:[%s7955_s3 + $0xfac] sm:$0xf]  ;;  %v6597_v38 = vld [vmem:[%s7955_s3 + $0xd98] sm:$0xf0]  ;;  %v6472_v62 = vor.u32 %v7313_v34, %v6469_v35 }
 0x226   : > { %4380 = vmatpush.bf16.msra.mxu3 %v6312_v33  ;;  %v6744_v33 = vor.u32 %v7381_v41, %v6741_v29  ;;  %v7345_v36 = vld [vmem:[%s7955_s3 + $0xd8c] sm:$0xf]  ;;  %v6872_v37 = vor.u32 %v7413_v50, %v6869_v30  ;;  %v6725_v42 = vld [vmem:[%s7955_s3 + $0xe98] sm:$0xf0] }
 0x227   : > { %4342 = vmatpush.bf16.msra.mxu0 %v5912_v40  ;;  %v7377_v40 = vld [vmem:[%s7955_s3 + $0xe8c] sm:$0xf]  ;;  %v6600_v53 = vor.u32 %v7345_v36, %v6597_v38  ;;  %v6453_v3 = vld [vmem:[%s7955_s3 + $0xc78] sm:$0xf0] }
 0x228   : > { %4355 = vmatpush.bf16.msra.mxu1 %v6040_v45  ;;  %v7409_v45 = vld [vmem:[%s7955_s3 + $0xf8c] sm:$0xf]  ;;  %v6581_v58 = vld [vmem:[%s7955_s3 + $0xd78] sm:$0xf0] }
 0x229   : > { %4368 = vmatpush.bf16.msra.mxu2 %v6168_v46  ;;  %v6853_v46 = vld [vmem:[%s7955_s3 + $0xf98] sm:$0xf0]  ;;  %v7309_v2 = vld [vmem:[%s7955_s3 + $0xc6c] sm:$0xf] }
 0x22a   : > { %4381 = vmatpush.bf16.msra.mxu3 %v6296_v54  ;;  %v6728_v54 = vor.u32 %v7377_v40, %v6725_v42  ;;  %v7341_v55 = vld [vmem:[%s7955_s3 + $0xd6c] sm:$0xf]  ;;  %v6856_v56 = vor.u32 %v7409_v45, %v6853_v46  ;;  %v6837_v60 = vld [vmem:[%s7955_s3 + $0xf78] sm:$0xf0]  ;;  %v6456_v61 = vor.u32 %v7309_v2, %v6453_v3 }
 0x22b   : > { %4343 = vmatpush.bf16.msra.mxu0 %v5896_v4  ;;  %v4137_v44 = vpop.f32.mrf.mxu0  ;;  %v7373_v59 = vld [vmem:[%s7955_s3 + $0xe6c] sm:$0xf]  ;;  %v6584_v63 = vor.u32 %v7341_v55, %v6581_v58  ;;  %v6437_v1 = vld [vmem:[%s7955_s3 + $0xc58] sm:$0xf0] }
 0x22c   : > { %4356 = vmatpush.bf16.msra.mxu1 %v6024_v0  ;;  %v4138_v49 = vadd.f32 %v4137_v44, %v9002_v43  ;;  %v4150_v52 = vpop.f32.mrf.mxu1  ;;  %v6709_v43 = vld [vmem:[%s7955_s3 + $0xe78] sm:$0xf0]  ;;  %v7405_v4 = vld [vmem:[%s7955_s3 + $0xf6c] sm:$0xf] }
 0x22d   : > { %4369 = vmatpush.bf16.msra.mxu2 %v6152_v22  ;;  %v6712_v0 = vor.u32 %v7373_v59, %v6709_v43  ;;  %v7305_v22 = vld [vmem:[%s7955_s3 + $0xc4c] sm:$0xf]  ;;  %v6693_v8 = vld [vmem:[%s7955_s3 + $0xe58] sm:$0xf0] }
 0x22e   : > { %4382 = vmatpush.bf16.msra.mxu3 %v6280_v23  ;;  %4344 = vmatmul.bf16.vlgmr.msra.gmra.mxu0 %v7535_v25  ;;  %v4151_v57 = vadd.f32 %v4150_v52, %v4138_v49  ;;  %v7337_v5 = vld [vmem:[%s7955_s3 + $0xd4c] sm:$0xf]  ;;  %v6840_v23 = vor.u32 %v7405_v4, %v6837_v60  ;;  %v6821_v12 = vld [vmem:[%s7955_s3 + $0xf58] sm:$0xf0]  ;;  %v6440_v13 = vor.u32 %v7305_v22, %v6437_v1  ;;  %v7539_v49 = vld [vmem:[#allocation1 + $0x24] sm:$0xff] }
 0x22f   : > { %4388 = vmatpush.bf16.msrb.mxu0 %v6520_v6  ;;  %4357 = vmatmul.bf16.vlgmr.msra.gmra.mxu1 %v7537_v47  ;;  %v6421_v51 = vld [vmem:[%s7955_s3 + $0xc38] sm:$0xf0]  ;;  %v7333_v19 = vld [vmem:[%s7955_s3 + $0xd2c] sm:$0xf] }
 0x230   : > { %4401 = vmatpush.bf16.msrb.mxu1 %v6648_v24  ;;  %4370 = vmatmul.bf16.vlgmr.msra.gmra.mxu2 %v7536_v48  ;;  %v6565_v24 = vld [vmem:[%s7955_s3 + $0xd58] sm:$0xf0]  ;;  %v7397_v41 = vld [vmem:[%s7955_s3 + $0xf2c] sm:$0xf] }
 0x231   : > { %4414 = vmatpush.bf16.msrb.mxu2 %v6776_v7  ;;  %4383 = vmatmul.bf16.vlgmr.msra.gmra.mxu3 %v7538_v31  ;;  %v7369_v7 = vld [vmem:[%s7955_s3 + $0xe4c] sm:$0xf]  ;;  %v6549_v25 = vld [vmem:[%s7955_s3 + $0xd38] sm:$0xf0] }
 0x232   : > { %4427 = vmatpush.bf16.msrb.mxu3 %v6904_v11  ;;  %v7401_v11 = vld [vmem:[%s7955_s3 + $0xf4c] sm:$0xf]  ;;  %v6677_v27 = vld [vmem:[%s7955_s3 + $0xe38] sm:$0xf0]  ;;  %v6552_v47 = vor.u32 %v7333_v19, %v6549_v25 }
 0x233   : > { %4389 = vmatpush.bf16.msrb.mxu0 %v6504_v16  ;;  %v4163_v6 = vpop.f32.mrf.mxu2  ;;  %v4139_v39 = vpop.f32.mrf.mxu0  ;;  %v6568_v16 = vor.u32 %v7337_v5, %v6565_v24  ;;  %v6824_v20 = vor.u32 %v7401_v11, %v6821_v12  ;;  %v6805_v29 = vld [vmem:[%s7955_s3 + $0xf38] sm:$0xf0]  ;;  %v7297_v30 = vld [vmem:[%s7955_s3 + $0xc0c] sm:$0xf] }
 0x234   : > { %4402 = vmatpush.bf16.msrb.mxu1 %v6632_v17  ;;  %v4164_v10 = vadd.f32 %v4163_v6, %v4151_v57  ;;  %v4176_v28 = vpop.f32.mrf.mxu3  ;;  %v4152_v14 = vpop.f32.mrf.mxu1  ;;  %v6696_v17 = vor.u32 %v7369_v7, %v6693_v8  ;;  %v6405_v31 = vld [vmem:[%s7955_s3 + $0xc18] sm:$0xf0]  ;;  %v7361_v34 = vld [vmem:[%s7955_s3 + $0xe0c] sm:$0xf] }
 0x235   : > { %4415 = vmatpush.bf16.msrb.mxu2 %v6760_v18  ;;  %v7301_v18 = vld [vmem:[%s7955_s3 + $0xc2c] sm:$0xf]  ;;  %v6661_v35 = vld [vmem:[%s7955_s3 + $0xe18] sm:$0xf0]  ;;  %v6408_v42 = vor.u32 %v7297_v30, %v6405_v31 }
 0x236   : > { %4428 = vmatpush.bf16.msrb.mxu3 %v6888_v26  ;;  %v4177_v15 = vadd.f32 %v4176_v28, %v4164_v10  ;;  %v7365_v26 = vld [vmem:[%s7955_s3 + $0xe2c] sm:$0xf]  ;;  %v6424_v48 = vor.u32 %v7301_v18, %v6421_v51  ;;  %v6789_v38 = vld [vmem:[%s7955_s3 + $0xf18] sm:$0xf0]  ;;  %v6664_v45 = vor.u32 %v7361_v34, %v6661_v35 }
 0x237   : > { %4390 = vmatpush.bf16.msrb.mxu0 %v6488_v32  ;;  %v6680_v50 = vor.u32 %v7365_v26, %v6677_v27  ;;  %v7329_v32 = vld [vmem:[%s7955_s3 + $0xd0c] sm:$0xf] }
 0x238   : > { %4403 = vmatpush.bf16.msrb.mxu1 %v6616_v21  ;;  %v6808_v21 = vor.u32 %v7397_v41, %v6805_v29  ;;  %v7541_v52 = vld [vmem:[#allocation1 + $0x36] sm:$0xff] }
 0x239   : > { %4416 = vmatpush.bf16.msrb.mxu2 %v6744_v33  ;;  %v6533_v33 = vld [vmem:[%s7955_s3 + $0xd18] sm:$0xf0] }
 0x23a   : > { %4429 = vmatpush.bf16.msrb.mxu3 %v6872_v37  ;;  %v7393_v37 = vld [vmem:[%s7955_s3 + $0xf0c] sm:$0xf]  ;;  %v6536_v44 = vor.u32 %v7329_v32, %v6533_v33 }
 0x23b   : > { %4391 = vmatpush.bf16.msrb.mxu0 %v6472_v62  ;;  %v4165_v36 = vpop.f32.mrf.mxu2  ;;  %v6792_v46 = vor.u32 %v7393_v37, %v6789_v38  ;;  %v7540_v62 = vld [vmem:[#allocation1 + $0x2d] sm:$0xff] }
 0x23c   : > { %4404 = vmatpush.bf16.msrb.mxu1 %v6600_v53  ;;  %v4178_v40 = vpop.f32.mrf.mxu3  ;;  %v7542_v53 = vld [vmem:[#allocation1 + $0x3f] sm:$0xff] }
 0x23d   : > { %4417 = vmatpush.bf16.msrb.mxu2 %v6728_v54 }
 0x23e   : > { %4430 = vmatpush.bf16.msrb.mxu3 %v6856_v56 }
 0x23f   : > { %4392 = vmatpush.bf16.msrb.mxu0 %v6456_v61 }
 0x240   : > { %4405 = vmatpush.bf16.msrb.mxu1 %v6584_v63 }
 0x241   : > { %4418 = vmatpush.bf16.msrb.mxu2 %v6712_v0 }
 0x242   : > { %4431 = vmatpush.bf16.msrb.mxu3 %v6840_v23 }
 0x243   : > { %4393 = vmatpush.bf16.msrb.mxu0 %v6440_v13 }
 0x244   : > { %4406 = vmatpush.bf16.msrb.mxu1 %v6568_v16 }
 0x245   : > { %4419 = vmatpush.bf16.msrb.mxu2 %v6696_v17 }
 0x246   : > { %4432 = vmatpush.bf16.msrb.mxu3 %v6824_v20 }
 0x247   : > { %4394 = vmatpush.bf16.msrb.mxu0 %v6424_v48 }
 0x248   : > { %4407 = vmatpush.bf16.msrb.mxu1 %v6552_v47 }
 0x249   : > { %4420 = vmatpush.bf16.msrb.mxu2 %v6680_v50 }
 0x24a   : > { %4433 = vmatpush.bf16.msrb.mxu3 %v6808_v21 }
 0x24b   : > { %4395 = vmatpush.bf16.msrb.mxu0 %v6408_v42  ;;  %v4189_v54 = vpop.f32.mrf.mxu0 }
 0x24c   : > { %4408 = vmatpush.bf16.msrb.mxu1 %v6536_v44  ;;  %v4190_v2 = vadd.f32 %v4189_v54, %v4177_v15  ;;  %v4202_v3 = vpop.f32.mrf.mxu1 }
 0x24d   : > { %4421 = vmatpush.bf16.msrb.mxu2 %v6664_v45 }
 0x24e   : > { %4434 = vmatpush.bf16.msrb.mxu3 %v6792_v46  ;;  %4396 = vmatmul.bf16.vlgmr.msrb.gmra.mxu0 %v7539_v49  ;;  %v4203_v55 = vadd.f32 %v4202_v3, %v4190_v2  ;;  %v497_v49 = vld [vmem:[#allocation2] sm:$0xff] }
 0x24f   : > { %4409 = vmatmul.bf16.vlgmr.msrb.gmra.mxu1 %v7540_v62 }
 0x250   : > { %4422 = vmatmul.bf16.vlgmr.msrb.gmra.mxu2 %v7541_v52 }
 0x251   : > { %4435 = vmatmul.bf16.vlgmr.msrb.gmra.mxu3 %v7542_v53 }
 0x253   : > { %v4215_v56 = vpop.f32.mrf.mxu2  ;;  %v4191_v59 = vpop.f32.mrf.mxu0 }
 0x254   : > { %v4216_v57 = vadd.f32 %v4215_v56, %v4203_v55  ;;  %v4228_v58 = vpop.f32.mrf.mxu3  ;;  %v4204_v43 = vpop.f32.mrf.mxu1 }
 0x256   : > { %v4229_v4 = vadd.f32 %v4228_v58, %v4216_v57 }
 0x258   : > { %v4445_v45 = vrot.slane %v4229_v4, 4 }
 0x25b   : > { %v4217_v60 = vpop.f32.mrf.mxu2 }
 0x25c   : > { %v4230_v61 = vpop.f32.mrf.mxu3 }
 0x26b   : > { %v4241_v63 = vpop.f32.mrf.mxu0 }
 0x26c   : > { %v4254_v0 = vpop.f32.mrf.mxu1 }
 0x26d   : > { %v4255_v22 = vadd.f32 %v4254_v0, %v4241_v63 }
 0x273   : > { %v4267_v1 = vpop.f32.mrf.mxu2  ;;  %v4243_v24 = vpop.f32.mrf.mxu0 }
 0x274   : > { %v4268_v5 = vadd.f32 %v4267_v1, %v4255_v22  ;;  %v4280_v23 = vpop.f32.mrf.mxu3  ;;  %v4256_v7 = vpop.f32.mrf.mxu1 }
 0x276   : > { %v4281_v6 = vadd.f32 %v4280_v23, %v4268_v5 }
 0x27b   : > { %v4269_v8 = vpop.f32.mrf.mxu2 }
 0x27c   : > { %v4282_v10 = vpop.f32.mrf.mxu3 }
 0x28b   : > { %v4293_v28 = vpop.f32.mrf.mxu0 }
 0x28c   : > { %v4306_v11 = vpop.f32.mrf.mxu1  ;;  %v4294_v51 = vadd.f32 %v4293_v28, %v4281_v6 }
 0x28e   : > { %v4307_v26 = vadd.f32 %v4306_v11, %v4294_v51 }
 0x293   : > { %v4319_v12 = vpop.f32.mrf.mxu2  ;;  %v4295_v13 = vpop.f32.mrf.mxu0 }
 0x294   : > { %v4332_v39 = vpop.f32.mrf.mxu3  ;;  %v4308_v14 = vpop.f32.mrf.mxu1  ;;  %v4320_v41 = vadd.f32 %v4319_v12, %v4307_v26 }
 0x296   : > { %v4333_v47 = vadd.f32 %v4332_v39, %v4320_v41 }
 0x29b   : > { %v4321_v15 = vpop.f32.mrf.mxu2 }
 0x29c   : > { %v4334_v16 = vpop.f32.mrf.mxu3 }
 0x2ab   : > { %v4345_v17 = vpop.f32.mrf.mxu0 }
 0x2ac   : > { %v4358_v18 = vpop.f32.mrf.mxu1  ;;  %v4346_v50 = vadd.f32 %v4345_v17, %v4333_v47 }
 0x2ae   : > { %v4359_v30 = vadd.f32 %v4358_v18, %v4346_v50 }
 0x2b3   : > { %v4371_v19 = vpop.f32.mrf.mxu2  ;;  %v4347_v25 = vpop.f32.mrf.mxu0 }
 0x2b4   : > { %v4384_v20 = vpop.f32.mrf.mxu3  ;;  %v4360_v27 = vpop.f32.mrf.mxu1  ;;  %v4372_v31 = vadd.f32 %v4371_v19, %v4359_v30 }
 0x2b6   : > { %v4385_v32 = vadd.f32 %v4384_v20, %v4372_v31 }
 0x2bb   : > { %v4373_v29 = vpop.f32.mrf.mxu2 }
 0x2bc   : > { %v4386_v48 = vpop.f32.mrf.mxu3 }
 0x2cb   : > { %v4397_v21 = vpop.f32.mrf.mxu0 }
 0x2cc   : > { %v4410_v33 = vpop.f32.mrf.mxu1  ;;  %v4398_v34 = vadd.f32 %v4397_v21, %v4385_v32 }
 0x2ce   : > { %v4411_v35 = vadd.f32 %v4410_v33, %v4398_v34 }
 0x2d3   : > { %v4423_v36 = vpop.f32.mrf.mxu2  ;;  %v4399_v40 = vpop.f32.mrf.mxu0 }
 0x2d4   : > { %v4424_v37 = vadd.f32 %v4423_v36, %v4411_v35  ;;  %v4436_v38 = vpop.f32.mrf.mxu3  ;;  %v4412_v42 = vpop.f32.mrf.mxu1 }
 0x2d6   : > { %v4437_v44 = vadd.f32 %v4436_v38, %v4424_v37 }
 0x2d8   : > { %v4446_v46 = vrot.slane %v4437_v44, 2 }
 0x2da   : > { %v4450_v62 = vsel %vm4449_vm1, %v4445_v45, %v4446_v46  ;;  %4459 = sbr.rel (%p6905_p1) target bundleno = 1303 (0x517), region = 96 }
 0x2db   : > { %v4452_v52 = vsel %vm4451_vm2, %v8871_v9, %v4450_v62  ;;  %v4425_v53 = vpop.f32.mrf.mxu2 }
 0x2dc   : > { %v4454_v54 = vadd.f32 %v4452_v52, %v497_v49  ;;  %v4438_v2 = vpop.f32.mrf.mxu3 }
 0x2de   : > { %4455 = vst [vmem:[#allocation2] sm:$0xff] %v4454_v54 }
 0x2df   : > { %v4523_v3 = vld [vmem:[#allocation8 + $0x178] sm:$0xff]  ;;  %v4522_v56 = vld [vmem:[#allocation8 + $0x170] sm:$0xff]  ;;  %v4521_v43 = vld [vmem:[#allocation8 + $0x168] sm:$0xff]  ;;  %vm4684_vm3 = vcmask 261120   ;;  %vm4714_vm4 = vcmask 64512   ;;  %vm4738_vm5 = vcmask 1024  }
 0x2e0   : > { %v4491_v55 = vld [vmem:[#allocation8 + $0x78] sm:$0xff]  ;;  %4594 = vmatpush.msra.mxu2 %v4523_v3  ;;  %v4490_v58 = vld [vmem:[#allocation8 + $0x70] sm:$0xff]  ;;  %v4489_v9 = vld [vmem:[#allocation8 + $0x68] sm:$0xff] }
 0x2e1   : > { %4554 = vmatpush.msra.mxu0 %v4491_v55  ;;  %v4539_v57 = vld [vmem:[#allocation8 + $0x1f8] sm:$0xff]  ;;  %v4538_v4 = vld [vmem:[#allocation8 + $0x1f0] sm:$0xff]  ;;  %v4537_v61 = vld [vmem:[#allocation8 + $0x1e8] sm:$0xff] }
 0x2e2   : > { %v4507_v59 = vld [vmem:[#allocation8 + $0xf8] sm:$0xff]  ;;  %4614 = vmatpush.msra.mxu3 %v4539_v57  ;;  %4595 = vmatpush.msra.mxu2 %v4522_v56  ;;  %v4506_v60 = vld [vmem:[#allocation8 + $0xf0] sm:$0xff]  ;;  %v4520_v63 = vld [vmem:[#allocation8 + $0x160] sm:$0xff] }
 0x2e3   : > { %4574 = vmatpush.msra.mxu1 %v4507_v59  ;;  %4555 = vmatpush.msra.mxu0 %v4490_v58  ;;  %v4488_v0 = vld [vmem:[#allocation8 + $0x60] sm:$0xff]  ;;  %v4505_v22 = vld [vmem:[#allocation8 + $0xe8] sm:$0xff]  ;;  %v4519_v23 = vld [vmem:[#allocation8 + $0x158] sm:$0xff] }
 0x2e4   : > { %4615 = vmatpush.msra.mxu3 %v4538_v4  ;;  %4596 = vmatpush.msra.mxu2 %v4521_v43  ;;  %v4536_v1 = vld [vmem:[#allocation8 + $0x1e0] sm:$0xff]  ;;  %v4487_v6 = vld [vmem:[#allocation8 + $0x58] sm:$0xff]  ;;  %v4518_v8 = vld [vmem:[#allocation8 + $0x150] sm:$0xff] }
 0x2e5   : > { %4575 = vmatpush.msra.mxu1 %v4506_v60  ;;  %4556 = vmatpush.msra.mxu0 %v4489_v9  ;;  %v4504_v5 = vld [vmem:[#allocation8 + $0xe0] sm:$0xff]  ;;  %v4535_v24 = vld [vmem:[#allocation8 + $0x1d8] sm:$0xff]  ;;  %v4486_v10 = vld [vmem:[#allocation8 + $0x50] sm:$0xff] }
 0x2e6   : > { %4616 = vmatpush.msra.mxu3 %v4537_v61  ;;  %4597 = vmatpush.msra.mxu2 %v4520_v63  ;;  %v4503_v7 = vld [vmem:[#allocation8 + $0xd8] sm:$0xff]  ;;  %v4534_v28 = vld [vmem:[#allocation8 + $0x1d0] sm:$0xff]  ;;  %v4517_v12 = vld [vmem:[#allocation8 + $0x148] sm:$0xff] }
 0x2e7   : > { %4576 = vmatpush.msra.mxu1 %v4505_v22  ;;  %4557 = vmatpush.msra.mxu0 %v4488_v0  ;;  %v4502_v11 = vld [vmem:[#allocation8 + $0xd0] sm:$0xff]  ;;  %v4485_v39 = vld [vmem:[#allocation8 + $0x48] sm:$0xff]  ;;  %v4516_v15 = vld [vmem:[#allocation8 + $0x140] sm:$0xff] }
 0x2e8   : > { %4617 = vmatpush.msra.mxu3 %v4536_v1  ;;  %4598 = vmatpush.msra.mxu2 %v4519_v23  ;;  %v4533_v13 = vld [vmem:[#allocation8 + $0x1c8] sm:$0xff]  ;;  %v4484_v16 = vld [vmem:[#allocation8 + $0x40] sm:$0xff]  ;;  %v4515_v51 = vld [vmem:[#allocation8 + $0x138] sm:$0xff] }
 0x2e9   : > { %4577 = vmatpush.msra.mxu1 %v4504_v5  ;;  %4558 = vmatpush.msra.mxu0 %v4487_v6  ;;  %v4501_v14 = vld [vmem:[#allocation8 + $0xc8] sm:$0xff]  ;;  %v4532_v17 = vld [vmem:[#allocation8 + $0x1c0] sm:$0xff]  ;;  %v4483_v19 = vld [vmem:[#allocation8 + $0x38] sm:$0xff] }
 0x2ea   : > { %4618 = vmatpush.msra.mxu3 %v4535_v24  ;;  %4599 = vmatpush.msra.mxu2 %v4518_v8  ;;  %v4500_v18 = vld [vmem:[#allocation8 + $0xc0] sm:$0xff]  ;;  %v4531_v20 = vld [vmem:[#allocation8 + $0x1b8] sm:$0xff]  ;;  %v4514_v26 = vld [vmem:[#allocation8 + $0x130] sm:$0xff] }
 0x2eb   : > { %4578 = vmatpush.msra.mxu1 %v4503_v7  ;;  %4559 = vmatpush.msra.mxu0 %v4486_v10  ;;  %v4499_v25 = vld [vmem:[#allocation8 + $0xb8] sm:$0xff]  ;;  %v4482_v27 = vld [vmem:[#allocation8 + $0x30] sm:$0xff]  ;;  %v4513_v48 = vld [vmem:[#allocation8 + $0x128] sm:$0xff] }
 0x2ec   : > { %4619 = vmatpush.msra.mxu3 %v4534_v28  ;;  %4600 = vmatpush.msra.mxu2 %v4517_v12  ;;  %v4530_v41 = vld [vmem:[#allocation8 + $0x1b0] sm:$0xff]  ;;  %v4481_v47 = vld [vmem:[#allocation8 + $0x28] sm:$0xff]  ;;  %v4512_v31 = vld [vmem:[#allocation8 + $0x120] sm:$0xff] }
 0x2ed   : > { %4579 = vmatpush.msra.mxu1 %v4502_v11  ;;  %4560 = vmatpush.msra.mxu0 %v4485_v39  ;;  %v4498_v29 = vld [vmem:[#allocation8 + $0xb0] sm:$0xff]  ;;  %v4529_v50 = vld [vmem:[#allocation8 + $0x1a8] sm:$0xff]  ;;  %v4480_v32 = vld [vmem:[#allocation8 + $0x20] sm:$0xff] }
 0x2ee   : > { %4620 = vmatpush.msra.mxu3 %v4533_v13  ;;  %4601 = vmatpush.msra.mxu2 %v4516_v15  ;;  %v4497_v30 = vld [vmem:[#allocation8 + $0xa8] sm:$0xff]  ;;  %v4461_v21 = vld [vmem:[#allocation6] sm:$0xf]  ;;  %v4528_v33 = vld [vmem:[#allocation8 + $0x1a0] sm:$0xff] }
 0x2ef   : > { %4580 = vmatpush.msra.mxu1 %v4501_v14  ;;  %4561 = vmatpush.msra.mxu0 %v4484_v16  ;;  %v4496_v34 = vld [vmem:[#allocation8 + $0xa0] sm:$0xff]  ;;  %v4463_v35 = vperm.slane %v4461_v21, 0  ;;  %v4464_v36 = vperm.slane %v4461_v21, 1  ;;  %v4465_v37 = vperm.slane %v4461_v21, 2  ;;  %v4466_v38 = vperm.slane %v4461_v21, 3  ;;  %v4511_v40 = vld [vmem:[#allocation8 + $0x118] sm:$0xff] }
 0x2f0   : > { %4621 = vmatpush.msra.mxu3 %v4532_v17  ;;  %4602 = vmatpush.msra.mxu2 %v4515_v51  ;;  %v4479_v42 = vld [vmem:[#allocation8 + $0x18] sm:$0xff]  ;;  %v4510_v44 = vld [vmem:[#allocation8 + $0x110] sm:$0xff]  ;;  %v4509_v54 = vld [vmem:[#allocation8 + $0x108] sm:$0xff] }
 0x2f1   : > { %4581 = vmatpush.msra.mxu1 %v4500_v18  ;;  %4562 = vmatpush.msra.mxu0 %v4483_v19  ;;  %v4527_v45 = vld [vmem:[#allocation8 + $0x198] sm:$0xff]  ;;  %v4467_v49 = vrot.slane %v4464_v36, 6  ;;  %v4468_v62 = vrot.slane %v4465_v37, 4  ;;  %v4469_v52 = vrot.slane %v4466_v38, 2  ;;  %v4478_v53 = vld [vmem:[#allocation8 + $0x10] sm:$0xff]  ;;  %v4477_v58 = vld [vmem:[#allocation8 + $0x8] sm:$0xff] }
 0x2f2   : > { %4622 = vmatpush.msra.mxu3 %v4531_v20  ;;  %4603 = vmatpush.msra.mxu2 %v4514_v26  ;;  %v4495_v46 = vld [vmem:[#allocation8 + $0x98] sm:$0xff]  ;;  %v4526_v3 = vld [vmem:[#allocation8 + $0x190] sm:$0xff]  ;;  %v4525_v43 = vld [vmem:[#allocation8 + $0x188] sm:$0xff] }
 0x2f3   : > { %4582 = vmatpush.msra.mxu1 %v4499_v25  ;;  %4563 = vmatpush.msra.mxu0 %v4482_v27  ;;  %v4460_v2 = vld [vmem:[#allocation2] sm:$0xff]  ;;  %v4470_v56 = vsel %vm4447_vm0, %v4463_v35, %v4467_v49  ;;  %v4471_v57 = vsel %vm4449_vm1, %v4468_v62, %v4469_v52  ;;  %v4493_v9 = vld [vmem:[#allocation8 + $0x88] sm:$0xff]  ;;  %v4508_v60 = vld [vmem:[#allocation8 + $0x100] sm:$0xff] }
 0x2f4   : > { %4623 = vmatpush.msra.mxu3 %v4530_v41  ;;  %4604 = vmatpush.msra.mxu2 %v4513_v48  ;;  %v4494_v55 = vld [vmem:[#allocation8 + $0x90] sm:$0xff]  ;;  %v4472_v59 = vsel %vm4451_vm2, %v4470_v56, %v4471_v57  ;;  %v4476_v61 = vld [vmem:[#allocation8] sm:$0xff] }
 0x2f5   : > { %4583 = vmatpush.msra.mxu1 %v4498_v29  ;;  %4564 = vmatpush.msra.mxu0 %v4481_v47  ;;  %v4474_v4 = vadd.f32 %v4472_v59, %v4460_v2  ;;  %v4524_v0 = vld [vmem:[#allocation8 + $0x180] sm:$0xff]  ;;  %v4648_v23 = vld [vmem:[%s9176_s5 + $0x68] sm:$0xff]  ;;  %v4647_v6 = vld [vmem:[%s9176_s5 + $0x60] sm:$0xff] }
 0x2f6   : > { %4624 = vmatpush.msra.mxu3 %v4529_v50  ;;  %4605 = vmatpush.msra.mxu2 %v4512_v31  ;;  %v4492_v22 = vld [vmem:[#allocation8 + $0x80] sm:$0xff]  ;;  %v4644_v12 = vld [vmem:[%s9176_s5 + $0x48] sm:$0xff]  ;;  %v4643_v39 = vld [vmem:[%s9176_s5 + $0x40] sm:$0xff] }
 0x2f7   : > { %4584 = vmatpush.msra.mxu1 %v4497_v30  ;;  %4565 = vmatpush.msra.mxu0 %v4480_v32  ;;  %v4475_v63 = vmax.f32 %v4474_v4, 0.0  ;;  %v4650_v1 = vld [vmem:[%s9176_s5 + $0x78] sm:$0xff]  ;;  %v4649_v5 = vld [vmem:[%s9176_s5 + $0x70] sm:$0xff]  ;;  %v4640_v15 = vld [vmem:[%s9176_s5 + $0x28] sm:$0xff] }
 0x2f8   : > { %4625 = vmatpush.msra.mxu3 %v4528_v33  ;;  %4606 = vmatpush.msra.mxu2 %v4511_v40  ;;  %v4646_v28 = vld [vmem:[%s9176_s5 + $0x58] sm:$0xff]  ;;  %v4645_v11 = vld [vmem:[%s9176_s5 + $0x50] sm:$0xff]  ;;  %v4639_v16 = vld [vmem:[%s9176_s5 + $0x20] sm:$0xff] }
 0x2f9   : > { %4585 = vmatpush.msra.mxu1 %v4496_v34  ;;  %4566 = vmatpush.msra.mxu0 %v4479_v42  ;;  %4545 = vst [vmem:[#allocation1] ss:$4 sm:$0xff] %v4475_v63  ;;  %v4642_v13 = vld [vmem:[%s9176_s5 + $0x38] sm:$0xff]  ;;  %v4641_v14 = vld [vmem:[%s9176_s5 + $0x30] sm:$0xff]  ;;  %v4636_v51 = vld [vmem:[%s9176_s5 + $0x8] sm:$0xff] }
 0x2fa   : > { %4626 = vmatpush.msra.mxu3 %v4527_v45  ;;  %4607 = vmatpush.msra.mxu2 %v4510_v44  ;;  %v4638_v17 = vld [vmem:[%s9176_s5 + $0x18] sm:$0xff]  ;;  %v4637_v18 = vld [vmem:[%s9176_s5 + $0x10] sm:$0xff]  ;;  %v4635_v19 = vld [vmem:[%s9176_s5] sm:$0xff] }
 0x2fb   : > { %4586 = vmatpush.msra.mxu1 %v4495_v46  ;;  %4567 = vmatpush.msra.mxu0 %v4478_v53  ;;  %v4679_v20 = vld [vmem:[%s9178_s7 + $0x18] sm:$0xff]  ;;  %v4678_v25 = vld [vmem:[%s9178_s7 + $0x10] sm:$0xff]  ;;  %v4677_v21 = vld [vmem:[%s9178_s7 + $0x8] sm:$0xff] }
 0x2fc   : > { %4627 = vmatpush.msra.mxu3 %v4526_v3  ;;  %4608 = vmatpush.msra.mxu2 %v4509_v54  ;;  %v7543_v26 = vld [vmem:[#allocation9] ss:$0 sm:$0xff]  ;;  %v4676_v33 = vld [vmem:[%s9178_s7] sm:$0xff]  ;;  %v7544_v35 = vld [vmem:[#allocation11] ss:$0 sm:$0xff] }
 0x2fd   : > { %4587 = vmatpush.msra.mxu1 %v4494_v55  ;;  %4568 = vmatpush.msra.mxu0 %v4477_v58  ;;  %v4709_v34 = vld [vmem:[%s9180_s9] sm:$0xff]  ;;  %v7545_v40 = vld [vmem:[#allocation12] ss:$0 sm:$0xff]  ;;  %v7546_v46 = vld [vmem:[#allocation3] ss:$0 sm:$0xff] }
 0x2fe   : > { %4628 = vmatpush.msra.mxu3 %v4525_v43  ;;  %4609 = vmatpush.msra.mxu2 %v4508_v60 }
 0x2ff   : > { %4588 = vmatpush.msra.mxu1 %v4493_v9  ;;  %4569 = vmatpush.msra.mxu0 %v4476_v61 }
 0x300   : > { %4629 = vmatpush.msra.mxu3 %v4524_v0  ;;  %v4548_v24 = vld.sshfl [vmem:[#allocation1 + $0x10] sm:$0xff pattern:$0x73625140]  ;;  %v4546_v7 = vld.sshfl [vmem:[#allocation1] sm:$0xff pattern:$0x73625140]  ;;  %4733 = vmatpush.msrb.mxu2 %v4709_v34 }
 0x301   : > { %4589 = vmatpush.msra.mxu1 %v4492_v22  ;;  %4655 = vmatpush.msrb.mxu0 %v4650_v1  ;;  %v4549_v8 = vld.sshfl [vmem:[#allocation1 + $0x18] sm:$0xff pattern:$0x73625140]  ;;  %v4547_v10 = vld.sshfl [vmem:[#allocation1 + $0x8] sm:$0xff pattern:$0x73625140] }
 0x302   : > { %4610 = vmatmul.f32.vlgmr.msra.gmra.mxu2 %v4548_v24  ;;  %4570 = vmatmul.f32.vlgmr.msra.gmra.mxu0 %v4546_v7 }
 0x303   : > { %4656 = vmatpush.msrb.mxu0 %v4649_v5  ;;  %4630 = vmatmul.f32.vlgmr.msra.gmra.mxu3 %v4549_v8 }
 0x304   : > { %4590 = vmatmul.f32.vlgmr.msra.gmra.mxu1 %v4547_v10 }
 0x305   : > { %4657 = vmatpush.msrb.mxu0 %v4648_v23  ;;  %4700 = vmatpush.msrb.mxu1 %v4679_v20 }
 0x307   : > { %4658 = vmatpush.msrb.mxu0 %v4647_v6  ;;  %4701 = vmatpush.msrb.mxu1 %v4678_v25 }
 0x309   : > { %4659 = vmatpush.msrb.mxu0 %v4646_v28  ;;  %4702 = vmatpush.msrb.mxu1 %v4677_v21 }
 0x30b   : > { %4660 = vmatpush.msrb.mxu0 %v4645_v11  ;;  %4703 = vmatpush.msrb.mxu1 %v4676_v33 }
 0x30d   : > { %4661 = vmatpush.msrb.mxu0 %v4644_v12 }
 0x30f   : > { %4662 = vmatpush.msrb.mxu0 %v4643_v39 }
 0x311   : > { %4663 = vmatpush.msrb.mxu0 %v4642_v13 }
 0x313   : > { %4664 = vmatpush.msrb.mxu0 %v4641_v14 }
 0x315   : > { %4665 = vmatpush.msrb.mxu0 %v4640_v15 }
 0x317   : > { %4666 = vmatpush.msrb.mxu0 %v4639_v16 }
 0x319   : > { %4667 = vmatpush.msrb.mxu0 %v4638_v17 }
 0x31b   : > { %4668 = vmatpush.msrb.mxu0 %v4637_v18 }
 0x31d   : > { %4669 = vmatpush.msrb.mxu0 %v4636_v51 }
 0x31f   : > { %4670 = vmatpush.msrb.mxu0 %v4635_v19 }
 0x37f   : > { %v4571_v27 = vpop.f32.mrf.mxu0 }
 0x380   : > { %v4572_v41 = vadd.f32 %v7543_v26, %v4571_v27 }
 0x381   : > { %v4591_v29 = vpop.f32.mrf.mxu1 }
 0x382   : > { %v4592_v48 = vadd.f32 %v4591_v29, %v4572_v41 }
 0x385   : > { %v4611_v47 = vpop.f32.mrf.mxu2 }
 0x386   : > { %v4612_v50 = vadd.f32 %v4611_v47, %v4592_v48  ;;  %v4631_v30 = vpop.f32.mrf.mxu3 }
 0x388   : > { %v4632_v31 = vadd.f32 %v4631_v30, %v4612_v50 }
 0x38a   : > { %v4634_v32 = vmax.f32 %v4632_v31, 0.0 }
 0x38c   : > { %4671 = vmatmul.f32.vlgmr.msrb.gmra.mxu0 %v4634_v32 }
 0x409   : > { %v4672_v36 = vpop.f32.mrf.mxu0 }
 0x40a   : > { %v4673_v37 = vadd.f32 %v7544_v35, %v4672_v36 }
 0x40c   : > { %v4675_v38 = vmax.f32 %v4673_v37, 0.0 }
 0x40e   : > { %6906 = vmatmul.msk.f32.vlgmr.msrb.gmra.mxu1 %vm4684_vm3, %v4675_v38 }
 0x48b   : > { %v4705_v42 = vpop.f32.mrf.mxu1 }
 0x48c   : > { %v4706_v44 = vadd.f32 %v7545_v40, %v4705_v42 }
 0x48e   : > { %v4708_v45 = vmax.f32 %v4706_v44, 0.0 }
 0x490   : > { %6907 = vmatmul.msk.f32.vlgmr.msrb.gmra.mxu2 %vm4714_vm4, %v4708_v45 }
 0x513   : > { %v4735_v49 = vpop.f32.mrf.mxu2 }
 0x514   : > { %v4736_v62 = vadd.f32 %v7546_v46, %v4735_v49 }
 0x516   : > { %4739 = vst.msk [vmem:[%s9182_s11] sm:$0x3] %vm4738_vm5, %v4736_v62 }
 0x517 PF: > { %p26_p3 = scmp.ge.s32.totalorder %s7913_s23, 6   ;;  %s9191_s19 = smov %s7765_s20 }
 0x518   : > { %s9192_s20 = smov %s7769_s21  ;;  %s9193_s21 = smov %s7924_s14 }
 0x519   : > { %s9194_s22 = smov %s7913_s23  ;;  %28 = sbr.rel (!%p26_p3) target bundleno = 9 (0x9), region = 131 }
 0x51e   :  { %4751 = vsyncpa [#allocation5], 1 }
 0x51f   :  { %4753 = vsyncpa [#allocation5 + $0x1], 1 }
 0x520   :  { %4754 = vsyncpa [#allocation7], 1 }
 0x521   :  { %4755 = vsyncpa [#allocation10], 1 }
 0x522   :  { %4756 = vsyncpa [#allocation13], 1 }

</bundles_post_ra>
